<compile_context>
chip_gen: v5e
topology: v5e:2x2
jax: 0.10.0
libtpu: 0.0.40
codegen_flags: <defaults>
</compile_context>

<pallas_src>
import numpy as np
import jax
import jax.numpy as jnp
from jax.experimental import pallas as pl
from jax.experimental.pallas import tpu as pltpu


def _round8(n):
    return ((n + 7) // 8) * 8


# ----------------------- host-side slab layout & packing --------------------
def make_layout(D, H, T, n_layers):
    """Static row offsets of every parameter inside the packed slab."""
    layout = {"layers": [], "H": H, "T": T, "D": D}
    off = 0
    for l in range(n_layers):
        d_in = D if l == 0 else 2 * H
        dirs = []
        for _ in range(2):
            ent = {"wi": off, "d_in": d_in}
            off += _round8(d_in)
            ent["wh"] = off
            off += _round8(H)
            ent["b"] = off          # row b: merged input bias (3H); row b+1: bh_n (H)
            off += 8
            dirs.append(ent)
        layout["layers"].append(dirs)
    layout["whead"] = off           # (T, 2H): outer(w2, w1) duplicated over fwd/bwd
    off += _round8(T)
    layout["bias"] = off            # lane 0: b_out*sum(w2) + b_out2
    off += 8
    layout["rows"] = off
    layout["lanes"] = 3 * H
    return layout


def pack_params(params, T):
    """Pack GRU + head parameters into one lane-dense (rows, 3H) f32 slab."""
    H = params["gru"][0]["fwd"][1].shape[0]
    D = params["gru"][0]["fwd"][0].shape[0]
    L = len(params["gru"])
    layout = make_layout(D, H, T, L)
    slab = np.zeros((layout["rows"], layout["lanes"]), np.float32)
    for l, layer in enumerate(params["gru"]):
        for d, key in enumerate(("fwd", "bwd")):
            wi, wh, bi, bh = (np.asarray(a, np.float32) for a in layer[key])
            ent = layout["layers"][l][d]
            slab[ent["wi"]:ent["wi"] + wi.shape[0], :] = wi          # (d_in, 3H)
            slab[ent["wh"]:ent["wh"] + H, :] = wh                    # (H, 3H)
            b_in = bi.copy()
            b_in[:, :2 * H] += bh[:, :2 * H]                         # r,z: bi + bh
            slab[ent["b"], :] = b_in[0]
            slab[ent["b"] + 1, :H] = bh[0, 2 * H:]                   # n: bh_n
    w1 = np.asarray(params["w_out"], np.float32)[0]                  # (H,)
    w2 = np.asarray(params["w_out2"], np.float32)[0]                 # (T,)
    whead = np.outer(w2, w1)                                         # (T, H)
    slab[layout["whead"]:layout["whead"] + T, :H] = whead            # fwd half
    slab[layout["whead"]:layout["whead"] + T, H:2 * H] = whead       # bwd half
    bias_total = (float(np.asarray(params["b_out"])[0, 0]) * float(w2.sum())
                  + float(np.asarray(params["b_out2"])[0, 0]))
    slab[layout["bias"], 0] = bias_total
    return jnp.asarray(slab), layout


# ------------------------------ fused kernel --------------------------------
def _make_fused_kernel(B, T, D, H, n_layers, layout):
    G = 3 * H

    def kernel(x_ref, slab_ref, o_ref, lay_ref):
        # lay_ref: (B, T, 2H) VMEM scratch holding [fwd | bwd] hidden states of
        # the most recently finished GRU layer.
        x_flat = x_ref[...].reshape(B * T, D)     # free merge: T == sublane tile (8)

        for l in range(n_layers):
            d_in = D if l == 0 else 2 * H
            inp = x_flat if l == 0 else lay_ref[...].reshape(B * T, 2 * H)

            # --- h-independent, time-batched input projections (both dirs) ---
            gis, whs, bhns = [], [], []
            for d in range(2):
                ent = layout["layers"][l][d]
                wi = slab_ref[ent["wi"]:ent["wi"] + d_in, :]          # (d_in, 3H)
                wh = slab_ref[ent["wh"]:ent["wh"] + H, :]             # (H, 3H)
                brow = slab_ref[ent["b"]:ent["b"] + 2, :]             # (2, 3H)
                b_in = brow[0:1, :]                                   # (1, 3H)
                bh_n = brow[1:2, 0:H]                                 # (1, H)
                gi = jnp.dot(inp, wi, preferred_element_type=jnp.float32)
                gi = gi.reshape(B, T, G) + b_in                       # (B, T, 3H)
                gis.append(gi)
                whs.append(wh)
                bhns.append(bh_n)

            # --- serial recurrences: 1 MXU push + 1 sigmoid + 1 tanh / step ---
            for d in range(2):
                gi, wh, bh_n = gis[d], whs[d], bhns[d]
                reverse = d == 1
                lane_off = d * H
                h = jnp.zeros((B, H), jnp.float32)
                ts = range(T - 1, -1, -1) if reverse else range(T)
                for t in ts:                        # fully unrolled, static t
                    g = gi[:, t, :]                                   # (B, 3H)
                    gh = jnp.dot(h, wh, preferred_element_type=jnp.float32)
                    rz = jax.nn.sigmoid(g[:, :2 * H] + gh[:, :2 * H])
                    r = rz[:, :H]
                    z = rz[:, H:]
                    n = jnp.tanh(g[:, 2 * H:] + r * (gh[:, 2 * H:] + bh_n))
                    h = (1.0 - z) * n + z * h
                    lay_ref[:, t:t + 1, lane_off:lane_off + H] = h[:, None, :]
            # nn.GRU inter-layer dropout is identity at inference time.

        # --- head: score[b] = sum_{t,c} Whead[t,c]*hid[b,t,c] + bias_total ----
        whead = slab_ref[layout["whead"]:layout["whead"] + T, :][:, :2 * H]
        bias = slab_ref[layout["bias"]:layout["bias"] + 1, :][:, 0:1]     # (1, 1)
        hid = lay_ref[...]                                                # (B, T, 2H)
        prod = hid * whead[None, :, :]
        score = jnp.sum(jnp.sum(prod, axis=2), axis=1, keepdims=True)     # (B, 1)
        o_ref[...] = jax.nn.sigmoid(score + bias)

    return kernel


# ------------------------------- full forward -------------------------------
def discriminator_forward(poses, slab, layout):
    B, T, D = poses.shape
    H = layout["H"]
    n_layers = len(layout["layers"])
    kernel = _make_fused_kernel(B, T, D, H, n_layers, layout)
    vmem = pl.BlockSpec(memory_space=pltpu.MemorySpace.VMEM)
    return pl.pallas_call(
        kernel,
        out_shape=jax.ShapeDtypeStruct((B, 1), jnp.float32),
        in_specs=[vmem, vmem],
        out_specs=vmem,
        scratch_shapes=[pltpu.VMEM((B, T, 2 * H), jnp.float32)],
    )(poses.astype(jnp.float32), slab)


# --------------------------- plain-JAX reference ----------------------------
def discriminator_forward_ref(poses, params):
    x = jnp.transpose(poses, (1, 0, 2)).astype(jnp.float32)
    H = params["gru"][0]["fwd"][1].shape[0]

    def run_dir(x_tbd, wi, wh, bi, bh, reverse):
        xs = x_tbd[::-1] if reverse else x_tbd

        def step(h, xt):
            gi = xt @ wi + bi
            gh = h @ wh + bh
            r = jax.nn.sigmoid(gi[:, :H] + gh[:, :H])
            z = jax.nn.sigmoid(gi[:, H:2 * H] + gh[:, H:2 * H])
            n = jnp.tanh(gi[:, 2 * H:] + r * gh[:, 2 * H:])
            h_new = (1.0 - z) * n + z * h
            return h_new, h_new

        h0 = jnp.zeros((x_tbd.shape[1], H), jnp.float32)
        _, ys = jax.lax.scan(step, h0, xs)
        return ys[::-1] if reverse else ys

    n_layers = len(params["gru"])
    summed = None
    for l, layer in enumerate(params["gru"]):
        f = run_dir(x, *layer["fwd"], False)
        b = run_dir(x, *layer["bwd"], True)
        if l + 1 < n_layers:
            x = jnp.concatenate([f, b], axis=-1)
        else:
            summed = f + b
    hidden = jnp.transpose(summed, (1, 0, 2))                 # (B, T, H)
    s = jnp.einsum("bth,h->bt", hidden, params["w_out"][0]) + params["b_out"][0, 0]
    r = s @ params["w_out2"][0] + params["b_out2"][0, 0]
    return jax.nn.sigmoid(r)[:, None]


# -------------------------------- params init -------------------------------
def init_params(key, D, H, T, n_layers):
    params = {"gru": []}
    stdv = 1.0 / np.sqrt(H)
    for l in range(n_layers):
        d_in = D if l == 0 else 2 * H
        layer = {}
        for direction in ("fwd", "bwd"):
            key, k1, k2, k3, k4 = jax.random.split(key, 5)
            wi = jax.random.uniform(k1, (d_in, 3 * H), jnp.float32, -stdv, stdv)
            wh = jax.random.uniform(k2, (H, 3 * H), jnp.float32, -stdv, stdv)
            bi = jax.random.uniform(k3, (1, 3 * H), jnp.float32, -stdv, stdv)
            bh = jax.random.uniform(k4, (1, 3 * H), jnp.float32, -stdv, stdv)
            layer[direction] = (wi, wh, bi, bh)
        params["gru"].append(layer)
    key, k1, k2 = jax.random.split(key, 3)
    params["w_out"] = jax.random.normal(k1, (1, H), jnp.float32) * 0.01   # nn.Linear(H,1)
    params["b_out"] = jnp.zeros((1, 1), jnp.float32)
    params["w_out2"] = jax.random.normal(k2, (1, T), jnp.float32) * (1.0 / np.sqrt(T))
    params["b_out2"] = jnp.zeros((1, 1), jnp.float32)
    return params


if __name__ == "__main__":
    # args.hidden_size=32, args.n_layers=2, args.n_poses=8; input_size=6; batch=2
    B, T, D, H, L = 2, 8, 6, 32, 2
    key = jax.random.PRNGKey(0)
    kp, kx = jax.random.split(key)
    params = init_params(kp, D, H, T, L)
    slab, layout = pack_params(params, T)
    poses = jax.random.normal(kx, (B, T, D), jnp.float32)

    out = discriminator_forward(poses, slab, layout)
    out = jax.block_until_ready(out)

    ref = discriminator_forward_ref(poses, params)
    np.testing.assert_allclose(np.asarray(out), np.asarray(ref), rtol=1e-4, atol=1e-4)
    assert out.shape == (B, 1)
    print("KERNEL_OK")
</pallas_src>

<mosaic_0001>
module attributes {stable_mosaic.version = 11 : i64} {
  func.func @kernel(%arg0: memref<2x8x6xf32, #tpu.memory_space<vmem>>, %arg1: memref<320x96xf32, #tpu.memory_space<vmem>>, %arg2: memref<2x1xf32, #tpu.memory_space<vmem>>, %arg3: memref<2x8x64xf32, #tpu.memory_space<vmem>>) attributes {dimension_semantics = [], scalar_prefetch = 0 : i64, scratch_operands = 1 : i64, tpu.core_type = #tpu.core_type<tc>} {
    %c0 = arith.constant 0 : index
    %c0_0 = arith.constant 0 : index
    %c0_1 = arith.constant 0 : index
    %0 = vector.load %arg0[%c0, %c0_0, %c0_1] : memref<2x8x6xf32, #tpu.memory_space<vmem>>, vector<2x8x6xf32>
    %1 = vector.shape_cast %0 : vector<2x8x6xf32> to vector<16x6xf32>
    %c0_2 = arith.constant 0 : index
    %c0_3 = arith.constant 0 : index
    %2 = vector.load %arg1[%c0_2, %c0_3] : memref<320x96xf32, #tpu.memory_space<vmem>>, vector<6x96xf32>
    %c8 = arith.constant 8 : index
    %c0_4 = arith.constant 0 : index
    %3 = vector.load %arg1[%c8, %c0_4] : memref<320x96xf32, #tpu.memory_space<vmem>>, vector<32x96xf32>
    %c40 = arith.constant 40 : index
    %c0_5 = arith.constant 0 : index
    %4 = vector.load %arg1[%c40, %c0_5] : memref<320x96xf32, #tpu.memory_space<vmem>>, vector<2x96xf32>
    %5 = vector.extract_strided_slice %4 {offsets = [0, 0], sizes = [1, 96], strides = [1, 1]} : vector<2x96xf32> to vector<1x96xf32>
    %6 = vector.extract_strided_slice %4 {offsets = [1, 0], sizes = [1, 32], strides = [1, 1]} : vector<2x96xf32> to vector<1x32xf32>
    %cst = arith.constant dense<0.000000e+00> : vector<16x96xf32>
    %7 = tpu.matmul %1, %2, %cst {dimension_numbers = #tpu.dot_dimension_numbers<[1], [0], [0], [1], [0, 0, 1, 1], [], []>} : vector<16x6xf32>, vector<6x96xf32>, vector<16x96xf32> -> vector<16x96xf32>
    %8 = vector.shape_cast %7 : vector<16x96xf32> to vector<2x8x96xf32>
    %9 = vector.shape_cast %5 : vector<1x96xf32> to vector<1x1x96xf32>
    %10 = vector.broadcast %9 : vector<1x1x96xf32> to vector<2x8x96xf32>
    %11 = arith.addf %8, %10 : vector<2x8x96xf32>
    %c48 = arith.constant 48 : index
    %c0_6 = arith.constant 0 : index
    %12 = vector.load %arg1[%c48, %c0_6] : memref<320x96xf32, #tpu.memory_space<vmem>>, vector<6x96xf32>
    %c56 = arith.constant 56 : index
    %c0_7 = arith.constant 0 : index
    %13 = vector.load %arg1[%c56, %c0_7] : memref<320x96xf32, #tpu.memory_space<vmem>>, vector<32x96xf32>
    %c88 = arith.constant 88 : index
    %c0_8 = arith.constant 0 : index
    %14 = vector.load %arg1[%c88, %c0_8] : memref<320x96xf32, #tpu.memory_space<vmem>>, vector<2x96xf32>
    %15 = vector.extract_strided_slice %14 {offsets = [0, 0], sizes = [1, 96], strides = [1, 1]} : vector<2x96xf32> to vector<1x96xf32>
    %16 = vector.extract_strided_slice %14 {offsets = [1, 0], sizes = [1, 32], strides = [1, 1]} : vector<2x96xf32> to vector<1x32xf32>
    %cst_9 = arith.constant dense<0.000000e+00> : vector<16x96xf32>
    %17 = tpu.matmul %1, %12, %cst_9 {dimension_numbers = #tpu.dot_dimension_numbers<[1], [0], [0], [1], [0, 0, 1, 1], [], []>} : vector<16x6xf32>, vector<6x96xf32>, vector<16x96xf32> -> vector<16x96xf32>
    %18 = vector.shape_cast %17 : vector<16x96xf32> to vector<2x8x96xf32>
    %19 = vector.shape_cast %15 : vector<1x96xf32> to vector<1x1x96xf32>
    %20 = vector.broadcast %19 : vector<1x1x96xf32> to vector<2x8x96xf32>
    %21 = arith.addf %18, %20 : vector<2x8x96xf32>
    %cst_10 = arith.constant 0.000000e+00 : f32
    %22 = vector.broadcast %cst_10 : f32 to vector<2x32xf32>
    %23 = vector.extract_strided_slice %11 {offsets = [0, 0, 0], sizes = [2, 1, 96], strides = [1, 1, 1]} : vector<2x8x96xf32> to vector<2x1x96xf32>
    %24 = vector.shape_cast %23 : vector<2x1x96xf32> to vector<2x96xf32>
    %cst_11 = arith.constant dense<0.000000e+00> : vector<2x96xf32>
    %25 = tpu.matmul %22, %3, %cst_11 {dimension_numbers = #tpu.dot_dimension_numbers<[1], [0], [0], [1], [0, 0, 1, 1], [], []>} : vector<2x32xf32>, vector<32x96xf32>, vector<2x96xf32> -> vector<2x96xf32>
    %26 = vector.extract_strided_slice %24 {offsets = [0, 0], sizes = [2, 64], strides = [1, 1]} : vector<2x96xf32> to vector<2x64xf32>
    %27 = vector.extract_strided_slice %25 {offsets = [0, 0], sizes = [2, 64], strides = [1, 1]} : vector<2x96xf32> to vector<2x64xf32>
    %28 = arith.addf %26, %27 : vector<2x64xf32>
    %29 = arith.negf %28 : vector<2x64xf32>
    %30 = math.exp %29 : vector<2x64xf32>
    %cst_12 = arith.constant 1.000000e+00 : f32
    %31 = vector.broadcast %cst_12 : f32 to vector<2x64xf32>
    %32 = arith.addf %31, %30 : vector<2x64xf32>
    %33 = arith.divf %31, %32 : vector<2x64xf32>
    %34 = vector.extract_strided_slice %33 {offsets = [0, 0], sizes = [2, 32], strides = [1, 1]} : vector<2x64xf32> to vector<2x32xf32>
    %35 = vector.extract_strided_slice %33 {offsets = [0, 32], sizes = [2, 32], strides = [1, 1]} : vector<2x64xf32> to vector<2x32xf32>
    %36 = vector.extract_strided_slice %24 {offsets = [0, 64], sizes = [2, 32], strides = [1, 1]} : vector<2x96xf32> to vector<2x32xf32>
    %37 = vector.extract_strided_slice %25 {offsets = [0, 64], sizes = [2, 32], strides = [1, 1]} : vector<2x96xf32> to vector<2x32xf32>
    %38 = vector.broadcast %6 : vector<1x32xf32> to vector<2x32xf32>
    %39 = arith.addf %37, %38 : vector<2x32xf32>
    %40 = arith.mulf %34, %39 : vector<2x32xf32>
    %41 = arith.addf %36, %40 : vector<2x32xf32>
    %42 = math.tanh %41 : vector<2x32xf32>
    %cst_13 = arith.constant 1.000000e+00 : f32
    %43 = vector.broadcast %cst_13 : f32 to vector<2x32xf32>
    %44 = arith.subf %43, %35 : vector<2x32xf32>
    %45 = arith.mulf %44, %42 : vector<2x32xf32>
    %46 = arith.mulf %35, %22 : vector<2x32xf32>
    %47 = arith.addf %45, %46 : vector<2x32xf32>
    %48 = vector.shape_cast %47 : vector<2x32xf32> to vector<2x1x32xf32>
    %c0_14 = arith.constant 0 : index
    %c0_15 = arith.constant 0 : index
    %c0_16 = arith.constant 0 : index
    %49 = vector.load %arg3[%c0_14, %c0_15, %c0_16] : memref<2x8x64xf32, #tpu.memory_space<vmem>>, vector<2x1x32xf32>
    tpu.vector_store %arg3[%c0_14, %c0_15, %c0_16], %48 {strides = array<i32>} : memref<2x8x64xf32, #tpu.memory_space<vmem>>, vector<2x1x32xf32>,
    %50 = vector.extract_strided_slice %11 {offsets = [0, 1, 0], sizes = [2, 1, 96], strides = [1, 1, 1]} : vector<2x8x96xf32> to vector<2x1x96xf32>
    %51 = vector.shape_cast %50 : vector<2x1x96xf32> to vector<2x96xf32>
    %cst_17 = arith.constant dense<0.000000e+00> : vector<2x96xf32>
    %52 = tpu.matmul %47, %3, %cst_17 {dimension_numbers = #tpu.dot_dimension_numbers<[1], [0], [0], [1], [0, 0, 1, 1], [], []>} : vector<2x32xf32>, vector<32x96xf32>, vector<2x96xf32> -> vector<2x96xf32>
    %53 = vector.extract_strided_slice %51 {offsets = [0, 0], sizes = [2, 64], strides = [1, 1]} : vector<2x96xf32> to vector<2x64xf32>
    %54 = vector.extract_strided_slice %52 {offsets = [0, 0], sizes = [2, 64], strides = [1, 1]} : vector<2x96xf32> to vector<2x64xf32>
    %55 = arith.addf %53, %54 : vector<2x64xf32>
    %56 = arith.negf %55 : vector<2x64xf32>
    %57 = math.exp %56 : vector<2x64xf32>
    %cst_18 = arith.constant 1.000000e+00 : f32
    %58 = vector.broadcast %cst_18 : f32 to vector<2x64xf32>
    %59 = arith.addf %58, %57 : vector<2x64xf32>
    %60 = arith.divf %58, %59 : vector<2x64xf32>
    %61 = vector.extract_strided_slice %60 {offsets = [0, 0], sizes = [2, 32], strides = [1, 1]} : vector<2x64xf32> to vector<2x32xf32>
    %62 = vector.extract_strided_slice %60 {offsets = [0, 32], sizes = [2, 32], strides = [1, 1]} : vector<2x64xf32> to vector<2x32xf32>
    %63 = vector.extract_strided_slice %51 {offsets = [0, 64], sizes = [2, 32], strides = [1, 1]} : vector<2x96xf32> to vector<2x32xf32>
    %64 = vector.extract_strided_slice %52 {offsets = [0, 64], sizes = [2, 32], strides = [1, 1]} : vector<2x96xf32> to vector<2x32xf32>
    %65 = vector.broadcast %6 : vector<1x32xf32> to vector<2x32xf32>
    %66 = arith.addf %64, %65 : vector<2x32xf32>
    %67 = arith.mulf %61, %66 : vector<2x32xf32>
    %68 = arith.addf %63, %67 : vector<2x32xf32>
    %69 = math.tanh %68 : vector<2x32xf32>
    %cst_19 = arith.constant 1.000000e+00 : f32
    %70 = vector.broadcast %cst_19 : f32 to vector<2x32xf32>
    %71 = arith.subf %70, %62 : vector<2x32xf32>
    %72 = arith.mulf %71, %69 : vector<2x32xf32>
    %73 = arith.mulf %62, %47 : vector<2x32xf32>
    %74 = arith.addf %72, %73 : vector<2x32xf32>
    %75 = vector.shape_cast %74 : vector<2x32xf32> to vector<2x1x32xf32>
    %c0_20 = arith.constant 0 : index
    %c1 = arith.constant 1 : index
    %c0_21 = arith.constant 0 : index
    %76 = vector.load %arg3[%c0_20, %c1, %c0_21] : memref<2x8x64xf32, #tpu.memory_space<vmem>>, vector<2x1x32xf32>
    tpu.vector_store %arg3[%c0_20, %c1, %c0_21], %75 {strides = array<i32>} : memref<2x8x64xf32, #tpu.memory_space<vmem>>, vector<2x1x32xf32>,
    %77 = vector.extract_strided_slice %11 {offsets = [0, 2, 0], sizes = [2, 1, 96], strides = [1, 1, 1]} : vector<2x8x96xf32> to vector<2x1x96xf32>
    %78 = vector.shape_cast %77 : vector<2x1x96xf32> to vector<2x96xf32>
    %cst_22 = arith.constant dense<0.000000e+00> : vector<2x96xf32>
    %79 = tpu.matmul %74, %3, %cst_22 {dimension_numbers = #tpu.dot_dimension_numbers<[1], [0], [0], [1], [0, 0, 1, 1], [], []>} : vector<2x32xf32>, vector<32x96xf32>, vector<2x96xf32> -> vector<2x96xf32>
    %80 = vector.extract_strided_slice %78 {offsets = [0, 0], sizes = [2, 64], strides = [1, 1]} : vector<2x96xf32> to vector<2x64xf32>
    %81 = vector.extract_strided_slice %79 {offsets = [0, 0], sizes = [2, 64], strides = [1, 1]} : vector<2x96xf32> to vector<2x64xf32>
    %82 = arith.addf %80, %81 : vector<2x64xf32>
    %83 = arith.negf %82 : vector<2x64xf32>
    %84 = math.exp %83 : vector<2x64xf32>
    %cst_23 = arith.constant 1.000000e+00 : f32
    %85 = vector.broadcast %cst_23 : f32 to vector<2x64xf32>
    %86 = arith.addf %85, %84 : vector<2x64xf32>
    %87 = arith.divf %85, %86 : vector<2x64xf32>
    %88 = vector.extract_strided_slice %87 {offsets = [0, 0], sizes = [2, 32], strides = [1, 1]} : vector<2x64xf32> to vector<2x32xf32>
    %89 = vector.extract_strided_slice %87 {offsets = [0, 32], sizes = [2, 32], strides = [1, 1]} : vector<2x64xf32> to vector<2x32xf32>
    %90 = vector.extract_strided_slice %78 {offsets = [0, 64], sizes = [2, 32], strides = [1, 1]} : vector<2x96xf32> to vector<2x32xf32>
    %91 = vector.extract_strided_slice %79 {offsets = [0, 64], sizes = [2, 32], strides = [1, 1]} : vector<2x96xf32> to vector<2x32xf32>
    %92 = vector.broadcast %6 : vector<1x32xf32> to vector<2x32xf32>
    %93 = arith.addf %91, %92 : vector<2x32xf32>
    %94 = arith.mulf %88, %93 : vector<2x32xf32>
    %95 = arith.addf %90, %94 : vector<2x32xf32>
    %96 = math.tanh %95 : vector<2x32xf32>
    %cst_24 = arith.constant 1.000000e+00 : f32
    %97 = vector.broadcast %cst_24 : f32 to vector<2x32xf32>
    %98 = arith.subf %97, %89 : vector<2x32xf32>
    %99 = arith.mulf %98, %96 : vector<2x32xf32>
    %100 = arith.mulf %89, %74 : vector<2x32xf32>
    %101 = arith.addf %99, %100 : vector<2x32xf32>
    %102 = vector.shape_cast %101 : vector<2x32xf32> to vector<2x1x32xf32>
    %c0_25 = arith.constant 0 : index
    %c2 = arith.constant 2 : index
    %c0_26 = arith.constant 0 : index
    %103 = vector.load %arg3[%c0_25, %c2, %c0_26] : memref<2x8x64xf32, #tpu.memory_space<vmem>>, vector<2x1x32xf32>
    tpu.vector_store %arg3[%c0_25, %c2, %c0_26], %102 {strides = array<i32>} : memref<2x8x64xf32, #tpu.memory_space<vmem>>, vector<2x1x32xf32>,
    %104 = vector.extract_strided_slice %11 {offsets = [0, 3, 0], sizes = [2, 1, 96], strides = [1, 1, 1]} : vector<2x8x96xf32> to vector<2x1x96xf32>
    %105 = vector.shape_cast %104 : vector<2x1x96xf32> to vector<2x96xf32>
    %cst_27 = arith.constant dense<0.000000e+00> : vector<2x96xf32>
    %106 = tpu.matmul %101, %3, %cst_27 {dimension_numbers = #tpu.dot_dimension_numbers<[1], [0], [0], [1], [0, 0, 1, 1], [], []>} : vector<2x32xf32>, vector<32x96xf32>, vector<2x96xf32> -> vector<2x96xf32>
    %107 = vector.extract_strided_slice %105 {offsets = [0, 0], sizes = [2, 64], strides = [1, 1]} : vector<2x96xf32> to vector<2x64xf32>
    %108 = vector.extract_strided_slice %106 {offsets = [0, 0], sizes = [2, 64], strides = [1, 1]} : vector<2x96xf32> to vector<2x64xf32>
    %109 = arith.addf %107, %108 : vector<2x64xf32>
    %110 = arith.negf %109 : vector<2x64xf32>
    %111 = math.exp %110 : vector<2x64xf32>
    %cst_28 = arith.constant 1.000000e+00 : f32
    %112 = vector.broadcast %cst_28 : f32 to vector<2x64xf32>
    %113 = arith.addf %112, %111 : vector<2x64xf32>
    %114 = arith.divf %112, %113 : vector<2x64xf32>
    %115 = vector.extract_strided_slice %114 {offsets = [0, 0], sizes = [2, 32], strides = [1, 1]} : vector<2x64xf32> to vector<2x32xf32>
    %116 = vector.extract_strided_slice %114 {offsets = [0, 32], sizes = [2, 32], strides = [1, 1]} : vector<2x64xf32> to vector<2x32xf32>
    %117 = vector.extract_strided_slice %105 {offsets = [0, 64], sizes = [2, 32], strides = [1, 1]} : vector<2x96xf32> to vector<2x32xf32>
    %118 = vector.extract_strided_slice %106 {offsets = [0, 64], sizes = [2, 32], strides = [1, 1]} : vector<2x96xf32> to vector<2x32xf32>
    %119 = vector.broadcast %6 : vector<1x32xf32> to vector<2x32xf32>
    %120 = arith.addf %118, %119 : vector<2x32xf32>
    %121 = arith.mulf %115, %120 : vector<2x32xf32>
    %122 = arith.addf %117, %121 : vector<2x32xf32>
    %123 = math.tanh %122 : vector<2x32xf32>
    %cst_29 = arith.constant 1.000000e+00 : f32
    %124 = vector.broadcast %cst_29 : f32 to vector<2x32xf32>
    %125 = arith.subf %124, %116 : vector<2x32xf32>
    %126 = arith.mulf %125, %123 : vector<2x32xf32>
    %127 = arith.mulf %116, %101 : vector<2x32xf32>
    %128 = arith.addf %126, %127 : vector<2x32xf32>
    %129 = vector.shape_cast %128 : vector<2x32xf32> to vector<2x1x32xf32>
    %c0_30 = arith.constant 0 : index
    %c3 = arith.constant 3 : index
    %c0_31 = arith.constant 0 : index
    %130 = vector.load %arg3[%c0_30, %c3, %c0_31] : memref<2x8x64xf32, #tpu.memory_space<vmem>>, vector<2x1x32xf32>
    tpu.vector_store %arg3[%c0_30, %c3, %c0_31], %129 {strides = array<i32>} : memref<2x8x64xf32, #tpu.memory_space<vmem>>, vector<2x1x32xf32>,
    %131 = vector.extract_strided_slice %11 {offsets = [0, 4, 0], sizes = [2, 1, 96], strides = [1, 1, 1]} : vector<2x8x96xf32> to vector<2x1x96xf32>
    %132 = vector.shape_cast %131 : vector<2x1x96xf32> to vector<2x96xf32>
    %cst_32 = arith.constant dense<0.000000e+00> : vector<2x96xf32>
    %133 = tpu.matmul %128, %3, %cst_32 {dimension_numbers = #tpu.dot_dimension_numbers<[1], [0], [0], [1], [0, 0, 1, 1], [], []>} : vector<2x32xf32>, vector<32x96xf32>, vector<2x96xf32> -> vector<2x96xf32>
    %134 = vector.extract_strided_slice %132 {offsets = [0, 0], sizes = [2, 64], strides = [1, 1]} : vector<2x96xf32> to vector<2x64xf32>
    %135 = vector.extract_strided_slice %133 {offsets = [0, 0], sizes = [2, 64], strides = [1, 1]} : vector<2x96xf32> to vector<2x64xf32>
    %136 = arith.addf %134, %135 : vector<2x64xf32>
    %137 = arith.negf %136 : vector<2x64xf32>
    %138 = math.exp %137 : vector<2x64xf32>
    %cst_33 = arith.constant 1.000000e+00 : f32
    %139 = vector.broadcast %cst_33 : f32 to vector<2x64xf32>
    %140 = arith.addf %139, %138 : vector<2x64xf32>
    %141 = arith.divf %139, %140 : vector<2x64xf32>
    %142 = vector.extract_strided_slice %141 {offsets = [0, 0], sizes = [2, 32], strides = [1, 1]} : vector<2x64xf32> to vector<2x32xf32>
    %143 = vector.extract_strided_slice %141 {offsets = [0, 32], sizes = [2, 32], strides = [1, 1]} : vector<2x64xf32> to vector<2x32xf32>
    %144 = vector.extract_strided_slice %132 {offsets = [0, 64], sizes = [2, 32], strides = [1, 1]} : vector<2x96xf32> to vector<2x32xf32>
    %145 = vector.extract_strided_slice %133 {offsets = [0, 64], sizes = [2, 32], strides = [1, 1]} : vector<2x96xf32> to vector<2x32xf32>
    %146 = vector.broadcast %6 : vector<1x32xf32> to vector<2x32xf32>
    %147 = arith.addf %145, %146 : vector<2x32xf32>
    %148 = arith.mulf %142, %147 : vector<2x32xf32>
    %149 = arith.addf %144, %148 : vector<2x32xf32>
    %150 = math.tanh %149 : vector<2x32xf32>
    %cst_34 = arith.constant 1.000000e+00 : f32
    %151 = vector.broadcast %cst_34 : f32 to vector<2x32xf32>
    %152 = arith.subf %151, %143 : vector<2x32xf32>
    %153 = arith.mulf %152, %150 : vector<2x32xf32>
    %154 = arith.mulf %143, %128 : vector<2x32xf32>
    %155 = arith.addf %153, %154 : vector<2x32xf32>
    %156 = vector.shape_cast %155 : vector<2x32xf32> to vector<2x1x32xf32>
    %c0_35 = arith.constant 0 : index
    %c4 = arith.constant 4 : index
    %c0_36 = arith.constant 0 : index
    %157 = vector.load %arg3[%c0_35, %c4, %c0_36] : memref<2x8x64xf32, #tpu.memory_space<vmem>>, vector<2x1x32xf32>
    tpu.vector_store %arg3[%c0_35, %c4, %c0_36], %156 {strides = array<i32>} : memref<2x8x64xf32, #tpu.memory_space<vmem>>, vector<2x1x32xf32>,
    %158 = vector.extract_strided_slice %11 {offsets = [0, 5, 0], sizes = [2, 1, 96], strides = [1, 1, 1]} : vector<2x8x96xf32> to vector<2x1x96xf32>
    %159 = vector.shape_cast %158 : vector<2x1x96xf32> to vector<2x96xf32>
    %cst_37 = arith.constant dense<0.000000e+00> : vector<2x96xf32>
    %160 = tpu.matmul %155, %3, %cst_37 {dimension_numbers = #tpu.dot_dimension_numbers<[1], [0], [0], [1], [0, 0, 1, 1], [], []>} : vector<2x32xf32>, vector<32x96xf32>, vector<2x96xf32> -> vector<2x96xf32>
    %161 = vector.extract_strided_slice %159 {offsets = [0, 0], sizes = [2, 64], strides = [1, 1]} : vector<2x96xf32> to vector<2x64xf32>
    %162 = vector.extract_strided_slice %160 {offsets = [0, 0], sizes = [2, 64], strides = [1, 1]} : vector<2x96xf32> to vector<2x64xf32>
    %163 = arith.addf %161, %162 : vector<2x64xf32>
    %164 = arith.negf %163 : vector<2x64xf32>
    %165 = math.exp %164 : vector<2x64xf32>
    %cst_38 = arith.constant 1.000000e+00 : f32
    %166 = vector.broadcast %cst_38 : f32 to vector<2x64xf32>
    %167 = arith.addf %166, %165 : vector<2x64xf32>
    %168 = arith.divf %166, %167 : vector<2x64xf32>
    %169 = vector.extract_strided_slice %168 {offsets = [0, 0], sizes = [2, 32], strides = [1, 1]} : vector<2x64xf32> to vector<2x32xf32>
    %170 = vector.extract_strided_slice %168 {offsets = [0, 32], sizes = [2, 32], strides = [1, 1]} : vector<2x64xf32> to vector<2x32xf32>
    %171 = vector.extract_strided_slice %159 {offsets = [0, 64], sizes = [2, 32], strides = [1, 1]} : vector<2x96xf32> to vector<2x32xf32>
    %172 = vector.extract_strided_slice %160 {offsets = [0, 64], sizes = [2, 32], strides = [1, 1]} : vector<2x96xf32> to vector<2x32xf32>
    %173 = vector.broadcast %6 : vector<1x32xf32> to vector<2x32xf32>
    %174 = arith.addf %172, %173 : vector<2x32xf32>
    %175 = arith.mulf %169, %174 : vector<2x32xf32>
    %176 = arith.addf %171, %175 : vector<2x32xf32>
    %177 = math.tanh %176 : vector<2x32xf32>
    %cst_39 = arith.constant 1.000000e+00 : f32
    %178 = vector.broadcast %cst_39 : f32 to vector<2x32xf32>
    %179 = arith.subf %178, %170 : vector<2x32xf32>
    %180 = arith.mulf %179, %177 : vector<2x32xf32>
    %181 = arith.mulf %170, %155 : vector<2x32xf32>
    %182 = arith.addf %180, %181 : vector<2x32xf32>
    %183 = vector.shape_cast %182 : vector<2x32xf32> to vector<2x1x32xf32>
    %c0_40 = arith.constant 0 : index
    %c5 = arith.constant 5 : index
    %c0_41 = arith.constant 0 : index
    %184 = vector.load %arg3[%c0_40, %c5, %c0_41] : memref<2x8x64xf32, #tpu.memory_space<vmem>>, vector<2x1x32xf32>
    tpu.vector_store %arg3[%c0_40, %c5, %c0_41], %183 {strides = array<i32>} : memref<2x8x64xf32, #tpu.memory_space<vmem>>, vector<2x1x32xf32>,
    %185 = vector.extract_strided_slice %11 {offsets = [0, 6, 0], sizes = [2, 1, 96], strides = [1, 1, 1]} : vector<2x8x96xf32> to vector<2x1x96xf32>
    %186 = vector.shape_cast %185 : vector<2x1x96xf32> to vector<2x96xf32>
    %cst_42 = arith.constant dense<0.000000e+00> : vector<2x96xf32>
    %187 = tpu.matmul %182, %3, %cst_42 {dimension_numbers = #tpu.dot_dimension_numbers<[1], [0], [0], [1], [0, 0, 1, 1], [], []>} : vector<2x32xf32>, vector<32x96xf32>, vector<2x96xf32> -> vector<2x96xf32>
    %188 = vector.extract_strided_slice %186 {offsets = [0, 0], sizes = [2, 64], strides = [1, 1]} : vector<2x96xf32> to vector<2x64xf32>
    %189 = vector.extract_strided_slice %187 {offsets = [0, 0], sizes = [2, 64], strides = [1, 1]} : vector<2x96xf32> to vector<2x64xf32>
    %190 = arith.addf %188, %189 : vector<2x64xf32>
    %191 = arith.negf %190 : vector<2x64xf32>
    %192 = math.exp %191 : vector<2x64xf32>
    %cst_43 = arith.constant 1.000000e+00 : f32
    %193 = vector.broadcast %cst_43 : f32 to vector<2x64xf32>
    %194 = arith.addf %193, %192 : vector<2x64xf32>
    %195 = arith.divf %193, %194 : vector<2x64xf32>
    %196 = vector.extract_strided_slice %195 {offsets = [0, 0], sizes = [2, 32], strides = [1, 1]} : vector<2x64xf32> to vector<2x32xf32>
    %197 = vector.extract_strided_slice %195 {offsets = [0, 32], sizes = [2, 32], strides = [1, 1]} : vector<2x64xf32> to vector<2x32xf32>
    %198 = vector.extract_strided_slice %186 {offsets = [0, 64], sizes = [2, 32], strides = [1, 1]} : vector<2x96xf32> to vector<2x32xf32>
    %199 = vector.extract_strided_slice %187 {offsets = [0, 64], sizes = [2, 32], strides = [1, 1]} : vector<2x96xf32> to vector<2x32xf32>
    %200 = vector.broadcast %6 : vector<1x32xf32> to vector<2x32xf32>
    %201 = arith.addf %199, %200 : vector<2x32xf32>
    %202 = arith.mulf %196, %201 : vector<2x32xf32>
    %203 = arith.addf %198, %202 : vector<2x32xf32>
    %204 = math.tanh %203 : vector<2x32xf32>
    %cst_44 = arith.constant 1.000000e+00 : f32
    %205 = vector.broadcast %cst_44 : f32 to vector<2x32xf32>
    %206 = arith.subf %205, %197 : vector<2x32xf32>
    %207 = arith.mulf %206, %204 : vector<2x32xf32>
    %208 = arith.mulf %197, %182 : vector<2x32xf32>
    %209 = arith.addf %207, %208 : vector<2x32xf32>
    %210 = vector.shape_cast %209 : vector<2x32xf32> to vector<2x1x32xf32>
    %c0_45 = arith.constant 0 : index
    %c6 = arith.constant 6 : index
    %c0_46 = arith.constant 0 : index
    %211 = vector.load %arg3[%c0_45, %c6, %c0_46] : memref<2x8x64xf32, #tpu.memory_space<vmem>>, vector<2x1x32xf32>
    tpu.vector_store %arg3[%c0_45, %c6, %c0_46], %210 {strides = array<i32>} : memref<2x8x64xf32, #tpu.memory_space<vmem>>, vector<2x1x32xf32>,
    %212 = vector.extract_strided_slice %11 {offsets = [0, 7, 0], sizes = [2, 1, 96], strides = [1, 1, 1]} : vector<2x8x96xf32> to vector<2x1x96xf32>
    %213 = vector.shape_cast %212 : vector<2x1x96xf32> to vector<2x96xf32>
    %cst_47 = arith.constant dense<0.000000e+00> : vector<2x96xf32>
    %214 = tpu.matmul %209, %3, %cst_47 {dimension_numbers = #tpu.dot_dimension_numbers<[1], [0], [0], [1], [0, 0, 1, 1], [], []>} : vector<2x32xf32>, vector<32x96xf32>, vector<2x96xf32> -> vector<2x96xf32>
    %215 = vector.extract_strided_slice %213 {offsets = [0, 0], sizes = [2, 64], strides = [1, 1]} : vector<2x96xf32> to vector<2x64xf32>
    %216 = vector.extract_strided_slice %214 {offsets = [0, 0], sizes = [2, 64], strides = [1, 1]} : vector<2x96xf32> to vector<2x64xf32>
    %217 = arith.addf %215, %216 : vector<2x64xf32>
    %218 = arith.negf %217 : vector<2x64xf32>
    %219 = math.exp %218 : vector<2x64xf32>
    %cst_48 = arith.constant 1.000000e+00 : f32
    %220 = vector.broadcast %cst_48 : f32 to vector<2x64xf32>
    %221 = arith.addf %220, %219 : vector<2x64xf32>
    %222 = arith.divf %220, %221 : vector<2x64xf32>
    %223 = vector.extract_strided_slice %222 {offsets = [0, 0], sizes = [2, 32], strides = [1, 1]} : vector<2x64xf32> to vector<2x32xf32>
    %224 = vector.extract_strided_slice %222 {offsets = [0, 32], sizes = [2, 32], strides = [1, 1]} : vector<2x64xf32> to vector<2x32xf32>
    %225 = vector.extract_strided_slice %213 {offsets = [0, 64], sizes = [2, 32], strides = [1, 1]} : vector<2x96xf32> to vector<2x32xf32>
    %226 = vector.extract_strided_slice %214 {offsets = [0, 64], sizes = [2, 32], strides = [1, 1]} : vector<2x96xf32> to vector<2x32xf32>
    %227 = vector.broadcast %6 : vector<1x32xf32> to vector<2x32xf32>
    %228 = arith.addf %226, %227 : vector<2x32xf32>
    %229 = arith.mulf %223, %228 : vector<2x32xf32>
    %230 = arith.addf %225, %229 : vector<2x32xf32>
    %231 = math.tanh %230 : vector<2x32xf32>
    %cst_49 = arith.constant 1.000000e+00 : f32
    %232 = vector.broadcast %cst_49 : f32 to vector<2x32xf32>
    %233 = arith.subf %232, %224 : vector<2x32xf32>
    %234 = arith.mulf %233, %231 : vector<2x32xf32>
    %235 = arith.mulf %224, %209 : vector<2x32xf32>
    %236 = arith.addf %234, %235 : vector<2x32xf32>
    %237 = vector.shape_cast %236 : vector<2x32xf32> to vector<2x1x32xf32>
    %c0_50 = arith.constant 0 : index
    %c7 = arith.constant 7 : index
    %c0_51 = arith.constant 0 : index
    %238 = vector.load %arg3[%c0_50, %c7, %c0_51] : memref<2x8x64xf32, #tpu.memory_space<vmem>>, vector<2x1x32xf32>
    tpu.vector_store %arg3[%c0_50, %c7, %c0_51], %237 {strides = array<i32>} : memref<2x8x64xf32, #tpu.memory_space<vmem>>, vector<2x1x32xf32>,
    %cst_52 = arith.constant 0.000000e+00 : f32
    %239 = vector.broadcast %cst_52 : f32 to vector<2x32xf32>
    %240 = vector.extract_strided_slice %21 {offsets = [0, 7, 0], sizes = [2, 1, 96], strides = [1, 1, 1]} : vector<2x8x96xf32> to vector<2x1x96xf32>
    %241 = vector.shape_cast %240 : vector<2x1x96xf32> to vector<2x96xf32>
    %cst_53 = arith.constant dense<0.000000e+00> : vector<2x96xf32>
    %242 = tpu.matmul %239, %13, %cst_53 {dimension_numbers = #tpu.dot_dimension_numbers<[1], [0], [0], [1], [0, 0, 1, 1], [], []>} : vector<2x32xf32>, vector<32x96xf32>, vector<2x96xf32> -> vector<2x96xf32>
    %243 = vector.extract_strided_slice %241 {offsets = [0, 0], sizes = [2, 64], strides = [1, 1]} : vector<2x96xf32> to vector<2x64xf32>
    %244 = vector.extract_strided_slice %242 {offsets = [0, 0], sizes = [2, 64], strides = [1, 1]} : vector<2x96xf32> to vector<2x64xf32>
    %245 = arith.addf %243, %244 : vector<2x64xf32>
    %246 = arith.negf %245 : vector<2x64xf32>
    %247 = math.exp %246 : vector<2x64xf32>
    %cst_54 = arith.constant 1.000000e+00 : f32
    %248 = vector.broadcast %cst_54 : f32 to vector<2x64xf32>
    %249 = arith.addf %248, %247 : vector<2x64xf32>
    %250 = arith.divf %248, %249 : vector<2x64xf32>
    %251 = vector.extract_strided_slice %250 {offsets = [0, 0], sizes = [2, 32], strides = [1, 1]} : vector<2x64xf32> to vector<2x32xf32>
    %252 = vector.extract_strided_slice %250 {offsets = [0, 32], sizes = [2, 32], strides = [1, 1]} : vector<2x64xf32> to vector<2x32xf32>
    %253 = vector.extract_strided_slice %241 {offsets = [0, 64], sizes = [2, 32], strides = [1, 1]} : vector<2x96xf32> to vector<2x32xf32>
    %254 = vector.extract_strided_slice %242 {offsets = [0, 64], sizes = [2, 32], strides = [1, 1]} : vector<2x96xf32> to vector<2x32xf32>
    %255 = vector.broadcast %16 : vector<1x32xf32> to vector<2x32xf32>
    %256 = arith.addf %254, %255 : vector<2x32xf32>
    %257 = arith.mulf %251, %256 : vector<2x32xf32>
    %258 = arith.addf %253, %257 : vector<2x32xf32>
    %259 = math.tanh %258 : vector<2x32xf32>
    %cst_55 = arith.constant 1.000000e+00 : f32
    %260 = vector.broadcast %cst_55 : f32 to vector<2x32xf32>
    %261 = arith.subf %260, %252 : vector<2x32xf32>
    %262 = arith.mulf %261, %259 : vector<2x32xf32>
    %263 = arith.mulf %252, %239 : vector<2x32xf32>
    %264 = arith.addf %262, %263 : vector<2x32xf32>
    %265 = vector.shape_cast %264 : vector<2x32xf32> to vector<2x1x32xf32>
    %c0_56 = arith.constant 0 : index
    %c7_57 = arith.constant 7 : index
    %c32 = arith.constant 32 : index
    %266 = vector.load %arg3[%c0_56, %c7_57, %c32] : memref<2x8x64xf32, #tpu.memory_space<vmem>>, vector<2x1x32xf32>
    tpu.vector_store %arg3[%c0_56, %c7_57, %c32], %265 {strides = array<i32>} : memref<2x8x64xf32, #tpu.memory_space<vmem>>, vector<2x1x32xf32>,
    %267 = vector.extract_strided_slice %21 {offsets = [0, 6, 0], sizes = [2, 1, 96], strides = [1, 1, 1]} : vector<2x8x96xf32> to vector<2x1x96xf32>
    %268 = vector.shape_cast %267 : vector<2x1x96xf32> to vector<2x96xf32>
    %cst_58 = arith.constant dense<0.000000e+00> : vector<2x96xf32>
    %269 = tpu.matmul %264, %13, %cst_58 {dimension_numbers = #tpu.dot_dimension_numbers<[1], [0], [0], [1], [0, 0, 1, 1], [], []>} : vector<2x32xf32>, vector<32x96xf32>, vector<2x96xf32> -> vector<2x96xf32>
    %270 = vector.extract_strided_slice %268 {offsets = [0, 0], sizes = [2, 64], strides = [1, 1]} : vector<2x96xf32> to vector<2x64xf32>
    %271 = vector.extract_strided_slice %269 {offsets = [0, 0], sizes = [2, 64], strides = [1, 1]} : vector<2x96xf32> to vector<2x64xf32>
    %272 = arith.addf %270, %271 : vector<2x64xf32>
    %273 = arith.negf %272 : vector<2x64xf32>
    %274 = math.exp %273 : vector<2x64xf32>
    %cst_59 = arith.constant 1.000000e+00 : f32
    %275 = vector.broadcast %cst_59 : f32 to vector<2x64xf32>
    %276 = arith.addf %275, %274 : vector<2x64xf32>
    %277 = arith.divf %275, %276 : vector<2x64xf32>
    %278 = vector.extract_strided_slice %277 {offsets = [0, 0], sizes = [2, 32], strides = [1, 1]} : vector<2x64xf32> to vector<2x32xf32>
    %279 = vector.extract_strided_slice %277 {offsets = [0, 32], sizes = [2, 32], strides = [1, 1]} : vector<2x64xf32> to vector<2x32xf32>
    %280 = vector.extract_strided_slice %268 {offsets = [0, 64], sizes = [2, 32], strides = [1, 1]} : vector<2x96xf32> to vector<2x32xf32>
    %281 = vector.extract_strided_slice %269 {offsets = [0, 64], sizes = [2, 32], strides = [1, 1]} : vector<2x96xf32> to vector<2x32xf32>
    %282 = vector.broadcast %16 : vector<1x32xf32> to vector<2x32xf32>
    %283 = arith.addf %281, %282 : vector<2x32xf32>
    %284 = arith.mulf %278, %283 : vector<2x32xf32>
    %285 = arith.addf %280, %284 : vector<2x32xf32>
    %286 = math.tanh %285 : vector<2x32xf32>
    %cst_60 = arith.constant 1.000000e+00 : f32
    %287 = vector.broadcast %cst_60 : f32 to vector<2x32xf32>
    %288 = arith.subf %287, %279 : vector<2x32xf32>
    %289 = arith.mulf %288, %286 : vector<2x32xf32>
    %290 = arith.mulf %279, %264 : vector<2x32xf32>
    %291 = arith.addf %289, %290 : vector<2x32xf32>
    %292 = vector.shape_cast %291 : vector<2x32xf32> to vector<2x1x32xf32>
    %c0_61 = arith.constant 0 : index
    %c6_62 = arith.constant 6 : index
    %c32_63 = arith.constant 32 : index
    %293 = vector.load %arg3[%c0_61, %c6_62, %c32_63] : memref<2x8x64xf32, #tpu.memory_space<vmem>>, vector<2x1x32xf32>
    tpu.vector_store %arg3[%c0_61, %c6_62, %c32_63], %292 {strides = array<i32>} : memref<2x8x64xf32, #tpu.memory_space<vmem>>, vector<2x1x32xf32>,
    %294 = vector.extract_strided_slice %21 {offsets = [0, 5, 0], sizes = [2, 1, 96], strides = [1, 1, 1]} : vector<2x8x96xf32> to vector<2x1x96xf32>
    %295 = vector.shape_cast %294 : vector<2x1x96xf32> to vector<2x96xf32>
    %cst_64 = arith.constant dense<0.000000e+00> : vector<2x96xf32>
    %296 = tpu.matmul %291, %13, %cst_64 {dimension_numbers = #tpu.dot_dimension_numbers<[1], [0], [0], [1], [0, 0, 1, 1], [], []>} : vector<2x32xf32>, vector<32x96xf32>, vector<2x96xf32> -> vector<2x96xf32>
    %297 = vector.extract_strided_slice %295 {offsets = [0, 0], sizes = [2, 64], strides = [1, 1]} : vector<2x96xf32> to vector<2x64xf32>
    %298 = vector.extract_strided_slice %296 {offsets = [0, 0], sizes = [2, 64], strides = [1, 1]} : vector<2x96xf32> to vector<2x64xf32>
    %299 = arith.addf %297, %298 : vector<2x64xf32>
    %300 = arith.negf %299 : vector<2x64xf32>
    %301 = math.exp %300 : vector<2x64xf32>
    %cst_65 = arith.constant 1.000000e+00 : f32
    %302 = vector.broadcast %cst_65 : f32 to vector<2x64xf32>
    %303 = arith.addf %302, %301 : vector<2x64xf32>
    %304 = arith.divf %302, %303 : vector<2x64xf32>
    %305 = vector.extract_strided_slice %304 {offsets = [0, 0], sizes = [2, 32], strides = [1, 1]} : vector<2x64xf32> to vector<2x32xf32>
    %306 = vector.extract_strided_slice %304 {offsets = [0, 32], sizes = [2, 32], strides = [1, 1]} : vector<2x64xf32> to vector<2x32xf32>
    %307 = vector.extract_strided_slice %295 {offsets = [0, 64], sizes = [2, 32], strides = [1, 1]} : vector<2x96xf32> to vector<2x32xf32>
    %308 = vector.extract_strided_slice %296 {offsets = [0, 64], sizes = [2, 32], strides = [1, 1]} : vector<2x96xf32> to vector<2x32xf32>
    %309 = vector.broadcast %16 : vector<1x32xf32> to vector<2x32xf32>
    %310 = arith.addf %308, %309 : vector<2x32xf32>
    %311 = arith.mulf %305, %310 : vector<2x32xf32>
    %312 = arith.addf %307, %311 : vector<2x32xf32>
    %313 = math.tanh %312 : vector<2x32xf32>
    %cst_66 = arith.constant 1.000000e+00 : f32
    %314 = vector.broadcast %cst_66 : f32 to vector<2x32xf32>
    %315 = arith.subf %314, %306 : vector<2x32xf32>
    %316 = arith.mulf %315, %313 : vector<2x32xf32>
    %317 = arith.mulf %306, %291 : vector<2x32xf32>
    %318 = arith.addf %316, %317 : vector<2x32xf32>
    %319 = vector.shape_cast %318 : vector<2x32xf32> to vector<2x1x32xf32>
    %c0_67 = arith.constant 0 : index
    %c5_68 = arith.constant 5 : index
    %c32_69 = arith.constant 32 : index
    %320 = vector.load %arg3[%c0_67, %c5_68, %c32_69] : memref<2x8x64xf32, #tpu.memory_space<vmem>>, vector<2x1x32xf32>
    tpu.vector_store %arg3[%c0_67, %c5_68, %c32_69], %319 {strides = array<i32>} : memref<2x8x64xf32, #tpu.memory_space<vmem>>, vector<2x1x32xf32>,
    %321 = vector.extract_strided_slice %21 {offsets = [0, 4, 0], sizes = [2, 1, 96], strides = [1, 1, 1]} : vector<2x8x96xf32> to vector<2x1x96xf32>
    %322 = vector.shape_cast %321 : vector<2x1x96xf32> to vector<2x96xf32>
    %cst_70 = arith.constant dense<0.000000e+00> : vector<2x96xf32>
    %323 = tpu.matmul %318, %13, %cst_70 {dimension_numbers = #tpu.dot_dimension_numbers<[1], [0], [0], [1], [0, 0, 1, 1], [], []>} : vector<2x32xf32>, vector<32x96xf32>, vector<2x96xf32> -> vector<2x96xf32>
    %324 = vector.extract_strided_slice %322 {offsets = [0, 0], sizes = [2, 64], strides = [1, 1]} : vector<2x96xf32> to vector<2x64xf32>
    %325 = vector.extract_strided_slice %323 {offsets = [0, 0], sizes = [2, 64], strides = [1, 1]} : vector<2x96xf32> to vector<2x64xf32>
    %326 = arith.addf %324, %325 : vector<2x64xf32>
    %327 = arith.negf %326 : vector<2x64xf32>
    %328 = math.exp %327 : vector<2x64xf32>
    %cst_71 = arith.constant 1.000000e+00 : f32
    %329 = vector.broadcast %cst_71 : f32 to vector<2x64xf32>
    %330 = arith.addf %329, %328 : vector<2x64xf32>
    %331 = arith.divf %329, %330 : vector<2x64xf32>
    %332 = vector.extract_strided_slice %331 {offsets = [0, 0], sizes = [2, 32], strides = [1, 1]} : vector<2x64xf32> to vector<2x32xf32>
    %333 = vector.extract_strided_slice %331 {offsets = [0, 32], sizes = [2, 32], strides = [1, 1]} : vector<2x64xf32> to vector<2x32xf32>
    %334 = vector.extract_strided_slice %322 {offsets = [0, 64], sizes = [2, 32], strides = [1, 1]} : vector<2x96xf32> to vector<2x32xf32>
    %335 = vector.extract_strided_slice %323 {offsets = [0, 64], sizes = [2, 32], strides = [1, 1]} : vector<2x96xf32> to vector<2x32xf32>
    %336 = vector.broadcast %16 : vector<1x32xf32> to vector<2x32xf32>
    %337 = arith.addf %335, %336 : vector<2x32xf32>
    %338 = arith.mulf %332, %337 : vector<2x32xf32>
    %339 = arith.addf %334, %338 : vector<2x32xf32>
    %340 = math.tanh %339 : vector<2x32xf32>
    %cst_72 = arith.constant 1.000000e+00 : f32
    %341 = vector.broadcast %cst_72 : f32 to vector<2x32xf32>
    %342 = arith.subf %341, %333 : vector<2x32xf32>
    %343 = arith.mulf %342, %340 : vector<2x32xf32>
    %344 = arith.mulf %333, %318 : vector<2x32xf32>
    %345 = arith.addf %343, %344 : vector<2x32xf32>
    %346 = vector.shape_cast %345 : vector<2x32xf32> to vector<2x1x32xf32>
    %c0_73 = arith.constant 0 : index
    %c4_74 = arith.constant 4 : index
    %c32_75 = arith.constant 32 : index
    %347 = vector.load %arg3[%c0_73, %c4_74, %c32_75] : memref<2x8x64xf32, #tpu.memory_space<vmem>>, vector<2x1x32xf32>
    tpu.vector_store %arg3[%c0_73, %c4_74, %c32_75], %346 {strides = array<i32>} : memref<2x8x64xf32, #tpu.memory_space<vmem>>, vector<2x1x32xf32>,
    %348 = vector.extract_strided_slice %21 {offsets = [0, 3, 0], sizes = [2, 1, 96], strides = [1, 1, 1]} : vector<2x8x96xf32> to vector<2x1x96xf32>
    %349 = vector.shape_cast %348 : vector<2x1x96xf32> to vector<2x96xf32>
    %cst_76 = arith.constant dense<0.000000e+00> : vector<2x96xf32>
    %350 = tpu.matmul %345, %13, %cst_76 {dimension_numbers = #tpu.dot_dimension_numbers<[1], [0], [0], [1], [0, 0, 1, 1], [], []>} : vector<2x32xf32>, vector<32x96xf32>, vector<2x96xf32> -> vector<2x96xf32>
    %351 = vector.extract_strided_slice %349 {offsets = [0, 0], sizes = [2, 64], strides = [1, 1]} : vector<2x96xf32> to vector<2x64xf32>
    %352 = vector.extract_strided_slice %350 {offsets = [0, 0], sizes = [2, 64], strides = [1, 1]} : vector<2x96xf32> to vector<2x64xf32>
    %353 = arith.addf %351, %352 : vector<2x64xf32>
    %354 = arith.negf %353 : vector<2x64xf32>
    %355 = math.exp %354 : vector<2x64xf32>
    %cst_77 = arith.constant 1.000000e+00 : f32
    %356 = vector.broadcast %cst_77 : f32 to vector<2x64xf32>
    %357 = arith.addf %356, %355 : vector<2x64xf32>
    %358 = arith.divf %356, %357 : vector<2x64xf32>
    %359 = vector.extract_strided_slice %358 {offsets = [0, 0], sizes = [2, 32], strides = [1, 1]} : vector<2x64xf32> to vector<2x32xf32>
    %360 = vector.extract_strided_slice %358 {offsets = [0, 32], sizes = [2, 32], strides = [1, 1]} : vector<2x64xf32> to vector<2x32xf32>
    %361 = vector.extract_strided_slice %349 {offsets = [0, 64], sizes = [2, 32], strides = [1, 1]} : vector<2x96xf32> to vector<2x32xf32>
    %362 = vector.extract_strided_slice %350 {offsets = [0, 64], sizes = [2, 32], strides = [1, 1]} : vector<2x96xf32> to vector<2x32xf32>
    %363 = vector.broadcast %16 : vector<1x32xf32> to vector<2x32xf32>
    %364 = arith.addf %362, %363 : vector<2x32xf32>
    %365 = arith.mulf %359, %364 : vector<2x32xf32>
    %366 = arith.addf %361, %365 : vector<2x32xf32>
    %367 = math.tanh %366 : vector<2x32xf32>
    %cst_78 = arith.constant 1.000000e+00 : f32
    %368 = vector.broadcast %cst_78 : f32 to vector<2x32xf32>
    %369 = arith.subf %368, %360 : vector<2x32xf32>
    %370 = arith.mulf %369, %367 : vector<2x32xf32>
    %371 = arith.mulf %360, %345 : vector<2x32xf32>
    %372 = arith.addf %370, %371 : vector<2x32xf32>
    %373 = vector.shape_cast %372 : vector<2x32xf32> to vector<2x1x32xf32>
    %c0_79 = arith.constant 0 : index
    %c3_80 = arith.constant 3 : index
    %c32_81 = arith.constant 32 : index
    %374 = vector.load %arg3[%c0_79, %c3_80, %c32_81] : memref<2x8x64xf32, #tpu.memory_space<vmem>>, vector<2x1x32xf32>
    tpu.vector_store %arg3[%c0_79, %c3_80, %c32_81], %373 {strides = array<i32>} : memref<2x8x64xf32, #tpu.memory_space<vmem>>, vector<2x1x32xf32>,
    %375 = vector.extract_strided_slice %21 {offsets = [0, 2, 0], sizes = [2, 1, 96], strides = [1, 1, 1]} : vector<2x8x96xf32> to vector<2x1x96xf32>
    %376 = vector.shape_cast %375 : vector<2x1x96xf32> to vector<2x96xf32>
    %cst_82 = arith.constant dense<0.000000e+00> : vector<2x96xf32>
    %377 = tpu.matmul %372, %13, %cst_82 {dimension_numbers = #tpu.dot_dimension_numbers<[1], [0], [0], [1], [0, 0, 1, 1], [], []>} : vector<2x32xf32>, vector<32x96xf32>, vector<2x96xf32> -> vector<2x96xf32>
    %378 = vector.extract_strided_slice %376 {offsets = [0, 0], sizes = [2, 64], strides = [1, 1]} : vector<2x96xf32> to vector<2x64xf32>
    %379 = vector.extract_strided_slice %377 {offsets = [0, 0], sizes = [2, 64], strides = [1, 1]} : vector<2x96xf32> to vector<2x64xf32>
    %380 = arith.addf %378, %379 : vector<2x64xf32>
    %381 = arith.negf %380 : vector<2x64xf32>
    %382 = math.exp %381 : vector<2x64xf32>
    %cst_83 = arith.constant 1.000000e+00 : f32
    %383 = vector.broadcast %cst_83 : f32 to vector<2x64xf32>
    %384 = arith.addf %383, %382 : vector<2x64xf32>
    %385 = arith.divf %383, %384 : vector<2x64xf32>
    %386 = vector.extract_strided_slice %385 {offsets = [0, 0], sizes = [2, 32], strides = [1, 1]} : vector<2x64xf32> to vector<2x32xf32>
    %387 = vector.extract_strided_slice %385 {offsets = [0, 32], sizes = [2, 32], strides = [1, 1]} : vector<2x64xf32> to vector<2x32xf32>
    %388 = vector.extract_strided_slice %376 {offsets = [0, 64], sizes = [2, 32], strides = [1, 1]} : vector<2x96xf32> to vector<2x32xf32>
    %389 = vector.extract_strided_slice %377 {offsets = [0, 64], sizes = [2, 32], strides = [1, 1]} : vector<2x96xf32> to vector<2x32xf32>
    %390 = vector.broadcast %16 : vector<1x32xf32> to vector<2x32xf32>
    %391 = arith.addf %389, %390 : vector<2x32xf32>
    %392 = arith.mulf %386, %391 : vector<2x32xf32>
    %393 = arith.addf %388, %392 : vector<2x32xf32>
    %394 = math.tanh %393 : vector<2x32xf32>
    %cst_84 = arith.constant 1.000000e+00 : f32
    %395 = vector.broadcast %cst_84 : f32 to vector<2x32xf32>
    %396 = arith.subf %395, %387 : vector<2x32xf32>
    %397 = arith.mulf %396, %394 : vector<2x32xf32>
    %398 = arith.mulf %387, %372 : vector<2x32xf32>
    %399 = arith.addf %397, %398 : vector<2x32xf32>
    %400 = vector.shape_cast %399 : vector<2x32xf32> to vector<2x1x32xf32>
    %c0_85 = arith.constant 0 : index
    %c2_86 = arith.constant 2 : index
    %c32_87 = arith.constant 32 : index
    %401 = vector.load %arg3[%c0_85, %c2_86, %c32_87] : memref<2x8x64xf32, #tpu.memory_space<vmem>>, vector<2x1x32xf32>
    tpu.vector_store %arg3[%c0_85, %c2_86, %c32_87], %400 {strides = array<i32>} : memref<2x8x64xf32, #tpu.memory_space<vmem>>, vector<2x1x32xf32>,
    %402 = vector.extract_strided_slice %21 {offsets = [0, 1, 0], sizes = [2, 1, 96], strides = [1, 1, 1]} : vector<2x8x96xf32> to vector<2x1x96xf32>
    %403 = vector.shape_cast %402 : vector<2x1x96xf32> to vector<2x96xf32>
    %cst_88 = arith.constant dense<0.000000e+00> : vector<2x96xf32>
    %404 = tpu.matmul %399, %13, %cst_88 {dimension_numbers = #tpu.dot_dimension_numbers<[1], [0], [0], [1], [0, 0, 1, 1], [], []>} : vector<2x32xf32>, vector<32x96xf32>, vector<2x96xf32> -> vector<2x96xf32>
    %405 = vector.extract_strided_slice %403 {offsets = [0, 0], sizes = [2, 64], strides = [1, 1]} : vector<2x96xf32> to vector<2x64xf32>
    %406 = vector.extract_strided_slice %404 {offsets = [0, 0], sizes = [2, 64], strides = [1, 1]} : vector<2x96xf32> to vector<2x64xf32>
    %407 = arith.addf %405, %406 : vector<2x64xf32>
    %408 = arith.negf %407 : vector<2x64xf32>
    %409 = math.exp %408 : vector<2x64xf32>
    %cst_89 = arith.constant 1.000000e+00 : f32
    %410 = vector.broadcast %cst_89 : f32 to vector<2x64xf32>
    %411 = arith.addf %410, %409 : vector<2x64xf32>
    %412 = arith.divf %410, %411 : vector<2x64xf32>
    %413 = vector.extract_strided_slice %412 {offsets = [0, 0], sizes = [2, 32], strides = [1, 1]} : vector<2x64xf32> to vector<2x32xf32>
    %414 = vector.extract_strided_slice %412 {offsets = [0, 32], sizes = [2, 32], strides = [1, 1]} : vector<2x64xf32> to vector<2x32xf32>
    %415 = vector.extract_strided_slice %403 {offsets = [0, 64], sizes = [2, 32], strides = [1, 1]} : vector<2x96xf32> to vector<2x32xf32>
    %416 = vector.extract_strided_slice %404 {offsets = [0, 64], sizes = [2, 32], strides = [1, 1]} : vector<2x96xf32> to vector<2x32xf32>
    %417 = vector.broadcast %16 : vector<1x32xf32> to vector<2x32xf32>
    %418 = arith.addf %416, %417 : vector<2x32xf32>
    %419 = arith.mulf %413, %418 : vector<2x32xf32>
    %420 = arith.addf %415, %419 : vector<2x32xf32>
    %421 = math.tanh %420 : vector<2x32xf32>
    %cst_90 = arith.constant 1.000000e+00 : f32
    %422 = vector.broadcast %cst_90 : f32 to vector<2x32xf32>
    %423 = arith.subf %422, %414 : vector<2x32xf32>
    %424 = arith.mulf %423, %421 : vector<2x32xf32>
    %425 = arith.mulf %414, %399 : vector<2x32xf32>
    %426 = arith.addf %424, %425 : vector<2x32xf32>
    %427 = vector.shape_cast %426 : vector<2x32xf32> to vector<2x1x32xf32>
    %c0_91 = arith.constant 0 : index
    %c1_92 = arith.constant 1 : index
    %c32_93 = arith.constant 32 : index
    %428 = vector.load %arg3[%c0_91, %c1_92, %c32_93] : memref<2x8x64xf32, #tpu.memory_space<vmem>>, vector<2x1x32xf32>
    tpu.vector_store %arg3[%c0_91, %c1_92, %c32_93], %427 {strides = array<i32>} : memref<2x8x64xf32, #tpu.memory_space<vmem>>, vector<2x1x32xf32>,
    %429 = vector.extract_strided_slice %21 {offsets = [0, 0, 0], sizes = [2, 1, 96], strides = [1, 1, 1]} : vector<2x8x96xf32> to vector<2x1x96xf32>
    %430 = vector.shape_cast %429 : vector<2x1x96xf32> to vector<2x96xf32>
    %cst_94 = arith.constant dense<0.000000e+00> : vector<2x96xf32>
    %431 = tpu.matmul %426, %13, %cst_94 {dimension_numbers = #tpu.dot_dimension_numbers<[1], [0], [0], [1], [0, 0, 1, 1], [], []>} : vector<2x32xf32>, vector<32x96xf32>, vector<2x96xf32> -> vector<2x96xf32>
    %432 = vector.extract_strided_slice %430 {offsets = [0, 0], sizes = [2, 64], strides = [1, 1]} : vector<2x96xf32> to vector<2x64xf32>
    %433 = vector.extract_strided_slice %431 {offsets = [0, 0], sizes = [2, 64], strides = [1, 1]} : vector<2x96xf32> to vector<2x64xf32>
    %434 = arith.addf %432, %433 : vector<2x64xf32>
    %435 = arith.negf %434 : vector<2x64xf32>
    %436 = math.exp %435 : vector<2x64xf32>
    %cst_95 = arith.constant 1.000000e+00 : f32
    %437 = vector.broadcast %cst_95 : f32 to vector<2x64xf32>
    %438 = arith.addf %437, %436 : vector<2x64xf32>
    %439 = arith.divf %437, %438 : vector<2x64xf32>
    %440 = vector.extract_strided_slice %439 {offsets = [0, 0], sizes = [2, 32], strides = [1, 1]} : vector<2x64xf32> to vector<2x32xf32>
    %441 = vector.extract_strided_slice %439 {offsets = [0, 32], sizes = [2, 32], strides = [1, 1]} : vector<2x64xf32> to vector<2x32xf32>
    %442 = vector.extract_strided_slice %430 {offsets = [0, 64], sizes = [2, 32], strides = [1, 1]} : vector<2x96xf32> to vector<2x32xf32>
    %443 = vector.extract_strided_slice %431 {offsets = [0, 64], sizes = [2, 32], strides = [1, 1]} : vector<2x96xf32> to vector<2x32xf32>
    %444 = vector.broadcast %16 : vector<1x32xf32> to vector<2x32xf32>
    %445 = arith.addf %443, %444 : vector<2x32xf32>
    %446 = arith.mulf %440, %445 : vector<2x32xf32>
    %447 = arith.addf %442, %446 : vector<2x32xf32>
    %448 = math.tanh %447 : vector<2x32xf32>
    %cst_96 = arith.constant 1.000000e+00 : f32
    %449 = vector.broadcast %cst_96 : f32 to vector<2x32xf32>
    %450 = arith.subf %449, %441 : vector<2x32xf32>
    %451 = arith.mulf %450, %448 : vector<2x32xf32>
    %452 = arith.mulf %441, %426 : vector<2x32xf32>
    %453 = arith.addf %451, %452 : vector<2x32xf32>
    %454 = vector.shape_cast %453 : vector<2x32xf32> to vector<2x1x32xf32>
    %c0_97 = arith.constant 0 : index
    %c0_98 = arith.constant 0 : index
    %c32_99 = arith.constant 32 : index
    %455 = vector.load %arg3[%c0_97, %c0_98, %c32_99] : memref<2x8x64xf32, #tpu.memory_space<vmem>>, vector<2x1x32xf32>
    tpu.vector_store %arg3[%c0_97, %c0_98, %c32_99], %454 {strides = array<i32>} : memref<2x8x64xf32, #tpu.memory_space<vmem>>, vector<2x1x32xf32>,
    %c0_100 = arith.constant 0 : index
    %c0_101 = arith.constant 0 : index
    %c0_102 = arith.constant 0 : index
    %456 = vector.load %arg3[%c0_100, %c0_101, %c0_102] : memref<2x8x64xf32, #tpu.memory_space<vmem>>, vector<2x8x64xf32>
    %457 = vector.shape_cast %456 : vector<2x8x64xf32> to vector<16x64xf32>
    %c96 = arith.constant 96 : index
    %c0_103 = arith.constant 0 : index
    %458 = vector.load %arg1[%c96, %c0_103] : memref<320x96xf32, #tpu.memory_space<vmem>>, vector<64x96xf32>
    %c160 = arith.constant 160 : index
    %c0_104 = arith.constant 0 : index
    %459 = vector.load %arg1[%c160, %c0_104] : memref<320x96xf32, #tpu.memory_space<vmem>>, vector<32x96xf32>
    %c192 = arith.constant 192 : index
    %c0_105 = arith.constant 0 : index
    %460 = vector.load %arg1[%c192, %c0_105] : memref<320x96xf32, #tpu.memory_space<vmem>>, vector<2x96xf32>
    %461 = vector.extract_strided_slice %460 {offsets = [0, 0], sizes = [1, 96], strides = [1, 1]} : vector<2x96xf32> to vector<1x96xf32>
    %462 = vector.extract_strided_slice %460 {offsets = [1, 0], sizes = [1, 32], strides = [1, 1]} : vector<2x96xf32> to vector<1x32xf32>
    %cst_106 = arith.constant dense<0.000000e+00> : vector<16x96xf32>
    %463 = tpu.matmul %457, %458, %cst_106 {dimension_numbers = #tpu.dot_dimension_numbers<[1], [0], [0], [1], [0, 0, 1, 1], [], []>} : vector<16x64xf32>, vector<64x96xf32>, vector<16x96xf32> -> vector<16x96xf32>
    %464 = vector.shape_cast %463 : vector<16x96xf32> to vector<2x8x96xf32>
    %465 = vector.shape_cast %461 : vector<1x96xf32> to vector<1x1x96xf32>
    %466 = vector.broadcast %465 : vector<1x1x96xf32> to vector<2x8x96xf32>
    %467 = arith.addf %464, %466 : vector<2x8x96xf32>
    %c200 = arith.constant 200 : index
    %c0_107 = arith.constant 0 : index
    %468 = vector.load %arg1[%c200, %c0_107] : memref<320x96xf32, #tpu.memory_space<vmem>>, vector<64x96xf32>
    %c264 = arith.constant 264 : index
    %c0_108 = arith.constant 0 : index
    %469 = vector.load %arg1[%c264, %c0_108] : memref<320x96xf32, #tpu.memory_space<vmem>>, vector<32x96xf32>
    %c296 = arith.constant 296 : index
    %c0_109 = arith.constant 0 : index
    %470 = vector.load %arg1[%c296, %c0_109] : memref<320x96xf32, #tpu.memory_space<vmem>>, vector<2x96xf32>
    %471 = vector.extract_strided_slice %470 {offsets = [0, 0], sizes = [1, 96], strides = [1, 1]} : vector<2x96xf32> to vector<1x96xf32>
    %472 = vector.extract_strided_slice %470 {offsets = [1, 0], sizes = [1, 32], strides = [1, 1]} : vector<2x96xf32> to vector<1x32xf32>
    %cst_110 = arith.constant dense<0.000000e+00> : vector<16x96xf32>
    %473 = tpu.matmul %457, %468, %cst_110 {dimension_numbers = #tpu.dot_dimension_numbers<[1], [0], [0], [1], [0, 0, 1, 1], [], []>} : vector<16x64xf32>, vector<64x96xf32>, vector<16x96xf32> -> vector<16x96xf32>
    %474 = vector.shape_cast %473 : vector<16x96xf32> to vector<2x8x96xf32>
    %475 = vector.shape_cast %471 : vector<1x96xf32> to vector<1x1x96xf32>
    %476 = vector.broadcast %475 : vector<1x1x96xf32> to vector<2x8x96xf32>
    %477 = arith.addf %474, %476 : vector<2x8x96xf32>
    %cst_111 = arith.constant 0.000000e+00 : f32
    %478 = vector.broadcast %cst_111 : f32 to vector<2x32xf32>
    %479 = vector.extract_strided_slice %467 {offsets = [0, 0, 0], sizes = [2, 1, 96], strides = [1, 1, 1]} : vector<2x8x96xf32> to vector<2x1x96xf32>
    %480 = vector.shape_cast %479 : vector<2x1x96xf32> to vector<2x96xf32>
    %cst_112 = arith.constant dense<0.000000e+00> : vector<2x96xf32>
    %481 = tpu.matmul %478, %459, %cst_112 {dimension_numbers = #tpu.dot_dimension_numbers<[1], [0], [0], [1], [0, 0, 1, 1], [], []>} : vector<2x32xf32>, vector<32x96xf32>, vector<2x96xf32> -> vector<2x96xf32>
    %482 = vector.extract_strided_slice %480 {offsets = [0, 0], sizes = [2, 64], strides = [1, 1]} : vector<2x96xf32> to vector<2x64xf32>
    %483 = vector.extract_strided_slice %481 {offsets = [0, 0], sizes = [2, 64], strides = [1, 1]} : vector<2x96xf32> to vector<2x64xf32>
    %484 = arith.addf %482, %483 : vector<2x64xf32>
    %485 = arith.negf %484 : vector<2x64xf32>
    %486 = math.exp %485 : vector<2x64xf32>
    %cst_113 = arith.constant 1.000000e+00 : f32
    %487 = vector.broadcast %cst_113 : f32 to vector<2x64xf32>
    %488 = arith.addf %487, %486 : vector<2x64xf32>
    %489 = arith.divf %487, %488 : vector<2x64xf32>
    %490 = vector.extract_strided_slice %489 {offsets = [0, 0], sizes = [2, 32], strides = [1, 1]} : vector<2x64xf32> to vector<2x32xf32>
    %491 = vector.extract_strided_slice %489 {offsets = [0, 32], sizes = [2, 32], strides = [1, 1]} : vector<2x64xf32> to vector<2x32xf32>
    %492 = vector.extract_strided_slice %480 {offsets = [0, 64], sizes = [2, 32], strides = [1, 1]} : vector<2x96xf32> to vector<2x32xf32>
    %493 = vector.extract_strided_slice %481 {offsets = [0, 64], sizes = [2, 32], strides = [1, 1]} : vector<2x96xf32> to vector<2x32xf32>
    %494 = vector.broadcast %462 : vector<1x32xf32> to vector<2x32xf32>
    %495 = arith.addf %493, %494 : vector<2x32xf32>
    %496 = arith.mulf %490, %495 : vector<2x32xf32>
    %497 = arith.addf %492, %496 : vector<2x32xf32>
    %498 = math.tanh %497 : vector<2x32xf32>
    %cst_114 = arith.constant 1.000000e+00 : f32
    %499 = vector.broadcast %cst_114 : f32 to vector<2x32xf32>
    %500 = arith.subf %499, %491 : vector<2x32xf32>
    %501 = arith.mulf %500, %498 : vector<2x32xf32>
    %502 = arith.mulf %491, %478 : vector<2x32xf32>
    %503 = arith.addf %501, %502 : vector<2x32xf32>
    %504 = vector.shape_cast %503 : vector<2x32xf32> to vector<2x1x32xf32>
    %c0_115 = arith.constant 0 : index
    %c0_116 = arith.constant 0 : index
    %c0_117 = arith.constant 0 : index
    %505 = vector.load %arg3[%c0_115, %c0_116, %c0_117] : memref<2x8x64xf32, #tpu.memory_space<vmem>>, vector<2x1x32xf32>
    tpu.vector_store %arg3[%c0_115, %c0_116, %c0_117], %504 {strides = array<i32>} : memref<2x8x64xf32, #tpu.memory_space<vmem>>, vector<2x1x32xf32>,
    %506 = vector.extract_strided_slice %467 {offsets = [0, 1, 0], sizes = [2, 1, 96], strides = [1, 1, 1]} : vector<2x8x96xf32> to vector<2x1x96xf32>
    %507 = vector.shape_cast %506 : vector<2x1x96xf32> to vector<2x96xf32>
    %cst_118 = arith.constant dense<0.000000e+00> : vector<2x96xf32>
    %508 = tpu.matmul %503, %459, %cst_118 {dimension_numbers = #tpu.dot_dimension_numbers<[1], [0], [0], [1], [0, 0, 1, 1], [], []>} : vector<2x32xf32>, vector<32x96xf32>, vector<2x96xf32> -> vector<2x96xf32>
    %509 = vector.extract_strided_slice %507 {offsets = [0, 0], sizes = [2, 64], strides = [1, 1]} : vector<2x96xf32> to vector<2x64xf32>
    %510 = vector.extract_strided_slice %508 {offsets = [0, 0], sizes = [2, 64], strides = [1, 1]} : vector<2x96xf32> to vector<2x64xf32>
    %511 = arith.addf %509, %510 : vector<2x64xf32>
    %512 = arith.negf %511 : vector<2x64xf32>
    %513 = math.exp %512 : vector<2x64xf32>
    %cst_119 = arith.constant 1.000000e+00 : f32
    %514 = vector.broadcast %cst_119 : f32 to vector<2x64xf32>
    %515 = arith.addf %514, %513 : vector<2x64xf32>
    %516 = arith.divf %514, %515 : vector<2x64xf32>
    %517 = vector.extract_strided_slice %516 {offsets = [0, 0], sizes = [2, 32], strides = [1, 1]} : vector<2x64xf32> to vector<2x32xf32>
    %518 = vector.extract_strided_slice %516 {offsets = [0, 32], sizes = [2, 32], strides = [1, 1]} : vector<2x64xf32> to vector<2x32xf32>
    %519 = vector.extract_strided_slice %507 {offsets = [0, 64], sizes = [2, 32], strides = [1, 1]} : vector<2x96xf32> to vector<2x32xf32>
    %520 = vector.extract_strided_slice %508 {offsets = [0, 64], sizes = [2, 32], strides = [1, 1]} : vector<2x96xf32> to vector<2x32xf32>
    %521 = vector.broadcast %462 : vector<1x32xf32> to vector<2x32xf32>
    %522 = arith.addf %520, %521 : vector<2x32xf32>
    %523 = arith.mulf %517, %522 : vector<2x32xf32>
    %524 = arith.addf %519, %523 : vector<2x32xf32>
    %525 = math.tanh %524 : vector<2x32xf32>
    %cst_120 = arith.constant 1.000000e+00 : f32
    %526 = vector.broadcast %cst_120 : f32 to vector<2x32xf32>
    %527 = arith.subf %526, %518 : vector<2x32xf32>
    %528 = arith.mulf %527, %525 : vector<2x32xf32>
    %529 = arith.mulf %518, %503 : vector<2x32xf32>
    %530 = arith.addf %528, %529 : vector<2x32xf32>
    %531 = vector.shape_cast %530 : vector<2x32xf32> to vector<2x1x32xf32>
    %c0_121 = arith.constant 0 : index
    %c1_122 = arith.constant 1 : index
    %c0_123 = arith.constant 0 : index
    %532 = vector.load %arg3[%c0_121, %c1_122, %c0_123] : memref<2x8x64xf32, #tpu.memory_space<vmem>>, vector<2x1x32xf32>
    tpu.vector_store %arg3[%c0_121, %c1_122, %c0_123], %531 {strides = array<i32>} : memref<2x8x64xf32, #tpu.memory_space<vmem>>, vector<2x1x32xf32>,
    %533 = vector.extract_strided_slice %467 {offsets = [0, 2, 0], sizes = [2, 1, 96], strides = [1, 1, 1]} : vector<2x8x96xf32> to vector<2x1x96xf32>
    %534 = vector.shape_cast %533 : vector<2x1x96xf32> to vector<2x96xf32>
    %cst_124 = arith.constant dense<0.000000e+00> : vector<2x96xf32>
    %535 = tpu.matmul %530, %459, %cst_124 {dimension_numbers = #tpu.dot_dimension_numbers<[1], [0], [0], [1], [0, 0, 1, 1], [], []>} : vector<2x32xf32>, vector<32x96xf32>, vector<2x96xf32> -> vector<2x96xf32>
    %536 = vector.extract_strided_slice %534 {offsets = [0, 0], sizes = [2, 64], strides = [1, 1]} : vector<2x96xf32> to vector<2x64xf32>
    %537 = vector.extract_strided_slice %535 {offsets = [0, 0], sizes = [2, 64], strides = [1, 1]} : vector<2x96xf32> to vector<2x64xf32>
    %538 = arith.addf %536, %537 : vector<2x64xf32>
    %539 = arith.negf %538 : vector<2x64xf32>
    %540 = math.exp %539 : vector<2x64xf32>
    %cst_125 = arith.constant 1.000000e+00 : f32
    %541 = vector.broadcast %cst_125 : f32 to vector<2x64xf32>
    %542 = arith.addf %541, %540 : vector<2x64xf32>
    %543 = arith.divf %541, %542 : vector<2x64xf32>
    %544 = vector.extract_strided_slice %543 {offsets = [0, 0], sizes = [2, 32], strides = [1, 1]} : vector<2x64xf32> to vector<2x32xf32>
    %545 = vector.extract_strided_slice %543 {offsets = [0, 32], sizes = [2, 32], strides = [1, 1]} : vector<2x64xf32> to vector<2x32xf32>
    %546 = vector.extract_strided_slice %534 {offsets = [0, 64], sizes = [2, 32], strides = [1, 1]} : vector<2x96xf32> to vector<2x32xf32>
    %547 = vector.extract_strided_slice %535 {offsets = [0, 64], sizes = [2, 32], strides = [1, 1]} : vector<2x96xf32> to vector<2x32xf32>
    %548 = vector.broadcast %462 : vector<1x32xf32> to vector<2x32xf32>
    %549 = arith.addf %547, %548 : vector<2x32xf32>
    %550 = arith.mulf %544, %549 : vector<2x32xf32>
    %551 = arith.addf %546, %550 : vector<2x32xf32>
    %552 = math.tanh %551 : vector<2x32xf32>
    %cst_126 = arith.constant 1.000000e+00 : f32
    %553 = vector.broadcast %cst_126 : f32 to vector<2x32xf32>
    %554 = arith.subf %553, %545 : vector<2x32xf32>
    %555 = arith.mulf %554, %552 : vector<2x32xf32>
    %556 = arith.mulf %545, %530 : vector<2x32xf32>
    %557 = arith.addf %555, %556 : vector<2x32xf32>
    %558 = vector.shape_cast %557 : vector<2x32xf32> to vector<2x1x32xf32>
    %c0_127 = arith.constant 0 : index
    %c2_128 = arith.constant 2 : index
    %c0_129 = arith.constant 0 : index
    %559 = vector.load %arg3[%c0_127, %c2_128, %c0_129] : memref<2x8x64xf32, #tpu.memory_space<vmem>>, vector<2x1x32xf32>
    tpu.vector_store %arg3[%c0_127, %c2_128, %c0_129], %558 {strides = array<i32>} : memref<2x8x64xf32, #tpu.memory_space<vmem>>, vector<2x1x32xf32>,
    %560 = vector.extract_strided_slice %467 {offsets = [0, 3, 0], sizes = [2, 1, 96], strides = [1, 1, 1]} : vector<2x8x96xf32> to vector<2x1x96xf32>
    %561 = vector.shape_cast %560 : vector<2x1x96xf32> to vector<2x96xf32>
    %cst_130 = arith.constant dense<0.000000e+00> : vector<2x96xf32>
    %562 = tpu.matmul %557, %459, %cst_130 {dimension_numbers = #tpu.dot_dimension_numbers<[1], [0], [0], [1], [0, 0, 1, 1], [], []>} : vector<2x32xf32>, vector<32x96xf32>, vector<2x96xf32> -> vector<2x96xf32>
    %563 = vector.extract_strided_slice %561 {offsets = [0, 0], sizes = [2, 64], strides = [1, 1]} : vector<2x96xf32> to vector<2x64xf32>
    %564 = vector.extract_strided_slice %562 {offsets = [0, 0], sizes = [2, 64], strides = [1, 1]} : vector<2x96xf32> to vector<2x64xf32>
    %565 = arith.addf %563, %564 : vector<2x64xf32>
    %566 = arith.negf %565 : vector<2x64xf32>
    %567 = math.exp %566 : vector<2x64xf32>
    %cst_131 = arith.constant 1.000000e+00 : f32
    %568 = vector.broadcast %cst_131 : f32 to vector<2x64xf32>
    %569 = arith.addf %568, %567 : vector<2x64xf32>
    %570 = arith.divf %568, %569 : vector<2x64xf32>
    %571 = vector.extract_strided_slice %570 {offsets = [0, 0], sizes = [2, 32], strides = [1, 1]} : vector<2x64xf32> to vector<2x32xf32>
    %572 = vector.extract_strided_slice %570 {offsets = [0, 32], sizes = [2, 32], strides = [1, 1]} : vector<2x64xf32> to vector<2x32xf32>
    %573 = vector.extract_strided_slice %561 {offsets = [0, 64], sizes = [2, 32], strides = [1, 1]} : vector<2x96xf32> to vector<2x32xf32>
    %574 = vector.extract_strided_slice %562 {offsets = [0, 64], sizes = [2, 32], strides = [1, 1]} : vector<2x96xf32> to vector<2x32xf32>
    %575 = vector.broadcast %462 : vector<1x32xf32> to vector<2x32xf32>
    %576 = arith.addf %574, %575 : vector<2x32xf32>
    %577 = arith.mulf %571, %576 : vector<2x32xf32>
    %578 = arith.addf %573, %577 : vector<2x32xf32>
    %579 = math.tanh %578 : vector<2x32xf32>
    %cst_132 = arith.constant 1.000000e+00 : f32
    %580 = vector.broadcast %cst_132 : f32 to vector<2x32xf32>
    %581 = arith.subf %580, %572 : vector<2x32xf32>
    %582 = arith.mulf %581, %579 : vector<2x32xf32>
    %583 = arith.mulf %572, %557 : vector<2x32xf32>
    %584 = arith.addf %582, %583 : vector<2x32xf32>
    %585 = vector.shape_cast %584 : vector<2x32xf32> to vector<2x1x32xf32>
    %c0_133 = arith.constant 0 : index
    %c3_134 = arith.constant 3 : index
    %c0_135 = arith.constant 0 : index
    %586 = vector.load %arg3[%c0_133, %c3_134, %c0_135] : memref<2x8x64xf32, #tpu.memory_space<vmem>>, vector<2x1x32xf32>
    tpu.vector_store %arg3[%c0_133, %c3_134, %c0_135], %585 {strides = array<i32>} : memref<2x8x64xf32, #tpu.memory_space<vmem>>, vector<2x1x32xf32>,
    %587 = vector.extract_strided_slice %467 {offsets = [0, 4, 0], sizes = [2, 1, 96], strides = [1, 1, 1]} : vector<2x8x96xf32> to vector<2x1x96xf32>
    %588 = vector.shape_cast %587 : vector<2x1x96xf32> to vector<2x96xf32>
    %cst_136 = arith.constant dense<0.000000e+00> : vector<2x96xf32>
    %589 = tpu.matmul %584, %459, %cst_136 {dimension_numbers = #tpu.dot_dimension_numbers<[1], [0], [0], [1], [0, 0, 1, 1], [], []>} : vector<2x32xf32>, vector<32x96xf32>, vector<2x96xf32> -> vector<2x96xf32>
    %590 = vector.extract_strided_slice %588 {offsets = [0, 0], sizes = [2, 64], strides = [1, 1]} : vector<2x96xf32> to vector<2x64xf32>
    %591 = vector.extract_strided_slice %589 {offsets = [0, 0], sizes = [2, 64], strides = [1, 1]} : vector<2x96xf32> to vector<2x64xf32>
    %592 = arith.addf %590, %591 : vector<2x64xf32>
    %593 = arith.negf %592 : vector<2x64xf32>
    %594 = math.exp %593 : vector<2x64xf32>
    %cst_137 = arith.constant 1.000000e+00 : f32
    %595 = vector.broadcast %cst_137 : f32 to vector<2x64xf32>
    %596 = arith.addf %595, %594 : vector<2x64xf32>
    %597 = arith.divf %595, %596 : vector<2x64xf32>
    %598 = vector.extract_strided_slice %597 {offsets = [0, 0], sizes = [2, 32], strides = [1, 1]} : vector<2x64xf32> to vector<2x32xf32>
    %599 = vector.extract_strided_slice %597 {offsets = [0, 32], sizes = [2, 32], strides = [1, 1]} : vector<2x64xf32> to vector<2x32xf32>
    %600 = vector.extract_strided_slice %588 {offsets = [0, 64], sizes = [2, 32], strides = [1, 1]} : vector<2x96xf32> to vector<2x32xf32>
    %601 = vector.extract_strided_slice %589 {offsets = [0, 64], sizes = [2, 32], strides = [1, 1]} : vector<2x96xf32> to vector<2x32xf32>
    %602 = vector.broadcast %462 : vector<1x32xf32> to vector<2x32xf32>
    %603 = arith.addf %601, %602 : vector<2x32xf32>
    %604 = arith.mulf %598, %603 : vector<2x32xf32>
    %605 = arith.addf %600, %604 : vector<2x32xf32>
    %606 = math.tanh %605 : vector<2x32xf32>
    %cst_138 = arith.constant 1.000000e+00 : f32
    %607 = vector.broadcast %cst_138 : f32 to vector<2x32xf32>
    %608 = arith.subf %607, %599 : vector<2x32xf32>
    %609 = arith.mulf %608, %606 : vector<2x32xf32>
    %610 = arith.mulf %599, %584 : vector<2x32xf32>
    %611 = arith.addf %609, %610 : vector<2x32xf32>
    %612 = vector.shape_cast %611 : vector<2x32xf32> to vector<2x1x32xf32>
    %c0_139 = arith.constant 0 : index
    %c4_140 = arith.constant 4 : index
    %c0_141 = arith.constant 0 : index
    %613 = vector.load %arg3[%c0_139, %c4_140, %c0_141] : memref<2x8x64xf32, #tpu.memory_space<vmem>>, vector<2x1x32xf32>
    tpu.vector_store %arg3[%c0_139, %c4_140, %c0_141], %612 {strides = array<i32>} : memref<2x8x64xf32, #tpu.memory_space<vmem>>, vector<2x1x32xf32>,
    %614 = vector.extract_strided_slice %467 {offsets = [0, 5, 0], sizes = [2, 1, 96], strides = [1, 1, 1]} : vector<2x8x96xf32> to vector<2x1x96xf32>
    %615 = vector.shape_cast %614 : vector<2x1x96xf32> to vector<2x96xf32>
    %cst_142 = arith.constant dense<0.000000e+00> : vector<2x96xf32>
    %616 = tpu.matmul %611, %459, %cst_142 {dimension_numbers = #tpu.dot_dimension_numbers<[1], [0], [0], [1], [0, 0, 1, 1], [], []>} : vector<2x32xf32>, vector<32x96xf32>, vector<2x96xf32> -> vector<2x96xf32>
    %617 = vector.extract_strided_slice %615 {offsets = [0, 0], sizes = [2, 64], strides = [1, 1]} : vector<2x96xf32> to vector<2x64xf32>
    %618 = vector.extract_strided_slice %616 {offsets = [0, 0], sizes = [2, 64], strides = [1, 1]} : vector<2x96xf32> to vector<2x64xf32>
    %619 = arith.addf %617, %618 : vector<2x64xf32>
    %620 = arith.negf %619 : vector<2x64xf32>
    %621 = math.exp %620 : vector<2x64xf32>
    %cst_143 = arith.constant 1.000000e+00 : f32
    %622 = vector.broadcast %cst_143 : f32 to vector<2x64xf32>
    %623 = arith.addf %622, %621 : vector<2x64xf32>
    %624 = arith.divf %622, %623 : vector<2x64xf32>
    %625 = vector.extract_strided_slice %624 {offsets = [0, 0], sizes = [2, 32], strides = [1, 1]} : vector<2x64xf32> to vector<2x32xf32>
    %626 = vector.extract_strided_slice %624 {offsets = [0, 32], sizes = [2, 32], strides = [1, 1]} : vector<2x64xf32> to vector<2x32xf32>
    %627 = vector.extract_strided_slice %615 {offsets = [0, 64], sizes = [2, 32], strides = [1, 1]} : vector<2x96xf32> to vector<2x32xf32>
    %628 = vector.extract_strided_slice %616 {offsets = [0, 64], sizes = [2, 32], strides = [1, 1]} : vector<2x96xf32> to vector<2x32xf32>
    %629 = vector.broadcast %462 : vector<1x32xf32> to vector<2x32xf32>
    %630 = arith.addf %628, %629 : vector<2x32xf32>
    %631 = arith.mulf %625, %630 : vector<2x32xf32>
    %632 = arith.addf %627, %631 : vector<2x32xf32>
    %633 = math.tanh %632 : vector<2x32xf32>
    %cst_144 = arith.constant 1.000000e+00 : f32
    %634 = vector.broadcast %cst_144 : f32 to vector<2x32xf32>
    %635 = arith.subf %634, %626 : vector<2x32xf32>
    %636 = arith.mulf %635, %633 : vector<2x32xf32>
    %637 = arith.mulf %626, %611 : vector<2x32xf32>
    %638 = arith.addf %636, %637 : vector<2x32xf32>
    %639 = vector.shape_cast %638 : vector<2x32xf32> to vector<2x1x32xf32>
    %c0_145 = arith.constant 0 : index
    %c5_146 = arith.constant 5 : index
    %c0_147 = arith.constant 0 : index
    %640 = vector.load %arg3[%c0_145, %c5_146, %c0_147] : memref<2x8x64xf32, #tpu.memory_space<vmem>>, vector<2x1x32xf32>
    tpu.vector_store %arg3[%c0_145, %c5_146, %c0_147], %639 {strides = array<i32>} : memref<2x8x64xf32, #tpu.memory_space<vmem>>, vector<2x1x32xf32>,
    %641 = vector.extract_strided_slice %467 {offsets = [0, 6, 0], sizes = [2, 1, 96], strides = [1, 1, 1]} : vector<2x8x96xf32> to vector<2x1x96xf32>
    %642 = vector.shape_cast %641 : vector<2x1x96xf32> to vector<2x96xf32>
    %cst_148 = arith.constant dense<0.000000e+00> : vector<2x96xf32>
    %643 = tpu.matmul %638, %459, %cst_148 {dimension_numbers = #tpu.dot_dimension_numbers<[1], [0], [0], [1], [0, 0, 1, 1], [], []>} : vector<2x32xf32>, vector<32x96xf32>, vector<2x96xf32> -> vector<2x96xf32>
    %644 = vector.extract_strided_slice %642 {offsets = [0, 0], sizes = [2, 64], strides = [1, 1]} : vector<2x96xf32> to vector<2x64xf32>
    %645 = vector.extract_strided_slice %643 {offsets = [0, 0], sizes = [2, 64], strides = [1, 1]} : vector<2x96xf32> to vector<2x64xf32>
    %646 = arith.addf %644, %645 : vector<2x64xf32>
    %647 = arith.negf %646 : vector<2x64xf32>
    %648 = math.exp %647 : vector<2x64xf32>
    %cst_149 = arith.constant 1.000000e+00 : f32
    %649 = vector.broadcast %cst_149 : f32 to vector<2x64xf32>
    %650 = arith.addf %649, %648 : vector<2x64xf32>
    %651 = arith.divf %649, %650 : vector<2x64xf32>
    %652 = vector.extract_strided_slice %651 {offsets = [0, 0], sizes = [2, 32], strides = [1, 1]} : vector<2x64xf32> to vector<2x32xf32>
    %653 = vector.extract_strided_slice %651 {offsets = [0, 32], sizes = [2, 32], strides = [1, 1]} : vector<2x64xf32> to vector<2x32xf32>
    %654 = vector.extract_strided_slice %642 {offsets = [0, 64], sizes = [2, 32], strides = [1, 1]} : vector<2x96xf32> to vector<2x32xf32>
    %655 = vector.extract_strided_slice %643 {offsets = [0, 64], sizes = [2, 32], strides = [1, 1]} : vector<2x96xf32> to vector<2x32xf32>
    %656 = vector.broadcast %462 : vector<1x32xf32> to vector<2x32xf32>
    %657 = arith.addf %655, %656 : vector<2x32xf32>
    %658 = arith.mulf %652, %657 : vector<2x32xf32>
    %659 = arith.addf %654, %658 : vector<2x32xf32>
    %660 = math.tanh %659 : vector<2x32xf32>
    %cst_150 = arith.constant 1.000000e+00 : f32
    %661 = vector.broadcast %cst_150 : f32 to vector<2x32xf32>
    %662 = arith.subf %661, %653 : vector<2x32xf32>
    %663 = arith.mulf %662, %660 : vector<2x32xf32>
    %664 = arith.mulf %653, %638 : vector<2x32xf32>
    %665 = arith.addf %663, %664 : vector<2x32xf32>
    %666 = vector.shape_cast %665 : vector<2x32xf32> to vector<2x1x32xf32>
    %c0_151 = arith.constant 0 : index
    %c6_152 = arith.constant 6 : index
    %c0_153 = arith.constant 0 : index
    %667 = vector.load %arg3[%c0_151, %c6_152, %c0_153] : memref<2x8x64xf32, #tpu.memory_space<vmem>>, vector<2x1x32xf32>
    tpu.vector_store %arg3[%c0_151, %c6_152, %c0_153], %666 {strides = array<i32>} : memref<2x8x64xf32, #tpu.memory_space<vmem>>, vector<2x1x32xf32>,
    %668 = vector.extract_strided_slice %467 {offsets = [0, 7, 0], sizes = [2, 1, 96], strides = [1, 1, 1]} : vector<2x8x96xf32> to vector<2x1x96xf32>
    %669 = vector.shape_cast %668 : vector<2x1x96xf32> to vector<2x96xf32>
    %cst_154 = arith.constant dense<0.000000e+00> : vector<2x96xf32>
    %670 = tpu.matmul %665, %459, %cst_154 {dimension_numbers = #tpu.dot_dimension_numbers<[1], [0], [0], [1], [0, 0, 1, 1], [], []>} : vector<2x32xf32>, vector<32x96xf32>, vector<2x96xf32> -> vector<2x96xf32>
    %671 = vector.extract_strided_slice %669 {offsets = [0, 0], sizes = [2, 64], strides = [1, 1]} : vector<2x96xf32> to vector<2x64xf32>
    %672 = vector.extract_strided_slice %670 {offsets = [0, 0], sizes = [2, 64], strides = [1, 1]} : vector<2x96xf32> to vector<2x64xf32>
    %673 = arith.addf %671, %672 : vector<2x64xf32>
    %674 = arith.negf %673 : vector<2x64xf32>
    %675 = math.exp %674 : vector<2x64xf32>
    %cst_155 = arith.constant 1.000000e+00 : f32
    %676 = vector.broadcast %cst_155 : f32 to vector<2x64xf32>
    %677 = arith.addf %676, %675 : vector<2x64xf32>
    %678 = arith.divf %676, %677 : vector<2x64xf32>
    %679 = vector.extract_strided_slice %678 {offsets = [0, 0], sizes = [2, 32], strides = [1, 1]} : vector<2x64xf32> to vector<2x32xf32>
    %680 = vector.extract_strided_slice %678 {offsets = [0, 32], sizes = [2, 32], strides = [1, 1]} : vector<2x64xf32> to vector<2x32xf32>
    %681 = vector.extract_strided_slice %669 {offsets = [0, 64], sizes = [2, 32], strides = [1, 1]} : vector<2x96xf32> to vector<2x32xf32>
    %682 = vector.extract_strided_slice %670 {offsets = [0, 64], sizes = [2, 32], strides = [1, 1]} : vector<2x96xf32> to vector<2x32xf32>
    %683 = vector.broadcast %462 : vector<1x32xf32> to vector<2x32xf32>
    %684 = arith.addf %682, %683 : vector<2x32xf32>
    %685 = arith.mulf %679, %684 : vector<2x32xf32>
    %686 = arith.addf %681, %685 : vector<2x32xf32>
    %687 = math.tanh %686 : vector<2x32xf32>
    %cst_156 = arith.constant 1.000000e+00 : f32
    %688 = vector.broadcast %cst_156 : f32 to vector<2x32xf32>
    %689 = arith.subf %688, %680 : vector<2x32xf32>
    %690 = arith.mulf %689, %687 : vector<2x32xf32>
    %691 = arith.mulf %680, %665 : vector<2x32xf32>
    %692 = arith.addf %690, %691 : vector<2x32xf32>
    %693 = vector.shape_cast %692 : vector<2x32xf32> to vector<2x1x32xf32>
    %c0_157 = arith.constant 0 : index
    %c7_158 = arith.constant 7 : index
    %c0_159 = arith.constant 0 : index
    %694 = vector.load %arg3[%c0_157, %c7_158, %c0_159] : memref<2x8x64xf32, #tpu.memory_space<vmem>>, vector<2x1x32xf32>
    tpu.vector_store %arg3[%c0_157, %c7_158, %c0_159], %693 {strides = array<i32>} : memref<2x8x64xf32, #tpu.memory_space<vmem>>, vector<2x1x32xf32>,
    %cst_160 = arith.constant 0.000000e+00 : f32
    %695 = vector.broadcast %cst_160 : f32 to vector<2x32xf32>
    %696 = vector.extract_strided_slice %477 {offsets = [0, 7, 0], sizes = [2, 1, 96], strides = [1, 1, 1]} : vector<2x8x96xf32> to vector<2x1x96xf32>
    %697 = vector.shape_cast %696 : vector<2x1x96xf32> to vector<2x96xf32>
    %cst_161 = arith.constant dense<0.000000e+00> : vector<2x96xf32>
    %698 = tpu.matmul %695, %469, %cst_161 {dimension_numbers = #tpu.dot_dimension_numbers<[1], [0], [0], [1], [0, 0, 1, 1], [], []>} : vector<2x32xf32>, vector<32x96xf32>, vector<2x96xf32> -> vector<2x96xf32>
    %699 = vector.extract_strided_slice %697 {offsets = [0, 0], sizes = [2, 64], strides = [1, 1]} : vector<2x96xf32> to vector<2x64xf32>
    %700 = vector.extract_strided_slice %698 {offsets = [0, 0], sizes = [2, 64], strides = [1, 1]} : vector<2x96xf32> to vector<2x64xf32>
    %701 = arith.addf %699, %700 : vector<2x64xf32>
    %702 = arith.negf %701 : vector<2x64xf32>
    %703 = math.exp %702 : vector<2x64xf32>
    %cst_162 = arith.constant 1.000000e+00 : f32
    %704 = vector.broadcast %cst_162 : f32 to vector<2x64xf32>
    %705 = arith.addf %704, %703 : vector<2x64xf32>
    %706 = arith.divf %704, %705 : vector<2x64xf32>
    %707 = vector.extract_strided_slice %706 {offsets = [0, 0], sizes = [2, 32], strides = [1, 1]} : vector<2x64xf32> to vector<2x32xf32>
    %708 = vector.extract_strided_slice %706 {offsets = [0, 32], sizes = [2, 32], strides = [1, 1]} : vector<2x64xf32> to vector<2x32xf32>
    %709 = vector.extract_strided_slice %697 {offsets = [0, 64], sizes = [2, 32], strides = [1, 1]} : vector<2x96xf32> to vector<2x32xf32>
    %710 = vector.extract_strided_slice %698 {offsets = [0, 64], sizes = [2, 32], strides = [1, 1]} : vector<2x96xf32> to vector<2x32xf32>
    %711 = vector.broadcast %472 : vector<1x32xf32> to vector<2x32xf32>
    %712 = arith.addf %710, %711 : vector<2x32xf32>
    %713 = arith.mulf %707, %712 : vector<2x32xf32>
    %714 = arith.addf %709, %713 : vector<2x32xf32>
    %715 = math.tanh %714 : vector<2x32xf32>
    %cst_163 = arith.constant 1.000000e+00 : f32
    %716 = vector.broadcast %cst_163 : f32 to vector<2x32xf32>
    %717 = arith.subf %716, %708 : vector<2x32xf32>
    %718 = arith.mulf %717, %715 : vector<2x32xf32>
    %719 = arith.mulf %708, %695 : vector<2x32xf32>
    %720 = arith.addf %718, %719 : vector<2x32xf32>
    %721 = vector.shape_cast %720 : vector<2x32xf32> to vector<2x1x32xf32>
    %c0_164 = arith.constant 0 : index
    %c7_165 = arith.constant 7 : index
    %c32_166 = arith.constant 32 : index
    %722 = vector.load %arg3[%c0_164, %c7_165, %c32_166] : memref<2x8x64xf32, #tpu.memory_space<vmem>>, vector<2x1x32xf32>
    tpu.vector_store %arg3[%c0_164, %c7_165, %c32_166], %721 {strides = array<i32>} : memref<2x8x64xf32, #tpu.memory_space<vmem>>, vector<2x1x32xf32>,
    %723 = vector.extract_strided_slice %477 {offsets = [0, 6, 0], sizes = [2, 1, 96], strides = [1, 1, 1]} : vector<2x8x96xf32> to vector<2x1x96xf32>
    %724 = vector.shape_cast %723 : vector<2x1x96xf32> to vector<2x96xf32>
    %cst_167 = arith.constant dense<0.000000e+00> : vector<2x96xf32>
    %725 = tpu.matmul %720, %469, %cst_167 {dimension_numbers = #tpu.dot_dimension_numbers<[1], [0], [0], [1], [0, 0, 1, 1], [], []>} : vector<2x32xf32>, vector<32x96xf32>, vector<2x96xf32> -> vector<2x96xf32>
    %726 = vector.extract_strided_slice %724 {offsets = [0, 0], sizes = [2, 64], strides = [1, 1]} : vector<2x96xf32> to vector<2x64xf32>
    %727 = vector.extract_strided_slice %725 {offsets = [0, 0], sizes = [2, 64], strides = [1, 1]} : vector<2x96xf32> to vector<2x64xf32>
    %728 = arith.addf %726, %727 : vector<2x64xf32>
    %729 = arith.negf %728 : vector<2x64xf32>
    %730 = math.exp %729 : vector<2x64xf32>
    %cst_168 = arith.constant 1.000000e+00 : f32
    %731 = vector.broadcast %cst_168 : f32 to vector<2x64xf32>
    %732 = arith.addf %731, %730 : vector<2x64xf32>
    %733 = arith.divf %731, %732 : vector<2x64xf32>
    %734 = vector.extract_strided_slice %733 {offsets = [0, 0], sizes = [2, 32], strides = [1, 1]} : vector<2x64xf32> to vector<2x32xf32>
    %735 = vector.extract_strided_slice %733 {offsets = [0, 32], sizes = [2, 32], strides = [1, 1]} : vector<2x64xf32> to vector<2x32xf32>
    %736 = vector.extract_strided_slice %724 {offsets = [0, 64], sizes = [2, 32], strides = [1, 1]} : vector<2x96xf32> to vector<2x32xf32>
    %737 = vector.extract_strided_slice %725 {offsets = [0, 64], sizes = [2, 32], strides = [1, 1]} : vector<2x96xf32> to vector<2x32xf32>
    %738 = vector.broadcast %472 : vector<1x32xf32> to vector<2x32xf32>
    %739 = arith.addf %737, %738 : vector<2x32xf32>
    %740 = arith.mulf %734, %739 : vector<2x32xf32>
    %741 = arith.addf %736, %740 : vector<2x32xf32>
    %742 = math.tanh %741 : vector<2x32xf32>
    %cst_169 = arith.constant 1.000000e+00 : f32
    %743 = vector.broadcast %cst_169 : f32 to vector<2x32xf32>
    %744 = arith.subf %743, %735 : vector<2x32xf32>
    %745 = arith.mulf %744, %742 : vector<2x32xf32>
    %746 = arith.mulf %735, %720 : vector<2x32xf32>
    %747 = arith.addf %745, %746 : vector<2x32xf32>
    %748 = vector.shape_cast %747 : vector<2x32xf32> to vector<2x1x32xf32>
    %c0_170 = arith.constant 0 : index
    %c6_171 = arith.constant 6 : index
    %c32_172 = arith.constant 32 : index
    %749 = vector.load %arg3[%c0_170, %c6_171, %c32_172] : memref<2x8x64xf32, #tpu.memory_space<vmem>>, vector<2x1x32xf32>
    tpu.vector_store %arg3[%c0_170, %c6_171, %c32_172], %748 {strides = array<i32>} : memref<2x8x64xf32, #tpu.memory_space<vmem>>, vector<2x1x32xf32>,
    %750 = vector.extract_strided_slice %477 {offsets = [0, 5, 0], sizes = [2, 1, 96], strides = [1, 1, 1]} : vector<2x8x96xf32> to vector<2x1x96xf32>
    %751 = vector.shape_cast %750 : vector<2x1x96xf32> to vector<2x96xf32>
    %cst_173 = arith.constant dense<0.000000e+00> : vector<2x96xf32>
    %752 = tpu.matmul %747, %469, %cst_173 {dimension_numbers = #tpu.dot_dimension_numbers<[1], [0], [0], [1], [0, 0, 1, 1], [], []>} : vector<2x32xf32>, vector<32x96xf32>, vector<2x96xf32> -> vector<2x96xf32>
    %753 = vector.extract_strided_slice %751 {offsets = [0, 0], sizes = [2, 64], strides = [1, 1]} : vector<2x96xf32> to vector<2x64xf32>
    %754 = vector.extract_strided_slice %752 {offsets = [0, 0], sizes = [2, 64], strides = [1, 1]} : vector<2x96xf32> to vector<2x64xf32>
    %755 = arith.addf %753, %754 : vector<2x64xf32>
    %756 = arith.negf %755 : vector<2x64xf32>
    %757 = math.exp %756 : vector<2x64xf32>
    %cst_174 = arith.constant 1.000000e+00 : f32
    %758 = vector.broadcast %cst_174 : f32 to vector<2x64xf32>
    %759 = arith.addf %758, %757 : vector<2x64xf32>
    %760 = arith.divf %758, %759 : vector<2x64xf32>
    %761 = vector.extract_strided_slice %760 {offsets = [0, 0], sizes = [2, 32], strides = [1, 1]} : vector<2x64xf32> to vector<2x32xf32>
    %762 = vector.extract_strided_slice %760 {offsets = [0, 32], sizes = [2, 32], strides = [1, 1]} : vector<2x64xf32> to vector<2x32xf32>
    %763 = vector.extract_strided_slice %751 {offsets = [0, 64], sizes = [2, 32], strides = [1, 1]} : vector<2x96xf32> to vector<2x32xf32>
    %764 = vector.extract_strided_slice %752 {offsets = [0, 64], sizes = [2, 32], strides = [1, 1]} : vector<2x96xf32> to vector<2x32xf32>
    %765 = vector.broadcast %472 : vector<1x32xf32> to vector<2x32xf32>
    %766 = arith.addf %764, %765 : vector<2x32xf32>
    %767 = arith.mulf %761, %766 : vector<2x32xf32>
    %768 = arith.addf %763, %767 : vector<2x32xf32>
    %769 = math.tanh %768 : vector<2x32xf32>
    %cst_175 = arith.constant 1.000000e+00 : f32
    %770 = vector.broadcast %cst_175 : f32 to vector<2x32xf32>
    %771 = arith.subf %770, %762 : vector<2x32xf32>
    %772 = arith.mulf %771, %769 : vector<2x32xf32>
    %773 = arith.mulf %762, %747 : vector<2x32xf32>
    %774 = arith.addf %772, %773 : vector<2x32xf32>
    %775 = vector.shape_cast %774 : vector<2x32xf32> to vector<2x1x32xf32>
    %c0_176 = arith.constant 0 : index
    %c5_177 = arith.constant 5 : index
    %c32_178 = arith.constant 32 : index
    %776 = vector.load %arg3[%c0_176, %c5_177, %c32_178] : memref<2x8x64xf32, #tpu.memory_space<vmem>>, vector<2x1x32xf32>
    tpu.vector_store %arg3[%c0_176, %c5_177, %c32_178], %775 {strides = array<i32>} : memref<2x8x64xf32, #tpu.memory_space<vmem>>, vector<2x1x32xf32>,
    %777 = vector.extract_strided_slice %477 {offsets = [0, 4, 0], sizes = [2, 1, 96], strides = [1, 1, 1]} : vector<2x8x96xf32> to vector<2x1x96xf32>
    %778 = vector.shape_cast %777 : vector<2x1x96xf32> to vector<2x96xf32>
    %cst_179 = arith.constant dense<0.000000e+00> : vector<2x96xf32>
    %779 = tpu.matmul %774, %469, %cst_179 {dimension_numbers = #tpu.dot_dimension_numbers<[1], [0], [0], [1], [0, 0, 1, 1], [], []>} : vector<2x32xf32>, vector<32x96xf32>, vector<2x96xf32> -> vector<2x96xf32>
    %780 = vector.extract_strided_slice %778 {offsets = [0, 0], sizes = [2, 64], strides = [1, 1]} : vector<2x96xf32> to vector<2x64xf32>
    %781 = vector.extract_strided_slice %779 {offsets = [0, 0], sizes = [2, 64], strides = [1, 1]} : vector<2x96xf32> to vector<2x64xf32>
    %782 = arith.addf %780, %781 : vector<2x64xf32>
    %783 = arith.negf %782 : vector<2x64xf32>
    %784 = math.exp %783 : vector<2x64xf32>
    %cst_180 = arith.constant 1.000000e+00 : f32
    %785 = vector.broadcast %cst_180 : f32 to vector<2x64xf32>
    %786 = arith.addf %785, %784 : vector<2x64xf32>
    %787 = arith.divf %785, %786 : vector<2x64xf32>
    %788 = vector.extract_strided_slice %787 {offsets = [0, 0], sizes = [2, 32], strides = [1, 1]} : vector<2x64xf32> to vector<2x32xf32>
    %789 = vector.extract_strided_slice %787 {offsets = [0, 32], sizes = [2, 32], strides = [1, 1]} : vector<2x64xf32> to vector<2x32xf32>
    %790 = vector.extract_strided_slice %778 {offsets = [0, 64], sizes = [2, 32], strides = [1, 1]} : vector<2x96xf32> to vector<2x32xf32>
    %791 = vector.extract_strided_slice %779 {offsets = [0, 64], sizes = [2, 32], strides = [1, 1]} : vector<2x96xf32> to vector<2x32xf32>
    %792 = vector.broadcast %472 : vector<1x32xf32> to vector<2x32xf32>
    %793 = arith.addf %791, %792 : vector<2x32xf32>
    %794 = arith.mulf %788, %793 : vector<2x32xf32>
    %795 = arith.addf %790, %794 : vector<2x32xf32>
    %796 = math.tanh %795 : vector<2x32xf32>
    %cst_181 = arith.constant 1.000000e+00 : f32
    %797 = vector.broadcast %cst_181 : f32 to vector<2x32xf32>
    %798 = arith.subf %797, %789 : vector<2x32xf32>
    %799 = arith.mulf %798, %796 : vector<2x32xf32>
    %800 = arith.mulf %789, %774 : vector<2x32xf32>
    %801 = arith.addf %799, %800 : vector<2x32xf32>
    %802 = vector.shape_cast %801 : vector<2x32xf32> to vector<2x1x32xf32>
    %c0_182 = arith.constant 0 : index
    %c4_183 = arith.constant 4 : index
    %c32_184 = arith.constant 32 : index
    %803 = vector.load %arg3[%c0_182, %c4_183, %c32_184] : memref<2x8x64xf32, #tpu.memory_space<vmem>>, vector<2x1x32xf32>
    tpu.vector_store %arg3[%c0_182, %c4_183, %c32_184], %802 {strides = array<i32>} : memref<2x8x64xf32, #tpu.memory_space<vmem>>, vector<2x1x32xf32>,
    %804 = vector.extract_strided_slice %477 {offsets = [0, 3, 0], sizes = [2, 1, 96], strides = [1, 1, 1]} : vector<2x8x96xf32> to vector<2x1x96xf32>
    %805 = vector.shape_cast %804 : vector<2x1x96xf32> to vector<2x96xf32>
    %cst_185 = arith.constant dense<0.000000e+00> : vector<2x96xf32>
    %806 = tpu.matmul %801, %469, %cst_185 {dimension_numbers = #tpu.dot_dimension_numbers<[1], [0], [0], [1], [0, 0, 1, 1], [], []>} : vector<2x32xf32>, vector<32x96xf32>, vector<2x96xf32> -> vector<2x96xf32>
    %807 = vector.extract_strided_slice %805 {offsets = [0, 0], sizes = [2, 64], strides = [1, 1]} : vector<2x96xf32> to vector<2x64xf32>
    %808 = vector.extract_strided_slice %806 {offsets = [0, 0], sizes = [2, 64], strides = [1, 1]} : vector<2x96xf32> to vector<2x64xf32>
    %809 = arith.addf %807, %808 : vector<2x64xf32>
    %810 = arith.negf %809 : vector<2x64xf32>
    %811 = math.exp %810 : vector<2x64xf32>
    %cst_186 = arith.constant 1.000000e+00 : f32
    %812 = vector.broadcast %cst_186 : f32 to vector<2x64xf32>
    %813 = arith.addf %812, %811 : vector<2x64xf32>
    %814 = arith.divf %812, %813 : vector<2x64xf32>
    %815 = vector.extract_strided_slice %814 {offsets = [0, 0], sizes = [2, 32], strides = [1, 1]} : vector<2x64xf32> to vector<2x32xf32>
    %816 = vector.extract_strided_slice %814 {offsets = [0, 32], sizes = [2, 32], strides = [1, 1]} : vector<2x64xf32> to vector<2x32xf32>
    %817 = vector.extract_strided_slice %805 {offsets = [0, 64], sizes = [2, 32], strides = [1, 1]} : vector<2x96xf32> to vector<2x32xf32>
    %818 = vector.extract_strided_slice %806 {offsets = [0, 64], sizes = [2, 32], strides = [1, 1]} : vector<2x96xf32> to vector<2x32xf32>
    %819 = vector.broadcast %472 : vector<1x32xf32> to vector<2x32xf32>
    %820 = arith.addf %818, %819 : vector<2x32xf32>
    %821 = arith.mulf %815, %820 : vector<2x32xf32>
    %822 = arith.addf %817, %821 : vector<2x32xf32>
    %823 = math.tanh %822 : vector<2x32xf32>
    %cst_187 = arith.constant 1.000000e+00 : f32
    %824 = vector.broadcast %cst_187 : f32 to vector<2x32xf32>
    %825 = arith.subf %824, %816 : vector<2x32xf32>
    %826 = arith.mulf %825, %823 : vector<2x32xf32>
    %827 = arith.mulf %816, %801 : vector<2x32xf32>
    %828 = arith.addf %826, %827 : vector<2x32xf32>
    %829 = vector.shape_cast %828 : vector<2x32xf32> to vector<2x1x32xf32>
    %c0_188 = arith.constant 0 : index
    %c3_189 = arith.constant 3 : index
    %c32_190 = arith.constant 32 : index
    %830 = vector.load %arg3[%c0_188, %c3_189, %c32_190] : memref<2x8x64xf32, #tpu.memory_space<vmem>>, vector<2x1x32xf32>
    tpu.vector_store %arg3[%c0_188, %c3_189, %c32_190], %829 {strides = array<i32>} : memref<2x8x64xf32, #tpu.memory_space<vmem>>, vector<2x1x32xf32>,
    %831 = vector.extract_strided_slice %477 {offsets = [0, 2, 0], sizes = [2, 1, 96], strides = [1, 1, 1]} : vector<2x8x96xf32> to vector<2x1x96xf32>
    %832 = vector.shape_cast %831 : vector<2x1x96xf32> to vector<2x96xf32>
    %cst_191 = arith.constant dense<0.000000e+00> : vector<2x96xf32>
    %833 = tpu.matmul %828, %469, %cst_191 {dimension_numbers = #tpu.dot_dimension_numbers<[1], [0], [0], [1], [0, 0, 1, 1], [], []>} : vector<2x32xf32>, vector<32x96xf32>, vector<2x96xf32> -> vector<2x96xf32>
    %834 = vector.extract_strided_slice %832 {offsets = [0, 0], sizes = [2, 64], strides = [1, 1]} : vector<2x96xf32> to vector<2x64xf32>
    %835 = vector.extract_strided_slice %833 {offsets = [0, 0], sizes = [2, 64], strides = [1, 1]} : vector<2x96xf32> to vector<2x64xf32>
    %836 = arith.addf %834, %835 : vector<2x64xf32>
    %837 = arith.negf %836 : vector<2x64xf32>
    %838 = math.exp %837 : vector<2x64xf32>
    %cst_192 = arith.constant 1.000000e+00 : f32
    %839 = vector.broadcast %cst_192 : f32 to vector<2x64xf32>
    %840 = arith.addf %839, %838 : vector<2x64xf32>
    %841 = arith.divf %839, %840 : vector<2x64xf32>
    %842 = vector.extract_strided_slice %841 {offsets = [0, 0], sizes = [2, 32], strides = [1, 1]} : vector<2x64xf32> to vector<2x32xf32>
    %843 = vector.extract_strided_slice %841 {offsets = [0, 32], sizes = [2, 32], strides = [1, 1]} : vector<2x64xf32> to vector<2x32xf32>
    %844 = vector.extract_strided_slice %832 {offsets = [0, 64], sizes = [2, 32], strides = [1, 1]} : vector<2x96xf32> to vector<2x32xf32>
    %845 = vector.extract_strided_slice %833 {offsets = [0, 64], sizes = [2, 32], strides = [1, 1]} : vector<2x96xf32> to vector<2x32xf32>
    %846 = vector.broadcast %472 : vector<1x32xf32> to vector<2x32xf32>
    %847 = arith.addf %845, %846 : vector<2x32xf32>
    %848 = arith.mulf %842, %847 : vector<2x32xf32>
    %849 = arith.addf %844, %848 : vector<2x32xf32>
    %850 = math.tanh %849 : vector<2x32xf32>
    %cst_193 = arith.constant 1.000000e+00 : f32
    %851 = vector.broadcast %cst_193 : f32 to vector<2x32xf32>
    %852 = arith.subf %851, %843 : vector<2x32xf32>
    %853 = arith.mulf %852, %850 : vector<2x32xf32>
    %854 = arith.mulf %843, %828 : vector<2x32xf32>
    %855 = arith.addf %853, %854 : vector<2x32xf32>
    %856 = vector.shape_cast %855 : vector<2x32xf32> to vector<2x1x32xf32>
    %c0_194 = arith.constant 0 : index
    %c2_195 = arith.constant 2 : index
    %c32_196 = arith.constant 32 : index
    %857 = vector.load %arg3[%c0_194, %c2_195, %c32_196] : memref<2x8x64xf32, #tpu.memory_space<vmem>>, vector<2x1x32xf32>
    tpu.vector_store %arg3[%c0_194, %c2_195, %c32_196], %856 {strides = array<i32>} : memref<2x8x64xf32, #tpu.memory_space<vmem>>, vector<2x1x32xf32>,
    %858 = vector.extract_strided_slice %477 {offsets = [0, 1, 0], sizes = [2, 1, 96], strides = [1, 1, 1]} : vector<2x8x96xf32> to vector<2x1x96xf32>
    %859 = vector.shape_cast %858 : vector<2x1x96xf32> to vector<2x96xf32>
    %cst_197 = arith.constant dense<0.000000e+00> : vector<2x96xf32>
    %860 = tpu.matmul %855, %469, %cst_197 {dimension_numbers = #tpu.dot_dimension_numbers<[1], [0], [0], [1], [0, 0, 1, 1], [], []>} : vector<2x32xf32>, vector<32x96xf32>, vector<2x96xf32> -> vector<2x96xf32>
    %861 = vector.extract_strided_slice %859 {offsets = [0, 0], sizes = [2, 64], strides = [1, 1]} : vector<2x96xf32> to vector<2x64xf32>
    %862 = vector.extract_strided_slice %860 {offsets = [0, 0], sizes = [2, 64], strides = [1, 1]} : vector<2x96xf32> to vector<2x64xf32>
    %863 = arith.addf %861, %862 : vector<2x64xf32>
    %864 = arith.negf %863 : vector<2x64xf32>
    %865 = math.exp %864 : vector<2x64xf32>
    %cst_198 = arith.constant 1.000000e+00 : f32
    %866 = vector.broadcast %cst_198 : f32 to vector<2x64xf32>
    %867 = arith.addf %866, %865 : vector<2x64xf32>
    %868 = arith.divf %866, %867 : vector<2x64xf32>
    %869 = vector.extract_strided_slice %868 {offsets = [0, 0], sizes = [2, 32], strides = [1, 1]} : vector<2x64xf32> to vector<2x32xf32>
    %870 = vector.extract_strided_slice %868 {offsets = [0, 32], sizes = [2, 32], strides = [1, 1]} : vector<2x64xf32> to vector<2x32xf32>
    %871 = vector.extract_strided_slice %859 {offsets = [0, 64], sizes = [2, 32], strides = [1, 1]} : vector<2x96xf32> to vector<2x32xf32>
    %872 = vector.extract_strided_slice %860 {offsets = [0, 64], sizes = [2, 32], strides = [1, 1]} : vector<2x96xf32> to vector<2x32xf32>
    %873 = vector.broadcast %472 : vector<1x32xf32> to vector<2x32xf32>
    %874 = arith.addf %872, %873 : vector<2x32xf32>
    %875 = arith.mulf %869, %874 : vector<2x32xf32>
    %876 = arith.addf %871, %875 : vector<2x32xf32>
    %877 = math.tanh %876 : vector<2x32xf32>
    %cst_199 = arith.constant 1.000000e+00 : f32
    %878 = vector.broadcast %cst_199 : f32 to vector<2x32xf32>
    %879 = arith.subf %878, %870 : vector<2x32xf32>
    %880 = arith.mulf %879, %877 : vector<2x32xf32>
    %881 = arith.mulf %870, %855 : vector<2x32xf32>
    %882 = arith.addf %880, %881 : vector<2x32xf32>
    %883 = vector.shape_cast %882 : vector<2x32xf32> to vector<2x1x32xf32>
    %c0_200 = arith.constant 0 : index
    %c1_201 = arith.constant 1 : index
    %c32_202 = arith.constant 32 : index
    %884 = vector.load %arg3[%c0_200, %c1_201, %c32_202] : memref<2x8x64xf32, #tpu.memory_space<vmem>>, vector<2x1x32xf32>
    tpu.vector_store %arg3[%c0_200, %c1_201, %c32_202], %883 {strides = array<i32>} : memref<2x8x64xf32, #tpu.memory_space<vmem>>, vector<2x1x32xf32>,
    %885 = vector.extract_strided_slice %477 {offsets = [0, 0, 0], sizes = [2, 1, 96], strides = [1, 1, 1]} : vector<2x8x96xf32> to vector<2x1x96xf32>
    %886 = vector.shape_cast %885 : vector<2x1x96xf32> to vector<2x96xf32>
    %cst_203 = arith.constant dense<0.000000e+00> : vector<2x96xf32>
    %887 = tpu.matmul %882, %469, %cst_203 {dimension_numbers = #tpu.dot_dimension_numbers<[1], [0], [0], [1], [0, 0, 1, 1], [], []>} : vector<2x32xf32>, vector<32x96xf32>, vector<2x96xf32> -> vector<2x96xf32>
    %888 = vector.extract_strided_slice %886 {offsets = [0, 0], sizes = [2, 64], strides = [1, 1]} : vector<2x96xf32> to vector<2x64xf32>
    %889 = vector.extract_strided_slice %887 {offsets = [0, 0], sizes = [2, 64], strides = [1, 1]} : vector<2x96xf32> to vector<2x64xf32>
    %890 = arith.addf %888, %889 : vector<2x64xf32>
    %891 = arith.negf %890 : vector<2x64xf32>
    %892 = math.exp %891 : vector<2x64xf32>
    %cst_204 = arith.constant 1.000000e+00 : f32
    %893 = vector.broadcast %cst_204 : f32 to vector<2x64xf32>
    %894 = arith.addf %893, %892 : vector<2x64xf32>
    %895 = arith.divf %893, %894 : vector<2x64xf32>
    %896 = vector.extract_strided_slice %895 {offsets = [0, 0], sizes = [2, 32], strides = [1, 1]} : vector<2x64xf32> to vector<2x32xf32>
    %897 = vector.extract_strided_slice %895 {offsets = [0, 32], sizes = [2, 32], strides = [1, 1]} : vector<2x64xf32> to vector<2x32xf32>
    %898 = vector.extract_strided_slice %886 {offsets = [0, 64], sizes = [2, 32], strides = [1, 1]} : vector<2x96xf32> to vector<2x32xf32>
    %899 = vector.extract_strided_slice %887 {offsets = [0, 64], sizes = [2, 32], strides = [1, 1]} : vector<2x96xf32> to vector<2x32xf32>
    %900 = vector.broadcast %472 : vector<1x32xf32> to vector<2x32xf32>
    %901 = arith.addf %899, %900 : vector<2x32xf32>
    %902 = arith.mulf %896, %901 : vector<2x32xf32>
    %903 = arith.addf %898, %902 : vector<2x32xf32>
    %904 = math.tanh %903 : vector<2x32xf32>
    %cst_205 = arith.constant 1.000000e+00 : f32
    %905 = vector.broadcast %cst_205 : f32 to vector<2x32xf32>
    %906 = arith.subf %905, %897 : vector<2x32xf32>
    %907 = arith.mulf %906, %904 : vector<2x32xf32>
    %908 = arith.mulf %897, %882 : vector<2x32xf32>
    %909 = arith.addf %907, %908 : vector<2x32xf32>
    %910 = vector.shape_cast %909 : vector<2x32xf32> to vector<2x1x32xf32>
    %c0_206 = arith.constant 0 : index
    %c0_207 = arith.constant 0 : index
    %c32_208 = arith.constant 32 : index
    %911 = vector.load %arg3[%c0_206, %c0_207, %c32_208] : memref<2x8x64xf32, #tpu.memory_space<vmem>>, vector<2x1x32xf32>
    tpu.vector_store %arg3[%c0_206, %c0_207, %c32_208], %910 {strides = array<i32>} : memref<2x8x64xf32, #tpu.memory_space<vmem>>, vector<2x1x32xf32>,
    %c304 = arith.constant 304 : index
    %c0_209 = arith.constant 0 : index
    %912 = vector.load %arg1[%c304, %c0_209] : memref<320x96xf32, #tpu.memory_space<vmem>>, vector<8x96xf32>
    %913 = vector.extract_strided_slice %912 {offsets = [0, 0], sizes = [8, 64], strides = [1, 1]} : vector<8x96xf32> to vector<8x64xf32>
    %c312 = arith.constant 312 : index
    %c0_210 = arith.constant 0 : index
    %914 = vector.load %arg1[%c312, %c0_210] : memref<320x96xf32, #tpu.memory_space<vmem>>, vector<1x96xf32>
    %915 = vector.extract_strided_slice %914 {offsets = [0, 0], sizes = [1, 1], strides = [1, 1]} : vector<1x96xf32> to vector<1x1xf32>
    %c0_211 = arith.constant 0 : index
    %c0_212 = arith.constant 0 : index
    %c0_213 = arith.constant 0 : index
    %916 = vector.load %arg3[%c0_211, %c0_212, %c0_213] : memref<2x8x64xf32, #tpu.memory_space<vmem>>, vector<2x8x64xf32>
    %917 = vector.shape_cast %913 : vector<8x64xf32> to vector<1x8x64xf32>
    %918 = vector.broadcast %917 : vector<1x8x64xf32> to vector<2x8x64xf32>
    %919 = arith.mulf %916, %918 : vector<2x8x64xf32>
    %cst_214 = arith.constant dense<0.000000e+00> : vector<2x8xf32>
    %920 = vector.multi_reduction <add>, %919, %cst_214 [2] : vector<2x8x64xf32> to vector<2x8xf32>
    %cst_215 = arith.constant dense<0.000000e+00> : vector<2xf32>
    %921 = vector.multi_reduction <add>, %920, %cst_215 [1] : vector<2x8xf32> to vector<2xf32>
    %922 = vector.shape_cast %921 : vector<2xf32> to vector<2x1xf32>
    %923 = vector.broadcast %915 : vector<1x1xf32> to vector<2x1xf32>
    %924 = arith.addf %922, %923 : vector<2x1xf32>
    %925 = arith.negf %924 : vector<2x1xf32>
    %926 = math.exp %925 : vector<2x1xf32>
    %cst_216 = arith.constant 1.000000e+00 : f32
    %927 = vector.broadcast %cst_216 : f32 to vector<2x1xf32>
    %928 = arith.addf %927, %926 : vector<2x1xf32>
    %929 = arith.divf %927, %928 : vector<2x1xf32>
    %c0_217 = arith.constant 0 : index
    %c0_218 = arith.constant 0 : index
    %930 = vector.load %arg2[%c0_217, %c0_218] : memref<2x1xf32, #tpu.memory_space<vmem>>, vector<2x1xf32>
    tpu.vector_store %arg2[%c0_217, %c0_218], %929 {strides = array<i32>} : memref<2x1xf32, #tpu.memory_space<vmem>>, vector<2x1xf32>,
    return
  }
}

</mosaic_0001>

<bundles_post_ra>
// kernel: tpu_custom_call.1
= control target key start
LH: loop header
LB: loop body
LE: loop exit
PB: predicated region body
PF: predicated region fallthrough
CT: control target
= control target key end

     0   :  { %vm26_vm0 = vcmask 1045504   ;;  %vm19_vm1 = vcmask 48128   ;;  %s4633_s23 = smov 64   ;;  %v4634_v9 = vmov 0.0   ;;  %vm215_vm10 = vcmask 1041409   ;;  %s5946_s1 = inlined_call_operand.vmem [shape: f32[320,96], index: 1, kind: input, shape index: {}]   ;;  %s5947_s0 = inlined_call_operand.vmem [shape: f32[2,8,6], index: 0, kind: input, shape index: {}]   ;;  %s5948_s2 = inlined_call_operand.vmem [shape: f32[2,1], index: 2, kind: output, shape index: {}]  }
   0x1   :  { %v4654_v0 = vld [vmem:[%s5946_s1 + $0x20] sm:$0xff]  ;;  %v4659_v1 = vld [vmem:[%s5946_s1 + $0x18] sm:$0xff]  ;;  %v4674_v4 = vld [vmem:[%s5946_s1 + $0x10] sm:$0xff]  ;;  %vm91_vm11 = vcmask 261120  }
   0x2   :  { %v13_v2 = vld [vmem:[%s5946_s1] sm:$0x3f]  ;;  %107 = vmatpush.msra.mxu2 %v4654_v0  ;;  %v18_v5 = vld [vmem:[%s5946_s1 + $0x28] sm:$0x3]  ;;  %233 = vmatpush.msra.mxu3 %v4654_v0 }
   0x3   :  { %4130 = vmatpush.msk.msra.mxu0 %vm26_vm0, %v13_v2  ;;  %v4669_v3 = vld [vmem:[%s5947_s0] sm:$0xff]  ;;  %v159_v6 = vperm.slane %v18_v5, 1  ;;  %v4687_v7 = vld [vmem:[%s5946_s1 + $0x8] sm:$0xff]  ;;  %v53_v15 = vperm.slane %v18_v5, 0 }
   0x4   :  { %4131 = vmatmul.msk.f32.vlgmr.msra.gmra.mxu0 %vm19_vm1, %v4669_v3  ;;  %108 = vmatpush.msra.mxu2 %v4659_v1  ;;  %v4698_v8 = vld [vmem:[%s5947_s0 + $0x8] sm:$0xff]  ;;  %s4635_s0 = smov 96  }
   0x5   :  { %610 = vmatpush.msrb.mxu0 %v4654_v0  ;;  %234 = vmatpush.msra.mxu3 %v4659_v1 }
   0x6   :  { %109 = vmatpush.msra.mxu2 %v4674_v4  ;;  %161 = vrot.lane.b32.xlu0 %v159_v6, %s4633_s23 }
   0x7   :  { %235 = vmatpush.msra.mxu3 %v4674_v4  ;;  %611 = vmatpush.msrb.mxu0 %v4659_v1 }
   0x8   :  { %110 = vmatpush.msra.mxu2 %v4687_v7 }
   0x9   :  { %111 = vmatmul.f32.vlgmr.msra.gmra.mxu2 %v4634_v9  ;;  %236 = vmatpush.msra.mxu3 %v4687_v7 }
   0xa   :  { %356 = vmatpush.msrb.mxu2 %v4654_v0  ;;  %612 = vmatpush.msrb.mxu0 %v4674_v4 }
   0xb   :  { %483 = vmatpush.msrb.mxu3 %v4654_v0 }
   0xc   :  { %4132 = vmatmul.msk.f32.gmra.mxu0 %vm19_vm1, %v4698_v8  ;;  %357 = vmatpush.msrb.mxu2 %v4659_v1 }
   0xd   :  { %484 = vmatpush.msrb.mxu3 %v4659_v1  ;;  %613 = vmatpush.msrb.mxu0 %v4687_v7 }
   0xe   :  { %358 = vmatpush.msrb.mxu2 %v4674_v4 }
   0xf   :  { %485 = vmatpush.msrb.mxu3 %v4674_v4 }
  0x10   :  { %359 = vmatpush.msrb.mxu2 %v4687_v7 }
  0x11   :  { %486 = vmatpush.msrb.mxu3 %v4687_v7 }
  0x12   :  { %864 = vmatpush.msra.mxu2 %v4654_v0 }
  0x14   :  { %865 = vmatpush.msra.mxu2 %v4659_v1 }
  0x16   :  { %866 = vmatpush.msra.mxu2 %v4674_v4 }
  0x18   :  { %867 = vmatpush.msra.mxu2 %v4687_v7 }
  0x78   :  { %v4718_v10 = vpop.permute.xlu0 %161 }
  0x81   :  { %v47_v14 = vpop.f32.mrf.mxu0 }
  0x82   :  { %v4723_v17 = vadd.f32 %v53_v15, %v47_v14 }
  0x89   :  { %v50_v16 = vpop.f32.mrf.mxu0 }
  0x8a   :  { %v4725_v18 = vadd.f32 %v53_v15, %v50_v16 }
  0x8c   :  { %v112_v11 = vpop.f32.mrf.mxu2 }
  0x8d   :  { %v164_v12 = vadd.f32 %v4718_v10, %v112_v11  ;;  %v116_v19 = vrot.slane %v112_v11, 1  ;;  %v119_v20 = vadd.f32 %v112_v11, %v4723_v17 }
  0x8f   :  { %167 = vrot.lane.b32.xlu1 %v164_v12, %s4633_s23  ;;  %v166_v13 = vrot.slane %v164_v12, 1  ;;  %v120_v21 = vadd.f32 %v116_v19, %v4725_v18  ;;  %v4136_v22 = vmul.f32 -1.442695, %v119_v20 }
  0x91   :  { %169 = vrot.lane.b32.xlu0 %v166_v13, %s4633_s23  ;;  %v4137_v23 = vmul.f32 -1.442695, %v120_v21  ;;  %4237 = vpow2.f32 %v4136_v22 }
  0x93   :  { %4239 = vpow2.f32 %v4137_v23 }
  0x97   :  { %v4238_v24 = vpop.eup %4237 }
  0x98   :  { %v127_v26 = vadd.f32 1.0, %v4238_v24 }
  0x99   :  { %v4240_v25 = vpop.eup %4239 }
  0x9a   :  { %v128_v27 = vadd.f32 1.0, %v4240_v25  ;;  %4241 = vrcp.f32 %v127_v26  ;;  %v140_v37 = vand.u32 2147483648, %v127_v26  ;;  %vm134_vm4 = vweird.f32 %v127_v26 }
  0x9b   :  { %v138_v39 = vand.u32 2147483647, %v127_v26 }
  0x9c   :  { %4243 = vrcp.f32 %v128_v27  ;;  %v155_v40 = vand.u32 2147483648, %v128_v27  ;;  %vm149_vm6 = vweird.f32 %v128_v27  ;;  %v153_v41 = vand.u32 2147483647, %v128_v27 }
  0x9d   :  { %v141_v43 = vor.u32 1.1754944e-38, %v140_v37  ;;  %vm139_vm8 = vcmp.eq.f32.partialorder %v138_v39, 8.507059e+37 }
  0x9e   :  { %v156_v46 = vor.u32 1.1754944e-38, %v155_v40  ;;  %vm154_vm9 = vcmp.eq.f32.partialorder %v153_v41, 8.507059e+37 }
  0xa0   :  { %v4242_v28 = vpop.eup %4241 }
  0xa1   :  { %v130_v30 = vmul.f32 %v4242_v28, %v127_v26  ;;  %vm135_vm2 = vweird.f32 %v4242_v28 }
  0xa2   :  { %v4244_v29 = vpop.eup %4243  ;;  %vm136_vm5 = vmor %vm134_vm4, %vm135_vm2 }
  0xa3   :  { %v145_v31 = vmul.f32 %v4244_v29, %v128_v27  ;;  %v131_v32 = vsub.f32 1.0, %v130_v30  ;;  %vm150_vm3 = vweird.f32 %v4244_v29 }
  0xa4   :  { %vm151_vm7 = vmor %vm149_vm6, %vm150_vm3 }
  0xa5   :  { %v146_v33 = vsub.f32 1.0, %v145_v31  ;;  %v132_v34 = vmul.f32 %v4242_v28, %v131_v32 }
  0xa7   :  { %v147_v35 = vmul.f32 %v4244_v29, %v146_v33  ;;  %v133_v36 = vadd.f32 %v4242_v28, %v132_v34 }
  0xa9   :  { %v148_v38 = vadd.f32 %v4244_v29, %v147_v35  ;;  %v137_v42 = vsel %vm136_vm5, %v4242_v28, %v133_v36 }
  0xaa   :  { %v142_v47 = vsel %vm139_vm8, %v141_v43, %v137_v42 }
  0xab   :  { %v152_v44 = vsel %vm151_vm7, %v4244_v29, %v148_v38  ;;  %v187_v59 = vsub.f32 1.0, %v142_v47  ;;  %v199_v5 = vmul.f32 0.0, %v142_v47 }
  0xac   :  { %v157_v50 = vsel %vm154_vm9, %v156_v46, %v152_v44 }
  0xad   :  { %v188_v60 = vsub.f32 1.0, %v157_v50  ;;  %v200_v63 = vmul.f32 0.0, %v157_v50 }
 0x101   :  { %v168_v45 = vpop.permute.xlu1 %167 }
 0x102   :  { %v173_v48 = vmul.f32 %v168_v45, %v142_v47 }
 0x103   :  { %v170_v49 = vpop.permute.xlu0 %169 }
 0x104   :  { %v174_v51 = vmul.f32 %v170_v49, %v157_v50  ;;  %177 = vrot.lane.b32.xlu2 %v173_v48, %s4633_s23 }
 0x106   :  { %179 = vrot.lane.b32.xlu1 %v174_v51, %s4633_s23 }
 0x15e   :  { %v178_v52 = vpop.permute.xlu2 %177 }
 0x15f   :  { %v183_v53 = vadd.f32 %v178_v52, %v4723_v17 }
 0x161   :  { %4245 = vtanh.f32 %v183_v53 }
 0x167   :  { %v4246_v54 = vpop.eup %4245 }
 0x168   :  { %191 = vrot.lane.b32.xlu0 %v4246_v54, %s4635_s0 }
 0x178   :  { %v180_v55 = vpop.permute.xlu1 %179 }
 0x179   :  { %v184_v56 = vadd.f32 %v180_v55, %v4725_v18 }
 0x17b   :  { %4247 = vtanh.f32 %v184_v56 }
 0x181   :  { %v4248_v57 = vpop.eup %4247 }
 0x182   :  { %193 = vrot.lane.b32.xlu2 %v4248_v57, %s4635_s0 }
 0x1da   :  { %v192_v58 = vpop.permute.xlu0 %191 }
 0x1db   :  { %v197_v62 = vmul.f32 %v192_v58, %v187_v59 }
 0x1dc   :  { %v194_v61 = vpop.permute.xlu2 %193 }
 0x1dd   :  { %v198_v2 = vmul.f32 %v194_v61, %v188_v60  ;;  %v4737_v11 = vadd.f32 %v199_v5, %v197_v62 }
 0x1df   :  { %v4735_v6 = vadd.f32 %v200_v63, %v198_v2  ;;  %v320_v62 = vrot.slane %v4737_v11, 7 }
 0x1e1   :  { %v214_v12 = vrot.slane %v4735_v6, 7 }
 0x1e3   :  { %v216_v13 = vsel %vm215_vm10, %v214_v12, %v4737_v11 }
 0x1e4   :  { %217 = vrot.lane.b32.xlu1 %v216_v13, %s4635_s0 }
 0x256   :  { %v218_v14 = vpop.permute.xlu1 %217 }
 0x257   :  { %4138 = vmatmul.msk.f32.vlgmr.msra.gmra.mxu3 %vm91_vm11, %v218_v14 }
 0x258   :  { %991 = vmatpush.msra.mxu3 %v4654_v0 }
 0x25a   :  { %992 = vmatpush.msra.mxu3 %v4659_v1 }
 0x25c   :  { %993 = vmatpush.msra.mxu3 %v4674_v4 }
 0x25e   :  { %994 = vmatpush.msra.mxu3 %v4687_v7 }
 0x2da   :  { %v238_v15 = vpop.f32.mrf.mxu3 }
 0x2db   :  { %v285_v16 = vadd.f32 %v238_v15, %v4718_v10  ;;  %v242_v20 = vrot.slane %v238_v15, 7  ;;  %v246_v25 = vadd.f32 %v238_v15, %v4725_v18 }
 0x2dd   :  { %290 = vrot.lane.b32.xlu0 %v285_v16, %s4633_s23  ;;  %v287_v19 = vrot.slane %v285_v16, 7  ;;  %v245_v21 = vadd.f32 %v242_v20, %v4723_v17  ;;  %v4140_v26 = vmul.f32 -1.442695, %v246_v25 }
 0x2df   :  { %288 = vrot.lane.b32.xlu2 %v287_v19, %s4633_s23  ;;  %v4139_v22 = vmul.f32 -1.442695, %v245_v21 }
 0x2e1   :  { %4249 = vpow2.f32 %v4139_v22 }
 0x2e7   :  { %v4250_v23 = vpop.eup %4249 }
 0x2e8   :  { %v253_v24 = vadd.f32 1.0, %v4250_v23 }
 0x2ea   :  { %4251 = vrcp.f32 %v253_v24  ;;  %v266_v34 = vand.u32 2147483648, %v253_v24  ;;  %vm260_vm13 = vweird.f32 %v253_v24  ;;  %v264_v35 = vand.u32 2147483647, %v253_v24 }
 0x2eb   :  { %4253 = vpow2.f32 %v4140_v26 }
 0x2ec   :  { %v267_v37 = vor.u32 1.1754944e-38, %v266_v34  ;;  %vm265_vm15 = vcmp.eq.f32.partialorder %v264_v35, 8.507059e+37 }
 0x2f0   :  { %v4252_v27 = vpop.eup %4251 }
 0x2f1   :  { %v256_v28 = vmul.f32 %v4252_v27, %v253_v24  ;;  %v4254_v30 = vpop.eup %4253  ;;  %vm261_vm12 = vweird.f32 %v4252_v27 }
 0x2f2   :  { %v254_v32 = vadd.f32 1.0, %v4254_v30  ;;  %vm262_vm14 = vmor %vm260_vm13, %vm261_vm12 }
 0x2f3   :  { %v257_v29 = vsub.f32 1.0, %v256_v28 }
 0x2f4   :  { %4255 = vrcp.f32 %v254_v32  ;;  %v281_v46 = vand.u32 2147483648, %v254_v32  ;;  %vm275_vm3 = vweird.f32 %v254_v32  ;;  %v279_v47 = vand.u32 2147483647, %v254_v32 }
 0x2f5   :  { %v258_v31 = vmul.f32 %v4252_v27, %v257_v29 }
 0x2f6   :  { %v282_v49 = vor.u32 1.1754944e-38, %v281_v46  ;;  %vm280_vm5 = vcmp.eq.f32.partialorder %v279_v47, 8.507059e+37 }
 0x2f7   :  { %v259_v33 = vadd.f32 %v4252_v27, %v258_v31 }
 0x2f9   :  { %v263_v36 = vsel %vm262_vm14, %v4252_v27, %v259_v33 }
 0x2fa   :  { %v4256_v38 = vpop.eup %4255  ;;  %v268_v40 = vsel %vm265_vm15, %v267_v37, %v263_v36 }
 0x2fb   :  { %v271_v42 = vmul.f32 %v4256_v38, %v254_v32  ;;  %vm276_vm2 = vweird.f32 %v4256_v38  ;;  %v308_v61 = vsub.f32 1.0, %v268_v40  ;;  %v323_v5 = vmul.f32 %v320_v62, %v268_v40 }
 0x2fc   :  { %vm277_vm4 = vmor %vm275_vm3, %vm276_vm2 }
 0x2fd   :  { %v272_v43 = vsub.f32 1.0, %v271_v42 }
 0x2ff   :  { %v273_v44 = vmul.f32 %v4256_v38, %v272_v43 }
 0x301   :  { %v274_v45 = vadd.f32 %v4256_v38, %v273_v44 }
 0x303   :  { %v278_v48 = vsel %vm277_vm4, %v4256_v38, %v274_v45 }
 0x304   :  { %v283_v51 = vsel %vm280_vm5, %v282_v49, %v278_v48 }
 0x305   :  { %v309_v60 = vsub.f32 1.0, %v283_v51  ;;  %v324_v14 = vmul.f32 %v283_v51, %v214_v12 }
 0x339   :  { %v289_v39 = vpop.permute.xlu2 %288 }
 0x33a   :  { %v294_v41 = vmul.f32 %v289_v39, %v268_v40 }
 0x33c   :  { %298 = vrot.lane.b32.xlu1 %v294_v41, %s4633_s23 }
 0x34f   :  { %v291_v50 = vpop.permute.xlu0 %290 }
 0x350   :  { %v295_v52 = vmul.f32 %v291_v50, %v283_v51 }
 0x352   :  { %300 = vrot.lane.b32.xlu2 %v295_v52, %s4633_s23 }
 0x3ac   :  { %v301_v53 = vpop.permute.xlu2 %300 }
 0x3ad   :  { %v305_v54 = vadd.f32 %v301_v53, %v4725_v18 }
 0x3ae   :  { %v299_v55 = vpop.permute.xlu1 %298 }
 0x3af   :  { %4257 = vtanh.f32 %v305_v54  ;;  %v304_v56 = vadd.f32 %v299_v55, %v4723_v17 }
 0x3b1   :  { %4259 = vtanh.f32 %v304_v56 }
 0x3b5   :  { %v4258_v57 = vpop.eup %4257 }
 0x3b6   :  { %314 = vrot.lane.b32.xlu1 %v4258_v57, %s4635_s0 }
 0x3b7   :  { %v4260_v58 = vpop.eup %4259 }
 0x3b8   :  { %312 = vrot.lane.b32.xlu0 %v4260_v58, %s4635_s0 }
 0x428   :  { %v315_v59 = vpop.permute.xlu1 %314 }
 0x429   :  { %v319_v2 = vmul.f32 %v315_v59, %v309_v60 }
 0x42a   :  { %v313_v63 = vpop.permute.xlu0 %312 }
 0x42b   :  { %v318_v13 = vmul.f32 %v313_v63, %v308_v61  ;;  %v4766_v16 = vadd.f32 %v324_v14, %v319_v2 }
 0x42d   :  { %v4764_v15 = vadd.f32 %v323_v5, %v318_v13 }
 0x42f   :  { %v338_v19 = vrot.slane %v4764_v15, 1  ;;  %v445_v13 = vrot.slane %v4764_v15, 7 }
 0x431   :  { %v339_v20 = vsel %vm215_vm10, %v4766_v16, %v338_v19  ;;  %v446_v19 = vrot.slane %v4766_v16, 7 }
 0x432   :  { %340 = vrot.lane.b32.xlu2 %v339_v20, %s4635_s0 }
 0x48c   :  { %v341_v21 = vpop.permute.xlu2 %340 }
 0x48d   :  { %4141 = vmatmul.msk.f32.vlgmr.msrb.gmra.mxu2 %vm91_vm11, %v341_v21 }
 0x510   :  { %v361_v22 = vpop.f32.mrf.mxu2 }
 0x511   :  { %v409_v23 = vadd.f32 %v361_v22, %v4718_v10  ;;  %v365_v12 = vrot.slane %v361_v22, 6  ;;  %v366_v26 = vrot.slane %v361_v22, 7 }
 0x513   :  { %v412_v24 = vrot.slane %v409_v23, 7  ;;  %v411_v25 = vrot.slane %v409_v23, 6  ;;  %v369_v27 = vadd.f32 %v365_v12, %v4723_v17  ;;  %v370_v28 = vadd.f32 %v366_v26, %v4725_v18 }
 0x515   :  { %415 = vrot.lane.b32.xlu1 %v412_v24, %s4633_s23  ;;  %413 = vrot.lane.b32.xlu0 %v411_v25, %s4633_s23  ;;  %v4142_v29 = vmul.f32 -1.442695, %v369_v27  ;;  %v4143_v30 = vmul.f32 -1.442695, %v370_v28 }
 0x517   :  { %4261 = vpow2.f32 %v4142_v29 }
 0x518   :  { %4263 = vpow2.f32 %v4143_v30 }
 0x51d   :  { %v4262_v31 = vpop.eup %4261 }
 0x51e   :  { %v4264_v32 = vpop.eup %4263  ;;  %v377_v33 = vadd.f32 1.0, %v4262_v31 }
 0x51f   :  { %v378_v34 = vadd.f32 1.0, %v4264_v32 }
 0x520   :  { %4265 = vrcp.f32 %v377_v33  ;;  %vm384_vm8 = vweird.f32 %v377_v33  ;;  %v390_v46 = vand.u32 2147483648, %v377_v33  ;;  %v388_v48 = vand.u32 2147483647, %v377_v33 }
 0x521   :  { %4267 = vrcp.f32 %v378_v34  ;;  %v405_v45 = vand.u32 2147483648, %v378_v34  ;;  %vm399_vm9 = vweird.f32 %v378_v34  ;;  %v403_v47 = vand.u32 2147483647, %v378_v34 }
 0x522   :  { %v391_v52 = vor.u32 1.1754944e-38, %v390_v46  ;;  %vm389_vm15 = vcmp.eq.f32.partialorder %v388_v48, 8.507059e+37 }
 0x523   :  { %v406_v51 = vor.u32 1.1754944e-38, %v405_v45  ;;  %vm404_vm14 = vcmp.eq.f32.partialorder %v403_v47, 8.507059e+37 }
 0x526   :  { %v4266_v35 = vpop.eup %4265 }
 0x527   :  { %v4268_v36 = vpop.eup %4267  ;;  %v380_v38 = vmul.f32 %v4266_v35, %v377_v33  ;;  %vm385_vm6 = vweird.f32 %v4266_v35 }
 0x528   :  { %v395_v37 = vmul.f32 %v4268_v36, %v378_v34  ;;  %vm400_vm7 = vweird.f32 %v4268_v36  ;;  %vm386_vm12 = vmor %vm384_vm8, %vm385_vm6 }
 0x529   :  { %v381_v40 = vsub.f32 1.0, %v380_v38  ;;  %vm401_vm13 = vmor %vm399_vm9, %vm400_vm7 }
 0x52a   :  { %v396_v39 = vsub.f32 1.0, %v395_v37 }
 0x52b   :  { %v382_v42 = vmul.f32 %v4266_v35, %v381_v40 }
 0x52c   :  { %v397_v41 = vmul.f32 %v4268_v36, %v396_v39 }
 0x52d   :  { %v383_v44 = vadd.f32 %v4266_v35, %v382_v42 }
 0x52e   :  { %v398_v43 = vadd.f32 %v4268_v36, %v397_v41 }
 0x52f   :  { %v387_v50 = vsel %vm386_vm12, %v4266_v35, %v383_v44 }
 0x530   :  { %v402_v49 = vsel %vm401_vm13, %v4268_v36, %v398_v43  ;;  %v392_v56 = vsel %vm389_vm15, %v391_v52, %v387_v50 }
 0x531   :  { %v407_v54 = vsel %vm404_vm14, %v406_v51, %v402_v49  ;;  %v433_v5 = vsub.f32 1.0, %v392_v56  ;;  %v449_v22 = vmul.f32 %v445_v13, %v392_v56 }
 0x532   :  { %v434_v14 = vsub.f32 1.0, %v407_v54  ;;  %v450_v24 = vmul.f32 %v446_v19, %v407_v54 }
 0x587   :  { %v416_v53 = vpop.permute.xlu1 %415  ;;  %v414_v55 = vpop.permute.xlu0 %413 }
 0x588   :  { %v420_v57 = vmul.f32 %v416_v53, %v407_v54  ;;  %v419_v58 = vmul.f32 %v414_v55, %v392_v56 }
 0x58a   :  { %425 = vrot.lane.b32.xlu0 %v420_v57, %s4633_s23  ;;  %423 = vrot.lane.b32.xlu2 %v419_v58, %s4633_s23 }
 0x5e4   :  { %v424_v59 = vpop.permute.xlu2 %423 }
 0x5e5   :  { %v429_v60 = vadd.f32 %v424_v59, %v4723_v17 }
 0x5e7   :  { %4269 = vtanh.f32 %v429_v60 }
 0x5ed   :  { %v4270_v61 = vpop.eup %4269 }
 0x5ee   :  { %437 = vrot.lane.b32.xlu1 %v4270_v61, %s4635_s0 }
 0x5fc   :  { %v426_v62 = vpop.permute.xlu0 %425 }
 0x5fd   :  { %v430_v63 = vadd.f32 %v426_v62, %v4725_v18 }
 0x5ff   :  { %4271 = vtanh.f32 %v430_v63 }
 0x605   :  { %v4272_v2 = vpop.eup %4271 }
 0x606   :  { %439 = vrot.lane.b32.xlu2 %v4272_v2, %s4635_s0 }
 0x660   :  { %v438_v20 = vpop.permute.xlu1 %437  ;;  %v440_v21 = vpop.permute.xlu2 %439 }
 0x661   :  { %v443_v23 = vmul.f32 %v438_v20, %v433_v5  ;;  %v444_v25 = vmul.f32 %v440_v21, %v434_v14 }
 0x663   :  { %v4786_v12 = vadd.f32 %v449_v22, %v443_v23  ;;  %v4788_v26 = vadd.f32 %v450_v24, %v444_v25 }
 0x665   :  { %v464_v27 = vrot.slane %v4786_v12, 2  ;;  %v465_v28 = vrot.slane %v4788_v26, 1 }
 0x667   :  { %v466_v29 = vsel %vm215_vm10, %v465_v28, %v464_v27  ;;  %v56_v27 = vld [vmem:[%s5946_s1 + $0x30] sm:$0x3f] }
 0x668   :  { %467 = vrot.lane.b32.xlu0 %v466_v29, %s4635_s0  ;;  %4133 = vmatpush.msk.msra.mxu1 %vm26_vm0, %v56_v27  ;;  %v572_v29 = vrot.slane %v4786_v12, 7 }
 0x669   :  { %4134 = vmatmul.msk.f32.vlgmr.msra.gmra.mxu1 %vm19_vm1, %v4669_v3 }
 0x66a   :  { %737 = vmatpush.msrb.mxu1 %v4654_v0 }
 0x66c   :  { %738 = vmatpush.msrb.mxu1 %v4659_v1 }
 0x66e   :  { %739 = vmatpush.msrb.mxu1 %v4674_v4 }
 0x670   :  { %740 = vmatpush.msrb.mxu1 %v4687_v7 }
 0x671   :  { %4135 = vmatmul.msk.f32.gmra.mxu1 %vm19_vm1, %v4698_v8 }
 0x6da   :  { %v468_v30 = vpop.permute.xlu0 %467 }
 0x6db   :  { %4144 = vmatmul.msk.f32.vlgmr.msrb.gmra.mxu3 %vm91_vm11, %v468_v30 }
 0x75e   :  { %v488_v31 = vpop.f32.mrf.mxu3 }
 0x75f   :  { %v536_v32 = vadd.f32 %v488_v31, %v4718_v10  ;;  %v493_v35 = vrot.slane %v488_v31, 6  ;;  %v492_v40 = vrot.slane %v488_v31, 5  ;;  %v573_v31 = vrot.slane %v4788_v26, 7 }
 0x761   :  { %v539_v33 = vrot.slane %v536_v32, 6  ;;  %v538_v34 = vrot.slane %v536_v32, 5  ;;  %v497_v36 = vadd.f32 %v493_v35, %v4725_v18  ;;  %v496_v41 = vadd.f32 %v492_v40, %v4723_v17  ;;  %v4852_v40 = vld [vmem:[%s5946_s1 + $0x38] sm:$0xff] }
 0x763   :  { %542 = vrot.lane.b32.xlu2 %v539_v33, %s4633_s23  ;;  %540 = vrot.lane.b32.xlu1 %v538_v34, %s4633_s23  ;;  %v4146_v37 = vmul.f32 -1.442695, %v497_v36  ;;  %v4145_v43 = vmul.f32 -1.442695, %v496_v41  ;;  %v61_v41 = vld [vmem:[%s5946_s1 + $0x58] sm:$0x3] }
 0x765   :  { %4273 = vpow2.f32 %v4146_v37  ;;  %v4831_v37 = vld [vmem:[%s5946_s1 + $0x50] sm:$0xff] }
 0x766   :  { %1111 = vmatpush.msra.mxu0 %v4831_v37  ;;  %1233 = vmatpush.msra.mxu1 %v4831_v37 }
 0x767   :  { %1354 = vmatpush.msrb.mxu2 %v4831_v37  ;;  %1475 = vmatpush.msrb.mxu3 %v4831_v37 }
 0x76b   :  { %v4274_v38 = vpop.eup %4273 }
 0x76c   :  { %v505_v39 = vadd.f32 1.0, %v4274_v38  ;;  %v4836_v38 = vld [vmem:[%s5946_s1 + $0x48] sm:$0xff] }
 0x76d   :  { %1112 = vmatpush.msra.mxu0 %v4836_v38  ;;  %1234 = vmatpush.msra.mxu1 %v4836_v38 }
 0x76e   :  { %4275 = vrcp.f32 %v505_v39  ;;  %v532_v50 = vand.u32 2147483648, %v505_v39  ;;  %vm526_vm3 = vweird.f32 %v505_v39  ;;  %v530_v51 = vand.u32 2147483647, %v505_v39  ;;  %1355 = vmatpush.msrb.mxu2 %v4836_v38  ;;  %1476 = vmatpush.msrb.mxu3 %v4836_v38 }
 0x76f   :  { %4277 = vpow2.f32 %v4145_v43 }
 0x770   :  { %v533_v53 = vor.u32 1.1754944e-38, %v532_v50  ;;  %vm531_vm5 = vcmp.eq.f32.partialorder %v530_v51, 8.507059e+37 }
 0x774   :  { %v4276_v42 = vpop.eup %4275 }
 0x775   :  { %v522_v44 = vmul.f32 %v4276_v42, %v505_v39  ;;  %v4278_v46 = vpop.eup %4277  ;;  %vm527_vm2 = vweird.f32 %v4276_v42  ;;  %v4843_v39 = vld [vmem:[%s5946_s1 + $0x40] sm:$0xff] }
 0x776   :  { %v504_v48 = vadd.f32 1.0, %v4278_v46  ;;  %vm528_vm4 = vmor %vm526_vm3, %vm527_vm2  ;;  %1113 = vmatpush.msra.mxu0 %v4843_v39  ;;  %1235 = vmatpush.msra.mxu1 %v4843_v39 }
 0x777   :  { %v523_v45 = vsub.f32 1.0, %v522_v44  ;;  %1356 = vmatpush.msrb.mxu2 %v4843_v39  ;;  %1477 = vmatpush.msrb.mxu3 %v4843_v39 }
 0x778   :  { %4279 = vrcp.f32 %v504_v48  ;;  %v517_v62 = vand.u32 2147483648, %v504_v48  ;;  %vm511_vm7 = vweird.f32 %v504_v48  ;;  %v515_v63 = vand.u32 2147483647, %v504_v48  ;;  %1114 = vmatpush.msra.mxu0 %v4852_v40  ;;  %1236 = vmatpush.msra.mxu1 %v4852_v40 }
 0x779   :  { %v524_v47 = vmul.f32 %v4276_v42, %v523_v45  ;;  %1357 = vmatpush.msrb.mxu2 %v4852_v40  ;;  %1478 = vmatpush.msrb.mxu3 %v4852_v40 }
 0x77a   :  { %v518_v5 = vor.u32 1.1754944e-38, %v517_v62  ;;  %vm516_vm9 = vcmp.eq.f32.partialorder %v515_v63, 8.507059e+37 }
 0x77b   :  { %v525_v49 = vadd.f32 %v4276_v42, %v524_v47 }
 0x77d   :  { %v529_v52 = vsel %vm528_vm4, %v4276_v42, %v525_v49  ;;  %v1164_v42 = vperm.slane %v61_v41, 1 }
 0x77e   :  { %v534_v55 = vsel %vm531_vm5, %v533_v53, %v529_v52  ;;  %v4280_v57 = vpop.eup %4279  ;;  %v88_v53 = vperm.slane %v61_v41, 0 }
 0x77f   :  { %v507_v58 = vmul.f32 %v4280_v57, %v504_v48  ;;  %vm512_vm6 = vweird.f32 %v4280_v57  ;;  %v561_v30 = vsub.f32 1.0, %v534_v55  ;;  %v577_v0 = vmul.f32 %v573_v31, %v534_v55 }
 0x780   :  { %vm513_vm8 = vmor %vm511_vm7, %vm512_vm6 }
 0x781   :  { %v508_v59 = vsub.f32 1.0, %v507_v58 }
 0x783   :  { %v509_v60 = vmul.f32 %v4280_v57, %v508_v59 }
 0x785   :  { %v510_v61 = vadd.f32 %v4280_v57, %v509_v60 }
 0x787   :  { %v514_v2 = vsel %vm513_vm8, %v4280_v57, %v510_v61 }
 0x788   :  { %v519_v14 = vsel %vm516_vm9, %v518_v5, %v514_v2 }
 0x789   :  { %v560_v28 = vsub.f32 1.0, %v519_v14  ;;  %v576_v3 = vmul.f32 %v572_v29, %v519_v14 }
 0x7bd   :  { %v543_v54 = vpop.permute.xlu2 %542 }
 0x7be   :  { %v547_v56 = vmul.f32 %v543_v54, %v534_v55  ;;  %v82_v54 = vpop.f32.mrf.mxu1 }
 0x7bf   :  { %v4882_v55 = vadd.f32 %v88_v53, %v82_v54 }
 0x7c0   :  { %552 = vrot.lane.b32.xlu1 %v547_v56, %s4633_s23 }
 0x7c6   :  { %v85_v2 = vpop.f32.mrf.mxu1 }
 0x7d5   :  { %v541_v13 = vpop.permute.xlu1 %540 }
 0x7d6   :  { %v546_v19 = vmul.f32 %v541_v13, %v519_v14 }
 0x7d8   :  { %550 = vrot.lane.b32.xlu0 %v546_v19, %s4633_s23  ;;  %v4887_v19 = vadd.f32 %v88_v53, %v85_v2 }
 0x832   :  { %v553_v20 = vpop.permute.xlu1 %552 }
 0x833   :  { %v557_v21 = vadd.f32 %v553_v20, %v4725_v18 }
 0x835   :  { %4281 = vtanh.f32 %v557_v21 }
 0x83b   :  { %v4282_v22 = vpop.eup %4281 }
 0x83c   :  { %566 = vrot.lane.b32.xlu0 %v4282_v22, %s4635_s0 }
 0x84a   :  { %v551_v23 = vpop.permute.xlu0 %550 }
 0x84b   :  { %v556_v24 = vadd.f32 %v551_v23, %v4723_v17 }
 0x84d   :  { %4283 = vtanh.f32 %v556_v24 }
 0x853   :  { %v4284_v25 = vpop.eup %4283 }
 0x854   :  { %564 = vrot.lane.b32.xlu2 %v4284_v25, %s4635_s0 }
 0x85c   :  { %1166 = vrot.lane.b32.xlu2 %v1164_v42, %s4633_s23 }
 0x8ae   :  { %v565_v32 = vpop.permute.xlu2 %564  ;;  %v567_v33 = vpop.permute.xlu0 %566 }
 0x8af   :  { %v570_v34 = vmul.f32 %v565_v32, %v560_v28  ;;  %v571_v35 = vmul.f32 %v567_v33, %v561_v30 }
 0x8b1   :  { %v4820_v1 = vadd.f32 %v576_v3, %v570_v34  ;;  %v4822_v4 = vadd.f32 %v577_v0, %v571_v35 }
 0x8b3   :  { %v591_v7 = vrot.slane %v4820_v1, 3  ;;  %v592_v8 = vrot.slane %v4822_v4, 2 }
 0x8b5   :  { %v593_v36 = vsel %vm215_vm10, %v592_v8, %v591_v7 }
 0x8b6   :  { %594 = vrot.lane.b32.xlu1 %v593_v36, %s4635_s0  ;;  %v4877_v48 = vpop.permute.xlu2 %1166 }
 0x928   :  { %v595_v43 = vpop.permute.xlu1 %594 }
 0x929   :  { %4147 = vmatmul.msk.f32.vlgmr.msrb.gmra.mxu0 %vm91_vm11, %v595_v43 }
 0x92a   :  { %1596 = vmatpush.msrb.mxu0 %v4831_v37 }
 0x92c   :  { %1597 = vmatpush.msrb.mxu0 %v4836_v38 }
 0x92e   :  { %1598 = vmatpush.msrb.mxu0 %v4843_v39 }
 0x930   :  { %1599 = vmatpush.msrb.mxu0 %v4852_v40 }
 0x931   :  { %1115 = vmatmul.f32.vlgmr.msra.gmra.mxu0 %v4634_v9 }
 0x9a6   :  { %v615_v44 = vpop.f32.mrf.mxu0 }
 0x9a7   :  { %v663_v45 = vadd.f32 %v615_v44, %v4718_v10  ;;  %v619_v59 = vrot.slane %v615_v44, 4  ;;  %v620_v60 = vrot.slane %v615_v44, 5 }
 0x9a9   :  { %v666_v46 = vrot.slane %v663_v45, 5  ;;  %v665_v47 = vrot.slane %v663_v45, 4  ;;  %v623_v62 = vadd.f32 %v619_v59, %v4723_v17  ;;  %v624_v63 = vadd.f32 %v620_v60, %v4725_v18 }
 0x9ab   :  { %669 = vrot.lane.b32.xlu1 %v666_v46, %s4633_s23  ;;  %667 = vrot.lane.b32.xlu0 %v665_v47, %s4633_s23  ;;  %v4148_v13 = vmul.f32 -1.442695, %v623_v62  ;;  %v4149_v14 = vmul.f32 -1.442695, %v624_v63 }
 0x9ae   :  { %v1116_v49 = vpop.f32.mrf.mxu0 }
 0x9af   :  { %v1169_v50 = vadd.f32 %v4877_v48, %v1116_v49  ;;  %v1120_v56 = vrot.slane %v1116_v49, 1  ;;  %v1121_v20 = vrot.slane %v1116_v49, 2 }
 0x9b1   :  { %v1171_v51 = vrot.slane %v1169_v50, 1  ;;  %v1172_v52 = vrot.slane %v1169_v50, 2  ;;  %v1124_v57 = vadd.f32 %v1120_v56, %v4882_v55  ;;  %v1125_v21 = vadd.f32 %v1121_v20, %v4887_v19 }
 0x9b3   :  { %1173 = vrot.lane.b32.xlu2 %v1171_v51, %s4633_s23  ;;  %1175 = vrot.lane.b32.xlu0 %v1172_v52, %s4633_s23  ;;  %v4159_v58 = vmul.f32 -1.442695, %v1124_v57  ;;  %v4160_v23 = vmul.f32 -1.442695, %v1125_v21 }
 0x9b5   :  { %4285 = vpow2.f32 %v4159_v58 }
 0x9bb   :  { %v4286_v61 = vpop.eup %4285 }
 0x9bc   :  { %v1132_v5 = vadd.f32 1.0, %v4286_v61 }
 0x9be   :  { %4287 = vrcp.f32 %v1132_v5  ;;  %v1145_v35 = vand.u32 2147483648, %v1132_v5  ;;  %vm1139_vm1 = vweird.f32 %v1132_v5  ;;  %v1143_v7 = vand.u32 2147483647, %v1132_v5 }
 0x9bf   :  { %4289 = vpow2.f32 %v4148_v13 }
 0x9c0   :  { %4291 = vpow2.f32 %v4149_v14  ;;  %v1146_v42 = vor.u32 1.1754944e-38, %v1145_v35  ;;  %vm1144_vm13 = vcmp.eq.f32.partialorder %v1143_v7, 8.507059e+37 }
 0x9c1   :  { %4293 = vpow2.f32 %v4160_v23 }
 0x9c4   :  { %v4288_v22 = vpop.eup %4287 }
 0x9c5   :  { %v4290_v24 = vpop.eup %4289  ;;  %v1135_v27 = vmul.f32 %v4288_v22, %v1132_v5  ;;  %vm1140_vm0 = vweird.f32 %v4288_v22 }
 0x9c6   :  { %v4292_v25 = vpop.eup %4291  ;;  %v631_v28 = vadd.f32 1.0, %v4290_v24  ;;  %vm1141_vm12 = vmor %vm1139_vm1, %vm1140_vm0 }
 0x9c7   :  { %v632_v29 = vadd.f32 1.0, %v4292_v25  ;;  %v1136_v30 = vsub.f32 1.0, %v1135_v27  ;;  %v4294_v31 = vpop.eup %4293 }
 0x9c8   :  { %4295 = vrcp.f32 %v631_v28  ;;  %v1133_v33 = vadd.f32 1.0, %v4294_v31  ;;  %vm638_vm2 = vweird.f32 %v631_v28  ;;  %v644_v58 = vand.u32 2147483648, %v631_v28 }
 0x9c9   :  { %4297 = vrcp.f32 %v632_v29  ;;  %v1137_v32 = vmul.f32 %v4288_v22, %v1136_v30  ;;  %v659_v57 = vand.u32 2147483648, %v632_v29  ;;  %vm653_vm3 = vweird.f32 %v632_v29 }
 0x9ca   :  { %4299 = vrcp.f32 %v1133_v33  ;;  %v657_v59 = vand.u32 2147483647, %v632_v29  ;;  %v642_v60 = vand.u32 2147483647, %v631_v28  ;;  %v645_v5 = vor.u32 1.1754944e-38, %v644_v58 }
 0x9cb   :  { %v1138_v34 = vadd.f32 %v4288_v22, %v1137_v32  ;;  %v660_v2 = vor.u32 1.1754944e-38, %v659_v57  ;;  %v1160_v25 = vand.u32 2147483648, %v1133_v33  ;;  %vm1154_vm9 = vweird.f32 %v1133_v33 }
 0x9cc   :  { %vm658_vm6 = vcmp.eq.f32.partialorder %v657_v59, 8.507059e+37  ;;  %vm643_vm7 = vcmp.eq.f32.partialorder %v642_v60, 8.507059e+37  ;;  %v1158_v27 = vand.u32 2147483647, %v1133_v33 }
 0x9cd   :  { %v1142_v8 = vsel %vm1141_vm12, %v4288_v22, %v1138_v34 }
 0x9ce   :  { %v4296_v3 = vpop.eup %4295  ;;  %v4890_v44 = vsel %vm1144_vm13, %v1146_v42, %v1142_v8  ;;  %vm1159_vm1 = vcmp.eq.f32.partialorder %v1158_v27, 8.507059e+37 }
 0x9cf   :  { %v4298_v0 = vpop.eup %4297  ;;  %v634_v41 = vmul.f32 %v4296_v3, %v631_v28  ;;  %vm639_vm14 = vweird.f32 %v4296_v3 }
 0x9d0   :  { %v649_v36 = vmul.f32 %v4298_v0, %v632_v29  ;;  %v4300_v49 = vpop.eup %4299  ;;  %vm654_vm15 = vweird.f32 %v4298_v0  ;;  %vm640_vm4 = vmor %vm638_vm2, %vm639_vm14  ;;  %v1161_v29 = vor.u32 1.1754944e-38, %v1160_v25 }
 0x9d1   :  { %v635_v47 = vsub.f32 1.0, %v634_v41  ;;  %v1150_v52 = vmul.f32 %v4300_v49, %v1133_v33  ;;  %vm655_vm5 = vmor %vm653_vm3, %vm654_vm15  ;;  %vm1155_vm8 = vweird.f32 %v4300_v49 }
 0x9d2   :  { %v650_v46 = vsub.f32 1.0, %v649_v36  ;;  %vm1156_vm0 = vmor %vm1154_vm9, %vm1155_vm8 }
 0x9d3   :  { %v636_v51 = vmul.f32 %v4296_v3, %v635_v47  ;;  %v1151_v56 = vsub.f32 1.0, %v1150_v52  ;;  %v700_v47 = vrot.slane %v4822_v4, 7 }
 0x9d4   :  { %v651_v50 = vmul.f32 %v4298_v0, %v650_v46 }
 0x9d5   :  { %v637_v54 = vadd.f32 %v4296_v3, %v636_v51  ;;  %v1152_v63 = vmul.f32 %v4300_v49, %v1151_v56 }
 0x9d6   :  { %v652_v53 = vadd.f32 %v4298_v0, %v651_v50  ;;  %v699_v50 = vrot.slane %v4820_v1, 7 }
 0x9d7   :  { %v641_v62 = vsel %vm640_vm4, %v4296_v3, %v637_v54  ;;  %v1153_v24 = vadd.f32 %v4300_v49, %v1152_v63 }
 0x9d8   :  { %v656_v61 = vsel %vm655_vm5, %v4298_v0, %v652_v53  ;;  %v646_v21 = vsel %vm643_vm7, %v645_v5, %v641_v62 }
 0x9d9   :  { %v661_v14 = vsel %vm658_vm6, %v660_v2, %v656_v61  ;;  %v1157_v28 = vsel %vm1156_vm0, %v4300_v49, %v1153_v24  ;;  %v687_v49 = vsub.f32 1.0, %v646_v21  ;;  %v703_v56 = vmul.f32 %v699_v50, %v646_v21 }
 0x9da   :  { %v1162_v30 = vsel %vm1159_vm1, %v1161_v29, %v1157_v28  ;;  %v688_v46 = vsub.f32 1.0, %v661_v14  ;;  %v704_v53 = vmul.f32 %v700_v47, %v661_v14  ;;  %v1193_v2 = vsub.f32 1.0, %v4890_v44 }
 0x9db   :  { %v1194_v63 = vsub.f32 1.0, %v1162_v30 }
 0xa0d   :  { %v1174_v43 = vpop.permute.xlu2 %1173 }
 0xa0e   :  { %v1179_v45 = vmul.f32 %v1174_v43, %v4890_v44 }
 0xa10   :  { %1183 = vrot.lane.b32.xlu0 %v1179_v45, %s4633_s23 }
 0xa1d   :  { %v670_v13 = vpop.permute.xlu1 %669  ;;  %v668_v20 = vpop.permute.xlu0 %667 }
 0xa1e   :  { %v674_v22 = vmul.f32 %v670_v13, %v661_v14  ;;  %v673_v23 = vmul.f32 %v668_v20, %v646_v21  ;;  %v1206_v14 = vmul.f32 0.0, %v1162_v30  ;;  %v1205_v21 = vmul.f32 0.0, %v4890_v44 }
 0xa20   :  { %679 = vrot.lane.b32.xlu2 %v674_v22, %s4633_s23  ;;  %677 = vrot.lane.b32.xlu1 %v673_v23, %s4633_s23 }
 0xa25   :  { %v1176_v31 = vpop.permute.xlu0 %1175 }
 0xa26   :  { %v1180_v32 = vmul.f32 %v1176_v31, %v1162_v30 }
 0xa28   :  { %1185 = vrot.lane.b32.xlu1 %v1180_v32, %s4633_s23 }
 0xa7a   :  { %v680_v3 = vpop.permute.xlu2 %679 }
 0xa7b   :  { %v684_v34 = vadd.f32 %v680_v3, %v4725_v18 }
 0xa7d   :  { %4301 = vtanh.f32 %v684_v34 }
 0xa82   :  { %v1184_v0 = vpop.permute.xlu0 %1183 }
 0xa83   :  { %v4302_v35 = vpop.eup %4301  ;;  %v1189_v7 = vadd.f32 %v1184_v0, %v4882_v55 }
 0xa84   :  { %693 = vrot.lane.b32.xlu0 %v4302_v35, %s4635_s0 }
 0xa85   :  { %4303 = vtanh.f32 %v1189_v7 }
 0xa8b   :  { %v4304_v33 = vpop.eup %4303 }
 0xa8c   :  { %1197 = vrot.lane.b32.xlu1 %v4304_v33, %s4635_s0 }
 0xa92   :  { %v678_v8 = vpop.permute.xlu1 %677 }
 0xa93   :  { %v683_v36 = vadd.f32 %v678_v8, %v4723_v17 }
 0xa95   :  { %4305 = vtanh.f32 %v683_v36 }
 0xa9a   :  { %v1186_v41 = vpop.permute.xlu1 %1185 }
 0xa9b   :  { %v4306_v42 = vpop.eup %4305  ;;  %v1190_v43 = vadd.f32 %v1186_v41, %v4887_v19 }
 0xa9c   :  { %691 = vrot.lane.b32.xlu2 %v4306_v42, %s4635_s0 }
 0xa9d   :  { %4307 = vtanh.f32 %v1190_v43 }
 0xaa3   :  { %v4308_v45 = vpop.eup %4307 }
 0xaa4   :  { %1199 = vrot.lane.b32.xlu2 %v4308_v45, %s4635_s0 }
 0xaf6   :  { %v694_v51 = vpop.permute.xlu0 %693  ;;  %v692_v52 = vpop.permute.xlu2 %691 }
 0xaf7   :  { %v698_v54 = vmul.f32 %v694_v51, %v688_v46  ;;  %v697_v57 = vmul.f32 %v692_v52, %v687_v49 }
 0xaf9   :  { %v4907_v58 = vadd.f32 %v704_v53, %v698_v54  ;;  %v4909_v59 = vadd.f32 %v703_v56, %v697_v57 }
 0xafb   :  { %v718_v60 = vrot.slane %v4909_v59, 4  ;;  %v719_v61 = vrot.slane %v4907_v58, 3 }
 0xafd   :  { %v720_v62 = vsel %vm215_vm10, %v719_v61, %v718_v60 }
 0xafe   :  { %721 = vrot.lane.b32.xlu0 %v720_v62, %s4635_s0  ;;  %v1200_v5 = vpop.permute.xlu2 %1199  ;;  %v1198_v13 = vpop.permute.xlu1 %1197 }
 0xaff   :  { %v1204_v20 = vmul.f32 %v1200_v5, %v1194_v63  ;;  %v1203_v22 = vmul.f32 %v1198_v13, %v1193_v2 }
 0xb01   :  { %v4917_v23 = vadd.f32 %v1206_v14, %v1204_v20  ;;  %v4919_v24 = vadd.f32 %v1205_v21, %v1203_v22 }
 0xb03   :  { %v1214_v25 = vrot.slane %v4919_v24, 7  ;;  %v1215_v27 = vrot.slane %v4917_v23, 6 }
 0xb05   :  { %v1216_v28 = vsel %vm215_vm10, %v1215_v27, %v1214_v25 }
 0xb06   :  { %1217 = vrot.lane.b32.xlu1 %v1216_v28, %s4635_s0 }
 0xb70   :  { %v722_v29 = vpop.permute.xlu0 %721 }
 0xb71   :  { %4150 = vmatmul.msk.f32.vlgmr.msrb.gmra.mxu1 %vm91_vm11, %v722_v29 }
 0xb72   :  { %1717 = vmatpush.msrb.mxu1 %v4831_v37 }
 0xb74   :  { %1718 = vmatpush.msrb.mxu1 %v4836_v38 }
 0xb76   :  { %1719 = vmatpush.msrb.mxu1 %v4843_v39 }
 0xb78   :  { %v1218_v44 = vpop.permute.xlu1 %1217  ;;  %1720 = vmatpush.msrb.mxu1 %v4852_v40 }
 0xb79   :  { %4161 = vmatmul.msk.f32.vlgmr.msra.gmra.mxu1 %vm91_vm11, %v1218_v44 }
 0xbee   :  { %v742_v30 = vpop.f32.mrf.mxu1 }
 0xbef   :  { %v790_v31 = vadd.f32 %v742_v30, %v4718_v10  ;;  %v746_v33 = vrot.slane %v742_v30, 3  ;;  %v747_v47 = vrot.slane %v742_v30, 4 }
 0xbf1   :  { %v793_v32 = vrot.slane %v790_v31, 4  ;;  %v792_v3 = vrot.slane %v790_v31, 3  ;;  %v750_v8 = vadd.f32 %v746_v33, %v4723_v17  ;;  %v751_v50 = vadd.f32 %v747_v47, %v4725_v18 }
 0xbf3   :  { %796 = vrot.lane.b32.xlu0 %v793_v32, %s4633_s23  ;;  %794 = vrot.lane.b32.xlu2 %v792_v3, %s4633_s23  ;;  %v4151_v36 = vmul.f32 -1.442695, %v750_v8  ;;  %v4152_v53 = vmul.f32 -1.442695, %v751_v50 }
 0xbf5   :  { %4309 = vpow2.f32 %v4151_v36 }
 0xbf6   :  { %v1238_v34 = vpop.f32.mrf.mxu1 }
 0xbf7   :  { %v1286_v0 = vadd.f32 %v1238_v34, %v4877_v48  ;;  %v1243_v41 = vrot.slane %v1238_v34, 3  ;;  %v1242_v54 = vrot.slane %v1238_v34, 2 }
 0xbf9   :  { %v1289_v35 = vrot.slane %v1286_v0, 3  ;;  %v1288_v7 = vrot.slane %v1286_v0, 2  ;;  %v1247_v42 = vadd.f32 %v1243_v41, %v4887_v19  ;;  %v1246_v57 = vadd.f32 %v1242_v54, %v4882_v55 }
 0xbfb   :  { %1292 = vrot.lane.b32.xlu2 %v1289_v35, %s4633_s23  ;;  %1290 = vrot.lane.b32.xlu1 %v1288_v7, %s4633_s23  ;;  %v4163_v43 = vmul.f32 -1.442695, %v1247_v42  ;;  %v4310_v45 = vpop.eup %4309  ;;  %v4162_v62 = vmul.f32 -1.442695, %v1246_v57 }
 0xbfc   :  { %v758_v46 = vadd.f32 1.0, %v4310_v45 }
 0xbfd   :  { %4311 = vpow2.f32 %v4163_v43 }
 0xbfe   :  { %4313 = vrcp.f32 %v758_v46  ;;  %v771_v21 = vand.u32 2147483648, %v758_v46  ;;  %vm765_vm13 = vweird.f32 %v758_v46  ;;  %v769_v22 = vand.u32 2147483647, %v758_v46 }
 0xc00   :  { %v772_v29 = vor.u32 1.1754944e-38, %v771_v21  ;;  %vm770_vm15 = vcmp.eq.f32.partialorder %v769_v22, 8.507059e+37 }
 0xc03   :  { %v4312_v49 = vpop.eup %4311 }
 0xc04   :  { %v1255_v51 = vadd.f32 1.0, %v4312_v49  ;;  %v4314_v52 = vpop.eup %4313 }
 0xc05   :  { %v761_v56 = vmul.f32 %v4314_v52, %v758_v46  ;;  %vm766_vm12 = vweird.f32 %v4314_v52 }
 0xc06   :  { %4315 = vrcp.f32 %v1255_v51  ;;  %vm767_vm14 = vmor %vm765_vm13, %vm766_vm12  ;;  %v1282_v0 = vand.u32 2147483648, %v1255_v51  ;;  %vm1276_vm3 = vweird.f32 %v1255_v51  ;;  %v1280_v35 = vand.u32 2147483647, %v1255_v51 }
 0xc07   :  { %4317 = vpow2.f32 %v4152_v53  ;;  %v762_v60 = vsub.f32 1.0, %v761_v56 }
 0xc08   :  { %4319 = vpow2.f32 %v4162_v62  ;;  %v1283_v8 = vor.u32 1.1754944e-38, %v1282_v0  ;;  %vm1281_vm5 = vcmp.eq.f32.partialorder %v1280_v35, 8.507059e+37 }
 0xc09   :  { %v763_v2 = vmul.f32 %v4314_v52, %v762_v60 }
 0xc0b   :  { %v764_v14 = vadd.f32 %v4314_v52, %v763_v2 }
 0xc0c   :  { %v4316_v61 = vpop.eup %4315 }
 0xc0d   :  { %v4318_v63 = vpop.eup %4317  ;;  %v1272_v5 = vmul.f32 %v4316_v61, %v1255_v51  ;;  %v768_v27 = vsel %vm767_vm14, %v4314_v52, %v764_v14  ;;  %vm1277_vm2 = vweird.f32 %v4316_v61 }
 0xc0e   :  { %v759_v13 = vadd.f32 1.0, %v4318_v63  ;;  %v4320_v25 = vpop.eup %4319  ;;  %v4941_v30 = vsel %vm770_vm15, %v772_v29, %v768_v27  ;;  %vm1278_vm4 = vmor %vm1276_vm3, %vm1277_vm2 }
 0xc0f   :  { %v1273_v20 = vsub.f32 1.0, %v1272_v5  ;;  %v1254_v44 = vadd.f32 1.0, %v4320_v25 }
 0xc10   :  { %4321 = vrcp.f32 %v759_v13  ;;  %v786_v51 = vand.u32 2147483648, %v759_v13  ;;  %vm780_vm7 = vweird.f32 %v759_v13  ;;  %v784_v52 = vand.u32 2147483647, %v759_v13 }
 0xc11   :  { %v1274_v28 = vmul.f32 %v4316_v61, %v1273_v20  ;;  %4323 = vrcp.f32 %v1254_v44  ;;  %v1267_v63 = vand.u32 2147483648, %v1254_v44  ;;  %vm1261_vm1 = vweird.f32 %v1254_v44 }
 0xc12   :  { %v787_v56 = vor.u32 1.1754944e-38, %v786_v51  ;;  %vm785_vm9 = vcmp.eq.f32.partialorder %v784_v52, 8.507059e+37  ;;  %v1265_v2 = vand.u32 2147483647, %v1254_v44 }
 0xc13   :  { %v1275_v3 = vadd.f32 %v4316_v61, %v1274_v28  ;;  %v1268_v14 = vor.u32 1.1754944e-38, %v1267_v63 }
 0xc14   :  { %vm1266_vm13 = vcmp.eq.f32.partialorder %v1265_v2, 8.507059e+37 }
 0xc15   :  { %v1279_v7 = vsel %vm1278_vm4, %v4316_v61, %v1275_v3 }
 0xc16   :  { %v4322_v34 = vpop.eup %4321  ;;  %v4945_v41 = vsel %vm1281_vm5, %v1283_v8, %v1279_v7  ;;  %v814_v7 = vsub.f32 1.0, %v4941_v30 }
 0xc17   :  { %v776_v33 = vmul.f32 %v4322_v34, %v759_v13  ;;  %v4324_v45 = vpop.eup %4323  ;;  %vm781_vm6 = vweird.f32 %v4322_v34 }
 0xc18   :  { %v1257_v47 = vmul.f32 %v4324_v45, %v1254_v44  ;;  %vm782_vm8 = vmor %vm780_vm7, %vm781_vm6  ;;  %vm1262_vm0 = vweird.f32 %v4324_v45 }
 0xc19   :  { %v777_v43 = vsub.f32 1.0, %v776_v33  ;;  %vm1263_vm12 = vmor %vm1261_vm1, %vm1262_vm0  ;;  %v826_v33 = vrot.slane %v4909_v59, 7 }
 0xc1a   :  { %v1258_v50 = vsub.f32 1.0, %v1257_v47 }
 0xc1b   :  { %v778_v46 = vmul.f32 %v4322_v34, %v777_v43 }
 0xc1c   :  { %v1259_v54 = vmul.f32 %v4324_v45, %v1258_v50 }
 0xc1d   :  { %v779_v49 = vadd.f32 %v4322_v34, %v778_v46 }
 0xc1e   :  { %v1260_v62 = vadd.f32 %v4324_v45, %v1259_v54  ;;  %v1311_v54 = vsub.f32 1.0, %v4945_v41 }
 0xc1f   :  { %v783_v53 = vsel %vm782_vm8, %v4322_v34, %v779_v49 }
 0xc20   :  { %v788_v60 = vsel %vm785_vm9, %v787_v56, %v783_v53  ;;  %v1264_v5 = vsel %vm1263_vm12, %v4324_v45, %v1260_v62  ;;  %v830_v45 = vmul.f32 %v826_v33, %v4941_v30  ;;  %v1323_v56 = vrot.slane %v4917_v23, 1 }
 0xc21   :  { %v1269_v20 = vsel %vm1266_vm13, %v1268_v14, %v1264_v5  ;;  %v815_v8 = vsub.f32 1.0, %v788_v60 }
 0xc22   :  { %v1310_v62 = vsub.f32 1.0, %v1269_v20 }
 0xc4d   :  { %v795_v31 = vpop.permute.xlu2 %794 }
 0xc4e   :  { %v800_v32 = vmul.f32 %v795_v31, %v4941_v30  ;;  %v1322_v30 = vrot.slane %v4919_v24, 1 }
 0xc50   :  { %804 = vrot.lane.b32.xlu0 %v800_v32, %s4633_s23  ;;  %v1326_v5 = vmul.f32 %v1322_v30, %v1269_v20 }
 0xc55   :  { %v1293_v36 = vpop.permute.xlu2 %1292 }
 0xc56   :  { %v1297_v42 = vmul.f32 %v1293_v36, %v4945_v41  ;;  %v827_v36 = vrot.slane %v4907_v58, 7 }
 0xc58   :  { %1302 = vrot.lane.b32.xlu0 %v1297_v42, %s4633_s23  ;;  %v831_v47 = vmul.f32 %v827_v36, %v788_v60 }
 0xc65   :  { %v797_v57 = vpop.permute.xlu0 %796 }
 0xc66   :  { %v801_v61 = vmul.f32 %v797_v57, %v788_v60  ;;  %v1327_v60 = vmul.f32 %v1323_v56, %v4945_v41 }
 0xc68   :  { %806 = vrot.lane.b32.xlu1 %v801_v61, %s4633_s23 }
 0xc6d   :  { %v1291_v13 = vpop.permute.xlu1 %1290 }
 0xc6e   :  { %v1296_v21 = vmul.f32 %v1291_v13, %v1269_v20 }
 0xc70   :  { %1300 = vrot.lane.b32.xlu2 %v1296_v21, %s4633_s23 }
 0xcc2   :  { %v805_v22 = vpop.permute.xlu0 %804 }
 0xcc3   :  { %v810_v25 = vadd.f32 %v805_v22, %v4723_v17 }
 0xcc5   :  { %4325 = vtanh.f32 %v810_v25 }
 0xcca   :  { %v1303_v27 = vpop.permute.xlu0 %1302  ;;  %v1301_v28 = vpop.permute.xlu2 %1300 }
 0xccb   :  { %v4326_v29 = vpop.eup %4325  ;;  %v1307_v31 = vadd.f32 %v1303_v27, %v4887_v19  ;;  %v1306_v44 = vadd.f32 %v1301_v28, %v4882_v55 }
 0xccc   :  { %818 = vrot.lane.b32.xlu1 %v4326_v29, %s4635_s0 }
 0xccd   :  { %4327 = vtanh.f32 %v1307_v31 }
 0xcce   :  { %4329 = vtanh.f32 %v1306_v44 }
 0xcd3   :  { %v4328_v32 = vpop.eup %4327 }
 0xcd4   :  { %v4330_v3 = vpop.eup %4329  ;;  %1316 = vrot.lane.b32.xlu1 %v4328_v32, %s4635_s0 }
 0xcd5   :  { %1314 = vrot.lane.b32.xlu0 %v4330_v3, %s4635_s0 }
 0xcda   :  { %v807_v34 = vpop.permute.xlu1 %806 }
 0xcdb   :  { %v811_v0 = vadd.f32 %v807_v34, %v4725_v18 }
 0xcdd   :  { %4331 = vtanh.f32 %v811_v0 }
 0xce3   :  { %v4332_v35 = vpop.eup %4331 }
 0xce4   :  { %820 = vrot.lane.b32.xlu2 %v4332_v35, %s4635_s0 }
 0xd3e   :  { %v819_v42 = vpop.permute.xlu1 %818  ;;  %v821_v43 = vpop.permute.xlu2 %820 }
 0xd3f   :  { %v824_v46 = vmul.f32 %v819_v42, %v814_v7  ;;  %v825_v49 = vmul.f32 %v821_v43, %v815_v8 }
 0xd41   :  { %v4963_v50 = vadd.f32 %v830_v45, %v824_v46  ;;  %v4965_v51 = vadd.f32 %v831_v47, %v825_v49 }
 0xd43   :  { %v845_v52 = vrot.slane %v4963_v50, 5  ;;  %v846_v53 = vrot.slane %v4965_v51, 4 }
 0xd45   :  { %v847_v57 = vsel %vm215_vm10, %v846_v53, %v845_v52 }
 0xd46   :  { %v1317_v61 = vpop.permute.xlu1 %1316  ;;  %848 = vrot.lane.b32.xlu2 %v847_v57, %s4635_s0 }
 0xd47   :  { %v1321_v63 = vmul.f32 %v1317_v61, %v1311_v54  ;;  %v1315_v2 = vpop.permute.xlu0 %1314 }
 0xd48   :  { %v1320_v14 = vmul.f32 %v1315_v2, %v1310_v62 }
 0xd49   :  { %v4975_v13 = vadd.f32 %v1327_v60, %v1321_v63 }
 0xd4a   :  { %v4977_v21 = vadd.f32 %v1326_v5, %v1320_v14 }
 0xd4b   :  { %v1336_v22 = vrot.slane %v4975_v13, 5 }
 0xd4c   :  { %v1335_v25 = vrot.slane %v4977_v21, 6 }
 0xd4e   :  { %v1337_v27 = vsel %vm215_vm10, %v1336_v22, %v1335_v25 }
 0xd4f   :  { %1338 = vrot.lane.b32.xlu0 %v1337_v27, %s4635_s0 }
 0xda0   :  { %v849_v28 = vpop.permute.xlu2 %848 }
 0xda1   :  { %4153 = vmatmul.msk.f32.vlgmr.msra.gmra.mxu2 %vm91_vm11, %v849_v28 }
 0xda2   :  { %1838 = vmatpush.msra.mxu2 %v4831_v37 }
 0xda4   :  { %1839 = vmatpush.msra.mxu2 %v4836_v38 }
 0xda6   :  { %1840 = vmatpush.msra.mxu2 %v4843_v39 }
 0xda8   :  { %1841 = vmatpush.msra.mxu2 %v4852_v40 }
 0xdc1   :  { %v1339_v41 = vpop.permute.xlu0 %1338 }
 0xdc2   :  { %4164 = vmatmul.msk.f32.vlgmr.msrb.gmra.mxu2 %vm91_vm11, %v1339_v41 }
 0xe24   :  { %v869_v20 = vpop.f32.mrf.mxu2 }
 0xe25   :  { %v917_v29 = vadd.f32 %v869_v20, %v4718_v10  ;;  %v874_v39 = vrot.slane %v869_v20, 3  ;;  %v873_v7 = vrot.slane %v869_v20, 2 }
 0xe27   :  { %v920_v31 = vrot.slane %v917_v29, 3  ;;  %v919_v44 = vrot.slane %v917_v29, 2  ;;  %v878_v40 = vadd.f32 %v874_v39, %v4725_v18  ;;  %v877_v33 = vadd.f32 %v873_v7, %v4723_v17 }
 0xe29   :  { %923 = vrot.lane.b32.xlu2 %v920_v31, %s4633_s23  ;;  %921 = vrot.lane.b32.xlu1 %v919_v44, %s4633_s23  ;;  %v4155_v34 = vmul.f32 -1.442695, %v878_v40  ;;  %v4154_v36 = vmul.f32 -1.442695, %v877_v33 }
 0xe2b   :  { %4333 = vpow2.f32 %v4155_v34 }
 0xe31   :  { %v4334_v0 = vpop.eup %4333 }
 0xe32   :  { %v886_v35 = vadd.f32 1.0, %v4334_v0 }
 0xe34   :  { %4335 = vrcp.f32 %v886_v35  ;;  %v913_v52 = vand.u32 2147483648, %v886_v35  ;;  %vm907_vm15 = vweird.f32 %v886_v35  ;;  %v911_v53 = vand.u32 2147483647, %v886_v35 }
 0xe35   :  { %4337 = vpow2.f32 %v4154_v36 }
 0xe36   :  { %v914_v56 = vor.u32 1.1754944e-38, %v913_v52  ;;  %vm912_vm3 = vcmp.eq.f32.partialorder %v911_v53, 8.507059e+37 }
 0xe3a   :  { %v4336_v8 = vpop.eup %4335 }
 0xe3b   :  { %v903_v42 = vmul.f32 %v4336_v8, %v886_v35  ;;  %v4338_v45 = vpop.eup %4337  ;;  %vm908_vm14 = vweird.f32 %v4336_v8 }
 0xe3c   :  { %v885_v47 = vadd.f32 1.0, %v4338_v45  ;;  %vm909_vm2 = vmor %vm907_vm15, %vm908_vm14 }
 0xe3d   :  { %v904_v43 = vsub.f32 1.0, %v903_v42 }
 0xe3e   :  { %4339 = vrcp.f32 %v885_v47  ;;  %v898_v20 = vand.u32 2147483648, %v885_v47  ;;  %vm892_vm5 = vweird.f32 %v885_v47  ;;  %v896_v29 = vand.u32 2147483647, %v885_v47 }
 0xe3f   :  { %v905_v46 = vmul.f32 %v4336_v8, %v904_v43 }
 0xe40   :  { %vm897_vm7 = vcmp.eq.f32.partialorder %v896_v29, 8.507059e+37 }
 0xe41   :  { %v906_v49 = vadd.f32 %v4336_v8, %v905_v46 }
 0xe43   :  { %v910_v54 = vsel %vm909_vm2, %v4336_v8, %v906_v49 }
 0xe44   :  { %v4997_v61 = vsel %vm912_vm3, %v914_v56, %v910_v54  ;;  %v4340_v30 = vpop.eup %4339 }
 0xe45   :  { %v1359_v32 = vpop.f32.mrf.mxu2  ;;  %v888_v2 = vmul.f32 %v4340_v30, %v885_v47  ;;  %vm893_vm4 = vweird.f32 %v4340_v30 }
 0xe46   :  { %v1407_v37 = vadd.f32 %v1359_v32, %v4877_v48  ;;  %v1363_v60 = vrot.slane %v1359_v32, 3  ;;  %v1364_v63 = vrot.slane %v1359_v32, 4  ;;  %vm894_vm6 = vmor %vm892_vm5, %vm893_vm4 }
 0xe47   :  { %v889_v22 = vsub.f32 1.0, %v888_v2 }
 0xe48   :  { %v1409_v38 = vrot.slane %v1407_v37, 3  ;;  %v1410_v3 = vrot.slane %v1407_v37, 4  ;;  %v1367_v5 = vadd.f32 %v1363_v60, %v4882_v55  ;;  %v1368_v14 = vadd.f32 %v1364_v63, %v4887_v19 }
 0xe49   :  { %v890_v28 = vmul.f32 %v4340_v30, %v889_v22  ;;  %v899_v37 = vor.u32 1.1754944e-38, %v898_v20 }
 0xe4a   :  { %1411 = vrot.lane.b32.xlu0 %v1409_v38, %s4633_s23  ;;  %1413 = vrot.lane.b32.xlu1 %v1410_v3, %s4633_s23  ;;  %v4165_v25 = vmul.f32 -1.442695, %v1367_v5  ;;  %v4166_v27 = vmul.f32 -1.442695, %v1368_v14 }
 0xe4b   :  { %v891_v41 = vadd.f32 %v4340_v30, %v890_v28 }
 0xe4c   :  { %4341 = vpow2.f32 %v4165_v25 }
 0xe4d   :  { %4343 = vpow2.f32 %v4166_v27  ;;  %v895_v44 = vsel %vm894_vm6, %v4340_v30, %v891_v41 }
 0xe4e   :  { %v5003_v39 = vsel %vm897_vm7, %v899_v37, %v895_v44 }
 0xe52   :  { %v4342_v31 = vpop.eup %4341 }
 0xe53   :  { %v4344_v32 = vpop.eup %4343  ;;  %v1375_v38 = vadd.f32 1.0, %v4342_v31 }
 0xe54   :  { %v1376_v40 = vadd.f32 1.0, %v4344_v32 }
 0xe55   :  { %4345 = vrcp.f32 %v1375_v38  ;;  %vm1382_vm0 = vweird.f32 %v1375_v38  ;;  %v1388_v47 = vand.u32 2147483648, %v1375_v38  ;;  %v1386_v52 = vand.u32 2147483647, %v1375_v38 }
 0xe56   :  { %4347 = vrcp.f32 %v1376_v40  ;;  %v1403_v49 = vand.u32 2147483648, %v1376_v40  ;;  %vm1397_vm12 = vweird.f32 %v1376_v40  ;;  %v1401_v53 = vand.u32 2147483647, %v1376_v40 }
 0xe57   :  { %vm1387_vm14 = vcmp.eq.f32.partialorder %v1386_v52, 8.507059e+37 }
 0xe58   :  { %vm1402_vm15 = vcmp.eq.f32.partialorder %v1401_v53, 8.507059e+37 }
 0xe5b   :  { %v4346_v0 = vpop.eup %4345 }
 0xe5c   :  { %v4348_v35 = vpop.eup %4347  ;;  %v1378_v7 = vmul.f32 %v4346_v0, %v1375_v38  ;;  %vm1383_vm8 = vweird.f32 %v4346_v0 }
 0xe5d   :  { %v1393_v33 = vmul.f32 %v4348_v35, %v1376_v40  ;;  %vm1398_vm9 = vweird.f32 %v4348_v35  ;;  %vm1384_vm1 = vmor %vm1382_vm0, %vm1383_vm8  ;;  %v954_v40 = vrot.slane %v4965_v51, 7 }
 0xe5e   :  { %v1379_v8 = vsub.f32 1.0, %v1378_v7  ;;  %vm1399_vm13 = vmor %vm1397_vm12, %vm1398_vm9 }
 0xe5f   :  { %v1394_v36 = vsub.f32 1.0, %v1393_v33  ;;  %v958_v7 = vmul.f32 %v954_v40, %v4997_v61 }
 0xe60   :  { %v1380_v42 = vmul.f32 %v4346_v0, %v1379_v8 }
 0xe61   :  { %v1395_v43 = vmul.f32 %v4348_v35, %v1394_v36 }
 0xe62   :  { %v1381_v45 = vadd.f32 %v4346_v0, %v1380_v42 }
 0xe63   :  { %v1396_v46 = vadd.f32 %v4348_v35, %v1395_v43 }
 0xe64   :  { %v1385_v54 = vsel %vm1384_vm1, %v4346_v0, %v1381_v45  ;;  %v941_v0 = vsub.f32 1.0, %v5003_v39 }
 0xe65   :  { %v1400_v56 = vsel %vm1399_vm13, %v4348_v35, %v1396_v46  ;;  %v953_v35 = vrot.slane %v4963_v50, 7 }
 0xe67   :  { %v957_v36 = vmul.f32 %v953_v35, %v5003_v39 }
 0xe83   :  { %v924_v57 = vpop.permute.xlu2 %923 }
 0xe84   :  { %v928_v62 = vmul.f32 %v924_v57, %v4997_v61  ;;  %v1389_v57 = vor.u32 1.1754944e-38, %v1388_v47 }
 0xe86   :  { %933 = vrot.lane.b32.xlu0 %v928_v62, %s4633_s23  ;;  %v1404_v62 = vor.u32 1.1754944e-38, %v1403_v49  ;;  %v1390_v60 = vsel %vm1387_vm14, %v1389_v57, %v1385_v54  ;;  %v1443_v54 = vrot.slane %v4977_v21, 1 }
 0xe87   :  { %v1431_v53 = vsub.f32 1.0, %v1390_v60 }
 0xe88   :  { %v1405_v63 = vsel %vm1402_vm15, %v1404_v62, %v1400_v56 }
 0xe89   :  { %v1432_v52 = vsub.f32 1.0, %v1405_v63 }
 0xe9b   :  { %v922_v3 = vpop.permute.xlu1 %921 }
 0xe9c   :  { %v927_v34 = vmul.f32 %v922_v3, %v5003_v39  ;;  %v942_v3 = vsub.f32 1.0, %v4997_v61  ;;  %v1444_v61 = vrot.slane %v4975_v13, 1 }
 0xe9e   :  { %931 = vrot.lane.b32.xlu2 %v927_v34, %s4633_s23  ;;  %v1448_v57 = vmul.f32 %v1444_v61, %v1405_v63 }
 0xebc   :  { %v1412_v30 = vpop.permute.xlu0 %1411  ;;  %v1414_v2 = vpop.permute.xlu1 %1413 }
 0xebd   :  { %v1417_v5 = vmul.f32 %v1412_v30, %v1390_v60  ;;  %v1418_v14 = vmul.f32 %v1414_v2, %v1405_v63  ;;  %v1447_v30 = vmul.f32 %v1443_v54, %v1390_v60  ;;  %v4625_v60 = vld [vmem:[%s5946_s1 + $0x50] sm:$0xff]  ;;  %v4626_v63 = vld [vmem:[%s5946_s1 + $0x48] sm:$0xff] }
 0xebf   :  { %1421 = vrot.lane.b32.xlu1 %v1417_v5, %s4633_s23  ;;  %1423 = vrot.lane.b32.xlu2 %v1418_v14, %s4633_s23 }
 0xef8   :  { %v934_v22 = vpop.permute.xlu0 %933  ;;  %v932_v25 = vpop.permute.xlu2 %931 }
 0xef9   :  { %v938_v27 = vadd.f32 %v934_v22, %v4725_v18  ;;  %v937_v28 = vadd.f32 %v932_v25, %v4723_v17 }
 0xefb   :  { %4349 = vtanh.f32 %v938_v27 }
 0xefc   :  { %4351 = vtanh.f32 %v937_v28 }
 0xf01   :  { %v4350_v41 = vpop.eup %4349 }
 0xf02   :  { %v4352_v20 = vpop.eup %4351  ;;  %947 = vrot.lane.b32.xlu1 %v4350_v41, %s4635_s0  ;;  %v4627_v41 = vld [vmem:[%s5946_s1 + $0x40] sm:$0xff] }
 0xf03   :  { %945 = vrot.lane.b32.xlu0 %v4352_v20, %s4635_s0 }
 0xf19   :  { %v1424_v29 = vpop.permute.xlu2 %1423 }
 0xf1a   :  { %v1428_v31 = vadd.f32 %v1424_v29, %v4887_v19  ;;  %v4628_v29 = vld [vmem:[%s5946_s1 + $0x38] sm:$0xff] }
 0xf1c   :  { %4353 = vtanh.f32 %v1428_v31 }
 0xf22   :  { %v4354_v44 = vpop.eup %4353 }
 0xf23   :  { %1437 = vrot.lane.b32.xlu0 %v4354_v44, %s4635_s0 }
 0xf31   :  { %v1422_v32 = vpop.permute.xlu1 %1421 }
 0xf32   :  { %v1427_v37 = vadd.f32 %v1422_v32, %v4882_v55 }
 0xf34   :  { %4355 = vtanh.f32 %v1427_v37 }
 0xf3a   :  { %v4356_v38 = vpop.eup %4355 }
 0xf3b   :  { %1435 = vrot.lane.b32.xlu2 %v4356_v38, %s4635_s0 }
 0xf74   :  { %v948_v34 = vpop.permute.xlu1 %947 }
 0xf75   :  { %v952_v33 = vmul.f32 %v948_v34, %v942_v3  ;;  %v946_v8 = vpop.permute.xlu0 %945 }
 0xf76   :  { %v951_v42 = vmul.f32 %v946_v8, %v941_v0 }
 0xf77   :  { %v5023_v43 = vadd.f32 %v958_v7, %v952_v33 }
 0xf78   :  { %v5025_v45 = vadd.f32 %v957_v36, %v951_v42 }
 0xf79   :  { %v973_v46 = vrot.slane %v5023_v43, 5 }
 0xf7a   :  { %v972_v47 = vrot.slane %v5025_v45, 6 }
 0xf7c   :  { %v974_v49 = vsel %vm215_vm10, %v973_v46, %v972_v47 }
 0xf7d   :  { %975 = vrot.lane.b32.xlu1 %v974_v49, %s4635_s0 }
 0xf95   :  { %v1438_v39 = vpop.permute.xlu0 %1437  ;;  %v1436_v56 = vpop.permute.xlu2 %1435 }
 0xf96   :  { %v1442_v62 = vmul.f32 %v1438_v39, %v1432_v52  ;;  %v1441_v2 = vmul.f32 %v1436_v56, %v1431_v53 }
 0xf98   :  { %v5033_v5 = vadd.f32 %v1448_v57, %v1442_v62  ;;  %v5035_v14 = vadd.f32 %v1447_v30, %v1441_v2 }
 0xf9a   :  { %v1456_v22 = vrot.slane %v5035_v14, 5  ;;  %v1457_v25 = vrot.slane %v5033_v5, 4 }
 0xf9c   :  { %v1458_v27 = vsel %vm215_vm10, %v1457_v25, %v1456_v22 }
 0xf9d   :  { %1459 = vrot.lane.b32.xlu2 %v1458_v27, %s4635_s0 }
 0xfef   :  { %v976_v28 = vpop.permute.xlu1 %975 }
 0xff0   :  { %4156 = vmatmul.msk.f32.vlgmr.msra.gmra.mxu3 %vm91_vm11, %v976_v28 }
 0xff1   :  { %1955 = vmatpush.msra.mxu3 %v4625_v60 }
 0xff3   :  { %1956 = vmatpush.msra.mxu3 %v4626_v63 }
 0xff5   :  { %1957 = vmatpush.msra.mxu3 %v4627_v41 }
 0xff7   :  { %v1460_v20 = vpop.permute.xlu2 %1459  ;;  %1958 = vmatpush.msra.mxu3 %v4628_v29 }
 0xff8   :  { %4167 = vmatmul.msk.f32.vlgmr.msrb.gmra.mxu3 %vm91_vm11, %v1460_v20 }
0x1073   :  { %v5055_v31 = vpop.f32.mrf.mxu3 }
0x107b   :  { %v1480_v44 = vpop.f32.mrf.mxu3 }
0x107c   :  { %v1528_v32 = vadd.f32 %v1480_v44, %v4877_v48  ;;  %v1484_v3 = vrot.slane %v1480_v44, 4  ;;  %v1485_v40 = vrot.slane %v1480_v44, 5 }
0x107e   :  { %v1531_v37 = vrot.slane %v1528_v32, 5  ;;  %v1530_v38 = vrot.slane %v1528_v32, 4  ;;  %v1488_v34 = vadd.f32 %v1484_v3, %v4882_v55  ;;  %v1489_v0 = vadd.f32 %v1485_v40, %v4887_v19 }
0x1080   :  { %1534 = vrot.lane.b32.xlu1 %v1531_v37, %s4633_s23  ;;  %1532 = vrot.lane.b32.xlu0 %v1530_v38, %s4633_s23  ;;  %v4168_v35 = vmul.f32 -1.442695, %v1488_v34  ;;  %v4169_v7 = vmul.f32 -1.442695, %v1489_v0 }
0x1082   :  { %4357 = vpow2.f32 %v4168_v35 }
0x1083   :  { %4359 = vpow2.f32 %v4169_v7  ;;  %v1564_v7 = vrot.slane %v5035_v14, 1 }
0x1088   :  { %v4358_v33 = vpop.eup %4357 }
0x1089   :  { %v4360_v8 = vpop.eup %4359  ;;  %v1496_v36 = vadd.f32 1.0, %v4358_v33 }
0x108a   :  { %v1497_v42 = vadd.f32 1.0, %v4360_v8  ;;  %v1565_v8 = vrot.slane %v5033_v5, 1 }
0x108b   :  { %4361 = vrcp.f32 %v1496_v36  ;;  %vm1503_vm4 = vweird.f32 %v1496_v36  ;;  %v1509_v30 = vand.u32 2147483648, %v1496_v36  ;;  %v1507_v22 = vand.u32 2147483647, %v1496_v36 }
0x108c   :  { %4363 = vrcp.f32 %v1497_v42  ;;  %v1524_v62 = vand.u32 2147483648, %v1497_v42  ;;  %vm1518_vm5 = vweird.f32 %v1497_v42  ;;  %v1522_v2 = vand.u32 2147483647, %v1497_v42 }
0x108d   :  { %v1510_v60 = vor.u32 1.1754944e-38, %v1509_v30  ;;  %vm1508_vm9 = vcmp.eq.f32.partialorder %v1507_v22, 8.507059e+37 }
0x108e   :  { %v1525_v28 = vor.u32 1.1754944e-38, %v1524_v62  ;;  %vm1523_vm8 = vcmp.eq.f32.partialorder %v1522_v2, 8.507059e+37 }
0x1091   :  { %v4362_v46 = vpop.eup %4361 }
0x1092   :  { %v4364_v47 = vpop.eup %4363  ;;  %v1499_v52 = vmul.f32 %v4362_v46, %v1496_v36  ;;  %vm1504_vm2 = vweird.f32 %v4362_v46 }
0x1093   :  { %v1514_v49 = vmul.f32 %v4364_v47, %v1497_v42  ;;  %vm1519_vm3 = vweird.f32 %v4364_v47  ;;  %vm1505_vm6 = vmor %vm1503_vm4, %vm1504_vm2 }
0x1094   :  { %v1500_v53 = vsub.f32 1.0, %v1499_v52  ;;  %vm1520_vm7 = vmor %vm1518_vm5, %vm1519_vm3 }
0x1095   :  { %v1515_v61 = vsub.f32 1.0, %v1514_v49 }
0x1096   :  { %v1501_v39 = vmul.f32 %v4362_v46, %v1500_v53 }
0x1097   :  { %v1516_v54 = vmul.f32 %v4364_v47, %v1515_v61 }
0x1098   :  { %v1502_v57 = vadd.f32 %v4362_v46, %v1501_v39 }
0x1099   :  { %v1517_v56 = vadd.f32 %v4364_v47, %v1516_v54 }
0x109a   :  { %v1506_v27 = vsel %vm1505_vm6, %v4362_v46, %v1502_v57 }
0x109b   :  { %v1521_v25 = vsel %vm1520_vm7, %v4364_v47, %v1517_v56  ;;  %v1511_v29 = vsel %vm1508_vm9, %v1510_v60, %v1506_v27 }
0x109c   :  { %v1526_v41 = vsel %vm1523_vm8, %v1525_v28, %v1521_v25  ;;  %v1552_v35 = vsub.f32 1.0, %v1511_v29  ;;  %v1568_v46 = vmul.f32 %v1564_v7, %v1511_v29 }
0x109d   :  { %v1553_v33 = vsub.f32 1.0, %v1526_v41  ;;  %v1569_v49 = vmul.f32 %v1565_v8, %v1526_v41 }
0x10f2   :  { %v1535_v63 = vpop.permute.xlu1 %1534  ;;  %v1533_v20 = vpop.permute.xlu0 %1532 }
0x10f3   :  { %v1539_v44 = vmul.f32 %v1535_v63, %v1526_v41  ;;  %v1538_v32 = vmul.f32 %v1533_v20, %v1511_v29 }
0x10f5   :  { %1544 = vrot.lane.b32.xlu0 %v1539_v44, %s4633_s23  ;;  %1542 = vrot.lane.b32.xlu2 %v1538_v32, %s4633_s23 }
0x114f   :  { %v1543_v37 = vpop.permute.xlu2 %1542 }
0x1150   :  { %v1548_v38 = vadd.f32 %v1543_v37, %v4882_v55 }
0x1152   :  { %4365 = vtanh.f32 %v1548_v38 }
0x1158   :  { %v4366_v3 = vpop.eup %4365 }
0x1159   :  { %1556 = vrot.lane.b32.xlu1 %v4366_v3, %s4635_s0 }
0x1167   :  { %v1545_v40 = vpop.permute.xlu0 %1544 }
0x1168   :  { %v1549_v34 = vadd.f32 %v1545_v40, %v4887_v19 }
0x116a   :  { %4367 = vtanh.f32 %v1549_v34 }
0x1170   :  { %v4368_v0 = vpop.eup %4367 }
0x1171   :  { %1558 = vrot.lane.b32.xlu2 %v4368_v0, %s4635_s0 }
0x11cb   :  { %v1557_v36 = vpop.permute.xlu1 %1556  ;;  %v1559_v42 = vpop.permute.xlu2 %1558 }
0x11cc   :  { %v1562_v47 = vmul.f32 %v1557_v36, %v1552_v35  ;;  %v1563_v52 = vmul.f32 %v1559_v42, %v1553_v33 }
0x11ce   :  { %v5070_v61 = vadd.f32 %v1568_v46, %v1562_v47  ;;  %v5072_v53 = vadd.f32 %v1569_v49, %v1563_v52 }
0x11d0   :  { %v1577_v54 = vrot.slane %v5070_v61, 4  ;;  %v1578_v39 = vrot.slane %v5072_v53, 3 }
0x11d2   :  { %v1579_v56 = vsel %vm215_vm10, %v1578_v39, %v1577_v54 }
0x11d3   :  { %1580 = vrot.lane.b32.xlu0 %v1579_v56, %s4635_s0 }
0x1245   :  { %v1581_v57 = vpop.permute.xlu0 %1580 }
0x1246   :  { %4170 = vmatmul.msk.f32.vlgmr.msrb.gmra.mxu0 %vm91_vm11, %v1581_v57 }
0x12c3   :  { %v1601_v62 = vpop.f32.mrf.mxu0 }
0x12c4   :  { %v1649_v30 = vadd.f32 %v1601_v62, %v4877_v48  ;;  %v1606_v25 = vrot.slane %v1601_v62, 6  ;;  %v1605_v41 = vrot.slane %v1601_v62, 5 }
0x12c6   :  { %v1652_v2 = vrot.slane %v1649_v30, 6  ;;  %v1651_v22 = vrot.slane %v1649_v30, 5  ;;  %v1610_v27 = vadd.f32 %v1606_v25, %v4887_v19  ;;  %v1609_v20 = vadd.f32 %v1605_v41, %v4882_v55 }
0x12c8   :  { %1655 = vrot.lane.b32.xlu2 %v1652_v2, %s4633_s23  ;;  %1653 = vrot.lane.b32.xlu1 %v1651_v22, %s4633_s23  ;;  %v4172_v28 = vmul.f32 -1.442695, %v1610_v27  ;;  %v4171_v44 = vmul.f32 -1.442695, %v1609_v20 }
0x12ca   :  { %4369 = vpow2.f32 %v4172_v28 }
0x12d0   :  { %v4370_v60 = vpop.eup %4369 }
0x12d1   :  { %v1618_v63 = vadd.f32 1.0, %v4370_v60 }
0x12d3   :  { %4371 = vrcp.f32 %v1618_v63  ;;  %v1645_v0 = vand.u32 2147483648, %v1618_v63  ;;  %vm1639_vm1 = vweird.f32 %v1618_v63  ;;  %v1643_v35 = vand.u32 2147483647, %v1618_v63 }
0x12d4   :  { %4373 = vpow2.f32 %v4171_v44 }
0x12d5   :  { %v1646_v33 = vor.u32 1.1754944e-38, %v1645_v0  ;;  %vm1644_vm13 = vcmp.eq.f32.partialorder %v1643_v35, 8.507059e+37 }
0x12d9   :  { %v4372_v29 = vpop.eup %4371 }
0x12da   :  { %v1635_v32 = vmul.f32 %v4372_v29, %v1618_v63  ;;  %v4374_v38 = vpop.eup %4373  ;;  %vm1640_vm0 = vweird.f32 %v4372_v29 }
0x12db   :  { %v1617_v40 = vadd.f32 1.0, %v4374_v38  ;;  %vm1641_vm12 = vmor %vm1639_vm1, %vm1640_vm0 }
0x12dc   :  { %v1636_v37 = vsub.f32 1.0, %v1635_v32  ;;  %v1686_v32 = vrot.slane %v5072_v53, 1 }
0x12dd   :  { %4375 = vrcp.f32 %v1617_v40  ;;  %v1630_v39 = vand.u32 2147483648, %v1617_v40  ;;  %vm1624_vm15 = vweird.f32 %v1617_v40  ;;  %v1628_v56 = vand.u32 2147483647, %v1617_v40 }
0x12de   :  { %v1637_v3 = vmul.f32 %v4372_v29, %v1636_v37 }
0x12df   :  { %v1631_v62 = vor.u32 1.1754944e-38, %v1630_v39  ;;  %vm1629_vm3 = vcmp.eq.f32.partialorder %v1628_v56, 8.507059e+37 }
0x12e0   :  { %v1638_v34 = vadd.f32 %v4372_v29, %v1637_v3 }
0x12e2   :  { %v1642_v7 = vsel %vm1641_vm12, %v4372_v29, %v1638_v34  ;;  %v1685_v29 = vrot.slane %v5070_v61, 1 }
0x12e3   :  { %v1647_v36 = vsel %vm1644_vm13, %v1646_v33, %v1642_v7  ;;  %v4376_v46 = vpop.eup %4375 }
0x12e4   :  { %v1620_v47 = vmul.f32 %v4376_v46, %v1617_v40  ;;  %vm1625_vm14 = vweird.f32 %v4376_v46  ;;  %v1674_v44 = vsub.f32 1.0, %v1647_v36  ;;  %v1690_v34 = vmul.f32 %v1686_v32, %v1647_v36 }
0x12e5   :  { %vm1626_vm2 = vmor %vm1624_vm15, %vm1625_vm14 }
0x12e6   :  { %v1621_v49 = vsub.f32 1.0, %v1620_v47 }
0x12e8   :  { %v1622_v52 = vmul.f32 %v4376_v46, %v1621_v49 }
0x12ea   :  { %v1623_v54 = vadd.f32 %v4376_v46, %v1622_v52 }
0x12ec   :  { %v1627_v57 = vsel %vm1626_vm2, %v4376_v46, %v1623_v54 }
0x12ed   :  { %v1632_v2 = vsel %vm1629_vm3, %v1631_v62, %v1627_v57 }
0x12ee   :  { %v1673_v20 = vsub.f32 1.0, %v1632_v2  ;;  %v1689_v3 = vmul.f32 %v1685_v29, %v1632_v2 }
0x1322   :  { %v1656_v8 = vpop.permute.xlu2 %1655 }
0x1323   :  { %v1660_v42 = vmul.f32 %v1656_v8, %v1647_v36 }
0x1325   :  { %1665 = vrot.lane.b32.xlu1 %v1660_v42, %s4633_s23 }
0x133a   :  { %v1654_v30 = vpop.permute.xlu1 %1653 }
0x133b   :  { %v1659_v22 = vmul.f32 %v1654_v30, %v1632_v2 }
0x133d   :  { %1663 = vrot.lane.b32.xlu0 %v1659_v22, %s4633_s23 }
0x1397   :  { %v1666_v25 = vpop.permute.xlu1 %1665 }
0x1398   :  { %v1670_v27 = vadd.f32 %v1666_v25, %v4887_v19 }
0x139a   :  { %4377 = vtanh.f32 %v1670_v27 }
0x13a0   :  { %v4378_v28 = vpop.eup %4377 }
0x13a1   :  { %1679 = vrot.lane.b32.xlu0 %v4378_v28, %s4635_s0 }
0x13af   :  { %v1664_v60 = vpop.permute.xlu0 %1663 }
0x13b0   :  { %v1669_v63 = vadd.f32 %v1664_v60, %v4882_v55 }
0x13b2   :  { %4379 = vtanh.f32 %v1669_v63 }
0x13b8   :  { %v4380_v41 = vpop.eup %4379 }
0x13b9   :  { %1677 = vrot.lane.b32.xlu2 %v4380_v41, %s4635_s0 }
0x1413   :  { %v1678_v37 = vpop.permute.xlu2 %1677  ;;  %v1680_v38 = vpop.permute.xlu0 %1679 }
0x1414   :  { %v1683_v40 = vmul.f32 %v1678_v37, %v1673_v20  ;;  %v1684_v0 = vmul.f32 %v1680_v38, %v1674_v44 }
0x1416   :  { %v5092_v35 = vadd.f32 %v1689_v3, %v1683_v40  ;;  %v5094_v7 = vadd.f32 %v1690_v34, %v1684_v0 }
0x1418   :  { %v1698_v33 = vrot.slane %v5092_v35, 3  ;;  %v1699_v8 = vrot.slane %v5094_v7, 2 }
0x141a   :  { %v1700_v42 = vsel %vm215_vm10, %v1699_v8, %v1698_v33 }
0x141b   :  { %1701 = vrot.lane.b32.xlu1 %v1700_v42, %s4635_s0 }
0x148d   :  { %v1702_v46 = vpop.permute.xlu1 %1701 }
0x148e   :  { %4173 = vmatmul.msk.f32.vlgmr.msrb.gmra.mxu1 %vm91_vm11, %v1702_v46 }
0x150b   :  { %v1722_v47 = vpop.f32.mrf.mxu1 }
0x150c   :  { %v1770_v49 = vadd.f32 %v1722_v47, %v4877_v48  ;;  %v1726_v54 = vrot.slane %v1722_v47, 6  ;;  %v1727_v30 = vrot.slane %v1722_v47, 7 }
0x150e   :  { %v1773_v36 = vrot.slane %v1770_v49, 7  ;;  %v1772_v52 = vrot.slane %v1770_v49, 6  ;;  %v1730_v39 = vadd.f32 %v1726_v54, %v4882_v55  ;;  %v1731_v2 = vadd.f32 %v1727_v30, %v4887_v19 }
0x1510   :  { %1776 = vrot.lane.b32.xlu0 %v1773_v36, %s4633_s23  ;;  %1774 = vrot.lane.b32.xlu2 %v1772_v52, %s4633_s23  ;;  %v4174_v56 = vmul.f32 -1.442695, %v1730_v39  ;;  %v4175_v25 = vmul.f32 -1.442695, %v1731_v2 }
0x1512   :  { %4381 = vpow2.f32 %v4174_v56 }
0x1518   :  { %v4382_v57 = vpop.eup %4381 }
0x1519   :  { %v1738_v62 = vadd.f32 1.0, %v4382_v57 }
0x151b   :  { %4383 = vrcp.f32 %v1738_v62  ;;  %v1751_v29 = vand.u32 2147483648, %v1738_v62  ;;  %vm1745_vm5 = vweird.f32 %v1738_v62  ;;  %v1749_v44 = vand.u32 2147483647, %v1738_v62 }
0x151c   :  { %4385 = vpow2.f32 %v4175_v25 }
0x151d   :  { %v1752_v37 = vor.u32 1.1754944e-38, %v1751_v29  ;;  %vm1750_vm7 = vcmp.eq.f32.partialorder %v1749_v44, 8.507059e+37 }
0x1521   :  { %v4384_v22 = vpop.eup %4383 }
0x1522   :  { %v1741_v27 = vmul.f32 %v4384_v22, %v1738_v62  ;;  %v4386_v60 = vpop.eup %4385  ;;  %vm1746_vm4 = vweird.f32 %v4384_v22 }
0x1523   :  { %v1739_v41 = vadd.f32 1.0, %v4386_v60  ;;  %vm1747_vm6 = vmor %vm1745_vm5, %vm1746_vm4  ;;  %v1806_v60 = vrot.slane %v5092_v35, 1 }
0x1524   :  { %v1742_v28 = vsub.f32 1.0, %v1741_v27  ;;  %v1807_v27 = vrot.slane %v5094_v7, 1 }
0x1525   :  { %4387 = vrcp.f32 %v1739_v41  ;;  %v1766_v46 = vand.u32 2147483648, %v1739_v41  ;;  %vm1760_vm9 = vweird.f32 %v1739_v41  ;;  %v1764_v47 = vand.u32 2147483647, %v1739_v41 }
0x1526   :  { %v1743_v63 = vmul.f32 %v4384_v22, %v1742_v28 }
0x1527   :  { %v1767_v36 = vor.u32 1.1754944e-38, %v1766_v46  ;;  %vm1765_vm1 = vcmp.eq.f32.partialorder %v1764_v47, 8.507059e+37 }
0x1528   :  { %v1744_v20 = vadd.f32 %v4384_v22, %v1743_v63 }
0x152a   :  { %v1748_v32 = vsel %vm1747_vm6, %v4384_v22, %v1744_v20 }
0x152b   :  { %v1753_v3 = vsel %vm1750_vm7, %v1752_v37, %v1748_v32  ;;  %v4388_v34 = vpop.eup %4387 }
0x152c   :  { %v1756_v0 = vmul.f32 %v4388_v34, %v1739_v41  ;;  %vm1761_vm8 = vweird.f32 %v4388_v34  ;;  %v1794_v28 = vsub.f32 1.0, %v1753_v3  ;;  %v1810_v44 = vmul.f32 %v1806_v60, %v1753_v3 }
0x152d   :  { %vm1762_vm0 = vmor %vm1760_vm9, %vm1761_vm8 }
0x152e   :  { %v1757_v33 = vsub.f32 1.0, %v1756_v0 }
0x1530   :  { %v1758_v8 = vmul.f32 %v4388_v34, %v1757_v33 }
0x1532   :  { %v1759_v42 = vadd.f32 %v4388_v34, %v1758_v8 }
0x1534   :  { %v1763_v49 = vsel %vm1762_vm0, %v4388_v34, %v1759_v42 }
0x1535   :  { %v1768_v54 = vsel %vm1765_vm1, %v1767_v36, %v1763_v49 }
0x1536   :  { %v1795_v25 = vsub.f32 1.0, %v1768_v54  ;;  %v1811_v20 = vmul.f32 %v1807_v27, %v1768_v54 }
0x156a   :  { %v1775_v38 = vpop.permute.xlu2 %1774 }
0x156b   :  { %v1780_v40 = vmul.f32 %v1775_v38, %v1753_v3 }
0x156d   :  { %1784 = vrot.lane.b32.xlu1 %v1780_v40, %s4633_s23 }
0x1582   :  { %v1777_v52 = vpop.permute.xlu0 %1776 }
0x1583   :  { %v1781_v39 = vmul.f32 %v1777_v52, %v1768_v54 }
0x1585   :  { %1786 = vrot.lane.b32.xlu2 %v1781_v39, %s4633_s23 }
0x15df   :  { %v1787_v56 = vpop.permute.xlu2 %1786  ;;  %v1785_v57 = vpop.permute.xlu1 %1784 }
0x15e0   :  { %v1791_v62 = vadd.f32 %v1787_v56, %v4887_v19  ;;  %v1790_v30 = vadd.f32 %v1785_v57, %v4882_v55 }
0x15e2   :  { %4389 = vtanh.f32 %v1791_v62 }
0x15e3   :  { %4391 = vtanh.f32 %v1790_v30 }
0x15e8   :  { %v4390_v2 = vpop.eup %4389 }
0x15e9   :  { %v4392_v22 = vpop.eup %4391  ;;  %1800 = vrot.lane.b32.xlu1 %v4390_v2, %s4635_s0 }
0x15ea   :  { %1798 = vrot.lane.b32.xlu0 %v4392_v22, %s4635_s0 }
0x165b   :  { %v1801_v63 = vpop.permute.xlu1 %1800 }
0x165c   :  { %v1799_v41 = vpop.permute.xlu0 %1798  ;;  %v1805_v29 = vmul.f32 %v1801_v63, %v1795_v25 }
0x165d   :  { %v1804_v32 = vmul.f32 %v1799_v41, %v1794_v28 }
0x165e   :  { %v5114_v37 = vadd.f32 %v1811_v20, %v1805_v29 }
0x165f   :  { %v5116_v38 = vadd.f32 %v1810_v44, %v1804_v32 }
0x1660   :  { %v1820_v40 = vrot.slane %v5114_v37, 1 }
0x1661   :  { %v1819_v34 = vrot.slane %v5116_v38, 2 }
0x1663   :  { %v1821_v0 = vsel %vm215_vm10, %v1820_v40, %v1819_v34 }
0x1664   :  { %1822 = vrot.lane.b32.xlu2 %v1821_v0, %s4635_s0 }
0x16be   :  { %v1823_v33 = vpop.permute.xlu2 %1822 }
0x16bf   :  { %4176 = vmatmul.msk.f32.vlgmr.msra.gmra.mxu2 %vm91_vm11, %v1823_v33 }
0x1742   :  { %v1843_v8 = vpop.f32.mrf.mxu2 }
0x1743   :  { %v1890_v3 = vadd.f32 %v1843_v8, %v4877_v48  ;;  %v1847_v46 = vrot.slane %v1843_v8, 7  ;;  %v1851_v47 = vadd.f32 %v1843_v8, %v4887_v19 }
0x1745   :  { %1895 = vrot.lane.b32.xlu1 %v1890_v3, %s4633_s23  ;;  %v1892_v42 = vrot.slane %v1890_v3, 7  ;;  %v1850_v49 = vadd.f32 %v1847_v46, %v4882_v55  ;;  %v4178_v36 = vmul.f32 -1.442695, %v1851_v47 }
0x1747   :  { %1893 = vrot.lane.b32.xlu0 %v1892_v42, %s4633_s23  ;;  %v4177_v52 = vmul.f32 -1.442695, %v1850_v49  ;;  %4393 = vpow2.f32 %v4178_v36 }
0x1749   :  { %4395 = vpow2.f32 %v4177_v52 }
0x174d   :  { %v4394_v54 = vpop.eup %4393 }
0x174e   :  { %v1859_v56 = vadd.f32 1.0, %v4394_v54 }
0x174f   :  { %v4396_v39 = vpop.eup %4395 }
0x1750   :  { %v1858_v57 = vadd.f32 1.0, %v4396_v39  ;;  %4397 = vrcp.f32 %v1859_v56  ;;  %v1886_v41 = vand.u32 2147483648, %v1859_v56  ;;  %vm1880_vm13 = vweird.f32 %v1859_v56 }
0x1751   :  { %v1884_v20 = vand.u32 2147483647, %v1859_v56 }
0x1752   :  { %4399 = vrcp.f32 %v1858_v57  ;;  %v1871_v44 = vand.u32 2147483648, %v1858_v57  ;;  %vm1865_vm2 = vweird.f32 %v1858_v57  ;;  %v1869_v34 = vand.u32 2147483647, %v1858_v57 }
0x1753   :  { %v1887_v0 = vor.u32 1.1754944e-38, %v1886_v41  ;;  %vm1885_vm4 = vcmp.eq.f32.partialorder %v1884_v20, 8.507059e+37 }
0x1754   :  { %v1872_v42 = vor.u32 1.1754944e-38, %v1871_v44  ;;  %vm1870_vm5 = vcmp.eq.f32.partialorder %v1869_v34, 8.507059e+37 }
0x1756   :  { %v4398_v62 = vpop.eup %4397 }
0x1757   :  { %v1876_v2 = vmul.f32 %v4398_v62, %v1859_v56  ;;  %vm1881_vm12 = vweird.f32 %v4398_v62  ;;  %v1044_v56 = vadd.f32 %v5055_v31, %v4718_v10 }
0x1758   :  { %v4400_v30 = vpop.eup %4399  ;;  %vm1882_vm15 = vmor %vm1880_vm13, %vm1881_vm12 }
0x1759   :  { %v1861_v22 = vmul.f32 %v4400_v30, %v1858_v57  ;;  %v1877_v25 = vsub.f32 1.0, %v1876_v2  ;;  %vm1866_vm14 = vweird.f32 %v4400_v30  ;;  %v1046_v57 = vrot.slane %v1044_v56, 1 }
0x175a   :  { %vm1867_vm3 = vmor %vm1865_vm2, %vm1866_vm14 }
0x175b   :  { %v1862_v27 = vsub.f32 1.0, %v1861_v22  ;;  %v1878_v28 = vmul.f32 %v4398_v62, %v1877_v25  ;;  %v1047_v22 = vrot.slane %v1044_v56, 2  ;;  %v1000_v25 = vrot.slane %v5055_v31, 1 }
0x175d   :  { %v1863_v60 = vmul.f32 %v4400_v30, %v1862_v27  ;;  %v1879_v63 = vadd.f32 %v4398_v62, %v1878_v28  ;;  %v1004_v27 = vadd.f32 %v1000_v25, %v4723_v17  ;;  %v1001_v25 = vrot.slane %v5055_v31, 2 }
0x175f   :  { %v1864_v29 = vadd.f32 %v4400_v30, %v1863_v60  ;;  %v1883_v32 = vsel %vm1882_vm15, %v4398_v62, %v1879_v63  ;;  %v4157_v28 = vmul.f32 -1.442695, %v1004_v27  ;;  %v1005_v27 = vadd.f32 %v1001_v25, %v4725_v18 }
0x1760   :  { %v1888_v3 = vsel %vm1885_vm4, %v1887_v0, %v1883_v32  ;;  %v1925_v0 = vrot.slane %v5116_v38, 1  ;;  %vm461_vm4 = vcmask 256002  }
0x1761   :  { %v1868_v33 = vsel %vm1867_vm3, %v4400_v30, %v1864_v29  ;;  %v1914_v32 = vsub.f32 1.0, %v1888_v3 }
0x1762   :  { %v1873_v49 = vsel %vm1870_vm5, %v1872_v42, %v1868_v33  ;;  %vm1814_vm5 = vcmask 518402  }
0x1763   :  { %v1913_v34 = vsub.f32 1.0, %v1873_v49  ;;  %v1928_v42 = vmul.f32 %v1925_v0, %v1873_v49 }
0x17b7   :  { %v1896_v8 = vpop.permute.xlu1 %1895 }
0x17b8   :  { %v1900_v46 = vmul.f32 %v1896_v8, %v1888_v3 }
0x17b9   :  { %v1894_v47 = vpop.permute.xlu0 %1893 }
0x17ba   :  { %v1899_v36 = vmul.f32 %v1894_v47, %v1873_v49  ;;  %1905 = vrot.lane.b32.xlu0 %v1900_v46, %s4633_s23 }
0x17bc   :  { %1903 = vrot.lane.b32.xlu2 %v1899_v36, %s4633_s23 }
0x1816   :  { %v1904_v52 = vpop.permute.xlu2 %1903 }
0x1817   :  { %v1909_v54 = vadd.f32 %v1904_v52, %v4882_v55  ;;  %v1929_v52 = vmul.f32 %v1888_v3, %v1820_v40 }
0x1819   :  { %4401 = vtanh.f32 %v1909_v54 }
0x181f   :  { %v4402_v39 = vpop.eup %4401 }
0x1820   :  { %1917 = vrot.lane.b32.xlu1 %v4402_v39, %s4635_s0 }
0x1828   :  { %1048 = vrot.lane.b32.xlu1 %v1046_v57, %s4633_s23 }
0x182c   :  { %v1906_v62 = vpop.permute.xlu0 %1905 }
0x182d   :  { %v1910_v30 = vadd.f32 %v1906_v62, %v4887_v19 }
0x182f   :  { %4403 = vtanh.f32 %v1910_v30 }
0x1830   :  { %4405 = vpow2.f32 %v4157_v28  ;;  %v4158_v28 = vmul.f32 -1.442695, %v1005_v27 }
0x1835   :  { %v4404_v2 = vpop.eup %4403 }
0x1836   :  { %1919 = vrot.lane.b32.xlu2 %v4404_v2, %s4635_s0  ;;  %v4406_v10 = vpop.eup %4405 }
0x1837   :  { %v1012_v60 = vadd.f32 1.0, %v4406_v10 }
0x1839   :  { %4407 = vrcp.f32 %v1012_v60  ;;  %v1025_v36 = vand.u32 2147483648, %v1012_v60  ;;  %vm1019_vm7 = vweird.f32 %v1012_v60  ;;  %v1023_v39 = vand.u32 2147483647, %v1012_v60 }
0x183a   :  { %4409 = vpow2.f32 %v4158_v28 }
0x183b   :  { %v1026_v30 = vor.u32 1.1754944e-38, %v1025_v36  ;;  %vm1024_vm9 = vcmp.eq.f32.partialorder %v1023_v39, 8.507059e+37 }
0x183e   :  { %1050 = vrot.lane.b32.xlu2 %v1047_v22, %s4633_s23 }
0x183f   :  { %v4408_v63 = vpop.eup %4407 }
0x1840   :  { %v1015_v41 = vmul.f32 %v4408_v63, %v1012_v60  ;;  %vm1020_vm6 = vweird.f32 %v4408_v63  ;;  %v4410_v10 = vpop.eup %4409 }
0x1841   :  { %vm1021_vm8 = vmor %vm1019_vm7, %vm1020_vm6  ;;  %v1013_v60 = vadd.f32 1.0, %v4410_v10 }
0x1842   :  { %v1016_v20 = vsub.f32 1.0, %v1015_v41 }
0x1843   :  { %4411 = vrcp.f32 %v1013_v60  ;;  %vm1034_vm1 = vweird.f32 %v1013_v60 }
0x1844   :  { %v1017_v29 = vmul.f32 %v4408_v63, %v1016_v20 }
0x1846   :  { %v1018_v47 = vadd.f32 %v4408_v63, %v1017_v29 }
0x1848   :  { %v1022_v62 = vsel %vm1021_vm8, %v4408_v63, %v1018_v47 }
0x1849   :  { %v5154_v2 = vsel %vm1024_vm9, %v1026_v30, %v1022_v62  ;;  %v4412_v63 = vpop.eup %4411 }
0x184a   :  { %v1030_v41 = vmul.f32 %v4412_v63, %v1013_v60  ;;  %vm1035_vm0 = vweird.f32 %v4412_v63 }
0x184b   :  { %vm1036_vm12 = vmor %vm1034_vm1, %vm1035_vm0  ;;  %vm5959_vm0 = vcmask 259077   ;;  %vm5958_vm1 = vcmask 521477  }
0x184c   :  { %v1031_v20 = vsub.f32 1.0, %v1030_v41 }
0x184e   :  { %v1032_v29 = vmul.f32 %v4412_v63, %v1031_v20 }
0x1890   :  { %v1920_v44 = vpop.permute.xlu2 %1919 }
0x1891   :  { %v1924_v8 = vmul.f32 %v1920_v44, %v1914_v32 }
0x1892   :  { %v1918_v33 = vpop.permute.xlu1 %1917 }
0x1893   :  { %v1923_v46 = vmul.f32 %v1918_v33, %v1913_v34  ;;  %v5147_v56 = vadd.f32 %v1929_v52, %v1924_v8  ;;  %v1033_v34 = vadd.f32 %v4412_v63, %v1032_v29  ;;  %v1040_v33 = vand.u32 2147483648, %v1013_v60 }
0x1894   :  { %v1038_v8 = vand.u32 2147483647, %v1013_v60 }
0x1895   :  { %v5145_v54 = vadd.f32 %v1928_v42, %v1923_v46  ;;  %v1037_v46 = vsel %vm1036_vm12, %v4412_v63, %v1033_v34  ;;  %v1041_v47 = vor.u32 1.1754944e-38, %v1040_v33  ;;  %vm5957_vm12 = vcmask 253952  }
0x1896   :  { %vm1039_vm13 = vcmp.eq.f32.partialorder %v1038_v8, 8.507059e+37 }
0x1897   :  { %v1937_v57 = vrot.slane %v5145_v54, 1  ;;  %v5166_v52 = vsel %vm1039_vm13, %v1041_v47, %v1037_v46  ;;  %vm5956_vm13 = vcmask 257027  }
0x1898   :  { %v1051_v36 = vpop.permute.xlu2 %1050 }
0x1899   :  { %v1938_v49 = vsel %vm215_vm10, %v5147_v56, %v1937_v57 }
0x189a   :  { %v1049_v40 = vpop.permute.xlu1 %1048  ;;  %1939 = vrot.lane.b32.xlu0 %v1938_v49, %s4635_s0 }
0x189b   :  { %v1054_v3 = vmul.f32 %v1049_v40, %v5154_v2 }
0x189d   :  { %1058 = vrot.lane.b32.xlu1 %v1054_v3, %s4633_s23 }
0x190c   :  { %v1940_v22 = vpop.permute.xlu0 %1939 }
0x190d   :  { %4179 = vmatmul.msk.f32.vlgmr.msra.gmra.mxu3 %vm91_vm11, %v1940_v22 }
0x190f   :  { %v1059_v44 = vpop.permute.xlu1 %1058 }
0x1910   :  { %v1064_v31 = vadd.f32 %v1059_v44, %v4723_v17 }
0x1912   :  { %4413 = vtanh.f32 %v1064_v31 }
0x1918   :  { %v4414_v17 = vpop.eup %4413 }
0x1990   :  { %v1960_v32 = vpop.f32.mrf.mxu3 }
0x1991   :  { %v2007_v0 = vadd.f32 %v1960_v32, %v4877_v48  ;;  %v1055_v48 = vmul.f32 %v1051_v36, %v5166_v52  ;;  %v1964_v39 = vrot.slane %v1960_v32, 1  ;;  %v1967_v3 = vadd.f32 %v1960_v32, %v4882_v55 }
0x1993   :  { %2010 = vrot.lane.b32.xlu0 %v2007_v0, %s4633_s23  ;;  %v2009_v42 = vrot.slane %v2007_v0, 1  ;;  %v1968_v62 = vadd.f32 %v1964_v39, %v4887_v19  ;;  %v4180_v22 = vmul.f32 -1.442695, %v1967_v3 }
0x1995   :  { %2012 = vrot.lane.b32.xlu2 %v2009_v42, %s4633_s23  ;;  %v4181_v30 = vmul.f32 -1.442695, %v1968_v62 }
0x1997   :  { %4415 = vpow2.f32 %v4181_v30 }
0x199b   :  { %1060 = vrot.lane.b32.xlu0 %v1055_v48, %s4633_s23 }
0x199d   :  { %1072 = vrot.lane.b32.xlu2 %v4414_v17, %s4635_s0  ;;  %v4416_v49 = vpop.eup %4415 }
0x199e   :  { %v1976_v40 = vadd.f32 1.0, %v4416_v49 }
0x19a0   :  { %4417 = vrcp.f32 %v1976_v40  ;;  %vm1997_vm15 = vweird.f32 %v1976_v40  ;;  %v2001_v63 = vand.u32 2147483647, %v1976_v40 }
0x19a1   :  { %4419 = vpow2.f32 %v4180_v22 }
0x19a2   :  { %vm2002_vm3 = vcmp.eq.f32.partialorder %v2001_v63, 8.507059e+37 }
0x19a5   :  { %455 = vrot.lane.b32.xlu2 %v4786_v12, %s4635_s0 }
0x19a6   :  { %v4418_v25 = vpop.eup %4417 }
0x19a7   :  { %v1993_v12 = vmul.f32 %v4418_v25, %v1976_v40  ;;  %v4420_v28 = vpop.eup %4419  ;;  %vm1998_vm14 = vweird.f32 %v4418_v25 }
0x19a8   :  { %v1975_v10 = vadd.f32 1.0, %v4420_v28  ;;  %vm1999_vm2 = vmor %vm1997_vm15, %vm1998_vm14  ;;  %vm5951_vm14 = vcmask 519427   ;;  %vm5949_vm15 = vcmask 260102   ;;  %v1069_v28 = vsub.f32 1.0, %v5166_v52 }
0x19a9   :  { %v1994_v27 = vsub.f32 1.0, %v1993_v12 }
0x19aa   :  { %4421 = vrcp.f32 %v1975_v10  ;;  %v1988_v47 = vand.u32 2147483648, %v1975_v10  ;;  %vm1982_vm7 = vweird.f32 %v1975_v10  ;;  %v1986_v36 = vand.u32 2147483647, %v1975_v10 }
0x19ac   :  { %vm1987_vm9 = vcmp.eq.f32.partialorder %v1986_v36, 8.507059e+37  ;;  %v2055_v36 = vld [vmem:[%s5946_s1 + $0x68] sm:$0xff] }
0x19ad   :  { %836 = vrot.lane.b32.xlu2 %v4963_v50, %s4635_s0  ;;  %v1995_v50 = vmul.f32 %v4418_v25, %v1994_v27 }
0x19af   :  { %v1996_v60 = vadd.f32 %v4418_v25, %v1995_v50  ;;  %v1081_v50 = vrot.slane %v5023_v43, 7 }
0x19b0   :  { %v4422_v29 = vpop.eup %4421 }
0x19b1   :  { %v2000_v41 = vsel %vm1999_vm2, %v4418_v25, %v1996_v60  ;;  %v1978_v0 = vmul.f32 %v4422_v29, %v1975_v10  ;;  %vm1983_vm6 = vweird.f32 %v4422_v29  ;;  %vm5950_vm2 = vcmask 522502  }
0x19b2   :  { %vm1984_vm8 = vmor %vm1982_vm7, %vm1983_vm6  ;;  %vm1932_vm6 = vcmask 517377   ;;  %vm715_vm7 = vcmask 258052  }
0x19b3   :  { %v1979_v33 = vsub.f32 1.0, %v1978_v0 }
0x19b5   :  { %457 = vrot.lane.b32.xlu2 %v4788_v26, %s4635_s0  ;;  %v2003_v26 = vand.u32 2147483648, %v1976_v40  ;;  %v1980_v8 = vmul.f32 %v4422_v29, %v1979_v33 }
0x19b7   :  { %v2004_v20 = vor.u32 1.1754944e-38, %v2003_v26  ;;  %v1981_v42 = vadd.f32 %v4422_v29, %v1980_v8  ;;  %v2104_v8 = vld [vmem:[%s5946_s1 + $0xe8] sm:$0xff] }
0x19b9   :  { %v5179_v44 = vsel %vm2002_vm3, %v2004_v20, %v2000_v41  ;;  %v1985_v48 = vsel %vm1984_vm8, %v4422_v29, %v1981_v42  ;;  %vm335_vm3 = vcmask 254977   ;;  %v2060_v20 = vld [vmem:[%s5946_s1 + $0x90] sm:$0xff]  ;;  %v2106_v29 = vld [vmem:[%s5946_s1 + $0xf8] sm:$0xff]  ;;  %vm5960_vm8 = vcmask 520452   ;;  %v2103_v42 = vld [vmem:[%s5946_s1 + $0xe0] sm:$0xff] }
0x19ef   :  { %v2013_v32 = vpop.permute.xlu2 %2012 }
0x19f0   :  { %v2017_v34 = vmul.f32 %v2013_v32, %v5179_v44  ;;  %v5303_v32 = vld [vmem:[%s5946_s1 + $0xc0] sm:$0x3] }
0x19f2   :  { %2022 = vrot.lane.b32.xlu0 %v2017_v34, %s4633_s23 }
0x19f7   :  { %v1073_v31 = vpop.permute.xlu2 %1072 }
0x19fa   :  { %205 = vrot.lane.b32.xlu0 %v4737_v11, %s4635_s0  ;;  %v1989_v11 = vor.u32 1.1754944e-38, %v1988_v47  ;;  %v2102_v47 = vld [vmem:[%s5946_s1 + $0xd8] sm:$0xff] }
0x19fc   :  { %v5190_v39 = vsel %vm1987_vm9, %v1989_v11, %v1985_v48  ;;  %vm5954_vm9 = vcmask 261127   ;;  %v2101_v48 = vld [vmem:[%s5946_s1 + $0xd0] sm:$0xff]  ;;  %v2054_v11 = vld [vmem:[%s5946_s1 + $0x60] sm:$0xff] }
0x19ff   :  { %v456_v46 = vpop.permute.xlu2 %455 }
0x1a00   :  { %462 = vst.msk [vmem:[#allocation2] sm:$0x4] %vm461_vm4, %v456_v46  ;;  %v2056_v46 = vld [vmem:[%s5946_s1 + $0x70] sm:$0xff] }
0x1a01   :  { %1815 = vst.msk [vmem:[#allocation2] sm:$0x4] %vm1814_vm5, %v5116_v38 }
0x1a02   :  { %582 = vrot.lane.b32.xlu0 %v4820_v1, %s4635_s0 }
0x1a05   :  { %v2011_v17 = vpop.permute.xlu0 %2010 }
0x1a06   :  { %v2016_v62 = vmul.f32 %v2011_v17, %v5190_v39  ;;  %v2100_v17 = vld [vmem:[%s5946_s1 + $0xc8] sm:$0xff] }
0x1a07   :  { %v837_v30 = vpop.permute.xlu2 %836 }
0x1a08   :  { %843 = vst.msk [vmem:[#allocation2] sm:$0x20] %vm5959_vm0, %v837_v30  ;;  %2020 = vrot.lane.b32.xlu1 %v2016_v62, %s4633_s23  ;;  %v2030_v62 = vsub.f32 1.0, %v5190_v39 }
0x1a09   :  { %1452 = vst.msk [vmem:[#allocation2] sm:$0x20] %vm5958_vm1, %v5035_v14  ;;  %v1080_v14 = vrot.slane %v5025_v45, 7 }
0x1a0a   :  { %963 = vrot.lane.b32.xlu0 %v5025_v45, %s4635_s0  ;;  %v5232_v45 = vld [vmem:[%s5946_s1 + $0xb0] sm:$0xff] }
0x1a0d   :  { %v1061_v1 = vpop.permute.xlu0 %1060 }
0x1a0e   :  { %v1065_v38 = vadd.f32 %v1061_v1, %v4725_v18  ;;  %v1068_v18 = vsub.f32 1.0, %v5154_v2  ;;  %v2045_v1 = vmul.f32 %v5190_v39, %v1937_v57 }
0x1a0f   :  { %v458_v49 = vpop.permute.xlu2 %457 }
0x1a10   :  { %4423 = vtanh.f32 %v1065_v38  ;;  %463 = vst.msk [vmem:[#allocation2 + $0x8] sm:$0x4] %vm461_vm4, %v458_v49 }
0x1a11   :  { %1816 = vst.msk [vmem:[#allocation2 + $0x8] sm:$0x4] %vm1814_vm5, %v5114_v37  ;;  %v1084_v37 = vmul.f32 %v1080_v14, %v5154_v2 }
0x1a12   :  { %207 = vrot.lane.b32.xlu0 %v4735_v6, %s4635_s0  ;;  %v1078_v6 = vmul.f32 %v1073_v31, %v1068_v18  ;;  %v2058_v31 = vld [vmem:[%s5946_s1 + $0x80] sm:$0xff]  ;;  %v2042_v18 = vrot.slane %v5147_v56, 1 }
0x1a14   :  { %v1086_v3 = vadd.f32 %v1084_v37, %v1078_v6  ;;  %v2046_v6 = vmul.f32 %v2042_v18, %v5179_v44 }
0x1a16   :  { %v4424_v40 = vpop.eup %4423 }
0x1a17   :  { %1074 = vrot.lane.b32.xlu1 %v4424_v40, %s4635_s0  ;;  %v2031_v40 = vsub.f32 1.0, %v5179_v44 }
0x1a1a   :  { %584 = vrot.lane.b32.xlu0 %v4822_v4, %s4635_s0  ;;  %v5225_v4 = vld [vmem:[%s5946_s1 + $0xb8] sm:$0xff] }
0x1a1b   :  { %2151 = vmatpush.msrb.mxu2 %v5225_v4  ;;  %2275 = vmatpush.msrb.mxu3 %v5225_v4 }
0x1a1d   :  { %2152 = vmatpush.msrb.mxu2 %v5232_v45  ;;  %2276 = vmatpush.msrb.mxu3 %v5232_v45 }
0x1a1f   :  { %329 = vrot.lane.b32.xlu1 %v4764_v15, %s4635_s0 }
0x1a22   :  { %965 = vrot.lane.b32.xlu0 %v5023_v43, %s4635_s0  ;;  %v2061_v43 = vld [vmem:[%s5946_s1 + $0x98] sm:$0xff] }
0x1a23   :  { %2082 = vmatpush.msra.mxu0 %v2061_v43 }
0x1a25   :  { %2083 = vmatpush.msra.mxu0 %v2060_v20 }
0x1a27   :  { %709 = vrot.lane.b32.xlu1 %v4909_v59, %s4635_s0 }
0x1a2f   :  { %1090 = vrot.lane.b32.xlu1 %v1086_v3, %s4635_s0 }
0x1a37   :  { %331 = vrot.lane.b32.xlu1 %v4766_v16, %s4635_s0  ;;  %v5240_v16 = vld [vmem:[%s5946_s1 + $0xa8] sm:$0xff] }
0x1a38   :  { %2153 = vmatpush.msrb.mxu2 %v5240_v16  ;;  %2277 = vmatpush.msrb.mxu3 %v5240_v16 }
0x1a3f   :  { %711 = vrot.lane.b32.xlu1 %v4907_v58, %s4635_s0  ;;  %v5245_v58 = vld [vmem:[%s5946_s1 + $0xa0] sm:$0xff] }
0x1a40   :  { %2154 = vmatpush.msrb.mxu2 %v5245_v58  ;;  %2278 = vmatpush.msrb.mxu3 %v5245_v58 }
0x1a41   :  { %2155 = vmatmul.f32.vlgmr.msrb.gmra.mxu2 %v4634_v9 }
0x1a42   :  { %2523 = vmatpush.msra.mxu3 %v5225_v4  ;;  %2397 = vmatpush.msra.mxu2 %v5225_v4 }
0x1a44   :  { %2524 = vmatpush.msra.mxu3 %v5232_v45  ;;  %2398 = vmatpush.msra.mxu2 %v5232_v45 }
0x1a46   :  { %2525 = vmatpush.msra.mxu3 %v5240_v16  ;;  %2399 = vmatpush.msra.mxu2 %v5240_v16 }
0x1a48   :  { %2526 = vmatpush.msra.mxu3 %v5245_v58  ;;  %2400 = vmatpush.msra.mxu2 %v5245_v58 }
0x1a4a   :  { %2649 = vmatpush.msrb.mxu2 %v5225_v4 }
0x1a4c   :  { %2650 = vmatpush.msrb.mxu2 %v5232_v45 }
0x1a4e   :  { %2651 = vmatpush.msrb.mxu2 %v5240_v16 }
0x1a50   :  { %2652 = vmatpush.msrb.mxu2 %v5245_v58 }
0x1a64   :  { %v2023_v15 = vpop.permute.xlu0 %2022 }
0x1a6c   :  { %v206_v59 = vpop.permute.xlu0 %205 }
0x1a6d   :  { %212 = vst.msk [vmem:[#allocation2] sm:$0x1] %vm5957_vm12, %v206_v59 }
0x1a74   :  { %v583_v2 = vpop.permute.xlu0 %582 }
0x1a75   :  { %589 = vst.msk [vmem:[#allocation2] sm:$0x8] %vm5956_vm13, %v583_v2 }
0x1a76   :  { %1694 = vst.msk [vmem:[#allocation2] sm:$0x8] %vm5951_vm14, %v5092_v35  ;;  %v2027_v35 = vadd.f32 %v2023_v15, %v4887_v19 }
0x1a7a   :  { %v2021_v22 = vpop.permute.xlu1 %2020 }
0x1a7b   :  { %v2026_v25 = vadd.f32 %v2021_v22, %v4882_v55 }
0x1a7c   :  { %v964_v12 = vpop.permute.xlu0 %963 }
0x1a7d   :  { %4425 = vtanh.f32 %v2026_v25  ;;  %970 = vst.msk [vmem:[#allocation2] sm:$0x40] %vm5949_vm15, %v964_v12 }
0x1a7e   :  { %1331 = vst.msk [vmem:[#allocation2] sm:$0x40] %vm5950_vm2, %v4977_v21  ;;  %4427 = vtanh.f32 %v2027_v35  ;;  %v1085_v21 = vmul.f32 %v1081_v50, %v5166_v52  ;;  %v2107_v52 = vld [vmem:[%s5946_s1 + $0x100] sm:$0xff] }
0x1a7f   :  { %2121 = vmatpush.msra.mxu1 %v2107_v52 }
0x1a81   :  { %2122 = vmatpush.msra.mxu1 %v2106_v29 }
0x1a83   :  { %v4426_v27 = vpop.eup %4425 }
0x1a84   :  { %2034 = vrot.lane.b32.xlu2 %v4426_v27, %s4635_s0  ;;  %v208_v55 = vpop.permute.xlu0 %207  ;;  %v4428_v26 = vpop.eup %4427 }
0x1a85   :  { %213 = vst.msk [vmem:[#allocation2 + $0x8] sm:$0x1] %vm5957_vm12, %v208_v55 }
0x1a89   :  { %v1075_v10 = vpop.permute.xlu1 %1074 }
0x1a8a   :  { %v1079_v60 = vmul.f32 %v1075_v10, %v1069_v28 }
0x1a8c   :  { %v1087_v63 = vadd.f32 %v1085_v21, %v1079_v60  ;;  %2036 = vrot.lane.b32.xlu2 %v4428_v26, %s4635_s0  ;;  %v585_v19 = vpop.permute.xlu0 %584 }
0x1a8d   :  { %590 = vst.msk [vmem:[#allocation2 + $0x8] sm:$0x8] %vm5956_vm13, %v585_v19 }
0x1a8e   :  { %1695 = vst.msk [vmem:[#allocation2 + $0x8] sm:$0x8] %vm5951_vm14, %v5094_v7  ;;  %1092 = vrot.lane.b32.xlu1 %v1087_v63, %s4635_s0  ;;  %vm5953_vm14 = vcmask 523264  }
0x1a91   :  { %v330_v41 = vpop.permute.xlu1 %329 }
0x1a92   :  { %336 = vst.msk [vmem:[#allocation2] sm:$0x2] %vm335_vm3, %v330_v41 }
0x1a93   :  { %1933 = vst.msk [vmem:[#allocation2] sm:$0x2] %vm1932_vm6, %v5145_v54 }
0x1a94   :  { %838 = vrot.lane.b32.xlu2 %v4965_v51, %s4635_s0  ;;  %v966_v7 = vpop.permute.xlu0 %965  ;;  %v2203_v51 = vperm.slane %v5303_v32, 1 }
0x1a95   :  { %971 = vst.msk [vmem:[#allocation2 + $0x8] sm:$0x40] %vm5949_vm15, %v966_v7  ;;  %vm5952_vm15 = vcmask 523527  }
0x1a96   :  { %1332 = vst.msk [vmem:[#allocation2 + $0x8] sm:$0x40] %vm5950_vm2, %v4975_v13  ;;  %vm5955_vm2 = vcmask 516352  }
0x1a99   :  { %v710_v34 = vpop.permute.xlu1 %709 }
0x1a9a   :  { %716 = vst.msk [vmem:[#allocation2] sm:$0x10] %vm715_vm7, %v710_v34 }
0x1a9b   :  { %1573 = vst.msk [vmem:[#allocation2] sm:$0x10] %vm5960_vm8, %v5070_v61  ;;  %v2059_v61 = vld [vmem:[%s5946_s1 + $0x88] sm:$0xff] }
0x1a9c   :  { %2205 = vrot.lane.b32.xlu2 %v2203_v51, %s4633_s23  ;;  %2084 = vmatpush.msra.mxu0 %v2059_v61 }
0x1a9e   :  { %2085 = vmatpush.msra.mxu0 %v2058_v31 }
0x1aa1   :  { %v1091_v0 = vpop.permute.xlu1 %1090 }
0x1aa2   :  { %1097 = vst.msk [vmem:[#allocation2] sm:$0x80] %vm5954_vm9, %v1091_v0 }
0x1aa3   :  { %1210 = vst.msk [vmem:[#allocation2] sm:$0x80] %vm5952_vm15, %v4919_v24  ;;  %v2105_v24 = vld [vmem:[%s5946_s1 + $0xf0] sm:$0xff] }
0x1aa4   :  { %2123 = vmatpush.msra.mxu1 %v2105_v24 }
0x1aa6   :  { %2124 = vmatpush.msra.mxu1 %v2104_v8 }
0x1aa8   :  { %2125 = vmatpush.msra.mxu1 %v2103_v42 }
0x1aa9   :  { %v332_v13 = vpop.permute.xlu1 %331 }
0x1aaa   :  { %337 = vst.msk [vmem:[#allocation2 + $0x8] sm:$0x2] %vm335_vm3, %v332_v13  ;;  %2126 = vmatpush.msra.mxu1 %v2102_v47 }
0x1aab   :  { %1934 = vst.msk [vmem:[#allocation2 + $0x8] sm:$0x2] %vm1932_vm6, %v5147_v56 }
0x1aac   :  { %2127 = vmatpush.msra.mxu1 %v2101_v48 }
0x1aae   :  { %2128 = vmatpush.msra.mxu1 %v2100_v17 }
0x1ab0   :  { %3027 = vmatpush.msrb.mxu1 %v5225_v4 }
0x1ab1   :  { %v712_v33 = vpop.permute.xlu1 %711 }
0x1ab2   :  { %717 = vst.msk [vmem:[#allocation2 + $0x8] sm:$0x10] %vm715_vm7, %v712_v33  ;;  %3028 = vmatpush.msrb.mxu1 %v5232_v45 }
0x1ab3   :  { %1574 = vst.msk [vmem:[#allocation2 + $0x8] sm:$0x10] %vm5960_vm8, %v5072_v53  ;;  %v2057_v53 = vld [vmem:[%s5946_s1 + $0x78] sm:$0xff] }
0x1ab4   :  { %2086 = vmatpush.msra.mxu0 %v2057_v53  ;;  %3029 = vmatpush.msrb.mxu1 %v5240_v16 }
0x1ab6   :  { %2087 = vmatpush.msra.mxu0 %v2056_v46  ;;  %3030 = vmatpush.msrb.mxu1 %v5245_v58 }
0x1ab8   :  { %2088 = vmatpush.msra.mxu0 %v2055_v36 }
0x1aba   :  { %2089 = vmatpush.msra.mxu0 %v2054_v11 }
0x1abc   :  { %2901 = vmatpush.msrb.mxu0 %v5225_v4 }
0x1abe   :  { %2902 = vmatpush.msrb.mxu0 %v5232_v45 }
0x1ac0   :  { %2903 = vmatpush.msrb.mxu0 %v5240_v16 }
0x1ac2   :  { %2904 = vmatpush.msrb.mxu0 %v5245_v58 }
0x1ac4   :  { %v2156_v56 = vpop.f32.mrf.mxu2 }
0x1ac5   :  { %v2160_v52 = vrot.slane %v2156_v56, 1 }
0x1ade   :  { %v2035_v30 = vpop.permute.xlu2 %2034 }
0x1adf   :  { %v2040_v38 = vmul.f32 %v2035_v30, %v2030_v62 }
0x1ae1   :  { %v2047_v49 = vadd.f32 %v2045_v1, %v2040_v38 }
0x1ae3   :  { %2050 = vst.msk [vmem:[#allocation2] sm:$0x1] %vm5955_vm2, %v2047_v49 }
0x1ae6   :  { %v2037_v14 = vpop.permute.xlu2 %2036 }
0x1ae7   :  { %v2041_v37 = vmul.f32 %v2037_v14, %v2031_v40 }
0x1ae9   :  { %v2048_v3 = vadd.f32 %v2046_v6, %v2041_v37 }
0x1aea   :  { %v2052_v15 = vld [vmem:[#allocation2] sm:$0xff] }
0x1aeb   :  { %2051 = vst.msk [vmem:[#allocation2 + $0x8] sm:$0x1] %vm5955_vm2, %v2048_v3  ;;  %4182 = vmatmul.msk.f32.vlgmr.msra.gmra.mxu0 %vm5953_vm14, %v2052_v15  ;;  %4184 = vmatmul.msk.f32.vlgmr.msra.gmra.mxu1 %vm5953_vm14, %v2052_v15 }
0x1aee   :  { %v839_v54 = vpop.permute.xlu2 %838 }
0x1aef   :  { %844 = vst.msk [vmem:[#allocation2 + $0x8] sm:$0x20] %vm5959_vm0, %v839_v54 }
0x1af0   :  { %1453 = vst.msk [vmem:[#allocation2 + $0x8] sm:$0x20] %vm5958_vm1, %v5033_v5  ;;  %v2097_v5 = vperm.slane %v5303_v32, 0 }
0x1af6   :  { %v5379_v57 = vpop.permute.xlu2 %2205 }
0x1af7   :  { %v2208_v44 = vadd.f32 %v5379_v57, %v2156_v56 }
0x1af9   :  { %2211 = vrot.lane.b32.xlu1 %v2208_v44, %s4633_s23  ;;  %v2210_v39 = vrot.slane %v2208_v44, 1 }
0x1afb   :  { %2213 = vrot.lane.b32.xlu0 %v2210_v39, %s4633_s23 }
0x1b00   :  { %v1093_v59 = vpop.permute.xlu1 %1092 }
0x1b01   :  { %1098 = vst.msk [vmem:[#allocation2 + $0x8] sm:$0x80] %vm5954_vm9, %v1093_v59 }
0x1b02   :  { %1211 = vst.msk [vmem:[#allocation2 + $0x8] sm:$0x80] %vm5952_vm15, %v4917_v23 }
0x1b09   :  { %v2053_v2 = vld [vmem:[#allocation2 + $0x8] sm:$0xff] }
0x1b0a   :  { %4183 = vmatmul.msk.f32.gmra.mxu0 %vm5953_vm14, %v2053_v2  ;;  %4185 = vmatmul.msk.f32.gmra.mxu1 %vm5953_vm14, %v2053_v2 }
0x1b68   :  { %v2091_v22 = vpop.f32.mrf.mxu0 }
0x1b69   :  { %v5390_v25 = vadd.f32 %v2097_v5, %v2091_v22 }
0x1b6b   :  { %v2163_v12 = vadd.f32 %v2156_v56, %v5390_v25  ;;  %v2212_v19 = vpop.permute.xlu1 %2211 }
0x1b6d   :  { %v4186_v35 = vmul.f32 -1.442695, %v2163_v12  ;;  %v2214_v46 = vpop.permute.xlu0 %2213 }
0x1b6f   :  { %4429 = vpow2.f32 %v4186_v35 }
0x1b75   :  { %v4430_v27 = vpop.eup %4429 }
0x1b76   :  { %v2171_v55 = vadd.f32 1.0, %v4430_v27 }
0x1b78   :  { %4431 = vrcp.f32 %v2171_v55  ;;  %v2184_v10 = vand.u32 2147483648, %v2171_v55  ;;  %v2182_v60 = vand.u32 2147483647, %v2171_v55  ;;  %vm2178_vm14 = vweird.f32 %v2171_v55 }
0x1b7a   :  { %v2185_v63 = vor.u32 1.1754944e-38, %v2184_v10  ;;  %vm2183_vm2 = vcmp.eq.f32.partialorder %v2182_v60, 8.507059e+37 }
0x1b7e   :  { %v4432_v28 = vpop.eup %4431 }
0x1b7f   :  { %v2174_v50 = vmul.f32 %v4432_v28, %v2171_v55  ;;  %vm2179_vm15 = vweird.f32 %v4432_v28 }
0x1b80   :  { %vm2180_vm9 = vmor %vm2178_vm14, %vm2179_vm15 }
0x1b81   :  { %v2175_v23 = vsub.f32 1.0, %v2174_v50 }
0x1b83   :  { %v2176_v21 = vmul.f32 %v4432_v28, %v2175_v23 }
0x1b85   :  { %v2177_v26 = vadd.f32 %v4432_v28, %v2176_v21 }
0x1b87   :  { %v2094_v41 = vpop.f32.mrf.mxu0  ;;  %v2181_v43 = vsel %vm2180_vm9, %v4432_v28, %v2177_v26 }
0x1b88   :  { %v5393_v7 = vadd.f32 %v2097_v5, %v2094_v41  ;;  %v2186_v20 = vsel %vm2183_vm2, %v2185_v63, %v2181_v43 }
0x1b89   :  { %v2217_v29 = vmul.f32 %v2212_v19, %v2186_v20  ;;  %v2231_v40 = vsub.f32 1.0, %v2186_v20  ;;  %v2243_v15 = vmul.f32 0.0, %v2186_v20 }
0x1b8a   :  { %v2164_v32 = vadd.f32 %v2160_v52, %v5393_v7 }
0x1b8b   :  { %2221 = vrot.lane.b32.xlu0 %v2217_v29, %s4633_s23 }
0x1b8c   :  { %v4187_v51 = vmul.f32 -1.442695, %v2164_v32 }
0x1b8e   :  { %4433 = vpow2.f32 %v4187_v51 }
0x1b94   :  { %v4434_v34 = vpop.eup %4433 }
0x1b95   :  { %v2172_v0 = vadd.f32 1.0, %v4434_v34 }
0x1b97   :  { %4435 = vrcp.f32 %v2172_v0  ;;  %v2199_v24 = vand.u32 2147483648, %v2172_v0  ;;  %v2197_v8 = vand.u32 2147483647, %v2172_v0  ;;  %vm2193_vm15 = vweird.f32 %v2172_v0 }
0x1b99   :  { %v2200_v42 = vor.u32 1.1754944e-38, %v2199_v24  ;;  %vm2198_vm9 = vcmp.eq.f32.partialorder %v2197_v8, 8.507059e+37 }
0x1b9d   :  { %v4436_v13 = vpop.eup %4435 }
0x1b9e   :  { %v2189_v33 = vmul.f32 %v4436_v13, %v2172_v0  ;;  %vm2194_vm14 = vweird.f32 %v4436_v13 }
0x1b9f   :  { %vm2195_vm2 = vmor %vm2193_vm15, %vm2194_vm14 }
0x1ba0   :  { %v2190_v61 = vsub.f32 1.0, %v2189_v33 }
0x1ba2   :  { %v2191_v31 = vmul.f32 %v4436_v13, %v2190_v61 }
0x1ba4   :  { %v2192_v53 = vadd.f32 %v4436_v13, %v2191_v31 }
0x1ba6   :  { %v2196_v47 = vsel %vm2195_vm2, %v4436_v13, %v2192_v53 }
0x1ba7   :  { %v2201_v36 = vsel %vm2198_vm9, %v2200_v42, %v2196_v47 }
0x1ba8   :  { %v2218_v48 = vmul.f32 %v2214_v46, %v2201_v36  ;;  %v2232_v18 = vsub.f32 1.0, %v2201_v36  ;;  %v2244_v37 = vmul.f32 0.0, %v2201_v36 }
0x1baa   :  { %2223 = vrot.lane.b32.xlu2 %v2218_v48, %s4633_s23 }
0x1bfd   :  { %v2222_v11 = vpop.permute.xlu0 %2221 }
0x1bfe   :  { %v2227_v17 = vadd.f32 %v2222_v11, %v5390_v25 }
0x1c00   :  { %4437 = vtanh.f32 %v2227_v17 }
0x1c04   :  { %v2224_v62 = vpop.permute.xlu2 %2223 }
0x1c05   :  { %v2228_v30 = vadd.f32 %v2224_v62, %v5393_v7 }
0x1c06   :  { %v4438_v1 = vpop.eup %4437 }
0x1c07   :  { %4439 = vtanh.f32 %v2228_v30  ;;  %2235 = vrot.lane.b32.xlu2 %v4438_v1, %s4635_s0 }
0x1c0d   :  { %v4440_v38 = vpop.eup %4439 }
0x1c0e   :  { %2237 = vrot.lane.b32.xlu1 %v4440_v38, %s4635_s0 }
0x1c61   :  { %v2236_v49 = vpop.permute.xlu2 %2235 }
0x1c62   :  { %v2241_v6 = vmul.f32 %v2236_v49, %v2231_v40 }
0x1c64   :  { %v5404_v56 = vadd.f32 %v2243_v15, %v2241_v6 }
0x1c66   :  { %v2362_v1 = vrot.slane %v5404_v56, 7 }
0x1c80   :  { %v2238_v14 = vpop.permute.xlu1 %2237 }
0x1c81   :  { %v2242_v3 = vmul.f32 %v2238_v14, %v2232_v18 }
0x1c83   :  { %v5402_v54 = vadd.f32 %v2244_v37, %v2242_v3 }
0x1c85   :  { %v2257_v44 = vrot.slane %v5402_v54, 7 }
0x1c87   :  { %v2258_v39 = vsel %vm215_vm10, %v2257_v44, %v5404_v56 }
0x1c88   :  { %2259 = vrot.lane.b32.xlu0 %v2258_v39, %s4635_s0 }
0x1cfa   :  { %v2260_v59 = vpop.permute.xlu0 %2259 }
0x1cfb   :  { %4188 = vmatmul.msk.f32.vlgmr.msrb.gmra.mxu3 %vm91_vm11, %v2260_v59 }
0x1cfc   :  { %2775 = vmatpush.msrb.mxu3 %v5225_v4 }
0x1cfe   :  { %2776 = vmatpush.msrb.mxu3 %v5232_v45 }
0x1d00   :  { %2777 = vmatpush.msrb.mxu3 %v5240_v16 }
0x1d02   :  { %2778 = vmatpush.msrb.mxu3 %v5245_v58 }
0x1d7e   :  { %v2280_v2 = vpop.f32.mrf.mxu3 }
0x1d7f   :  { %v2327_v5 = vadd.f32 %v2280_v2, %v5379_v57  ;;  %v2288_v12 = vadd.f32 %v2280_v2, %v5393_v7  ;;  %v2284_v45 = vrot.slane %v2280_v2, 7 }
0x1d81   :  { %2332 = vrot.lane.b32.xlu2 %v2327_v5, %s4633_s23  ;;  %v2329_v22 = vrot.slane %v2327_v5, 7  ;;  %v4190_v35 = vmul.f32 -1.442695, %v2288_v12  ;;  %v2287_v16 = vadd.f32 %v2284_v45, %v5390_v25 }
0x1d83   :  { %2330 = vrot.lane.b32.xlu1 %v2329_v22, %s4633_s23  ;;  %4441 = vpow2.f32 %v4190_v35  ;;  %v4189_v58 = vmul.f32 -1.442695, %v2287_v16 }
0x1d89   :  { %v4442_v27 = vpop.eup %4441 }
0x1d8a   :  { %v2296_v4 = vadd.f32 1.0, %v4442_v27 }
0x1d8c   :  { %4443 = vrcp.f32 %v2296_v4  ;;  %v2323_v26 = vand.u32 2147483648, %v2296_v4  ;;  %vm2317_vm15 = vweird.f32 %v2296_v4  ;;  %v2321_v63 = vand.u32 2147483647, %v2296_v4 }
0x1d8d   :  { %4445 = vpow2.f32 %v4189_v58 }
0x1d8e   :  { %v2324_v41 = vor.u32 1.1754944e-38, %v2323_v26  ;;  %vm2322_vm9 = vcmp.eq.f32.partialorder %v2321_v63, 8.507059e+37 }
0x1d92   :  { %v4444_v55 = vpop.eup %4443 }
0x1d93   :  { %v2313_v28 = vmul.f32 %v4444_v55, %v2296_v4  ;;  %v4446_v10 = vpop.eup %4445  ;;  %vm2318_vm14 = vweird.f32 %v4444_v55 }
0x1d94   :  { %v2295_v60 = vadd.f32 1.0, %v4446_v10  ;;  %vm2319_vm2 = vmor %vm2317_vm15, %vm2318_vm14 }
0x1d95   :  { %v2314_v50 = vsub.f32 1.0, %v2313_v28 }
0x1d96   :  { %4447 = vrcp.f32 %v2295_v60  ;;  %v2308_v13 = vand.u32 2147483648, %v2295_v60  ;;  %vm2302_vm12 = vweird.f32 %v2295_v60  ;;  %v2306_v33 = vand.u32 2147483647, %v2295_v60 }
0x1d97   :  { %v2315_v23 = vmul.f32 %v4444_v55, %v2314_v50 }
0x1d98   :  { %v2309_v24 = vor.u32 1.1754944e-38, %v2308_v13  ;;  %vm2307_vm14 = vcmp.eq.f32.partialorder %v2306_v33, 8.507059e+37 }
0x1d99   :  { %v2316_v21 = vadd.f32 %v4444_v55, %v2315_v23 }
0x1d9b   :  { %v2320_v19 = vsel %vm2319_vm2, %v4444_v55, %v2316_v21 }
0x1d9c   :  { %v2325_v52 = vsel %vm2322_vm9, %v2324_v41, %v2320_v19  ;;  %v4448_v29 = vpop.eup %4447 }
0x1d9d   :  { %v2298_v32 = vmul.f32 %v4448_v29, %v2295_v60  ;;  %vm2303_vm13 = vweird.f32 %v4448_v29  ;;  %v2351_v62 = vsub.f32 1.0, %v2325_v52  ;;  %v2366_v14 = vmul.f32 %v2325_v52, %v2257_v44 }
0x1d9e   :  { %vm2304_vm1 = vmor %vm2302_vm12, %vm2303_vm13 }
0x1d9f   :  { %v2299_v51 = vsub.f32 1.0, %v2298_v32 }
0x1da1   :  { %v2300_v34 = vmul.f32 %v4448_v29, %v2299_v51 }
0x1da3   :  { %v2301_v0 = vadd.f32 %v4448_v29, %v2300_v34 }
0x1da5   :  { %v2305_v61 = vsel %vm2304_vm1, %v4448_v29, %v2301_v0 }
0x1da6   :  { %v2310_v8 = vsel %vm2307_vm14, %v2309_v24, %v2305_v61 }
0x1da7   :  { %v2350_v30 = vsub.f32 1.0, %v2310_v8  ;;  %v2365_v40 = vmul.f32 %v2362_v1, %v2310_v8 }
0x1ddb   :  { %v2333_v43 = vpop.permute.xlu2 %2332 }
0x1ddc   :  { %v2337_v20 = vmul.f32 %v2333_v43, %v2325_v52 }
0x1dde   :  { %2342 = vrot.lane.b32.xlu1 %v2337_v20, %s4633_s23 }
0x1df5   :  { %v2331_v31 = vpop.permute.xlu1 %2330 }
0x1df6   :  { %v2336_v53 = vmul.f32 %v2331_v31, %v2310_v8 }
0x1df8   :  { %2340 = vrot.lane.b32.xlu0 %v2336_v53, %s4633_s23 }
0x1e50   :  { %v2343_v42 = vpop.permute.xlu1 %2342 }
0x1e51   :  { %v2347_v46 = vadd.f32 %v2343_v42, %v5393_v7 }
0x1e53   :  { %4449 = vtanh.f32 %v2347_v46 }
0x1e59   :  { %v4450_v47 = vpop.eup %4449 }
0x1e5a   :  { %2356 = vrot.lane.b32.xlu0 %v4450_v47, %s4635_s0 }
0x1e6a   :  { %v2341_v36 = vpop.permute.xlu0 %2340 }
0x1e6b   :  { %v2346_v48 = vadd.f32 %v2341_v36, %v5390_v25 }
0x1e6d   :  { %4451 = vtanh.f32 %v2346_v48 }
0x1e73   :  { %v4452_v11 = vpop.eup %4451 }
0x1e74   :  { %2354 = vrot.lane.b32.xlu2 %v4452_v11, %s4635_s0 }
0x1ecc   :  { %v2357_v17 = vpop.permute.xlu0 %2356 }
0x1ecd   :  { %v2361_v49 = vmul.f32 %v2357_v17, %v2351_v62 }
0x1ece   :  { %v2355_v38 = vpop.permute.xlu2 %2354 }
0x1ecf   :  { %v2360_v18 = vmul.f32 %v2355_v38, %v2350_v30  ;;  %v5433_v37 = vadd.f32 %v2366_v14, %v2361_v49 }
0x1ed1   :  { %v5431_v6 = vadd.f32 %v2365_v40, %v2360_v18  ;;  %v2487_v62 = vrot.slane %v5433_v37, 7 }
0x1ed3   :  { %v2379_v3 = vrot.slane %v5431_v6, 1  ;;  %v2486_v1 = vrot.slane %v5431_v6, 7 }
0x1ed5   :  { %v2380_v15 = vsel %vm215_vm10, %v5433_v37, %v2379_v3 }
0x1ed6   :  { %2381 = vrot.lane.b32.xlu1 %v2380_v15, %s4635_s0 }
0x1f48   :  { %v2382_v39 = vpop.permute.xlu1 %2381 }
0x1f49   :  { %4191 = vmatmul.msk.f32.vlgmr.msra.gmra.mxu2 %vm91_vm11, %v2382_v39 }
0x1fcc   :  { %v2402_v59 = vpop.f32.mrf.mxu2 }
0x1fcd   :  { %v2450_v2 = vadd.f32 %v2402_v59, %v5379_v57  ;;  %v2406_v44 = vrot.slane %v2402_v59, 6  ;;  %v2407_v45 = vrot.slane %v2402_v59, 7 }
0x1fcf   :  { %v2453_v5 = vrot.slane %v2450_v2, 7  ;;  %v2452_v22 = vrot.slane %v2450_v2, 6  ;;  %v2410_v12 = vadd.f32 %v2406_v44, %v5390_v25  ;;  %v2411_v16 = vadd.f32 %v2407_v45, %v5393_v7 }
0x1fd1   :  { %2456 = vrot.lane.b32.xlu0 %v2453_v5, %s4633_s23  ;;  %2454 = vrot.lane.b32.xlu2 %v2452_v22, %s4633_s23  ;;  %v4192_v35 = vmul.f32 -1.442695, %v2410_v12  ;;  %v4193_v58 = vmul.f32 -1.442695, %v2411_v16 }
0x1fd3   :  { %4453 = vpow2.f32 %v4192_v35 }
0x1fd9   :  { %v4454_v27 = vpop.eup %4453 }
0x1fda   :  { %v2418_v4 = vadd.f32 1.0, %v4454_v27 }
0x1fdc   :  { %4455 = vrcp.f32 %v2418_v4  ;;  %v2431_v26 = vand.u32 2147483648, %v2418_v4  ;;  %vm2425_vm12 = vweird.f32 %v2418_v4  ;;  %v2429_v63 = vand.u32 2147483647, %v2418_v4 }
0x1fdd   :  { %4457 = vpow2.f32 %v4193_v58 }
0x1fde   :  { %v2432_v41 = vor.u32 1.1754944e-38, %v2431_v26  ;;  %vm2430_vm15 = vcmp.eq.f32.partialorder %v2429_v63, 8.507059e+37 }
0x1fe2   :  { %v4456_v55 = vpop.eup %4455 }
0x1fe3   :  { %v2421_v28 = vmul.f32 %v4456_v55, %v2418_v4  ;;  %v4458_v23 = vpop.eup %4457  ;;  %vm2426_vm1 = vweird.f32 %v4456_v55 }
0x1fe4   :  { %v2419_v21 = vadd.f32 1.0, %v4458_v23  ;;  %vm2427_vm13 = vmor %vm2425_vm12, %vm2426_vm1 }
0x1fe5   :  { %v2422_v50 = vsub.f32 1.0, %v2421_v28 }
0x1fe6   :  { %4459 = vrcp.f32 %v2419_v21  ;;  %v2446_v13 = vand.u32 2147483648, %v2419_v21  ;;  %vm2440_vm9 = vweird.f32 %v2419_v21  ;;  %v2444_v33 = vand.u32 2147483647, %v2419_v21 }
0x1fe7   :  { %v2423_v10 = vmul.f32 %v4456_v55, %v2422_v50 }
0x1fe8   :  { %v2447_v24 = vor.u32 1.1754944e-38, %v2446_v13  ;;  %vm2445_vm1 = vcmp.eq.f32.partialorder %v2444_v33, 8.507059e+37 }
0x1fe9   :  { %v2424_v60 = vadd.f32 %v4456_v55, %v2423_v10 }
0x1feb   :  { %v2428_v19 = vsel %vm2427_vm13, %v4456_v55, %v2424_v60 }
0x1fec   :  { %v2433_v52 = vsel %vm2430_vm15, %v2432_v41, %v2428_v19  ;;  %v4460_v29 = vpop.eup %4459 }
0x1fed   :  { %v2436_v32 = vmul.f32 %v4460_v29, %v2419_v21  ;;  %vm2441_vm2 = vweird.f32 %v4460_v29  ;;  %v2474_v30 = vsub.f32 1.0, %v2433_v52  ;;  %v2490_v14 = vmul.f32 %v2486_v1, %v2433_v52 }
0x1fee   :  { %vm2442_vm14 = vmor %vm2440_vm9, %vm2441_vm2 }
0x1fef   :  { %v2437_v51 = vsub.f32 1.0, %v2436_v32 }
0x1ff1   :  { %v2438_v34 = vmul.f32 %v4460_v29, %v2437_v51 }
0x1ff3   :  { %v2439_v0 = vadd.f32 %v4460_v29, %v2438_v34 }
0x1ff5   :  { %v2443_v61 = vsel %vm2442_vm14, %v4460_v29, %v2439_v0 }
0x1ff6   :  { %v2448_v8 = vsel %vm2445_vm1, %v2447_v24, %v2443_v61 }
0x1ff7   :  { %v2475_v17 = vsub.f32 1.0, %v2448_v8  ;;  %v2491_v40 = vmul.f32 %v2487_v62, %v2448_v8 }
0x202b   :  { %v2455_v43 = vpop.permute.xlu2 %2454 }
0x202c   :  { %v2460_v20 = vmul.f32 %v2455_v43, %v2433_v52 }
0x202e   :  { %2464 = vrot.lane.b32.xlu1 %v2460_v20, %s4633_s23 }
0x2043   :  { %v2457_v31 = vpop.permute.xlu0 %2456 }
0x2044   :  { %v2461_v53 = vmul.f32 %v2457_v31, %v2448_v8 }
0x2046   :  { %2466 = vrot.lane.b32.xlu2 %v2461_v53, %s4633_s23 }
0x20a0   :  { %v2467_v42 = vpop.permute.xlu2 %2466  ;;  %v2465_v46 = vpop.permute.xlu1 %2464 }
0x20a1   :  { %v2471_v47 = vadd.f32 %v2467_v42, %v5393_v7  ;;  %v2470_v36 = vadd.f32 %v2465_v46, %v5390_v25 }
0x20a3   :  { %4461 = vtanh.f32 %v2471_v47 }
0x20a4   :  { %4463 = vtanh.f32 %v2470_v36 }
0x20a9   :  { %v4462_v48 = vpop.eup %4461 }
0x20aa   :  { %v4464_v11 = vpop.eup %4463  ;;  %2480 = vrot.lane.b32.xlu1 %v4462_v48, %s4635_s0 }
0x20ab   :  { %2478 = vrot.lane.b32.xlu0 %v4464_v11, %s4635_s0 }
0x211c   :  { %v2481_v38 = vpop.permute.xlu1 %2480 }
0x211d   :  { %v2479_v49 = vpop.permute.xlu0 %2478  ;;  %v2485_v18 = vmul.f32 %v2481_v38, %v2475_v17 }
0x211e   :  { %v2484_v3 = vmul.f32 %v2479_v49, %v2474_v30 }
0x211f   :  { %v5453_v15 = vadd.f32 %v2491_v40, %v2485_v18 }
0x2120   :  { %v5455_v39 = vadd.f32 %v2490_v14, %v2484_v3 }
0x2121   :  { %v2505_v59 = vrot.slane %v5453_v15, 1  ;;  %v2613_v18 = vrot.slane %v5453_v15, 7 }
0x2122   :  { %v2504_v2 = vrot.slane %v5455_v39, 2  ;;  %v2612_v49 = vrot.slane %v5455_v39, 7 }
0x2124   :  { %v2506_v5 = vsel %vm215_vm10, %v2505_v59, %v2504_v2 }
0x2125   :  { %2507 = vrot.lane.b32.xlu2 %v2506_v5, %s4635_s0 }
0x217f   :  { %v2508_v22 = vpop.permute.xlu2 %2507 }
0x2180   :  { %4194 = vmatmul.msk.f32.vlgmr.msra.gmra.mxu3 %vm91_vm11, %v2508_v22 }
0x2203   :  { %v2528_v44 = vpop.f32.mrf.mxu3 }
0x2204   :  { %v2576_v12 = vadd.f32 %v2528_v44, %v5379_v57  ;;  %v2532_v4 = vrot.slane %v2528_v44, 5  ;;  %v2533_v45 = vrot.slane %v2528_v44, 6 }
0x2206   :  { %v2578_v35 = vrot.slane %v2576_v12, 5  ;;  %v2579_v27 = vrot.slane %v2576_v12, 6  ;;  %v2536_v16 = vadd.f32 %v2532_v4, %v5390_v25  ;;  %v2537_v55 = vadd.f32 %v2533_v45, %v5393_v7  ;;  %v5486_v45 = vld [vmem:[%s5946_s1 + $0x120] sm:$0xff] }
0x2207   :  { %3146 = vmatpush.msra.mxu2 %v5486_v45  ;;  %3267 = vmatpush.msra.mxu3 %v5486_v45 }
0x2208   :  { %2582 = vrot.lane.b32.xlu1 %v2579_v27, %s4633_s23  ;;  %2580 = vrot.lane.b32.xlu0 %v2578_v35, %s4633_s23  ;;  %v4195_v58 = vmul.f32 -1.442695, %v2536_v16  ;;  %v4196_v28 = vmul.f32 -1.442695, %v2537_v55  ;;  %v5491_v16 = vld [vmem:[%s5946_s1 + $0x118] sm:$0xff]  ;;  %v5498_v55 = vld [vmem:[%s5946_s1 + $0x110] sm:$0xff] }
0x2209   :  { %3387 = vmatpush.msra.mxu0 %v5486_v45  ;;  %3507 = vmatpush.msra.mxu1 %v5486_v45 }
0x220a   :  { %4465 = vpow2.f32 %v4195_v58  ;;  %3147 = vmatpush.msra.mxu2 %v5491_v16  ;;  %3268 = vmatpush.msra.mxu3 %v5491_v16  ;;  %v5507_v58 = vld [vmem:[%s5946_s1 + $0x108] sm:$0xff] }
0x220b   :  { %4467 = vpow2.f32 %v4196_v28  ;;  %3388 = vmatpush.msra.mxu0 %v5491_v16  ;;  %3508 = vmatpush.msra.mxu1 %v5491_v16  ;;  %v2112_v28 = vld [vmem:[%s5946_s1 + $0x128] sm:$0x3] }
0x220c   :  { %3148 = vmatpush.msra.mxu2 %v5498_v55  ;;  %3269 = vmatpush.msra.mxu3 %v5498_v55 }
0x220d   :  { %3389 = vmatpush.msra.mxu0 %v5498_v55  ;;  %3509 = vmatpush.msra.mxu1 %v5498_v55 }
0x220e   :  { %3149 = vmatpush.msra.mxu2 %v5507_v58  ;;  %3270 = vmatpush.msra.mxu3 %v5507_v58 }
0x220f   :  { %3390 = vmatpush.msra.mxu0 %v5507_v58  ;;  %3510 = vmatpush.msra.mxu1 %v5507_v58 }
0x2210   :  { %v4466_v50 = vpop.eup %4465 }
0x2211   :  { %v4468_v23 = vpop.eup %4467  ;;  %v2544_v10 = vadd.f32 1.0, %v4466_v50  ;;  %v3199_v50 = vperm.slane %v2112_v28, 1 }
0x2212   :  { %v2545_v21 = vadd.f32 1.0, %v4468_v23 }
0x2213   :  { %4469 = vrcp.f32 %v2544_v10  ;;  %vm2551_vm15 = vweird.f32 %v2544_v10  ;;  %v2557_v34 = vand.u32 2147483648, %v2544_v10  ;;  %v2555_v13 = vand.u32 2147483647, %v2544_v10 }
0x2214   :  { %4471 = vrcp.f32 %v2545_v21  ;;  %v2572_v51 = vand.u32 2147483648, %v2545_v21  ;;  %vm2566_vm2 = vweird.f32 %v2545_v21  ;;  %v2570_v0 = vand.u32 2147483647, %v2545_v21 }
0x2215   :  { %v2558_v31 = vor.u32 1.1754944e-38, %v2557_v34  ;;  %vm2556_vm0 = vcmp.eq.f32.partialorder %v2555_v13, 8.507059e+37 }
0x2216   :  { %v2573_v24 = vor.u32 1.1754944e-38, %v2572_v51  ;;  %vm2571_vm1 = vcmp.eq.f32.partialorder %v2570_v0, 8.507059e+37  ;;  %v2136_v51 = vperm.slane %v2112_v28, 0 }
0x2219   :  { %v4470_v60 = vpop.eup %4469 }
0x221a   :  { %v4472_v26 = vpop.eup %4471  ;;  %v2547_v19 = vmul.f32 %v4470_v60, %v2544_v10  ;;  %vm2552_vm12 = vweird.f32 %v4470_v60 }
0x221b   :  { %v2562_v63 = vmul.f32 %v4472_v26, %v2545_v21  ;;  %vm2567_vm13 = vweird.f32 %v4472_v26  ;;  %vm2553_vm9 = vmor %vm2551_vm15, %vm2552_vm12 }
0x221c   :  { %v2548_v43 = vsub.f32 1.0, %v2547_v19  ;;  %vm2568_vm14 = vmor %vm2566_vm2, %vm2567_vm13 }
0x221d   :  { %v2563_v41 = vsub.f32 1.0, %v2562_v63 }
0x221e   :  { %v2549_v20 = vmul.f32 %v4470_v60, %v2548_v43 }
0x221f   :  { %v2564_v52 = vmul.f32 %v4472_v26, %v2563_v41 }
0x2220   :  { %v2550_v32 = vadd.f32 %v4470_v60, %v2549_v20 }
0x2221   :  { %v2565_v29 = vadd.f32 %v4472_v26, %v2564_v52 }
0x2222   :  { %v2554_v61 = vsel %vm2553_vm9, %v4470_v60, %v2550_v32 }
0x2223   :  { %v2569_v33 = vsel %vm2568_vm14, %v4472_v26, %v2565_v29  ;;  %v2559_v46 = vsel %vm2556_vm0, %v2558_v31, %v2554_v61 }
0x2224   :  { %v2574_v53 = vsel %vm2571_vm1, %v2573_v24, %v2569_v33  ;;  %v2600_v38 = vsub.f32 1.0, %v2559_v46  ;;  %v2616_v59 = vmul.f32 %v2612_v49, %v2559_v46 }
0x2225   :  { %v2601_v40 = vsub.f32 1.0, %v2574_v53  ;;  %v2617_v5 = vmul.f32 %v2613_v18, %v2574_v53 }
0x227a   :  { %v2583_v8 = vpop.permute.xlu1 %2582  ;;  %v2581_v42 = vpop.permute.xlu0 %2580 }
0x227b   :  { %v2587_v47 = vmul.f32 %v2583_v8, %v2574_v53  ;;  %v2586_v36 = vmul.f32 %v2581_v42, %v2559_v46 }
0x227d   :  { %2592 = vrot.lane.b32.xlu0 %v2587_v47, %s4633_s23  ;;  %2590 = vrot.lane.b32.xlu2 %v2586_v36, %s4633_s23 }
0x22d7   :  { %v2591_v48 = vpop.permute.xlu2 %2590 }
0x22d8   :  { %v2596_v11 = vadd.f32 %v2591_v48, %v5390_v25 }
0x22da   :  { %4473 = vtanh.f32 %v2596_v11 }
0x22e0   :  { %v4474_v17 = vpop.eup %4473 }
0x22e1   :  { %2604 = vrot.lane.b32.xlu1 %v4474_v17, %s4635_s0 }
0x22e9   :  { %3201 = vrot.lane.b32.xlu1 %v3199_v50, %s4633_s23 }
0x22ef   :  { %v2593_v62 = vpop.permute.xlu0 %2592 }
0x22f0   :  { %v2597_v30 = vadd.f32 %v2593_v62, %v5393_v7 }
0x22f2   :  { %4475 = vtanh.f32 %v2597_v30 }
0x22f8   :  { %v4476_v1 = vpop.eup %4475 }
0x22f9   :  { %2606 = vrot.lane.b32.xlu2 %v4476_v1, %s4635_s0 }
0x2353   :  { %v2605_v14 = vpop.permute.xlu1 %2604  ;;  %v2607_v3 = vpop.permute.xlu2 %2606 }
0x2354   :  { %v2610_v2 = vmul.f32 %v2605_v14, %v2600_v38  ;;  %v2611_v22 = vmul.f32 %v2607_v3, %v2601_v40 }
0x2356   :  { %v5475_v44 = vadd.f32 %v2616_v59, %v2610_v2  ;;  %v5477_v12 = vadd.f32 %v2617_v5, %v2611_v22 }
0x2358   :  { %v2630_v35 = vrot.slane %v5475_v44, 3  ;;  %v2631_v27 = vrot.slane %v5477_v12, 2 }
0x235a   :  { %v2632_v4 = vsel %vm215_vm10, %v2631_v27, %v2630_v35 }
0x235b   :  { %2633 = vrot.lane.b32.xlu0 %v2632_v4, %s4635_s0  ;;  %v5532_v63 = vpop.permute.xlu1 %3201 }
0x23cd   :  { %v2634_v23 = vpop.permute.xlu0 %2633 }
0x23ce   :  { %4197 = vmatmul.msk.f32.vlgmr.msrb.gmra.mxu2 %vm91_vm11, %v2634_v23 }
0x23cf   :  { %3627 = vmatpush.msrb.mxu2 %v5486_v45 }
0x23d1   :  { %3628 = vmatpush.msrb.mxu2 %v5491_v16 }
0x23d3   :  { %3629 = vmatpush.msrb.mxu2 %v5498_v55 }
0x23d5   :  { %3630 = vmatpush.msrb.mxu2 %v5507_v58 }
0x23d6   :  { %3150 = vmatmul.f32.vlgmr.msra.gmra.mxu2 %v4634_v9  ;;  %v2130_v9 = vpop.f32.mrf.mxu1 }
0x23d7   :  { %v5542_v11 = vadd.f32 %v2136_v51, %v2130_v9 }
0x23de   :  { %v2133_v32 = vpop.f32.mrf.mxu1 }
0x23df   :  { %v5538_v13 = vadd.f32 %v2136_v51, %v2133_v32 }
0x2451   :  { %v2654_v10 = vpop.f32.mrf.mxu2 }
0x2452   :  { %v2702_v21 = vadd.f32 %v2654_v10, %v5379_v57  ;;  %v2658_v20 = vrot.slane %v2654_v10, 4  ;;  %v2659_v8 = vrot.slane %v2654_v10, 5 }
0x2454   :  { %v2704_v60 = vrot.slane %v2702_v21, 4  ;;  %v2705_v26 = vrot.slane %v2702_v21, 5  ;;  %v2662_v29 = vadd.f32 %v2658_v20, %v5390_v25  ;;  %v2663_v42 = vadd.f32 %v2659_v8, %v5393_v7 }
0x2456   :  { %2708 = vrot.lane.b32.xlu0 %v2705_v26, %s4633_s23  ;;  %2706 = vrot.lane.b32.xlu2 %v2704_v60, %s4633_s23  ;;  %v4198_v34 = vmul.f32 -1.442695, %v2662_v29  ;;  %v4199_v36 = vmul.f32 -1.442695, %v2663_v42 }
0x2458   :  { %4477 = vpow2.f32 %v4198_v34 }
0x2459   :  { %v3151_v19 = vpop.f32.mrf.mxu2 }
0x245a   :  { %v3204_v41 = vadd.f32 %v5532_v63, %v3151_v19  ;;  %v3156_v0 = vrot.slane %v3151_v19, 2  ;;  %v3155_v48 = vrot.slane %v3151_v19, 1 }
0x245c   :  { %v3206_v43 = vrot.slane %v3204_v41, 1  ;;  %v3207_v52 = vrot.slane %v3204_v41, 2  ;;  %v3160_v33 = vadd.f32 %v3156_v0, %v5538_v13  ;;  %v3159_v62 = vadd.f32 %v3155_v48, %v5542_v11 }
0x245e   :  { %3208 = vrot.lane.b32.xlu1 %v3206_v43, %s4633_s23  ;;  %3210 = vrot.lane.b32.xlu2 %v3207_v52, %s4633_s23  ;;  %v4210_v61 = vmul.f32 -1.442695, %v3160_v33  ;;  %v4478_v24 = vpop.eup %4477  ;;  %v4209_v38 = vmul.f32 -1.442695, %v3159_v62 }
0x245f   :  { %v2670_v31 = vadd.f32 1.0, %v4478_v24 }
0x2460   :  { %4479 = vpow2.f32 %v4210_v61 }
0x2461   :  { %4481 = vrcp.f32 %v2670_v31  ;;  %v2683_v2 = vand.u32 2147483648, %v2670_v31  ;;  %vm2677_vm12 = vweird.f32 %v2670_v31  ;;  %v2681_v5 = vand.u32 2147483647, %v2670_v31 }
0x2463   :  { %v2684_v4 = vor.u32 1.1754944e-38, %v2683_v2  ;;  %vm2682_vm15 = vcmp.eq.f32.partialorder %v2681_v5, 8.507059e+37 }
0x2466   :  { %v4480_v53 = vpop.eup %4479 }
0x2467   :  { %v3168_v46 = vadd.f32 1.0, %v4480_v53  ;;  %v4482_v47 = vpop.eup %4481 }
0x2468   :  { %v2673_v17 = vmul.f32 %v4482_v47, %v2670_v31  ;;  %vm2678_vm0 = vweird.f32 %v4482_v47 }
0x2469   :  { %4483 = vrcp.f32 %v3168_v46  ;;  %vm2679_vm13 = vmor %vm2677_vm12, %vm2678_vm0  ;;  %v3195_v26 = vand.u32 2147483648, %v3168_v46  ;;  %vm3189_vm9 = vweird.f32 %v3168_v46  ;;  %v3193_v19 = vand.u32 2147483647, %v3168_v46 }
0x246a   :  { %4485 = vpow2.f32 %v4199_v36  ;;  %v2674_v30 = vsub.f32 1.0, %v2673_v17 }
0x246b   :  { %4487 = vpow2.f32 %v4209_v38  ;;  %v3196_v52 = vor.u32 1.1754944e-38, %v3195_v26  ;;  %vm3194_vm1 = vcmp.eq.f32.partialorder %v3193_v19, 8.507059e+37  ;;  %v2738_v26 = vrot.slane %v5475_v44, 7 }
0x246c   :  { %v2675_v40 = vmul.f32 %v4482_v47, %v2674_v30 }
0x246e   :  { %v2676_v3 = vadd.f32 %v4482_v47, %v2675_v40 }
0x246f   :  { %v4484_v1 = vpop.eup %4483 }
0x2470   :  { %v4486_v49 = vpop.eup %4485  ;;  %v3185_v18 = vmul.f32 %v4484_v1, %v3168_v46  ;;  %v2680_v35 = vsel %vm2679_vm13, %v4482_v47, %v2676_v3  ;;  %vm3190_vm2 = vweird.f32 %v4484_v1 }
0x2471   :  { %v2671_v14 = vadd.f32 1.0, %v4486_v49  ;;  %v4488_v22 = vpop.eup %4487  ;;  %v5545_v23 = vsel %vm2682_vm15, %v2684_v4, %v2680_v35  ;;  %vm3191_vm14 = vmor %vm3189_vm9, %vm3190_vm2 }
0x2472   :  { %v3186_v59 = vsub.f32 1.0, %v3185_v18  ;;  %v3167_v28 = vadd.f32 1.0, %v4488_v22 }
0x2473   :  { %4489 = vrcp.f32 %v2671_v14  ;;  %v2698_v24 = vand.u32 2147483648, %v2671_v14  ;;  %vm2692_vm12 = vweird.f32 %v2671_v14  ;;  %v2696_v31 = vand.u32 2147483647, %v2671_v14 }
0x2474   :  { %v3187_v27 = vmul.f32 %v4484_v1, %v3186_v59  ;;  %4491 = vrcp.f32 %v3167_v28  ;;  %v3180_v17 = vand.u32 2147483648, %v3167_v28  ;;  %vm3174_vm9 = vweird.f32 %v3167_v28 }
0x2475   :  { %v2699_v42 = vor.u32 1.1754944e-38, %v2698_v24  ;;  %vm2697_vm15 = vcmp.eq.f32.partialorder %v2696_v31, 8.507059e+37  ;;  %v3178_v62 = vand.u32 2147483647, %v3167_v28 }
0x2476   :  { %v3188_v21 = vadd.f32 %v4484_v1, %v3187_v27 }
0x2478   :  { %v3192_v41 = vsel %vm3191_vm14, %v4484_v1, %v3188_v21  ;;  %v3181_v1 = vor.u32 1.1754944e-38, %v3180_v17  ;;  %v2739_v21 = vrot.slane %v5477_v12, 7 }
0x2479   :  { %v4490_v60 = vpop.eup %4489  ;;  %v5549_v9 = vsel %vm3194_vm1, %v3196_v52, %v3192_v41  ;;  %vm3179_vm1 = vcmp.eq.f32.partialorder %v3178_v62, 8.507059e+37 }
0x247a   :  { %v2688_v43 = vmul.f32 %v4490_v60, %v2671_v14  ;;  %v4492_v51 = vpop.eup %4491  ;;  %vm2693_vm0 = vweird.f32 %v4490_v60  ;;  %v3229_v24 = vsub.f32 1.0, %v5549_v9 }
0x247b   :  { %v3170_v0 = vmul.f32 %v4492_v51, %v3167_v28  ;;  %vm2694_vm13 = vmor %vm2692_vm12, %vm2693_vm0  ;;  %vm3175_vm2 = vweird.f32 %v4492_v51 }
0x247c   :  { %v2689_v32 = vsub.f32 1.0, %v2688_v43  ;;  %vm3176_vm14 = vmor %vm3174_vm9, %vm3175_vm2 }
0x247d   :  { %v3171_v61 = vsub.f32 1.0, %v3170_v0 }
0x247e   :  { %v2690_v34 = vmul.f32 %v4490_v60, %v2689_v32 }
0x247f   :  { %v3172_v53 = vmul.f32 %v4492_v51, %v3171_v61 }
0x2480   :  { %v2691_v33 = vadd.f32 %v4490_v60, %v2690_v34 }
0x2481   :  { %v3173_v48 = vadd.f32 %v4492_v51, %v3172_v53 }
0x2482   :  { %v2695_v8 = vsel %vm2694_vm13, %v4490_v60, %v2691_v33  ;;  %v2726_v60 = vsub.f32 1.0, %v5545_v23 }
0x2483   :  { %v2700_v47 = vsel %vm2697_vm15, %v2699_v42, %v2695_v8  ;;  %v3177_v30 = vsel %vm3176_vm14, %v4492_v51, %v3173_v48  ;;  %v3241_v42 = vmul.f32 0.0, %v5549_v9 }
0x2484   :  { %v3182_v49 = vsel %vm3179_vm1, %v3181_v1, %v3177_v30  ;;  %v2743_v43 = vmul.f32 %v2739_v21, %v2700_v47 }
0x2485   :  { %v3228_v61 = vsub.f32 1.0, %v3182_v49  ;;  %v3240_v53 = vmul.f32 0.0, %v3182_v49 }
0x24b0   :  { %v2707_v50 = vpop.permute.xlu2 %2706 }
0x24b1   :  { %v2712_v10 = vmul.f32 %v2707_v50, %v5545_v23 }
0x24b3   :  { %2716 = vrot.lane.b32.xlu0 %v2712_v10, %s4633_s23  ;;  %v2727_v10 = vsub.f32 1.0, %v2700_v47 }
0x24b8   :  { %v3211_v20 = vpop.permute.xlu2 %3210 }
0x24b9   :  { %v3215_v29 = vmul.f32 %v3211_v20, %v5549_v9  ;;  %v2742_v20 = vmul.f32 %v2738_v26, %v5545_v23 }
0x24bb   :  { %3220 = vrot.lane.b32.xlu0 %v3215_v29, %s4633_s23 }
0x24c8   :  { %v2709_v46 = vpop.permute.xlu0 %2708 }
0x24c9   :  { %v2713_v36 = vmul.f32 %v2709_v46, %v2700_v47 }
0x24cb   :  { %2718 = vrot.lane.b32.xlu1 %v2713_v36, %s4633_s23 }
0x24d0   :  { %v3209_v38 = vpop.permute.xlu1 %3208 }
0x24d1   :  { %v3214_v40 = vmul.f32 %v3209_v38, %v3182_v49 }
0x24d3   :  { %3218 = vrot.lane.b32.xlu2 %v3214_v40, %s4633_s23 }
0x2525   :  { %v2717_v18 = vpop.permute.xlu0 %2716 }
0x2526   :  { %v2722_v14 = vadd.f32 %v2717_v18, %v5390_v25 }
0x2528   :  { %4493 = vtanh.f32 %v2722_v14 }
0x252d   :  { %v3219_v3 = vpop.permute.xlu2 %3218  ;;  %v3221_v59 = vpop.permute.xlu0 %3220 }
0x252e   :  { %v4494_v2 = vpop.eup %4493  ;;  %v3224_v5 = vadd.f32 %v3219_v3, %v5542_v11  ;;  %v3225_v22 = vadd.f32 %v3221_v59, %v5538_v13 }
0x252f   :  { %2730 = vrot.lane.b32.xlu1 %v4494_v2, %s4635_s0 }
0x2530   :  { %4495 = vtanh.f32 %v3224_v5 }
0x2531   :  { %4497 = vtanh.f32 %v3225_v22 }
0x2536   :  { %v4496_v35 = vpop.eup %4495 }
0x2537   :  { %v4498_v27 = vpop.eup %4497  ;;  %3232 = vrot.lane.b32.xlu0 %v4496_v35, %s4635_s0 }
0x2538   :  { %3234 = vrot.lane.b32.xlu1 %v4498_v27, %s4635_s0 }
0x253d   :  { %v2719_v4 = vpop.permute.xlu1 %2718 }
0x253e   :  { %v2723_v28 = vadd.f32 %v2719_v4, %v5393_v7 }
0x2540   :  { %4499 = vtanh.f32 %v2723_v28 }
0x2546   :  { %v4500_v50 = vpop.eup %4499 }
0x2547   :  { %2732 = vrot.lane.b32.xlu2 %v4500_v50, %s4635_s0 }
0x25a1   :  { %v2733_v19 = vpop.permute.xlu2 %2732  ;;  %v2731_v41 = vpop.permute.xlu1 %2730 }
0x25a2   :  { %v2737_v52 = vmul.f32 %v2733_v19, %v2727_v10  ;;  %v2736_v29 = vmul.f32 %v2731_v41, %v2726_v60 }
0x25a4   :  { %v5567_v32 = vadd.f32 %v2743_v43, %v2737_v52  ;;  %v5569_v51 = vadd.f32 %v2742_v20, %v2736_v29 }
0x25a6   :  { %v2757_v34 = vrot.slane %v5567_v32, 3  ;;  %v2756_v0 = vrot.slane %v5569_v51, 4 }
0x25a8   :  { %v2758_v33 = vsel %vm215_vm10, %v2757_v34, %v2756_v0 }
0x25a9   :  { %2759 = vrot.lane.b32.xlu2 %v2758_v33, %s4635_s0  ;;  %v3233_v31 = vpop.permute.xlu0 %3232 }
0x25aa   :  { %v3235_v8 = vpop.permute.xlu1 %3234  ;;  %v3238_v23 = vmul.f32 %v3233_v31, %v3228_v61 }
0x25ab   :  { %v3239_v46 = vmul.f32 %v3235_v8, %v3229_v24 }
0x25ac   :  { %v5577_v47 = vadd.f32 %v3240_v53, %v3238_v23 }
0x25ad   :  { %v5579_v36 = vadd.f32 %v3241_v42, %v3239_v46 }
0x25ae   :  { %v3248_v48 = vrot.slane %v5577_v47, 7 }
0x25af   :  { %v3249_v17 = vrot.slane %v5579_v36, 6 }
0x25b1   :  { %v3250_v62 = vsel %vm215_vm10, %v3249_v17, %v3248_v48 }
0x25b2   :  { %3251 = vrot.lane.b32.xlu0 %v3250_v62, %s4635_s0 }
0x2603   :  { %v2760_v30 = vpop.permute.xlu2 %2759 }
0x2604   :  { %4200 = vmatmul.msk.f32.vlgmr.msrb.gmra.mxu3 %vm91_vm11, %v2760_v30 }
0x2605   :  { %3747 = vmatpush.msrb.mxu3 %v5486_v45 }
0x2607   :  { %3748 = vmatpush.msrb.mxu3 %v5491_v16 }
0x2609   :  { %3749 = vmatpush.msrb.mxu3 %v5498_v55 }
0x260b   :  { %3750 = vmatpush.msrb.mxu3 %v5507_v58 }
0x2624   :  { %v3252_v9 = vpop.permute.xlu0 %3251 }
0x2625   :  { %4211 = vmatmul.msk.f32.vlgmr.msra.gmra.mxu3 %vm91_vm11, %v3252_v9 }
0x2687   :  { %v2780_v1 = vpop.f32.mrf.mxu3 }
0x2688   :  { %v2828_v38 = vadd.f32 %v2780_v1, %v5379_v57  ;;  %v2785_v2 = vrot.slane %v2780_v1, 4  ;;  %v2784_v4 = vrot.slane %v2780_v1, 3 }
0x268a   :  { %v2830_v49 = vrot.slane %v2828_v38, 3  ;;  %v2831_v40 = vrot.slane %v2828_v38, 4  ;;  %v2789_v5 = vadd.f32 %v2785_v2, %v5393_v7  ;;  %v2788_v28 = vadd.f32 %v2784_v4, %v5390_v25 }
0x268c   :  { %2834 = vrot.lane.b32.xlu2 %v2831_v40, %s4633_s23  ;;  %2832 = vrot.lane.b32.xlu1 %v2830_v49, %s4633_s23  ;;  %v4202_v22 = vmul.f32 -1.442695, %v2789_v5  ;;  %v4201_v10 = vmul.f32 -1.442695, %v2788_v28 }
0x268e   :  { %4501 = vpow2.f32 %v4202_v22 }
0x2694   :  { %v4502_v35 = vpop.eup %4501 }
0x2695   :  { %v2797_v27 = vadd.f32 1.0, %v4502_v35 }
0x2697   :  { %4503 = vrcp.f32 %v2797_v27  ;;  %v2824_v52 = vand.u32 2147483648, %v2797_v27  ;;  %vm2818_vm12 = vweird.f32 %v2797_v27  ;;  %v2822_v20 = vand.u32 2147483647, %v2797_v27 }
0x2698   :  { %4505 = vpow2.f32 %v4201_v10 }
0x2699   :  { %v2825_v34 = vor.u32 1.1754944e-38, %v2824_v52  ;;  %vm2823_vm15 = vcmp.eq.f32.partialorder %v2822_v20, 8.507059e+37 }
0x269d   :  { %v4504_v50 = vpop.eup %4503 }
0x269e   :  { %v2814_v21 = vmul.f32 %v4504_v50, %v2797_v27  ;;  %v4506_v26 = vpop.eup %4505  ;;  %vm2819_vm0 = vweird.f32 %v4504_v50 }
0x269f   :  { %v2796_v41 = vadd.f32 1.0, %v4506_v26  ;;  %vm2820_vm13 = vmor %vm2818_vm12, %vm2819_vm0 }
0x26a0   :  { %v2815_v60 = vsub.f32 1.0, %v2814_v21 }
0x26a1   :  { %4507 = vrcp.f32 %v2796_v41  ;;  %v2809_v9 = vand.u32 2147483648, %v2796_v41  ;;  %vm2803_vm9 = vweird.f32 %v2796_v41  ;;  %v2807_v1 = vand.u32 2147483647, %v2796_v41 }
0x26a2   :  { %v2816_v19 = vmul.f32 %v4504_v50, %v2815_v60 }
0x26a3   :  { %vm2808_vm1 = vcmp.eq.f32.partialorder %v2807_v1, 8.507059e+37 }
0x26a4   :  { %v2817_v43 = vadd.f32 %v4504_v50, %v2816_v19 }
0x26a6   :  { %v2821_v29 = vsel %vm2820_vm13, %v4504_v50, %v2817_v43 }
0x26a7   :  { %v5599_v33 = vsel %vm2823_vm15, %v2825_v34, %v2821_v29  ;;  %v4508_v24 = vpop.eup %4507 }
0x26a8   :  { %v3272_v18 = vpop.f32.mrf.mxu3  ;;  %v2799_v53 = vmul.f32 %v4508_v24, %v2796_v41  ;;  %vm2804_vm2 = vweird.f32 %v4508_v24 }
0x26a9   :  { %v3320_v14 = vadd.f32 %v3272_v18, %v5532_v63  ;;  %v3276_v31 = vrot.slane %v3272_v18, 2  ;;  %v3277_v8 = vrot.slane %v3272_v18, 3  ;;  %vm2805_vm14 = vmor %vm2803_vm9, %vm2804_vm2  ;;  %v2810_v18 = vor.u32 1.1754944e-38, %v2809_v9 }
0x26aa   :  { %v2800_v46 = vsub.f32 1.0, %v2799_v53 }
0x26ab   :  { %v3322_v3 = vrot.slane %v3320_v14, 2  ;;  %v3323_v59 = vrot.slane %v3320_v14, 3  ;;  %v3280_v23 = vadd.f32 %v3276_v31, %v5542_v11  ;;  %v3281_v42 = vadd.f32 %v3277_v8, %v5538_v13 }
0x26ac   :  { %v2801_v62 = vmul.f32 %v4508_v24, %v2800_v46 }
0x26ad   :  { %3326 = vrot.lane.b32.xlu1 %v3323_v59, %s4633_s23  ;;  %3324 = vrot.lane.b32.xlu0 %v3322_v3, %s4633_s23  ;;  %v4212_v48 = vmul.f32 -1.442695, %v3280_v23  ;;  %v4213_v17 = vmul.f32 -1.442695, %v3281_v42 }
0x26ae   :  { %v2802_v30 = vadd.f32 %v4508_v24, %v2801_v62 }
0x26af   :  { %4509 = vpow2.f32 %v4212_v48 }
0x26b0   :  { %4511 = vpow2.f32 %v4213_v17  ;;  %v2806_v49 = vsel %vm2805_vm14, %v4508_v24, %v2802_v30 }
0x26b1   :  { %v5605_v3 = vsel %vm2808_vm1, %v2810_v18, %v2806_v49 }
0x26b5   :  { %v4510_v38 = vpop.eup %4509 }
0x26b6   :  { %v4512_v40 = vpop.eup %4511  ;;  %v3288_v14 = vadd.f32 1.0, %v4510_v38 }
0x26b7   :  { %v3289_v2 = vadd.f32 1.0, %v4512_v40 }
0x26b8   :  { %4513 = vrcp.f32 %v3288_v14  ;;  %vm3295_vm13 = vweird.f32 %v3288_v14  ;;  %v3301_v41 = vand.u32 2147483648, %v3288_v14  ;;  %v3299_v52 = vand.u32 2147483647, %v3288_v14 }
0x26b9   :  { %4515 = vrcp.f32 %v3289_v2  ;;  %v3316_v19 = vand.u32 2147483648, %v3289_v2  ;;  %vm3310_vm15 = vweird.f32 %v3289_v2  ;;  %v3314_v43 = vand.u32 2147483647, %v3289_v2 }
0x26ba   :  { %vm3300_vm1 = vcmp.eq.f32.partialorder %v3299_v52, 8.507059e+37  ;;  %v3356_v52 = vrot.slane %v5577_v47, 1 }
0x26bb   :  { %v3317_v34 = vor.u32 1.1754944e-38, %v3316_v19  ;;  %vm3315_vm14 = vcmp.eq.f32.partialorder %v3314_v43, 8.507059e+37 }
0x26be   :  { %v4514_v22 = vpop.eup %4513 }
0x26bf   :  { %v4516_v35 = vpop.eup %4515  ;;  %v3291_v4 = vmul.f32 %v4514_v22, %v3288_v14  ;;  %vm3296_vm0 = vweird.f32 %v4514_v22  ;;  %v2852_v14 = vsub.f32 1.0, %v5605_v3 }
0x26c0   :  { %v3306_v27 = vmul.f32 %v4516_v35, %v3289_v2  ;;  %vm3311_vm12 = vweird.f32 %v4516_v35  ;;  %vm3297_vm2 = vmor %vm3295_vm13, %vm3296_vm0 }
0x26c1   :  { %v3292_v50 = vsub.f32 1.0, %v3291_v4  ;;  %vm3312_vm9 = vmor %vm3310_vm15, %vm3311_vm12 }
0x26c2   :  { %v3307_v28 = vsub.f32 1.0, %v3306_v27 }
0x26c3   :  { %v3293_v21 = vmul.f32 %v4514_v22, %v3292_v50 }
0x26c4   :  { %v3308_v10 = vmul.f32 %v4516_v35, %v3307_v28 }
0x26c5   :  { %v3294_v26 = vadd.f32 %v4514_v22, %v3293_v21 }
0x26c6   :  { %v3309_v60 = vadd.f32 %v4516_v35, %v3308_v10 }
0x26c7   :  { %v3298_v29 = vsel %vm3297_vm2, %v4514_v22, %v3294_v26  ;;  %v2865_v22 = vrot.slane %v5567_v32, 7 }
0x26c8   :  { %v3313_v20 = vsel %vm3312_vm9, %v4516_v35, %v3309_v60 }
0x26c9   :  { %v3318_v24 = vsel %vm3315_vm14, %v3317_v34, %v3313_v20  ;;  %v2869_v28 = vmul.f32 %v2865_v22, %v5599_v33 }
0x26e6   :  { %v2835_v0 = vpop.permute.xlu2 %2834 }
0x26e7   :  { %v2839_v61 = vmul.f32 %v2835_v0, %v5599_v33  ;;  %v3302_v0 = vor.u32 1.1754944e-38, %v3301_v41  ;;  %v3345_v41 = vsub.f32 1.0, %v3318_v24 }
0x26e9   :  { %2844 = vrot.lane.b32.xlu0 %v2839_v61, %s4633_s23  ;;  %v3303_v8 = vsel %vm3300_vm1, %v3302_v0, %v3298_v29 }
0x26ea   :  { %v3344_v43 = vsub.f32 1.0, %v3303_v8  ;;  %v3360_v0 = vmul.f32 %v3356_v52, %v3303_v8 }
0x26fe   :  { %v2833_v59 = vpop.permute.xlu1 %2832 }
0x26ff   :  { %v2838_v5 = vmul.f32 %v2833_v59, %v5605_v3  ;;  %v2864_v59 = vrot.slane %v5569_v51, 7 }
0x2701   :  { %2842 = vrot.lane.b32.xlu2 %v2838_v5, %s4633_s23  ;;  %v2853_v5 = vsub.f32 1.0, %v5599_v33  ;;  %v2868_v35 = vmul.f32 %v2864_v59, %v5605_v3  ;;  %v3357_v3 = vrot.slane %v5579_v36, 1 }
0x2703   :  { %v3361_v29 = vmul.f32 %v3357_v3, %v3318_v24 }
0x271f   :  { %v3327_v61 = vpop.permute.xlu1 %3326  ;;  %v3325_v31 = vpop.permute.xlu0 %3324 }
0x2720   :  { %v3331_v53 = vmul.f32 %v3327_v61, %v3318_v24  ;;  %v3330_v23 = vmul.f32 %v3325_v31, %v3303_v8 }
0x2722   :  { %3336 = vrot.lane.b32.xlu2 %v3331_v53, %s4633_s23  ;;  %3334 = vrot.lane.b32.xlu1 %v3330_v23, %s4633_s23 }
0x275b   :  { %v2843_v42 = vpop.permute.xlu2 %2842  ;;  %v2845_v46 = vpop.permute.xlu0 %2844 }
0x275c   :  { %v2848_v48 = vadd.f32 %v2843_v42, %v5390_v25  ;;  %v2849_v17 = vadd.f32 %v2845_v46, %v5393_v7 }
0x275e   :  { %4517 = vtanh.f32 %v2848_v48 }
0x275f   :  { %4519 = vtanh.f32 %v2849_v17 }
0x2764   :  { %v4518_v62 = vpop.eup %4517 }
0x2765   :  { %v4520_v30 = vpop.eup %4519  ;;  %2856 = vrot.lane.b32.xlu0 %v4518_v62, %s4635_s0 }
0x2766   :  { %2858 = vrot.lane.b32.xlu1 %v4520_v30, %s4635_s0 }
0x277c   :  { %v3337_v9 = vpop.permute.xlu2 %3336 }
0x277d   :  { %v3341_v1 = vadd.f32 %v3337_v9, %v5538_v13 }
0x277f   :  { %4521 = vtanh.f32 %v3341_v1 }
0x2785   :  { %v4522_v38 = vpop.eup %4521 }
0x2786   :  { %3350 = vrot.lane.b32.xlu0 %v4522_v38, %s4635_s0 }
0x2794   :  { %v3335_v49 = vpop.permute.xlu1 %3334 }
0x2795   :  { %v3340_v40 = vadd.f32 %v3335_v49, %v5542_v11 }
0x2797   :  { %4523 = vtanh.f32 %v3340_v40 }
0x279d   :  { %v4524_v18 = vpop.eup %4523 }
0x279e   :  { %3348 = vrot.lane.b32.xlu2 %v4524_v18, %s4635_s0 }
0x27d7   :  { %v2857_v2 = vpop.permute.xlu0 %2856 }
0x27d8   :  { %v2862_v27 = vmul.f32 %v2857_v2, %v2852_v14  ;;  %v2859_v4 = vpop.permute.xlu1 %2858 }
0x27d9   :  { %v2863_v50 = vmul.f32 %v2859_v4, %v2853_v5 }
0x27da   :  { %v5625_v10 = vadd.f32 %v2868_v35, %v2862_v27 }
0x27db   :  { %v5627_v21 = vadd.f32 %v2869_v28, %v2863_v50 }
0x27dc   :  { %v2882_v60 = vrot.slane %v5625_v10, 5 }
0x27dd   :  { %v2883_v26 = vrot.slane %v5627_v21, 4 }
0x27df   :  { %v2884_v19 = vsel %vm215_vm10, %v2883_v26, %v2882_v60 }
0x27e0   :  { %2885 = vrot.lane.b32.xlu1 %v2884_v19, %s4635_s0 }
0x27f8   :  { %v3351_v33 = vpop.permute.xlu0 %3350  ;;  %v3349_v20 = vpop.permute.xlu2 %3348 }
0x27f9   :  { %v3355_v34 = vmul.f32 %v3351_v33, %v3345_v41  ;;  %v3354_v61 = vmul.f32 %v3349_v20, %v3344_v43 }
0x27fb   :  { %v5635_v31 = vadd.f32 %v3361_v29, %v3355_v34  ;;  %v5637_v53 = vadd.f32 %v3360_v0, %v3354_v61 }
0x27fd   :  { %v3369_v23 = vrot.slane %v5635_v31, 5  ;;  %v3368_v42 = vrot.slane %v5637_v53, 6 }
0x27ff   :  { %v3370_v46 = vsel %vm215_vm10, %v3369_v23, %v3368_v42 }
0x2800   :  { %3371 = vrot.lane.b32.xlu2 %v3370_v46, %s4635_s0 }
0x2852   :  { %v2886_v48 = vpop.permute.xlu1 %2885 }
0x2853   :  { %4203 = vmatmul.msk.f32.vlgmr.msrb.gmra.mxu0 %vm91_vm11, %v2886_v48 }
0x2854   :  { %3867 = vmatpush.msrb.mxu0 %v5486_v45 }
0x2856   :  { %3868 = vmatpush.msrb.mxu0 %v5491_v16 }
0x2858   :  { %3869 = vmatpush.msrb.mxu0 %v5498_v55 }
0x285a   :  { %v3372_v24 = vpop.permute.xlu2 %3371  ;;  %3870 = vmatpush.msrb.mxu0 %v5507_v58 }
0x285b   :  { %4214 = vmatmul.msk.f32.vlgmr.msra.gmra.mxu0 %vm91_vm11, %v3372_v24 }
0x28d0   :  { %v2906_v8 = vpop.f32.mrf.mxu0 }
0x28d1   :  { %v2954_v17 = vadd.f32 %v2906_v8, %v5379_v57  ;;  %v2910_v49 = vrot.slane %v2906_v8, 2  ;;  %v2911_v40 = vrot.slane %v2906_v8, 3 }
0x28d3   :  { %v2956_v62 = vrot.slane %v2954_v17, 2  ;;  %v2957_v30 = vrot.slane %v2954_v17, 3  ;;  %v2914_v14 = vadd.f32 %v2910_v49, %v5390_v25  ;;  %v2915_v59 = vadd.f32 %v2911_v40, %v5393_v7 }
0x28d5   :  { %2960 = vrot.lane.b32.xlu1 %v2957_v30, %s4633_s23  ;;  %2958 = vrot.lane.b32.xlu0 %v2956_v62, %s4633_s23  ;;  %v4204_v5 = vmul.f32 -1.442695, %v2914_v14  ;;  %v4205_v22 = vmul.f32 -1.442695, %v2915_v59 }
0x28d8   :  { %v3392_v9 = vpop.f32.mrf.mxu0 }
0x28d9   :  { %v3440_v45 = vadd.f32 %v3392_v9, %v5532_v63  ;;  %v3396_v55 = vrot.slane %v3392_v9, 3  ;;  %v3397_v35 = vrot.slane %v3392_v9, 4 }
0x28db   :  { %v3442_v16 = vrot.slane %v3440_v45, 3  ;;  %v3443_v1 = vrot.slane %v3440_v45, 4  ;;  %v3400_v58 = vadd.f32 %v3396_v55, %v5542_v11  ;;  %v3401_v27 = vadd.f32 %v3397_v35, %v5538_v13 }
0x28dd   :  { %3444 = vrot.lane.b32.xlu2 %v3442_v16, %s4633_s23  ;;  %3446 = vrot.lane.b32.xlu0 %v3443_v1, %s4633_s23  ;;  %v4215_v38 = vmul.f32 -1.442695, %v3400_v58  ;;  %v4216_v28 = vmul.f32 -1.442695, %v3401_v27 }
0x28df   :  { %4525 = vpow2.f32 %v4215_v38 }
0x28e5   :  { %v4526_v18 = vpop.eup %4525 }
0x28e6   :  { %v3408_v2 = vadd.f32 1.0, %v4526_v18 }
0x28e8   :  { %4527 = vrcp.f32 %v3408_v2  ;;  %v3421_v0 = vand.u32 2147483648, %v3408_v2  ;;  %vm3415_vm12 = vweird.f32 %v3408_v2  ;;  %v3419_v61 = vand.u32 2147483647, %v3408_v2 }
0x28e9   :  { %4529 = vpow2.f32 %v4204_v5 }
0x28ea   :  { %4531 = vpow2.f32 %v4205_v22  ;;  %v3422_v48 = vor.u32 1.1754944e-38, %v3421_v0  ;;  %vm3420_vm15 = vcmp.eq.f32.partialorder %v3419_v61, 8.507059e+37 }
0x28eb   :  { %4533 = vpow2.f32 %v4216_v28 }
0x28ee   :  { %v4528_v4 = vpop.eup %4527 }
0x28ef   :  { %v4530_v50 = vpop.eup %4529  ;;  %v3411_v26 = vmul.f32 %v4528_v4, %v3408_v2  ;;  %vm3416_vm0 = vweird.f32 %v4528_v4 }
0x28f0   :  { %v4532_v60 = vpop.eup %4531  ;;  %v2922_v19 = vadd.f32 1.0, %v4530_v50  ;;  %vm3417_vm13 = vmor %vm3415_vm12, %vm3416_vm0 }
0x28f1   :  { %v2923_v41 = vadd.f32 1.0, %v4532_v60  ;;  %v3412_v3 = vsub.f32 1.0, %v3411_v26  ;;  %v4534_v43 = vpop.eup %4533 }
0x28f2   :  { %4535 = vrcp.f32 %v2922_v19  ;;  %v3409_v33 = vadd.f32 1.0, %v4534_v43  ;;  %vm2929_vm14 = vweird.f32 %v2922_v19  ;;  %v2935_v40 = vand.u32 2147483648, %v2922_v19 }
0x28f3   :  { %4537 = vrcp.f32 %v2923_v41  ;;  %v3413_v52 = vmul.f32 %v4528_v4, %v3412_v3  ;;  %v2950_v49 = vand.u32 2147483648, %v2923_v41  ;;  %vm2944_vm1 = vweird.f32 %v2923_v41 }
0x28f4   :  { %4539 = vrcp.f32 %v3409_v33  ;;  %v2948_v18 = vand.u32 2147483647, %v2923_v41  ;;  %v2933_v14 = vand.u32 2147483647, %v2922_v19  ;;  %v2936_v35 = vor.u32 1.1754944e-38, %v2935_v40 }
0x28f5   :  { %v3414_v29 = vadd.f32 %v4528_v4, %v3413_v52  ;;  %v2951_v22 = vor.u32 1.1754944e-38, %v2950_v49  ;;  %v3436_v43 = vand.u32 2147483648, %v3409_v33 }
0x28f7   :  { %v3418_v23 = vsel %vm3417_vm13, %v4528_v4, %v3414_v29  ;;  %vm2949_vm13 = vcmp.eq.f32.partialorder %v2948_v18, 8.507059e+37  ;;  %v3437_v52 = vor.u32 1.1754944e-38, %v3436_v43 }
0x28f8   :  { %v4536_v20 = vpop.eup %4535  ;;  %v5659_v8 = vsel %vm3420_vm15, %v3422_v48, %v3418_v23  ;;  %vm2934_vm15 = vcmp.eq.f32.partialorder %v2933_v14, 8.507059e+37 }
0x28f9   :  { %v4538_v34 = vpop.eup %4537  ;;  %v2925_v46 = vmul.f32 %v4536_v20, %v2922_v19  ;;  %vm2930_vm2 = vweird.f32 %v4536_v20  ;;  %v3434_v19 = vand.u32 2147483647, %v3409_v33 }
0x28fa   :  { %v2940_v42 = vmul.f32 %v4538_v34, %v2923_v41  ;;  %v4540_v9 = vpop.eup %4539  ;;  %vm2945_vm9 = vweird.f32 %v4538_v34  ;;  %vm2931_vm0 = vmor %vm2929_vm14, %vm2930_vm2  ;;  %vm3430_vm2 = vweird.f32 %v3409_v33 }
0x28fb   :  { %v2926_v30 = vsub.f32 1.0, %v2925_v46  ;;  %v3426_v1 = vmul.f32 %v4540_v9, %v3409_v33  ;;  %vm2946_vm12 = vmor %vm2944_vm1, %vm2945_vm9  ;;  %vm3431_vm8 = vweird.f32 %v4540_v9  ;;  %vm3435_vm14 = vcmp.eq.f32.partialorder %v3434_v19, 8.507059e+37 }
0x28fc   :  { %v2941_v62 = vsub.f32 1.0, %v2940_v42  ;;  %vm3432_vm9 = vmor %vm3430_vm2, %vm3431_vm8 }
0x28fd   :  { %v2927_v16 = vmul.f32 %v4536_v20, %v2926_v30  ;;  %v3427_v38 = vsub.f32 1.0, %v3426_v1 }
0x28fe   :  { %v2942_v45 = vmul.f32 %v4538_v34, %v2941_v62 }
0x28ff   :  { %v2928_v58 = vadd.f32 %v4536_v20, %v2927_v16  ;;  %v3428_v5 = vmul.f32 %v4540_v9, %v3427_v38  ;;  %v2991_v16 = vrot.slane %v5627_v21, 7 }
0x2900   :  { %v2943_v55 = vadd.f32 %v4538_v34, %v2942_v45 }
0x2901   :  { %v2932_v2 = vsel %vm2931_vm0, %v4536_v20, %v2928_v58  ;;  %v3429_v3 = vadd.f32 %v4540_v9, %v3428_v5 }
0x2902   :  { %v2947_v59 = vsel %vm2946_vm12, %v4538_v34, %v2943_v55  ;;  %v2937_v50 = vsel %vm2934_vm15, %v2936_v35, %v2932_v2  ;;  %v2990_v55 = vrot.slane %v5625_v10, 7  ;;  %v3477_v35 = vrot.slane %v5635_v31, 1 }
0x2903   :  { %v2952_v4 = vsel %vm2949_vm13, %v2951_v22, %v2947_v59  ;;  %v3433_v41 = vsel %vm3432_vm9, %v4540_v9, %v3429_v3  ;;  %v2978_v1 = vsub.f32 1.0, %v2937_v50 }
0x2904   :  { %v3438_v20 = vsel %vm3435_vm14, %v3437_v52, %v3433_v41  ;;  %v2979_v45 = vsub.f32 1.0, %v2952_v4  ;;  %v2995_v49 = vmul.f32 %v2991_v16, %v2952_v4  ;;  %v2994_v18 = vmul.f32 %v2990_v55, %v2937_v50 }
0x2905   :  { %v3481_v3 = vmul.f32 %v3477_v35, %v3438_v20 }
0x2937   :  { %v3445_v24 = vpop.permute.xlu2 %3444 }
0x2938   :  { %v3450_v17 = vmul.f32 %v3445_v24, %v5659_v8 }
0x293a   :  { %3454 = vrot.lane.b32.xlu0 %v3450_v17, %s4633_s23 }
0x2947   :  { %v2961_v27 = vpop.permute.xlu1 %2960  ;;  %v2959_v28 = vpop.permute.xlu0 %2958 }
0x2948   :  { %v2965_v60 = vmul.f32 %v2961_v27, %v2952_v4  ;;  %v2964_v26 = vmul.f32 %v2959_v28, %v2937_v50  ;;  %v3465_v28 = vsub.f32 1.0, %v3438_v20  ;;  %v3476_v4 = vrot.slane %v5637_v53, 1 }
0x294a   :  { %2970 = vrot.lane.b32.xlu2 %v2965_v60, %s4633_s23  ;;  %2968 = vrot.lane.b32.xlu1 %v2964_v26, %s4633_s23  ;;  %v3464_v60 = vsub.f32 1.0, %v5659_v8  ;;  %v3480_v19 = vmul.f32 %v3476_v4, %v5659_v8  ;;  %v4629_v8 = vld [vmem:[%s5946_s1 + $0x120] sm:$0xff] }
0x294f   :  { %v3447_v29 = vpop.permute.xlu0 %3446 }
0x2950   :  { %v3451_v34 = vmul.f32 %v3447_v29, %v3438_v20  ;;  %v4630_v20 = vld [vmem:[%s5946_s1 + $0x118] sm:$0xff] }
0x2952   :  { %3456 = vrot.lane.b32.xlu1 %v3451_v34, %s4633_s23 }
0x29a4   :  { %v2971_v0 = vpop.permute.xlu2 %2970 }
0x29a5   :  { %v2975_v61 = vadd.f32 %v2971_v0, %v5393_v7 }
0x29a7   :  { %4541 = vtanh.f32 %v2975_v61 }
0x29ac   :  { %v3455_v23 = vpop.permute.xlu0 %3454 }
0x29ad   :  { %v4542_v42 = vpop.eup %4541  ;;  %v3460_v46 = vadd.f32 %v3455_v23, %v5542_v11 }
0x29ae   :  { %2984 = vrot.lane.b32.xlu0 %v4542_v42, %s4635_s0  ;;  %v4631_v42 = vld [vmem:[%s5946_s1 + $0x110] sm:$0xff] }
0x29af   :  { %4543 = vtanh.f32 %v3460_v46 }
0x29b5   :  { %v4544_v33 = vpop.eup %4543 }
0x29b6   :  { %3468 = vrot.lane.b32.xlu1 %v4544_v33, %s4635_s0  ;;  %v4632_v33 = vld [vmem:[%s5946_s1 + $0x108] sm:$0xff] }
0x29bc   :  { %v2969_v48 = vpop.permute.xlu1 %2968 }
0x29bd   :  { %v2974_v24 = vadd.f32 %v2969_v48, %v5390_v25 }
0x29bf   :  { %4545 = vtanh.f32 %v2974_v24 }
0x29c4   :  { %v3457_v17 = vpop.permute.xlu1 %3456 }
0x29c5   :  { %v4546_v62 = vpop.eup %4545  ;;  %v3461_v30 = vadd.f32 %v3457_v17, %v5538_v13 }
0x29c6   :  { %2982 = vrot.lane.b32.xlu2 %v4546_v62, %s4635_s0 }
0x29c7   :  { %4547 = vtanh.f32 %v3461_v30 }
0x29cd   :  { %v4548_v9 = vpop.eup %4547 }
0x29ce   :  { %3470 = vrot.lane.b32.xlu2 %v4548_v9, %s4635_s0 }
0x2a20   :  { %v2985_v58 = vpop.permute.xlu0 %2984  ;;  %v2983_v38 = vpop.permute.xlu2 %2982 }
0x2a21   :  { %v2989_v40 = vmul.f32 %v2985_v58, %v2979_v45  ;;  %v2988_v14 = vmul.f32 %v2983_v38, %v2978_v1 }
0x2a23   :  { %v5676_v59 = vadd.f32 %v2995_v49, %v2989_v40  ;;  %v5678_v2 = vadd.f32 %v2994_v18, %v2988_v14 }
0x2a25   :  { %v3009_v5 = vrot.slane %v5676_v59, 5  ;;  %v3008_v22 = vrot.slane %v5678_v2, 6 }
0x2a27   :  { %v3010_v27 = vsel %vm215_vm10, %v3009_v5, %v3008_v22 }
0x2a28   :  { %3011 = vrot.lane.b32.xlu0 %v3010_v27, %s4635_s0  ;;  %v3471_v50 = vpop.permute.xlu2 %3470  ;;  %v3469_v26 = vpop.permute.xlu1 %3468 }
0x2a29   :  { %v3475_v43 = vmul.f32 %v3471_v50, %v3465_v28  ;;  %v3474_v41 = vmul.f32 %v3469_v26, %v3464_v60 }
0x2a2b   :  { %v5688_v52 = vadd.f32 %v3481_v3, %v3475_v43  ;;  %v5690_v29 = vadd.f32 %v3480_v19, %v3474_v41 }
0x2a2d   :  { %v3489_v34 = vrot.slane %v5688_v52, 4  ;;  %v3488_v0 = vrot.slane %v5690_v29, 5 }
0x2a2f   :  { %v3490_v61 = vsel %vm215_vm10, %v3489_v34, %v3488_v0 }
0x2a30   :  { %3491 = vrot.lane.b32.xlu1 %v3490_v61, %s4635_s0 }
0x2a9a   :  { %v3012_v23 = vpop.permute.xlu0 %3011 }
0x2a9b   :  { %4206 = vmatmul.msk.f32.vlgmr.msrb.gmra.mxu1 %vm91_vm11, %v3012_v23 }
0x2a9c   :  { %3983 = vmatpush.msrb.mxu1 %v4629_v8 }
0x2a9e   :  { %3984 = vmatpush.msrb.mxu1 %v4630_v20 }
0x2aa0   :  { %3985 = vmatpush.msrb.mxu1 %v4631_v42 }
0x2aa2   :  { %v3492_v46 = vpop.permute.xlu1 %3491  ;;  %3986 = vmatpush.msrb.mxu1 %v4632_v33 }
0x2aa3   :  { %4217 = vmatmul.msk.f32.vlgmr.msra.gmra.mxu1 %vm91_vm11, %v3492_v46 }
0x2b18   :  { %v5710_v48 = vpop.f32.mrf.mxu1 }
0x2b20   :  { %v3512_v24 = vpop.f32.mrf.mxu1 }
0x2b21   :  { %v3560_v17 = vadd.f32 %v3512_v24, %v5532_v63  ;;  %v3516_v9 = vrot.slane %v3512_v24, 4  ;;  %v3517_v58 = vrot.slane %v3512_v24, 5 }
0x2b23   :  { %v3562_v62 = vrot.slane %v3560_v17, 4  ;;  %v3563_v30 = vrot.slane %v3560_v17, 5  ;;  %v3520_v45 = vadd.f32 %v3516_v9, %v5542_v11  ;;  %v3521_v38 = vadd.f32 %v3517_v58, %v5538_v13 }
0x2b25   :  { %3566 = vrot.lane.b32.xlu0 %v3563_v30, %s4633_s23  ;;  %3564 = vrot.lane.b32.xlu2 %v3562_v62, %s4633_s23  ;;  %v4218_v16 = vmul.f32 -1.442695, %v3520_v45  ;;  %v4219_v40 = vmul.f32 -1.442695, %v3521_v38  ;;  %v3596_v38 = vrot.slane %v5690_v29, 1 }
0x2b27   :  { %4549 = vpow2.f32 %v4218_v16 }
0x2b2d   :  { %v4550_v1 = vpop.eup %4549 }
0x2b2e   :  { %v3528_v55 = vadd.f32 1.0, %v4550_v1 }
0x2b30   :  { %4551 = vrcp.f32 %v3528_v55  ;;  %v3541_v28 = vand.u32 2147483648, %v3528_v55  ;;  %vm3535_vm1 = vweird.f32 %v3528_v55  ;;  %v3539_v60 = vand.u32 2147483647, %v3528_v55 }
0x2b31   :  { %4553 = vpow2.f32 %v4219_v40 }
0x2b32   :  { %v3542_v50 = vor.u32 1.1754944e-38, %v3541_v28  ;;  %vm3540_vm12 = vcmp.eq.f32.partialorder %v3539_v60, 8.507059e+37 }
0x2b36   :  { %v4552_v49 = vpop.eup %4551 }
0x2b37   :  { %v3531_v18 = vmul.f32 %v4552_v49, %v3528_v55  ;;  %v4554_v5 = vpop.eup %4553  ;;  %vm3536_vm8 = vweird.f32 %v4552_v49  ;;  %v3597_v55 = vrot.slane %v5688_v52, 1 }
0x2b38   :  { %v3529_v35 = vadd.f32 1.0, %v4554_v5  ;;  %vm3537_vm0 = vmor %vm3535_vm1, %vm3536_vm8 }
0x2b39   :  { %v3532_v14 = vsub.f32 1.0, %v3531_v18 }
0x2b3a   :  { %4555 = vrcp.f32 %v3529_v35  ;;  %v3556_v23 = vand.u32 2147483648, %v3529_v35  ;;  %vm3550_vm15 = vweird.f32 %v3529_v35  ;;  %v3554_v8 = vand.u32 2147483647, %v3529_v35 }
0x2b3b   :  { %v3533_v22 = vmul.f32 %v4552_v49, %v3532_v14 }
0x2b3c   :  { %v3557_v42 = vor.u32 1.1754944e-38, %v3556_v23  ;;  %vm3555_vm9 = vcmp.eq.f32.partialorder %v3554_v8, 8.507059e+37 }
0x2b3d   :  { %v3534_v27 = vadd.f32 %v4552_v49, %v3533_v22 }
0x2b3f   :  { %v3538_v4 = vsel %vm3537_vm0, %v4552_v49, %v3534_v27 }
0x2b40   :  { %v3543_v3 = vsel %vm3540_vm12, %v3542_v50, %v3538_v4  ;;  %v4556_v19 = vpop.eup %4555 }
0x2b41   :  { %v3546_v41 = vmul.f32 %v4556_v19, %v3529_v35  ;;  %vm3551_vm13 = vweird.f32 %v4556_v19  ;;  %v3584_v58 = vsub.f32 1.0, %v3543_v3  ;;  %v3600_v5 = vmul.f32 %v3596_v38, %v3543_v3 }
0x2b42   :  { %vm3552_vm2 = vmor %vm3550_vm15, %vm3551_vm13 }
0x2b43   :  { %v3547_v34 = vsub.f32 1.0, %v3546_v41 }
0x2b45   :  { %v3548_v0 = vmul.f32 %v4556_v19, %v3547_v34 }
0x2b47   :  { %v3549_v61 = vadd.f32 %v4556_v19, %v3548_v0 }
0x2b49   :  { %v3553_v20 = vsel %vm3552_vm2, %v4556_v19, %v3549_v61 }
0x2b4a   :  { %v3558_v33 = vsel %vm3555_vm9, %v3557_v42, %v3553_v20 }
0x2b4b   :  { %v3585_v1 = vsub.f32 1.0, %v3558_v33  ;;  %v3601_v18 = vmul.f32 %v3597_v55, %v3558_v33 }
0x2b7f   :  { %v3565_v26 = vpop.permute.xlu2 %3564 }
0x2b80   :  { %v3570_v43 = vmul.f32 %v3565_v26, %v3543_v3 }
0x2b82   :  { %3574 = vrot.lane.b32.xlu1 %v3570_v43, %s4633_s23 }
0x2b97   :  { %v3567_v46 = vpop.permute.xlu0 %3566 }
0x2b98   :  { %v3571_v24 = vmul.f32 %v3567_v46, %v3558_v33 }
0x2b9a   :  { %3576 = vrot.lane.b32.xlu2 %v3571_v24, %s4633_s23 }
0x2bf4   :  { %v3577_v17 = vpop.permute.xlu2 %3576  ;;  %v3575_v62 = vpop.permute.xlu1 %3574 }
0x2bf5   :  { %v3581_v30 = vadd.f32 %v3577_v17, %v5538_v13  ;;  %v3580_v9 = vadd.f32 %v3575_v62, %v5542_v11 }
0x2bf7   :  { %4557 = vtanh.f32 %v3581_v30 }
0x2bf8   :  { %4559 = vtanh.f32 %v3580_v9 }
0x2bfd   :  { %v4558_v45 = vpop.eup %4557 }
0x2bfe   :  { %v4560_v16 = vpop.eup %4559  ;;  %3590 = vrot.lane.b32.xlu1 %v4558_v45, %s4635_s0 }
0x2bff   :  { %3588 = vrot.lane.b32.xlu0 %v4560_v16, %s4635_s0 }
0x2c70   :  { %v3591_v49 = vpop.permute.xlu1 %3590 }
0x2c71   :  { %v3589_v40 = vpop.permute.xlu0 %3588  ;;  %v3595_v14 = vmul.f32 %v3591_v49, %v3585_v1 }
0x2c72   :  { %v3594_v22 = vmul.f32 %v3589_v40, %v3584_v58 }
0x2c73   :  { %v5725_v35 = vadd.f32 %v3601_v18, %v3595_v14 }
0x2c74   :  { %v5727_v27 = vadd.f32 %v3600_v5, %v3594_v22 }
0x2c75   :  { %v3609_v28 = vrot.slane %v5725_v35, 3 }
0x2c76   :  { %v3608_v60 = vrot.slane %v5727_v27, 4 }
0x2c78   :  { %v3610_v4 = vsel %vm215_vm10, %v3609_v28, %v3608_v60 }
0x2c79   :  { %3611 = vrot.lane.b32.xlu2 %v3610_v4, %s4635_s0 }
0x2cd3   :  { %v3612_v50 = vpop.permute.xlu2 %3611 }
0x2cd4   :  { %4220 = vmatmul.msk.f32.vlgmr.msrb.gmra.mxu2 %vm91_vm11, %v3612_v50 }
0x2d57   :  { %v3632_v26 = vpop.f32.mrf.mxu2 }
0x2d58   :  { %v3680_v43 = vadd.f32 %v3632_v26, %v5532_v63  ;;  %v3636_v41 = vrot.slane %v3632_v26, 5  ;;  %v3637_v34 = vrot.slane %v3632_v26, 6 }
0x2d5a   :  { %v3682_v3 = vrot.slane %v3680_v43, 5  ;;  %v3683_v19 = vrot.slane %v3680_v43, 6  ;;  %v3640_v0 = vadd.f32 %v3636_v41, %v5542_v11  ;;  %v3641_v61 = vadd.f32 %v3637_v34, %v5538_v13 }
0x2d5c   :  { %3686 = vrot.lane.b32.xlu1 %v3683_v19, %s4633_s23  ;;  %3684 = vrot.lane.b32.xlu0 %v3682_v3, %s4633_s23  ;;  %v4221_v23 = vmul.f32 -1.442695, %v3640_v0  ;;  %v4222_v8 = vmul.f32 -1.442695, %v3641_v61 }
0x2d5e   :  { %4561 = vpow2.f32 %v4221_v23 }
0x2d5f   :  { %4563 = vpow2.f32 %v4222_v8 }
0x2d64   :  { %v4562_v20 = vpop.eup %4561 }
0x2d65   :  { %v4564_v42 = vpop.eup %4563  ;;  %v3648_v46 = vadd.f32 1.0, %v4562_v20  ;;  %v3716_v20 = vrot.slane %v5727_v27, 1 }
0x2d66   :  { %v3649_v33 = vadd.f32 1.0, %v4564_v42 }
0x2d67   :  { %4565 = vrcp.f32 %v3648_v46  ;;  %vm3655_vm1 = vweird.f32 %v3648_v46  ;;  %v3661_v49 = vand.u32 2147483648, %v3648_v46  ;;  %v3659_v18 = vand.u32 2147483647, %v3648_v46 }
0x2d68   :  { %4567 = vrcp.f32 %v3649_v33  ;;  %v3676_v38 = vand.u32 2147483648, %v3649_v33  ;;  %vm3670_vm0 = vweird.f32 %v3649_v33  ;;  %v3674_v40 = vand.u32 2147483647, %v3649_v33 }
0x2d69   :  { %v3662_v28 = vor.u32 1.1754944e-38, %v3661_v49  ;;  %vm3660_vm2 = vcmp.eq.f32.partialorder %v3659_v18, 8.507059e+37 }
0x2d6a   :  { %v3677_v22 = vor.u32 1.1754944e-38, %v3676_v38  ;;  %vm3675_vm15 = vcmp.eq.f32.partialorder %v3674_v40, 8.507059e+37 }
0x2d6d   :  { %v4566_v24 = vpop.eup %4565 }
0x2d6e   :  { %v4568_v17 = vpop.eup %4567  ;;  %v3651_v30 = vmul.f32 %v4566_v24, %v3648_v46  ;;  %vm3656_vm14 = vweird.f32 %v4566_v24  ;;  %v3717_v46 = vrot.slane %v5725_v35, 1 }
0x2d6f   :  { %v3666_v62 = vmul.f32 %v4568_v17, %v3649_v33  ;;  %vm3671_vm8 = vweird.f32 %v4568_v17  ;;  %vm3657_vm12 = vmor %vm3655_vm1, %vm3656_vm14 }
0x2d70   :  { %v3652_v45 = vsub.f32 1.0, %v3651_v30  ;;  %vm3672_vm13 = vmor %vm3670_vm0, %vm3671_vm8 }
0x2d71   :  { %v3667_v9 = vsub.f32 1.0, %v3666_v62 }
0x2d72   :  { %v3653_v1 = vmul.f32 %v4566_v24, %v3652_v45 }
0x2d73   :  { %v3668_v16 = vmul.f32 %v4568_v17, %v3667_v9 }
0x2d74   :  { %v3654_v58 = vadd.f32 %v4566_v24, %v3653_v1 }
0x2d75   :  { %v3669_v55 = vadd.f32 %v4568_v17, %v3668_v16 }
0x2d76   :  { %v3658_v5 = vsel %vm3657_vm12, %v4566_v24, %v3654_v58 }
0x2d77   :  { %v3673_v14 = vsel %vm3672_vm13, %v4568_v17, %v3669_v55  ;;  %v3663_v26 = vsel %vm3660_vm2, %v3662_v28, %v3658_v5 }
0x2d78   :  { %v3678_v4 = vsel %vm3675_vm15, %v3677_v22, %v3673_v14  ;;  %v3704_v8 = vsub.f32 1.0, %v3663_v26  ;;  %v3720_v17 = vmul.f32 %v3716_v20, %v3663_v26 }
0x2d79   :  { %v3705_v42 = vsub.f32 1.0, %v3678_v4  ;;  %v3721_v30 = vmul.f32 %v3717_v46, %v3678_v4 }
0x2dce   :  { %v3687_v60 = vpop.permute.xlu1 %3686  ;;  %v3685_v50 = vpop.permute.xlu0 %3684 }
0x2dcf   :  { %v3691_v43 = vmul.f32 %v3687_v60, %v3678_v4  ;;  %v3690_v3 = vmul.f32 %v3685_v50, %v3663_v26 }
0x2dd1   :  { %3696 = vrot.lane.b32.xlu0 %v3691_v43, %s4633_s23  ;;  %3694 = vrot.lane.b32.xlu2 %v3690_v3, %s4633_s23 }
0x2e2b   :  { %v3695_v19 = vpop.permute.xlu2 %3694 }
0x2e2c   :  { %v3700_v41 = vadd.f32 %v3695_v19, %v5542_v11 }
0x2e2e   :  { %4569 = vtanh.f32 %v3700_v41 }
0x2e34   :  { %v4570_v34 = vpop.eup %4569 }
0x2e35   :  { %3708 = vrot.lane.b32.xlu1 %v4570_v34, %s4635_s0 }
0x2e43   :  { %v3697_v0 = vpop.permute.xlu0 %3696 }
0x2e44   :  { %v3701_v61 = vadd.f32 %v3697_v0, %v5538_v13 }
0x2e46   :  { %4571 = vtanh.f32 %v3701_v61 }
0x2e4c   :  { %v4572_v23 = vpop.eup %4571 }
0x2e4d   :  { %3710 = vrot.lane.b32.xlu2 %v4572_v23, %s4635_s0 }
0x2ea7   :  { %v3709_v33 = vpop.permute.xlu1 %3708  ;;  %v3711_v24 = vpop.permute.xlu2 %3710 }
0x2ea8   :  { %v3714_v62 = vmul.f32 %v3709_v33, %v3704_v8  ;;  %v3715_v9 = vmul.f32 %v3711_v24, %v3705_v42 }
0x2eaa   :  { %v5747_v45 = vadd.f32 %v3720_v17, %v3714_v62  ;;  %v5749_v16 = vadd.f32 %v3721_v30, %v3715_v9 }
0x2eac   :  { %v3728_v1 = vrot.slane %v5747_v45, 3  ;;  %v3729_v55 = vrot.slane %v5749_v16, 2 }
0x2eae   :  { %v3730_v58 = vsel %vm215_vm10, %v3729_v55, %v3728_v1 }
0x2eaf   :  { %3731 = vrot.lane.b32.xlu0 %v3730_v58, %s4635_s0 }
0x2f21   :  { %v3732_v38 = vpop.permute.xlu0 %3731 }
0x2f22   :  { %4223 = vmatmul.msk.f32.vlgmr.msrb.gmra.mxu3 %vm91_vm11, %v3732_v38 }
0x2fa5   :  { %v3752_v49 = vpop.f32.mrf.mxu3 }
0x2fa6   :  { %v3800_v40 = vadd.f32 %v3752_v49, %v5532_v63  ;;  %v3757_v5 = vrot.slane %v3752_v49, 7  ;;  %v3756_v50 = vrot.slane %v3752_v49, 6 }
0x2fa8   :  { %v3802_v18 = vrot.slane %v3800_v40, 6  ;;  %v3803_v14 = vrot.slane %v3800_v40, 7  ;;  %v3761_v22 = vadd.f32 %v3757_v5, %v5538_v13  ;;  %v3760_v26 = vadd.f32 %v3756_v50, %v5542_v11 }
0x2faa   :  { %3806 = vrot.lane.b32.xlu2 %v3803_v14, %s4633_s23  ;;  %3804 = vrot.lane.b32.xlu1 %v3802_v18, %s4633_s23  ;;  %v4225_v28 = vmul.f32 -1.442695, %v3761_v22  ;;  %v4224_v3 = vmul.f32 -1.442695, %v3760_v26 }
0x2fac   :  { %4573 = vpow2.f32 %v4225_v28 }
0x2fb2   :  { %v4574_v60 = vpop.eup %4573 }
0x2fb3   :  { %v3769_v4 = vadd.f32 1.0, %v4574_v60 }
0x2fb5   :  { %4575 = vrcp.f32 %v3769_v4  ;;  %v3796_v8 = vand.u32 2147483648, %v3769_v4  ;;  %vm3790_vm14 = vweird.f32 %v3769_v4  ;;  %v3794_v20 = vand.u32 2147483647, %v3769_v4 }
0x2fb6   :  { %4577 = vpow2.f32 %v4224_v3  ;;  %v3836_v3 = vrot.slane %v5747_v45, 1 }
0x2fb7   :  { %v3797_v46 = vor.u32 1.1754944e-38, %v3796_v8  ;;  %vm3795_vm1 = vcmp.eq.f32.partialorder %v3794_v20, 8.507059e+37 }
0x2fbb   :  { %v4576_v43 = vpop.eup %4575 }
0x2fbc   :  { %v3786_v19 = vmul.f32 %v4576_v43, %v3769_v4  ;;  %v4578_v34 = vpop.eup %4577  ;;  %vm3791_vm9 = vweird.f32 %v4576_v43 }
0x2fbd   :  { %v3768_v61 = vadd.f32 1.0, %v4578_v34  ;;  %vm3792_vm8 = vmor %vm3790_vm14, %vm3791_vm9 }
0x2fbe   :  { %v3787_v41 = vsub.f32 1.0, %v3786_v19 }
0x2fbf   :  { %4579 = vrcp.f32 %v3768_v61  ;;  %v3781_v58 = vand.u32 2147483648, %v3768_v61  ;;  %vm3775_vm12 = vweird.f32 %v3768_v61  ;;  %v3779_v38 = vand.u32 2147483647, %v3768_v61 }
0x2fc0   :  { %v3788_v0 = vmul.f32 %v4576_v43, %v3787_v41  ;;  %v3837_v41 = vrot.slane %v5749_v16, 1 }
0x2fc1   :  { %v3782_v40 = vor.u32 1.1754944e-38, %v3781_v58  ;;  %vm3780_vm15 = vcmp.eq.f32.partialorder %v3779_v38, 8.507059e+37 }
0x2fc2   :  { %v3789_v23 = vadd.f32 %v4576_v43, %v3788_v0 }
0x2fc4   :  { %v3793_v42 = vsel %vm3792_vm8, %v4576_v43, %v3789_v23 }
0x2fc5   :  { %v3798_v24 = vsel %vm3795_vm1, %v3797_v46, %v3793_v42  ;;  %v4580_v62 = vpop.eup %4579 }
0x2fc6   :  { %v3771_v30 = vmul.f32 %v4580_v62, %v3768_v61  ;;  %vm3776_vm0 = vweird.f32 %v4580_v62  ;;  %v3825_v19 = vsub.f32 1.0, %v3798_v24  ;;  %v3841_v8 = vmul.f32 %v3837_v41, %v3798_v24 }
0x2fc7   :  { %vm3777_vm13 = vmor %vm3775_vm12, %vm3776_vm0 }
0x2fc8   :  { %v3772_v9 = vsub.f32 1.0, %v3771_v30 }
0x2fca   :  { %v3773_v1 = vmul.f32 %v4580_v62, %v3772_v9 }
0x2fcc   :  { %v3774_v55 = vadd.f32 %v4580_v62, %v3773_v1 }
0x2fce   :  { %v3778_v49 = vsel %vm3777_vm13, %v4580_v62, %v3774_v55 }
0x2fcf   :  { %v3783_v14 = vsel %vm3780_vm15, %v3782_v40, %v3778_v49 }
0x2fd0   :  { %v3824_v43 = vsub.f32 1.0, %v3783_v14  ;;  %v3840_v61 = vmul.f32 %v3836_v3, %v3783_v14 }
0x3004   :  { %v3807_v33 = vpop.permute.xlu2 %3806 }
0x3005   :  { %v3811_v17 = vmul.f32 %v3807_v33, %v3798_v24 }
0x3007   :  { %3816 = vrot.lane.b32.xlu1 %v3811_v17, %s4633_s23 }
0x301c   :  { %v3805_v18 = vpop.permute.xlu1 %3804 }
0x301d   :  { %v3810_v5 = vmul.f32 %v3805_v18, %v3783_v14 }
0x301f   :  { %3814 = vrot.lane.b32.xlu0 %v3810_v5, %s4633_s23 }
0x3079   :  { %v3817_v22 = vpop.permute.xlu1 %3816 }
0x307a   :  { %v3821_v28 = vadd.f32 %v3817_v22, %v5538_v13 }
0x307c   :  { %4581 = vtanh.f32 %v3821_v28 }
0x3082   :  { %v4582_v60 = vpop.eup %4581 }
0x3083   :  { %3830 = vrot.lane.b32.xlu0 %v4582_v60, %s4635_s0 }
0x3091   :  { %v3815_v4 = vpop.permute.xlu0 %3814 }
0x3092   :  { %v3820_v50 = vadd.f32 %v3815_v4, %v5542_v11 }
0x3094   :  { %4583 = vtanh.f32 %v3820_v50 }
0x309a   :  { %v4584_v26 = vpop.eup %4583 }
0x309b   :  { %3828 = vrot.lane.b32.xlu2 %v4584_v26, %s4635_s0 }
0x30f5   :  { %v3829_v34 = vpop.permute.xlu2 %3828  ;;  %v3831_v0 = vpop.permute.xlu0 %3830 }
0x30f6   :  { %v3834_v23 = vmul.f32 %v3829_v34, %v3824_v43  ;;  %v3835_v20 = vmul.f32 %v3831_v0, %v3825_v19 }
0x30f8   :  { %v5769_v42 = vadd.f32 %v3840_v61, %v3834_v23  ;;  %v5771_v46 = vadd.f32 %v3841_v8, %v3835_v20 }
0x30fa   :  { %v3848_v33 = vrot.slane %v5769_v42, 2  ;;  %v3849_v17 = vrot.slane %v5771_v46, 1 }
0x30fc   :  { %v3850_v62 = vsel %vm215_vm10, %v3849_v17, %v3848_v33 }
0x30fd   :  { %3851 = vrot.lane.b32.xlu1 %v3850_v62, %s4635_s0 }
0x316f   :  { %v3852_v30 = vpop.permute.xlu1 %3851 }
0x3170   :  { %4226 = vmatmul.msk.f32.vlgmr.msrb.gmra.mxu0 %vm91_vm11, %v3852_v30 }
0x31ed   :  { %v3872_v9 = vpop.f32.mrf.mxu0 }
0x31ee   :  { %v3919_v24 = vadd.f32 %v3872_v9, %v5532_v63  ;;  %v3876_v55 = vrot.slane %v3872_v9, 7  ;;  %v3880_v18 = vadd.f32 %v3872_v9, %v5538_v13 }
0x31f0   :  { %v3921_v1 = vrot.slane %v3919_v24, 7  ;;  %3924 = vrot.lane.b32.xlu0 %v3919_v24, %s4633_s23  ;;  %v3879_v58 = vadd.f32 %v3876_v55, %v5542_v11  ;;  %v4228_v14 = vmul.f32 -1.442695, %v3880_v18 }
0x31f2   :  { %3922 = vrot.lane.b32.xlu2 %v3921_v1, %s4633_s23  ;;  %v4227_v38 = vmul.f32 -1.442695, %v3879_v58 }
0x31f4   :  { %4585 = vpow2.f32 %v4227_v38 }
0x31fa   :  { %v4586_v49 = vpop.eup %4585 }
0x31fb   :  { %v3887_v40 = vadd.f32 1.0, %v4586_v49 }
0x31fd   :  { %4587 = vrcp.f32 %v3887_v40  ;;  %v3900_v43 = vand.u32 2147483648, %v3887_v40  ;;  %vm3894_vm9 = vweird.f32 %v3887_v40  ;;  %v3898_v3 = vand.u32 2147483647, %v3887_v40 }
0x31fe   :  { %4589 = vpow2.f32 %v4228_v14 }
0x31ff   :  { %v3901_v41 = vor.u32 1.1754944e-38, %v3900_v43  ;;  %vm3899_vm8 = vcmp.eq.f32.partialorder %v3898_v3, 8.507059e+37 }
0x3203   :  { %v4588_v5 = vpop.eup %4587 }
0x3204   :  { %v3890_v22 = vmul.f32 %v4588_v5, %v3887_v40  ;;  %v4590_v60 = vpop.eup %4589  ;;  %vm3895_vm2 = vweird.f32 %v4588_v5 }
0x3205   :  { %v3888_v50 = vadd.f32 1.0, %v4590_v60  ;;  %vm3896_vm14 = vmor %vm3894_vm9, %vm3895_vm2 }
0x3206   :  { %v3891_v28 = vsub.f32 1.0, %v3890_v22 }
0x3207   :  { %4591 = vrcp.f32 %v3888_v50  ;;  %v3915_v30 = vand.u32 2147483648, %v3888_v50  ;;  %vm3909_vm0 = vweird.f32 %v3888_v50  ;;  %v3913_v9 = vand.u32 2147483647, %v3888_v50 }
0x3208   :  { %v3892_v4 = vmul.f32 %v4588_v5, %v3891_v28  ;;  %v3080_v28 = vadd.f32 %v5710_v48, %v5379_v57 }
0x3209   :  { %v3916_v1 = vor.u32 1.1754944e-38, %v3915_v30  ;;  %vm3914_vm13 = vcmp.eq.f32.partialorder %v3913_v9, 8.507059e+37 }
0x320a   :  { %v3893_v26 = vadd.f32 %v4588_v5, %v3892_v4  ;;  %v3083_v60 = vrot.slane %v3080_v28, 2  ;;  %v3082_v4 = vrot.slane %v3080_v28, 1 }
0x320c   :  { %v3897_v19 = vsel %vm3896_vm14, %v4588_v5, %v3893_v26 }
0x320d   :  { %v4592_v34 = vpop.eup %4591  ;;  %v3902_v61 = vsel %vm3899_vm8, %v3901_v41, %v3897_v19 }
0x320e   :  { %v3905_v8 = vmul.f32 %v4592_v34, %v3888_v50  ;;  %vm3910_vm1 = vweird.f32 %v4592_v34  ;;  %v3036_v50 = vrot.slane %v5710_v48, 1 }
0x320f   :  { %vm3911_vm12 = vmor %vm3909_vm0, %vm3910_vm1 }
0x3210   :  { %v3906_v20 = vsub.f32 1.0, %v3905_v8  ;;  %v3040_v26 = vadd.f32 %v3036_v50, %v5390_v25 }
0x3212   :  { %v3907_v33 = vmul.f32 %v4592_v34, %v3906_v20  ;;  %v4207_v43 = vmul.f32 -1.442695, %v3040_v26  ;;  %v3942_v20 = vsub.f32 1.0, %v3902_v61 }
0x3214   :  { %v3908_v62 = vadd.f32 %v4592_v34, %v3907_v33  ;;  %v3954_v33 = vrot.slane %v5769_v42, 1 }
0x3216   :  { %v3912_v24 = vsel %vm3911_vm12, %v4592_v34, %v3908_v62  ;;  %v3957_v9 = vmul.f32 %v3954_v33, %v3902_v61 }
0x3217   :  { %v3917_v58 = vsel %vm3914_vm13, %v3916_v1, %v3912_v24 }
0x3218   :  { %v3943_v8 = vsub.f32 1.0, %v3917_v58 }
0x324c   :  { %v3923_v0 = vpop.permute.xlu2 %3922 }
0x324d   :  { %v3928_v23 = vmul.f32 %v3923_v0, %v3902_v61 }
0x324f   :  { %3932 = vrot.lane.b32.xlu1 %v3928_v23, %s4633_s23 }
0x3262   :  { %v3925_v55 = vpop.permute.xlu0 %3924 }
0x3263   :  { %v3929_v38 = vmul.f32 %v3925_v55, %v3917_v58 }
0x3265   :  { %3934 = vrot.lane.b32.xlu2 %v3929_v38, %s4633_s23  ;;  %v3958_v38 = vmul.f32 %v3917_v58, %v3849_v17 }
0x32bf   :  { %v3935_v49 = vpop.permute.xlu2 %3934 }
0x32c0   :  { %v3939_v40 = vadd.f32 %v3935_v49, %v5538_v13 }
0x32c1   :  { %v3933_v18 = vpop.permute.xlu1 %3932 }
0x32c2   :  { %4593 = vtanh.f32 %v3939_v40  ;;  %v3938_v14 = vadd.f32 %v3933_v18, %v5542_v11 }
0x32c4   :  { %4595 = vtanh.f32 %v3938_v14 }
0x32c5   :  { %4597 = vpow2.f32 %v4207_v43 }
0x32c8   :  { %v4594_v5 = vpop.eup %4593 }
0x32c9   :  { %3948 = vrot.lane.b32.xlu1 %v4594_v5, %s4635_s0 }
0x32ca   :  { %v4596_v22 = vpop.eup %4595 }
0x32cb   :  { %3946 = vrot.lane.b32.xlu0 %v4596_v22, %s4635_s0  ;;  %v4598_v3 = vpop.eup %4597 }
0x32cc   :  { %v3048_v19 = vadd.f32 1.0, %v4598_v3 }
0x32ce   :  { %4599 = vrcp.f32 %v3048_v19  ;;  %v3061_v55 = vand.u32 2147483648, %v3048_v19  ;;  %vm3055_vm2 = vweird.f32 %v3048_v19  ;;  %v3059_v40 = vand.u32 2147483647, %v3048_v19 }
0x32d0   :  { %v3062_v22 = vor.u32 1.1754944e-38, %v3061_v55  ;;  %vm3060_vm14 = vcmp.eq.f32.partialorder %v3059_v40, 8.507059e+37 }
0x32d1   :  { %3086 = vrot.lane.b32.xlu1 %v3083_v60, %s4633_s23 }
0x32d3   :  { %3084 = vrot.lane.b32.xlu0 %v3082_v4, %s4633_s23  ;;  %v3037_v4 = vrot.slane %v5710_v48, 2 }
0x32d4   :  { %v4600_v41 = vpop.eup %4599 }
0x32d5   :  { %v3051_v34 = vmul.f32 %v4600_v41, %v3048_v19  ;;  %vm3056_vm15 = vweird.f32 %v4600_v41  ;;  %v3041_v50 = vadd.f32 %v3037_v4, %v5393_v7 }
0x32d6   :  { %vm3057_vm9 = vmor %vm3055_vm2, %vm3056_vm15 }
0x32d7   :  { %v3052_v57 = vsub.f32 1.0, %v3051_v34  ;;  %v4208_v26 = vmul.f32 -1.442695, %v3041_v50 }
0x32d9   :  { %v3053_v0 = vmul.f32 %v4600_v41, %v3052_v57  ;;  %4601 = vpow2.f32 %v4208_v26 }
0x32db   :  { %v3054_v1 = vadd.f32 %v4600_v41, %v3053_v0 }
0x32dd   :  { %v3058_v5 = vsel %vm3057_vm9, %v4600_v41, %v3054_v1 }
0x32de   :  { %v5809_v28 = vsel %vm3060_vm14, %v3062_v22, %v3058_v5 }
0x32df   :  { %v4602_v43 = vpop.eup %4601 }
0x32e0   :  { %v3049_v3 = vadd.f32 1.0, %v4602_v43 }
0x32e2   :  { %4603 = vrcp.f32 %v3049_v3  ;;  %v3076_v33 = vand.u32 2147483648, %v3049_v3  ;;  %v3074_v48 = vand.u32 2147483647, %v3049_v3 }
0x32e4   :  { %vm3075_vm0 = vcmp.eq.f32.partialorder %v3074_v48, 8.507059e+37 }
0x32e8   :  { %v4604_v19 = vpop.eup %4603 }
0x32e9   :  { %v3066_v41 = vmul.f32 %v4604_v19, %v3049_v3  ;;  %vm3071_vm8 = vweird.f32 %v4604_v19 }
0x32eb   :  { %v3067_v34 = vsub.f32 1.0, %v3066_v41 }
0x32ed   :  { %v3068_v57 = vmul.f32 %v4604_v19, %v3067_v34 }
0x333b   :  { %v3949_v23 = vpop.permute.xlu1 %3948 }
0x333c   :  { %v3953_v30 = vmul.f32 %v3949_v23, %v3943_v8  ;;  %v3069_v8 = vadd.f32 %v4604_v19, %v3068_v57 }
0x333d   :  { %v3947_v62 = vpop.permute.xlu0 %3946 }
0x333e   :  { %v3952_v24 = vmul.f32 %v3947_v62, %v3942_v20  ;;  %v5802_v18 = vadd.f32 %v3958_v38, %v3953_v30 }
0x3340   :  { %v5800_v49 = vadd.f32 %v3957_v9, %v3952_v24  ;;  %v3077_v24 = vor.u32 1.1754944e-38, %v3076_v33 }
0x3342   :  { %v3965_v14 = vrot.slane %v5800_v49, 1 }
0x3343   :  { %v3087_v0 = vpop.permute.xlu1 %3086 }
0x3344   :  { %v3966_v61 = vsel %vm215_vm10, %v5802_v18, %v3965_v14 }
0x3345   :  { %v3085_v17 = vpop.permute.xlu0 %3084  ;;  %3967 = vrot.lane.b32.xlu2 %v3966_v61, %s4635_s0 }
0x3346   :  { %v3090_v58 = vmul.f32 %v3085_v17, %v5809_v28 }
0x3348   :  { %3094 = vrot.lane.b32.xlu1 %v3090_v58, %s4633_s23 }
0x339f   :  { %v3968_v60 = vpop.permute.xlu2 %3967 }
0x33a0   :  { %4229 = vmatmul.msk.f32.vlgmr.msrb.gmra.mxu1 %vm91_vm11, %v3968_v60  ;;  %vm3070_vm11 = vweird.f32 %v3049_v3 }
0x33a1   :  { %vm3072_vm1 = vmor %vm3070_vm11, %vm3071_vm8 }
0x33a2   :  { %v3073_v30 = vsel %vm3072_vm1, %v4604_v19, %v3069_v8  ;;  %vm5961_vm1 = vcmask 520452  }
0x33a3   :  { %v5820_v1 = vsel %vm3075_vm0, %v3077_v24, %v3073_v30  ;;  %vm5962_vm0 = vcmask 259077  }
0x33a4   :  { %v3091_v38 = vmul.f32 %v3087_v0, %v5820_v1 }
0x33ba   :  { %v3095_v9 = vpop.permute.xlu1 %3094 }
0x33bb   :  { %v3100_v55 = vadd.f32 %v3095_v9, %v5390_v25 }
0x33bd   :  { %4605 = vtanh.f32 %v3100_v55 }
0x341d   :  { %v3988_v23 = vpop.f32.mrf.mxu1 }
0x341e   :  { %v4035_v20 = vadd.f32 %v3988_v23, %v5532_v63  ;;  %v4606_v63 = vpop.eup %4605  ;;  %v3995_v40 = vadd.f32 %v3988_v23, %v5542_v11  ;;  %v3992_v61 = vrot.slane %v3988_v23, 1 }
0x3420   :  { %v4037_v62 = vrot.slane %v4035_v20, 1  ;;  %4038 = vrot.lane.b32.xlu2 %v4035_v20, %s4633_s23  ;;  %v4230_v25 = vmul.f32 -1.442695, %v3995_v40  ;;  %v3996_v17 = vadd.f32 %v3992_v61, %v5538_v13 }
0x3422   :  { %4040 = vrot.lane.b32.xlu0 %v4037_v62, %s4633_s23  ;;  %4607 = vpow2.f32 %v4230_v25  ;;  %v4231_v58 = vmul.f32 -1.442695, %v3996_v17 }
0x3428   :  { %3096 = vrot.lane.b32.xlu2 %v3091_v38, %s4633_s23  ;;  %v4608_v5 = vpop.eup %4607 }
0x3429   :  { %v4003_v22 = vadd.f32 1.0, %v4608_v5 }
0x342b   :  { %4609 = vrcp.f32 %v4003_v22  ;;  %v4016_v43 = vand.u32 2147483648, %v4003_v22  ;;  %vm4010_vm13 = vweird.f32 %v4003_v22 }
0x342c   :  { %4611 = vpow2.f32 %v4231_v58 }
0x342d   :  { %v4017_v19 = vor.u32 1.1754944e-38, %v4016_v43 }
0x3430   :  { %3108 = vrot.lane.b32.xlu2 %v4606_v63, %s4635_s0 }
0x3438   :  { %2371 = vrot.lane.b32.xlu2 %v5431_v6, %s4635_s0  ;;  %v4610_v6 = vpop.eup %4609 }
0x3439   :  { %v4006_v60 = vmul.f32 %v4610_v6, %v4003_v22  ;;  %vm4011_vm12 = vweird.f32 %v4610_v6 }
0x343a   :  { %vm4012_vm15 = vmor %vm4010_vm13, %vm4011_vm12  ;;  %vm5963_vm12 = vcmask 521477   ;;  %vm5964_vm13 = vcmask 253952  }
0x3440   :  { %2498 = vrot.lane.b32.xlu2 %v5453_v15, %s4635_s0  ;;  %v4007_v15 = vsub.f32 1.0, %v4006_v60  ;;  %v3116_v60 = vrot.slane %v5678_v2, 7 }
0x3442   :  { %v4008_v4 = vmul.f32 %v4610_v6, %v4007_v15 }
0x3444   :  { %v4009_v50 = vadd.f32 %v4610_v6, %v4008_v4  ;;  %v3120_v4 = vmul.f32 %v3116_v60, %v5809_v28 }
0x3446   :  { %v4013_v3 = vsel %vm4012_vm15, %v4610_v6, %v4009_v50  ;;  %vm5965_vm15 = vmmov %vm5964_vm13 }
0x3448   :  { %2748 = vrot.lane.b32.xlu2 %v5569_v51, %s4635_s0  ;;  %v4612_v51 = vpop.eup %4611 }
0x3449   :  { %v4004_v26 = vadd.f32 1.0, %v4612_v51 }
0x344b   :  { %4613 = vrcp.f32 %v4004_v26  ;;  %v4031_v24 = vand.u32 2147483648, %v4004_v26  ;;  %vm4025_vm14 = vweird.f32 %v4004_v26  ;;  %v4029_v55 = vand.u32 2147483647, %v4004_v26 }
0x344d   :  { %v4032_v40 = vor.u32 1.1754944e-38, %v4031_v24  ;;  %vm4030_vm11 = vcmp.eq.f32.partialorder %v4029_v55, 8.507059e+37 }
0x3450   :  { %2876 = vrot.lane.b32.xlu2 %v5627_v21, %s4635_s0  ;;  %v4014_v21 = vand.u32 2147483647, %v4003_v22 }
0x3451   :  { %v4614_v0 = vpop.eup %4613 }
0x3452   :  { %vm4015_vm2 = vcmp.eq.f32.partialorder %v4014_v21, 8.507059e+37  ;;  %v4021_v23 = vmul.f32 %v4614_v0, %v4004_v26  ;;  %vm4026_vm9 = vweird.f32 %v4614_v0 }
0x3453   :  { %v5836_v34 = vsel %vm4015_vm2, %v4017_v19, %v4013_v3  ;;  %vm4027_vm8 = vmor %vm4025_vm14, %vm4026_vm9  ;;  %vm5966_vm2 = vcmask 257027   ;;  %v4070_v3 = vrot.slane %v5802_v18, 1 }
0x3454   :  { %v4022_v33 = vsub.f32 1.0, %v4021_v23  ;;  %vm5969_vm9 = vmmov %vm5966_vm2  ;;  %v4073_v43 = vmul.f32 %v5836_v34, %v3965_v14 }
0x3456   :  { %v4023_v48 = vmul.f32 %v4614_v0, %v4022_v33 }
0x3458   :  { %v4024_v9 = vadd.f32 %v4614_v0, %v4023_v48 }
0x345a   :  { %v4028_v38 = vsel %vm4027_vm8, %v4614_v0, %v4024_v9  ;;  %vm5971_vm8 = vcmask 260102  }
0x345b   :  { %v5847_v25 = vsel %vm4030_vm11, %v4032_v40, %v4028_v38  ;;  %vm5975_vm11 = vcmask 516352   ;;  %v4236_v38 = vld [vmem:[%s5946_s1 + $0x138] ss:$0 sm:$0xff] }
0x345c   :  { %v4059_v21 = vsub.f32 1.0, %v5847_v25 }
0x347a   :  { %v4039_v41 = vpop.permute.xlu2 %4038 }
0x347b   :  { %v4044_v57 = vmul.f32 %v4039_v41, %v5836_v34  ;;  %v4074_v41 = vmul.f32 %v4070_v3, %v5847_v25 }
0x347d   :  { %4048 = vrot.lane.b32.xlu0 %v4044_v57, %s4633_s23 }
0x3482   :  { %v3097_v8 = vpop.permute.xlu2 %3096 }
0x3483   :  { %v3101_v20 = vadd.f32 %v3097_v8, %v5393_v7 }
0x3485   :  { %4615 = vtanh.f32 %v3101_v20 }
0x348a   :  { %v5841_v62 = vpop.permute.xlu2 %3108 }
0x348b   :  { %v4616_v30 = vpop.eup %4615 }
0x348c   :  { %3110 = vrot.lane.b32.xlu0 %v4616_v30, %s4635_s0 }
0x3492   :  { %v2372_v63 = vpop.permute.xlu2 %2371 }
0x3493   :  { %2377 = vst.msk [vmem:[#allocation2] sm:$0x2] %vm335_vm3, %v2372_v63 }
0x3494   :  { %3961 = vst.msk [vmem:[#allocation2] sm:$0x2] %vm1932_vm6, %v5800_v49  ;;  %v4041_v7 = vpop.permute.xlu0 %4040  ;;  %2249 = vrot.lane.b32.xlu0 %v5404_v56, %s4635_s0 }
0x3495   :  { %v4045_v5 = vmul.f32 %v4041_v7, %v5847_v25 }
0x3497   :  { %4050 = vrot.lane.b32.xlu1 %v4045_v5, %s4633_s23 }
0x349a   :  { %v2499_v22 = vpop.permute.xlu2 %2498 }
0x349b   :  { %2503 = vst.msk [vmem:[#allocation2 + $0x8] sm:$0x4] %vm461_vm4, %v2499_v22 }
0x349c   :  { %3845 = vst.msk [vmem:[#allocation2 + $0x8] sm:$0x4] %vm1814_vm5, %v5771_v46  ;;  %2373 = vrot.lane.b32.xlu0 %v5433_v37, %s4635_s0 }
0x349f   :  { %2251 = vrot.lane.b32.xlu1 %v5402_v54, %s4635_s0 }
0x34a2   :  { %v2749_v61 = vpop.permute.xlu2 %2748 }
0x34a3   :  { %2754 = vst.msk [vmem:[#allocation2] sm:$0x10] %vm715_vm7, %v2749_v61 }
0x34a4   :  { %3604 = vst.msk [vmem:[#allocation2] sm:$0x10] %vm5961_vm1, %v5727_v27  ;;  %2622 = vrot.lane.b32.xlu0 %v5475_v44, %s4635_s0  ;;  %v3105_v44 = vsub.f32 1.0, %v5820_v1 }
0x34a7   :  { %2496 = vrot.lane.b32.xlu1 %v5455_v39, %s4635_s0 }
0x34aa   :  { %v2877_v56 = vpop.permute.xlu2 %2876 }
0x34ab   :  { %2881 = vst.msk [vmem:[#allocation2 + $0x8] sm:$0x20] %vm5962_vm0, %v2877_v56 }
0x34ac   :  { %3485 = vst.msk [vmem:[#allocation2 + $0x8] sm:$0x20] %vm5963_vm12, %v5688_v52  ;;  %2750 = vrot.lane.b32.xlu0 %v5567_v32, %s4635_s0  ;;  %v3117_v32 = vrot.slane %v5676_v59, 7 }
0x34af   :  { %2624 = vrot.lane.b32.xlu1 %v5477_v12, %s4635_s0  ;;  %v3121_v12 = vmul.f32 %v3117_v32, %v5820_v1 }
0x34b4   :  { %3000 = vrot.lane.b32.xlu0 %v5678_v2, %s4635_s0 }
0x34b7   :  { %2874 = vrot.lane.b32.xlu1 %v5625_v10, %s4635_s0 }
0x34ef   :  { %v4049_v54 = vpop.permute.xlu0 %4048 }
0x34f0   :  { %v4054_v37 = vadd.f32 %v4049_v54, %v5542_v11 }
0x34f2   :  { %4617 = vtanh.f32 %v4054_v37 }
0x34f8   :  { %v4618_v39 = vpop.eup %4617 }
0x34f9   :  { %4062 = vrot.lane.b32.xlu1 %v4618_v39, %s4635_s0 }
0x34fe   :  { %v3111_v52 = vpop.permute.xlu0 %3110 }
0x34ff   :  { %v3115_v27 = vmul.f32 %v3111_v52, %v3105_v44 }
0x3501   :  { %v3123_v46 = vadd.f32 %v3121_v12, %v3115_v27  ;;  %3002 = vrot.lane.b32.xlu1 %v5676_v59, %s4635_s0  ;;  %v3104_v59 = vsub.f32 1.0, %v5809_v28 }
0x3503   :  { %3128 = vrot.lane.b32.xlu0 %v3123_v46, %s4635_s0  ;;  %v3114_v15 = vmul.f32 %v5841_v62, %v3104_v59 }
0x3505   :  { %v3122_v51 = vadd.f32 %v3120_v4, %v3114_v15 }
0x3506   :  { %v2250_v10 = vpop.permute.xlu0 %2249 }
0x3507   :  { %2255 = vst.msk [vmem:[#allocation2] sm:$0x1] %vm5964_vm13, %v2250_v10  ;;  %vm5979_vm13 = vcmask 261127  }
0x3509   :  { %v4051_v11 = vpop.permute.xlu1 %4050 }
0x350a   :  { %v4055_v17 = vadd.f32 %v4051_v11, %v5538_v13 }
0x350c   :  { %4619 = vtanh.f32 %v4055_v17 }
0x350e   :  { %v2374_v6 = vpop.permute.xlu0 %2373 }
0x350f   :  { %2378 = vst.msk [vmem:[#allocation2 + $0x8] sm:$0x2] %vm335_vm3, %v2374_v6  ;;  %vm5967_vm3 = vcmask 519427  }
0x3510   :  { %3962 = vst.msk [vmem:[#allocation2 + $0x8] sm:$0x2] %vm1932_vm6, %v5802_v18  ;;  %vm5968_vm6 = vmmov %vm5961_vm1  ;;  %v4079_v18 = vld [vmem:[%s5946_s1 + $0x130] sm:$0xff] }
0x3511   :  { %v2252_v1 = vpop.permute.xlu1 %2251  ;;  %vm5970_vm14 = vmmov %vm5967_vm3 }
0x3512   :  { %v4620_v58 = vpop.eup %4619  ;;  %2256 = vst.msk [vmem:[#allocation2 + $0x8] sm:$0x1] %vm5965_vm15, %v2252_v1  ;;  %vm5976_vm1 = vmmov %vm5975_vm11  ;;  %vm5980_vm15 = vcmask 523527  }
0x3513   :  { %4064 = vrot.lane.b32.xlu2 %v4620_v58, %s4635_s0 }
0x3516   :  { %v2623_v13 = vpop.permute.xlu0 %2622 }
0x3517   :  { %2628 = vst.msk [vmem:[#allocation2] sm:$0x8] %vm5966_vm2, %v2623_v13  ;;  %vm5981_vm2 = vmmov %vm5979_vm13 }
0x3518   :  { %3724 = vst.msk [vmem:[#allocation2] sm:$0x8] %vm5967_vm3, %v5747_v45  ;;  %vm5982_vm3 = vmmov %vm5980_vm15 }
0x3519   :  { %v2497_v50 = vpop.permute.xlu1 %2496 }
0x351a   :  { %2502 = vst.msk [vmem:[#allocation2] sm:$0x4] %vm461_vm4, %v2497_v50  ;;  %vm5972_vm4 = vcmask 522502  }
0x351b   :  { %3844 = vst.msk [vmem:[#allocation2] sm:$0x4] %vm1814_vm5, %v5769_v42  ;;  %3126 = vrot.lane.b32.xlu2 %v3122_v51, %s4635_s0  ;;  %vm5973_vm5 = vmmov %vm5962_vm0 }
0x351c   :  { %vm5977_vm0 = vmmov %vm5971_vm8 }
0x351e   :  { %v2751_v2 = vpop.permute.xlu0 %2750 }
0x351f   :  { %2755 = vst.msk [vmem:[#allocation2 + $0x8] sm:$0x10] %vm715_vm7, %v2751_v2  ;;  %vm5974_vm7 = vmmov %vm5963_vm12 }
0x3520   :  { %3605 = vst.msk [vmem:[#allocation2 + $0x8] sm:$0x10] %vm5968_vm6, %v5725_v35  ;;  %v4058_v35 = vsub.f32 1.0, %v5836_v34  ;;  %vm5978_vm12 = vmmov %vm5972_vm4  ;;  %vm5983_vm6 = vcmask 523264  }
0x3521   :  { %v2625_v28 = vpop.permute.xlu1 %2624 }
0x3522   :  { %2629 = vst.msk [vmem:[#allocation2 + $0x8] sm:$0x8] %vm5969_vm9, %v2625_v28  ;;  %vm5984_vm9 = vmmov %vm5983_vm6 }
0x3523   :  { %3725 = vst.msk [vmem:[#allocation2 + $0x8] sm:$0x8] %vm5970_vm14, %v5749_v16  ;;  %vm4099_vm14 = vcmask 58368  }
0x3526   :  { %v3001_v45 = vpop.permute.xlu0 %3000 }
0x3527   :  { %3006 = vst.msk [vmem:[#allocation2] sm:$0x40] %vm5971_vm8, %v3001_v45 }
0x3528   :  { %3364 = vst.msk [vmem:[#allocation2] sm:$0x40] %vm5972_vm4, %v5637_v53  ;;  %vm4124_vm4 = vcmask 1024  }
0x3529   :  { %v2875_v42 = vpop.permute.xlu1 %2874 }
0x352a   :  { %2880 = vst.msk [vmem:[#allocation2] sm:$0x20] %vm5973_vm5, %v2875_v42 }
0x352b   :  { %3484 = vst.msk [vmem:[#allocation2] sm:$0x20] %vm5974_vm7, %v5690_v29 }
0x356b   :  { %v4063_v26 = vpop.permute.xlu1 %4062 }
0x356c   :  { %v4068_v16 = vmul.f32 %v4063_v26, %v4058_v35 }
0x356d   :  { %v4065_v19 = vpop.permute.xlu2 %4064 }
0x356e   :  { %v4075_v53 = vadd.f32 %v4073_v43, %v4068_v16  ;;  %v4069_v57 = vmul.f32 %v4065_v19, %v4059_v21 }
0x3570   :  { %4077 = vst.msk [vmem:[#allocation2] sm:$0x1] %vm5975_vm11, %v4075_v53  ;;  %v4076_v29 = vadd.f32 %v4074_v41, %v4069_v57 }
0x3572   :  { %4078 = vst.msk [vmem:[#allocation2 + $0x8] sm:$0x1] %vm5976_vm1, %v4076_v29 }
0x3573   :  { %v3003_v0 = vpop.permute.xlu1 %3002 }
0x3574   :  { %3007 = vst.msk [vmem:[#allocation2 + $0x8] sm:$0x40] %vm5977_vm0, %v3003_v0 }
0x3575   :  { %3365 = vst.msk [vmem:[#allocation2 + $0x8] sm:$0x40] %vm5978_vm12, %v5635_v31  ;;  %v3129_v49 = vpop.permute.xlu0 %3128  ;;  %v3127_v14 = vpop.permute.xlu2 %3126 }
0x3576   :  { %3133 = vst.msk [vmem:[#allocation2 + $0x8] sm:$0x80] %vm5979_vm13, %v3129_v49 }
0x3577   :  { %3245 = vst.msk [vmem:[#allocation2 + $0x8] sm:$0x80] %vm5980_vm15, %v5579_v36  ;;  %v4093_v36 = vlaneseq }
0x3578   :  { %3132 = vst.msk [vmem:[#allocation2] sm:$0x80] %vm5981_vm2, %v3127_v14 }
0x3579   :  { %3244 = vst.msk [vmem:[#allocation2] sm:$0x80] %vm5982_vm3, %v5577_v47  ;;  %v4094_v48 = vand.u32 127, %v4093_v36 }
0x357e   :  { %v4082_v34 = vld [vmem:[#allocation2 + $0x8] sm:$0xff] }
0x357f   :  { %v4084_v23 = vmul.f32 %v4082_v34, %v4079_v18 }
0x3580   :  { %v4081_v8 = vld [vmem:[#allocation2] sm:$0xff] }
0x3581   :  { %v4083_v31 = vmul.f32 %v4081_v8, %v4079_v18  ;;  %v4088_v20 = vsel %vm5983_vm6, %v4084_v23, 0.0 }
0x3582   :  { %4089 = vadd.xlane.f32.xlu2 %v4088_v20 }
0x3583   :  { %v4085_v33 = vsel %vm5984_vm9, %v4083_v31, 0.0 }
0x3584   :  { %4086 = vadd.xlane.f32.xlu1 %v4085_v33 }
0x35f5   :  { %v4090_v62 = vpop.xlane.xlu2 %4089 }
0x35f6   :  { %v4096_v30 = vperm.slane %v4090_v62, %v4094_v48 }
0x35f7   :  { %v4087_v9 = vpop.xlane.xlu1 %4086 }
0x35f8   :  { %v4095_v47 = vperm.slane %v4087_v9, %v4094_v48 }
0x35fa   :  { %v4097_v24 = vsel %vm215_vm10, %v4096_v30, %v4095_v47 }
0x35fb   :  { %v4100_v55 = vsel %vm4099_vm14, %v4097_v24, 0.0 }
0x35fc   :  { %4101 = vadd.xlane.f32.xlu0 %v4100_v55 }
0x366f   :  { %v4102_v63 = vpop.xlane.xlu0 %4101 }
0x3670   :  { %v4104_v40 = vadd.f32 %v4236_v38, %v4102_v63 }
0x3672   :  { %v4232_v7 = vmul.f32 -1.442695, %v4104_v40 }
0x3674   :  { %4621 = vpow2.f32 %v4232_v7 }
0x367a   :  { %v4622_v25 = vpop.eup %4621 }
0x367b   :  { %v4108_v5 = vadd.f32 1.0, %v4622_v25 }
0x367d   :  { %4623 = vrcp.f32 %v4108_v5  ;;  %v4120_v54 = vand.u32 2147483648, %v4108_v5  ;;  %v4118_v39 = vand.u32 2147483647, %v4108_v5  ;;  %vm4114_vm10 = vweird.f32 %v4108_v5 }
0x367f   :  { %v4121_v32 = vor.u32 1.1754944e-38, %v4120_v54  ;;  %vm4119_vm7 = vcmp.eq.f32.partialorder %v4118_v39, 8.507059e+37 }
0x3683   :  { %v4624_v22 = vpop.eup %4623 }
0x3684   :  { %v4110_v61 = vmul.f32 %v4624_v22, %v4108_v5  ;;  %vm4115_vm8 = vweird.f32 %v4624_v22 }
0x3685   :  { %vm4116_vm5 = vmor %vm4114_vm10, %vm4115_vm8 }
0x3686   :  { %v4111_v56 = vsub.f32 1.0, %v4110_v61 }
0x3688   :  { %v4112_v37 = vmul.f32 %v4624_v22, %v4111_v56 }
0x368a   :  { %v4113_v44 = vadd.f32 %v4624_v22, %v4112_v37 }
0x368c   :  { %v4117_v52 = vsel %vm4116_vm5, %v4624_v22, %v4113_v44 }
0x368d   :  { %v4122_v12 = vsel %vm4119_vm7, %v4121_v32, %v4117_v52 }
0x368e   :  { %4125 = vst.msk [vmem:[%s5948_s2] sm:$0x3] %vm4124_vm4, %v4122_v12 }

</bundles_post_ra>
